<compile_context>
chip_gen: v5e
topology: v5e:2x2
jax: 0.10.0
libtpu: 0.0.40
codegen_flags: <defaults>
</compile_context>

<pallas_src>
import functools

import jax
import jax.numpy as jnp
from jax.experimental import pallas as pl
from jax.experimental.pallas import tpu as pltpu

IMAGE_SIZE = 28
HIDDEN_SIZE = 512
NUM_CLASSES = 10
IN_FEATURES = IMAGE_SIZE * IMAGE_SIZE  # 784
K_PAD = 896    # 7 * 128  (lane-aligned contraction dim for layer 1)
N_PAD = 128    # lane-dense logits (only first NUM_CLASSES columns are real)
LEAKY_ALPHA = 0.01
BN_EPS = 1e-5


def _round_up(n, m):
    return (n + m - 1) // m * m


def _leaky_relu(x, alpha):
    return jnp.where(x >= 0, x, alpha * x)


def mlp_kernel(x_ref,
               w1_ref, b1_ref,
               w2_ref, b2_ref,
               w3_ref, b3_ref,
               o_ref):
    """Fused 3-layer MLP forward for one batch tile.

    Weights arrive with eval-mode BatchNorm already folded in (scale folded
    into the weight columns, shift folded into the bias), so the kernel is
    three MXU matmuls + bias + LeakyReLU.  Dropout is the identity at
    inference time.
    Matmul operands are bf16; accumulation and elementwise math are f32.
    """
    x = x_ref[...]  # bf16 (tb, K_PAD)

    # Layer 1: Linear(+folded BN) + LeakyReLU      (Dropout = identity)
    h = jnp.dot(x, w1_ref[...], preferred_element_type=jnp.float32) + b1_ref[...]
    h = _leaky_relu(h, LEAKY_ALPHA)
    # TODO(synk): training-mode Dropout(p=0.2) / batch-statistic BatchNorm not
    # implemented; this kernel reproduces eval-mode forward semantics.

    # Layer 2: Linear(+folded BN) + LeakyReLU      (Dropout = identity)
    h = jnp.dot(h.astype(jnp.bfloat16), w2_ref[...],
                preferred_element_type=jnp.float32) + b2_ref[...]
    h = _leaky_relu(h, LEAKY_ALPHA)

    # Layer 3: Linear -> logits (lane-padded to N_PAD)
    out = jnp.dot(h.astype(jnp.bfloat16), w3_ref[...],
                  preferred_element_type=jnp.float32) + b3_ref[...]
    o_ref[...] = out.astype(o_ref.dtype)


@functools.partial(jax.jit, static_argnames=("batch_tile",))
def ffnn_forward(x_nchw, params, batch_tile=256):
    """x_nchw: (B, 1, 28, 28) float32  ->  logits (B, 10) float32."""
    B = x_nchw.shape[0]
    x2d = x_nchw.reshape(B, IN_FEATURES).astype(jnp.float32)  # SvegaFlatten

    (w1, b1, g1, be1, m1, v1,
     w2, b2, g2, be2, m2, v2,
     w3, b3) = params

    # ---- Fold eval-mode BatchNorm into the Linear layers (wrapper math). ----
    s1 = g1 / jnp.sqrt(v1 + BN_EPS)
    t1 = be1 - m1 * s1
    s2 = g2 / jnp.sqrt(v2 + BN_EPS)
    t2 = be2 - m2 * s2
    w1f = w1 * s1[None, :]
    b1f = b1 * s1 + t1
    w2f = w2 * s2[None, :]
    b2f = b2 * s2 + t2

    # ---- Pad for MXU/lane alignment; cast matmul operands to bf16. ----------
    tb = min(batch_tile, _round_up(B, 128))       # MXU-row aligned batch tile
    Bpad = _round_up(B, tb)
    grid = (Bpad // tb,)

    x_p = jnp.pad(x2d, ((0, Bpad - B), (0, K_PAD - IN_FEATURES))).astype(jnp.bfloat16)
    w1_p = jnp.pad(w1f, ((0, K_PAD - IN_FEATURES), (0, 0))).astype(jnp.bfloat16)
    w2_p = w2f.astype(jnp.bfloat16)
    w3_p = jnp.pad(w3, ((0, 0), (0, N_PAD - NUM_CLASSES))).astype(jnp.bfloat16)

    b1_p = b1f.reshape(1, HIDDEN_SIZE).astype(jnp.float32)
    b2_p = b2f.reshape(1, HIDDEN_SIZE).astype(jnp.float32)
    b3_p = jnp.pad(b3, (0, N_PAD - NUM_CLASSES)).reshape(1, N_PAD).astype(jnp.float32)

    rep = lambda i: (0, 0)  # weights/biases: same full block every grid step

    out = pl.pallas_call(
        mlp_kernel,
        out_shape=jax.ShapeDtypeStruct((Bpad, N_PAD), jnp.float32),
        grid_spec=pltpu.PrefetchScalarGridSpec(
            num_scalar_prefetch=0,
            grid=grid,
            in_specs=[
                pl.BlockSpec((tb, K_PAD), lambda i: (i, 0)),            # x tile
                pl.BlockSpec((K_PAD, HIDDEN_SIZE), rep),                # w1 (BN-folded)
                pl.BlockSpec((1, HIDDEN_SIZE), rep),                    # b1 (BN-folded)
                pl.BlockSpec((HIDDEN_SIZE, HIDDEN_SIZE), rep),          # w2 (BN-folded)
                pl.BlockSpec((1, HIDDEN_SIZE), rep),                    # b2 (BN-folded)
                pl.BlockSpec((HIDDEN_SIZE, N_PAD), rep),                # w3 (lane-padded)
                pl.BlockSpec((1, N_PAD), rep),                          # b3 (lane-padded)
            ],
            out_specs=pl.BlockSpec((tb, N_PAD), lambda i: (i, 0)),
        ),
        compiler_params=pltpu.CompilerParams(
            dimension_semantics=("parallel",),
        ),
    )(x_p, w1_p, b1_p, w2_p, b2_p, w3_p, b3_p)

    return out[:B, :NUM_CLASSES]


def init_params(key):
    """Deterministic synthetic parameters matching the module's shapes."""
    ks = jax.random.split(key, 8)
    w1 = jax.random.normal(ks[0], (IN_FEATURES, HIDDEN_SIZE), jnp.float32) * 0.02
    b1 = jnp.zeros((HIDDEN_SIZE,), jnp.float32)
    g1 = jnp.ones((HIDDEN_SIZE,), jnp.float32) + 0.1 * jax.random.normal(ks[1], (HIDDEN_SIZE,))
    be1 = 0.1 * jax.random.normal(ks[2], (HIDDEN_SIZE,))
    m1 = 0.05 * jax.random.normal(ks[3], (HIDDEN_SIZE,))
    v1 = jnp.ones((HIDDEN_SIZE,), jnp.float32) * 0.9

    w2 = jax.random.normal(ks[4], (HIDDEN_SIZE, HIDDEN_SIZE), jnp.float32) * 0.02
    b2 = jnp.zeros((HIDDEN_SIZE,), jnp.float32)
    g2 = jnp.ones((HIDDEN_SIZE,), jnp.float32) + 0.1 * jax.random.normal(ks[5], (HIDDEN_SIZE,))
    be2 = 0.1 * jax.random.normal(ks[6], (HIDDEN_SIZE,))
    m2 = 0.05 * jax.random.normal(ks[7], (HIDDEN_SIZE,))
    v2 = jnp.ones((HIDDEN_SIZE,), jnp.float32) * 1.1

    w3 = jax.random.normal(jax.random.PRNGKey(123), (HIDDEN_SIZE, NUM_CLASSES), jnp.float32) * 0.02
    b3 = jnp.zeros((NUM_CLASSES,), jnp.float32)

    return (w1, b1, g1, be1, m1, v1,
            w2, b2, g2, be2, m2, v2,
            w3, b3)


def reference_forward(x_nchw, params):
    """Pure-JAX f32 reference (same eval-mode semantics) for a sanity check."""
    (w1, b1, g1, be1, m1, v1, w2, b2, g2, be2, m2, v2, w3, b3) = params
    x = x_nchw.reshape(x_nchw.shape[0], -1)
    h = x @ w1 + b1
    h = (h - m1) / jnp.sqrt(v1 + BN_EPS) * g1 + be1
    h = jnp.where(h >= 0, h, LEAKY_ALPHA * h)
    h = h @ w2 + b2
    h = (h - m2) / jnp.sqrt(v2 + BN_EPS) * g2 + be2
    h = jnp.where(h >= 0, h, LEAKY_ALPHA * h)
    return h @ w3 + b3


if __name__ == "__main__":
    key = jax.random.PRNGKey(0)
    k_x, k_p = jax.random.split(key)

    B = 32  # small demo batch; wrapper pads up to the 128-row MXU-aligned tile
    x = jax.random.normal(k_x, (B, 1, IMAGE_SIZE, IMAGE_SIZE), jnp.float32)
    params = init_params(k_p)

    out = ffnn_forward(x, params)
    out = jax.block_until_ready(out)

    ref = reference_forward(x, params)
    assert out.shape == (B, NUM_CLASSES), out.shape
    # bf16 matmul operands (f32 accumulation) -> relaxed tolerance vs f32 ref.
    err = float(jnp.max(jnp.abs(out - ref)))
    assert jnp.allclose(out, ref, atol=2e-2, rtol=2e-2), err

    print("KERNEL_OK")
</pallas_src>

<mosaic_0001>
module attributes {stable_mosaic.version = 11 : i64} {
  func.func @mlp_kernel(%arg0: i32, %arg1: memref<128x896xbf16, #tpu.memory_space<vmem>>, %arg2: memref<896x512xbf16, #tpu.memory_space<vmem>>, %arg3: memref<1x512xf32, #tpu.memory_space<vmem>>, %arg4: memref<512x512xbf16, #tpu.memory_space<vmem>>, %arg5: memref<1x512xf32, #tpu.memory_space<vmem>>, %arg6: memref<512x128xbf16, #tpu.memory_space<vmem>>, %arg7: memref<1x128xf32, #tpu.memory_space<vmem>>, %arg8: memref<128x128xf32, #tpu.memory_space<vmem>>) attributes {dimension_semantics = [#tpu.dimension_semantics<parallel>], iteration_bounds = array<i64: 1>, scalar_prefetch = 0 : i64, scratch_operands = 0 : i64, tpu.core_type = #tpu.core_type<tc>, window_params = [{transform_indices = @transform_0, window_bounds = array<i64: 128, 896>}, {pipeline_mode = #tpu.pipeline_mode<synchronous>, transform_indices = @transform_1, window_bounds = array<i64: 896, 512>}, {pipeline_mode = #tpu.pipeline_mode<synchronous>, transform_indices = @transform_2, window_bounds = array<i64: 1, 512>}, {pipeline_mode = #tpu.pipeline_mode<synchronous>, transform_indices = @transform_3, window_bounds = array<i64: 512, 512>}, {pipeline_mode = #tpu.pipeline_mode<synchronous>, transform_indices = @transform_4, window_bounds = array<i64: 1, 512>}, {pipeline_mode = #tpu.pipeline_mode<synchronous>, transform_indices = @transform_5, window_bounds = array<i64: 512, 128>}, {pipeline_mode = #tpu.pipeline_mode<synchronous>, transform_indices = @transform_6, window_bounds = array<i64: 1, 128>}, {transform_indices = @transform_7, window_bounds = array<i64: 128, 128>}]} {
    %c0 = arith.constant 0 : index
    %c0_0 = arith.constant 0 : index
    %0 = vector.load %arg1[%c0, %c0_0] : memref<128x896xbf16, #tpu.memory_space<vmem>>, vector<128x896xbf16>
    %c0_1 = arith.constant 0 : index
    %c0_2 = arith.constant 0 : index
    %1 = vector.load %arg2[%c0_1, %c0_2] : memref<896x512xbf16, #tpu.memory_space<vmem>>, vector<896x512xbf16>
    %cst = arith.constant dense<0.000000e+00> : vector<128x512xf32>
    %2 = tpu.matmul %0, %1, %cst {dimension_numbers = #tpu.dot_dimension_numbers<[1], [0], [0], [1], [0, 0, 1, 1], [], []>} : vector<128x896xbf16>, vector<896x512xbf16>, vector<128x512xf32> -> vector<128x512xf32>
    %c0_3 = arith.constant 0 : index
    %c0_4 = arith.constant 0 : index
    %3 = vector.load %arg3[%c0_3, %c0_4] : memref<1x512xf32, #tpu.memory_space<vmem>>, vector<1x512xf32>
    %4 = vector.broadcast %3 : vector<1x512xf32> to vector<128x512xf32>
    %5 = arith.addf %2, %4 : vector<128x512xf32>
    %cst_5 = arith.constant 0.000000e+00 : f32
    %6 = vector.broadcast %cst_5 : f32 to vector<128x512xf32>
    %7 = arith.cmpf oge, %5, %6 : vector<128x512xf32>
    %cst_6 = arith.constant 0.00999999977 : f32
    %8 = vector.broadcast %cst_6 : f32 to vector<128x512xf32>
    %9 = arith.mulf %8, %5 : vector<128x512xf32>
    %10 = arith.select %7, %5, %9 : vector<128x512xi1>, vector<128x512xf32>
    %11 = arith.truncf %10 : vector<128x512xf32> to vector<128x512xbf16>
    %c0_7 = arith.constant 0 : index
    %c0_8 = arith.constant 0 : index
    %12 = vector.load %arg4[%c0_7, %c0_8] : memref<512x512xbf16, #tpu.memory_space<vmem>>, vector<512x512xbf16>
    %cst_9 = arith.constant dense<0.000000e+00> : vector<128x512xf32>
    %13 = tpu.matmul %11, %12, %cst_9 {dimension_numbers = #tpu.dot_dimension_numbers<[1], [0], [0], [1], [0, 0, 1, 1], [], []>} : vector<128x512xbf16>, vector<512x512xbf16>, vector<128x512xf32> -> vector<128x512xf32>
    %c0_10 = arith.constant 0 : index
    %c0_11 = arith.constant 0 : index
    %14 = vector.load %arg5[%c0_10, %c0_11] : memref<1x512xf32, #tpu.memory_space<vmem>>, vector<1x512xf32>
    %15 = vector.broadcast %14 : vector<1x512xf32> to vector<128x512xf32>
    %16 = arith.addf %13, %15 : vector<128x512xf32>
    %cst_12 = arith.constant 0.000000e+00 : f32
    %17 = vector.broadcast %cst_12 : f32 to vector<128x512xf32>
    %18 = arith.cmpf oge, %16, %17 : vector<128x512xf32>
    %cst_13 = arith.constant 0.00999999977 : f32
    %19 = vector.broadcast %cst_13 : f32 to vector<128x512xf32>
    %20 = arith.mulf %19, %16 : vector<128x512xf32>
    %21 = arith.select %18, %16, %20 : vector<128x512xi1>, vector<128x512xf32>
    %22 = arith.truncf %21 : vector<128x512xf32> to vector<128x512xbf16>
    %c0_14 = arith.constant 0 : index
    %c0_15 = arith.constant 0 : index
    %23 = vector.load %arg6[%c0_14, %c0_15] : memref<512x128xbf16, #tpu.memory_space<vmem>>, vector<512x128xbf16>
    %cst_16 = arith.constant dense<0.000000e+00> : vector<128x128xf32>
    %24 = tpu.matmul %22, %23, %cst_16 {dimension_numbers = #tpu.dot_dimension_numbers<[1], [0], [0], [1], [0, 0, 1, 1], [], []>} : vector<128x512xbf16>, vector<512x128xbf16>, vector<128x128xf32> -> vector<128x128xf32>
    %c0_17 = arith.constant 0 : index
    %c0_18 = arith.constant 0 : index
    %25 = vector.load %arg7[%c0_17, %c0_18] : memref<1x128xf32, #tpu.memory_space<vmem>>, vector<1x128xf32>
    %26 = vector.broadcast %25 : vector<1x128xf32> to vector<128x128xf32>
    %27 = arith.addf %24, %26 : vector<128x128xf32>
    %c0_19 = arith.constant 0 : index
    %c0_20 = arith.constant 0 : index
    %28 = vector.load %arg8[%c0_19, %c0_20] : memref<128x128xf32, #tpu.memory_space<vmem>>, vector<128x128xf32>
    tpu.vector_store %arg8[%c0_19, %c0_20], %27 {strides = array<i32>} : memref<128x128xf32, #tpu.memory_space<vmem>>, vector<128x128xf32>,
    return
  }
  func.func @transform_0(%arg0: i32) -> (i32, i32) {
    %c0_i32 = arith.constant 0 : i32
    %c0_i32_0 = arith.constant 0 : i32
    return %arg0, %c0_i32 : i32, i32
  }
  func.func @transform_1(%arg0: i32) -> (i32, i32) {
    %c0_i32 = arith.constant 0 : i32
    %c0_i32_0 = arith.constant 0 : i32
    %c0_i32_1 = arith.constant 0 : i32
    return %c0_i32, %c0_i32_0 : i32, i32
  }
  func.func @transform_2(%arg0: i32) -> (i32, i32) {
    %c0_i32 = arith.constant 0 : i32
    %c0_i32_0 = arith.constant 0 : i32
    %c0_i32_1 = arith.constant 0 : i32
    return %c0_i32, %c0_i32_0 : i32, i32
  }
  func.func @transform_3(%arg0: i32) -> (i32, i32) {
    %c0_i32 = arith.constant 0 : i32
    %c0_i32_0 = arith.constant 0 : i32
    %c0_i32_1 = arith.constant 0 : i32
    return %c0_i32, %c0_i32_0 : i32, i32
  }
  func.func @transform_4(%arg0: i32) -> (i32, i32) {
    %c0_i32 = arith.constant 0 : i32
    %c0_i32_0 = arith.constant 0 : i32
    %c0_i32_1 = arith.constant 0 : i32
    return %c0_i32, %c0_i32_0 : i32, i32
  }
  func.func @transform_5(%arg0: i32) -> (i32, i32) {
    %c0_i32 = arith.constant 0 : i32
    %c0_i32_0 = arith.constant 0 : i32
    %c0_i32_1 = arith.constant 0 : i32
    return %c0_i32, %c0_i32_0 : i32, i32
  }
  func.func @transform_6(%arg0: i32) -> (i32, i32) {
    %c0_i32 = arith.constant 0 : i32
    %c0_i32_0 = arith.constant 0 : i32
    %c0_i32_1 = arith.constant 0 : i32
    return %c0_i32, %c0_i32_0 : i32, i32
  }
  func.func @transform_7(%arg0: i32) -> (i32, i32) {
    %c0_i32 = arith.constant 0 : i32
    %c0_i32_0 = arith.constant 0 : i32
    return %arg0, %c0_i32 : i32, i32
  }
}

</mosaic_0001>

<bundles_post_ra>
// kernel: ffnn_forward.1
= control target key start
LH: loop header
LB: loop body
LE: loop exit
PB: predicated region body
PF: predicated region fallthrough
CT: control target
= control target key end

     0   :  { %s11695_s1 = inlined_call_operand.vmem [shape: bf16[896,512], index: 1, kind: input, shape index: {}]   ;;  %s11696_s0 = inlined_call_operand.vmem [shape: bf16[128,896], index: 0, kind: input, shape index: {}]   ;;  %s11697_s2 = inlined_call_operand.vmem [shape: f32[1,512], index: 2, kind: input, shape index: {}]   ;;  %s11698_s3 = inlined_call_operand.vmem [shape: bf16[512,512], index: 3, kind: input, shape index: {}]   ;;  %s11699_s4 = inlined_call_operand.vmem [shape: f32[1,512], index: 4, kind: input, shape index: {}]   ;;  %s11700_s5 = inlined_call_operand.vmem [shape: bf16[512,128], index: 5, kind: input, shape index: {}]   ;;  %s11701_s6 = inlined_call_operand.vmem [shape: f32[1,128], index: 6, kind: input, shape index: {}]   ;;  %s11702_s7 = inlined_call_operand.vmem [shape: f32[128,128], index: 7, kind: output, shape index: {}]  }
   0x1   :  { %v5928_v0 = vld [vmem:[%s11695_s1 + $0xe0] sm:$0xf]  ;;  %v7436_v1 = vld [vmem:[%s11695_s1 + $0xec] sm:$0xf0] }
   0x2   :  { %v6056_v2 = vld [vmem:[%s11695_s1 + $0x1e0] sm:$0xf]  ;;  %v5929_v3 = vor.u32 %v7436_v1, %v5928_v0  ;;  %v7468_v4 = vld [vmem:[%s11695_s1 + $0x1ec] sm:$0xf0] }
   0x3   :  { %v6184_v5 = vld [vmem:[%s11695_s1 + $0x2e0] sm:$0xf]  ;;  %v7500_v6 = vld [vmem:[%s11695_s1 + $0x2ec] sm:$0xf0]  ;;  %v6057_v7 = vor.u32 %v7468_v4, %v6056_v2 }
   0x4   :  { %v6185_v8 = vor.u32 %v7500_v6, %v6184_v5  ;;  %v6312_v9 = vld [vmem:[%s11695_s1 + $0x3e0] sm:$0xf]  ;;  %v7532_v10 = vld [vmem:[%s11695_s1 + $0x3ec] sm:$0xf0]  ;;  %1732 = vmatpush.bf16.msra.mxu0 %v5929_v3 }
   0x5   :  { %v5912_v11 = vld [vmem:[%s11695_s1 + $0xc0] sm:$0xf]  ;;  %v6313_v12 = vor.u32 %v7532_v10, %v6312_v9  ;;  %v7432_v13 = vld [vmem:[%s11695_s1 + $0xcc] sm:$0xf0]  ;;  %1781 = vmatpush.bf16.msra.mxu1 %v6057_v7 }
   0x6   :  { %v6040_v14 = vld [vmem:[%s11695_s1 + $0x1c0] sm:$0xf]  ;;  %v7464_v15 = vld [vmem:[%s11695_s1 + $0x1cc] sm:$0xf0]  ;;  %1830 = vmatpush.bf16.msra.mxu2 %v6185_v8  ;;  %v5913_v16 = vor.u32 %v7432_v13, %v5912_v11 }
   0x7   :  { %v6041_v17 = vor.u32 %v7464_v15, %v6040_v14  ;;  %v6168_v18 = vld [vmem:[%s11695_s1 + $0x2c0] sm:$0xf]  ;;  %v7496_v19 = vld [vmem:[%s11695_s1 + $0x2cc] sm:$0xf0]  ;;  %1879 = vmatpush.bf16.msra.mxu3 %v6313_v12 }
   0x8   :  { %v6296_v20 = vld [vmem:[%s11695_s1 + $0x3c0] sm:$0xf]  ;;  %v6169_v21 = vor.u32 %v7496_v19, %v6168_v18  ;;  %v7528_v22 = vld [vmem:[%s11695_s1 + $0x3cc] sm:$0xf0]  ;;  %1733 = vmatpush.bf16.msra.mxu0 %v5913_v16 }
   0x9   :  { %v5896_v23 = vld [vmem:[%s11695_s1 + $0xa0] sm:$0xf]  ;;  %v7428_v24 = vld [vmem:[%s11695_s1 + $0xac] sm:$0xf0]  ;;  %v6297_v25 = vor.u32 %v7528_v22, %v6296_v20  ;;  %1782 = vmatpush.bf16.msra.mxu1 %v6041_v17 }
   0xa   :  { %v6024_v26 = vld [vmem:[%s11695_s1 + $0x1a0] sm:$0xf]  ;;  %v7460_v27 = vld [vmem:[%s11695_s1 + $0x1ac] sm:$0xf0]  ;;  %v5897_v29 = vor.u32 %v7428_v24, %v5896_v23  ;;  %1831 = vmatpush.bf16.msra.mxu2 %v6169_v21 }
   0xb   :  { %v6152_v28 = vld [vmem:[%s11695_s1 + $0x2a0] sm:$0xf]  ;;  %v7492_v30 = vld [vmem:[%s11695_s1 + $0x2ac] sm:$0xf0]  ;;  %v6025_v33 = vor.u32 %v7460_v27, %v6024_v26  ;;  %1880 = vmatpush.bf16.msra.mxu3 %v6297_v25 }
   0xc   :  { %v6280_v31 = vld [vmem:[%s11695_s1 + $0x3a0] sm:$0xf]  ;;  %v7524_v32 = vld [vmem:[%s11695_s1 + $0x3ac] sm:$0xf0]  ;;  %v6153_v34 = vor.u32 %v7492_v30, %v6152_v28  ;;  %1734 = vmatpush.bf16.msra.mxu0 %v5897_v29  ;;  %v7353_v29 = vld [vmem:[%s11696_s0 + $0x18] sm:$0xf0] }
   0xd   :  { %v5880_v35 = vld [vmem:[%s11695_s1 + $0x80] sm:$0xf]  ;;  %v7424_v36 = vld [vmem:[%s11695_s1 + $0x8c] sm:$0xf0]  ;;  %v6281_v38 = vor.u32 %v7524_v32, %v6280_v31  ;;  %1783 = vmatpush.bf16.msra.mxu1 %v6025_v33  ;;  %v7350_v30 = vld [vmem:[%s11696_s0 + $0x4] sm:$0xf] }
   0xe   :  { %v6008_v37 = vld [vmem:[%s11695_s1 + $0x180] sm:$0xf]  ;;  %v7456_v39 = vld [vmem:[%s11695_s1 + $0x18c] sm:$0xf0]  ;;  %v5881_v44 = vor.u32 %v7424_v36, %v5880_v35  ;;  %1832 = vmatpush.bf16.msra.mxu2 %v6153_v34  ;;  %v5600_v35 = vld [vmem:[%s11696_s0 + $0x8] sm:$0xf] }
   0xf   :  { %v6136_v40 = vld [vmem:[%s11695_s1 + $0x280] sm:$0xf]  ;;  %v7488_v41 = vld [vmem:[%s11695_s1 + $0x28c] sm:$0xf0]  ;;  %v6009_v45 = vor.u32 %v7456_v39, %v6008_v37  ;;  %1881 = vmatpush.bf16.msra.mxu3 %v6281_v38  ;;  %v7434_v36 = vld [vmem:[%s11695_s1 + $0xe4] sm:$0xf] }
  0x10   :  { %v6264_v42 = vld [vmem:[%s11695_s1 + $0x380] sm:$0xf]  ;;  %v7520_v43 = vld [vmem:[%s11695_s1 + $0x38c] sm:$0xf0]  ;;  %v6137_v46 = vor.u32 %v7488_v41, %v6136_v40  ;;  %1735 = vmatpush.bf16.msra.mxu0 %v5881_v44  ;;  %v5930_v37 = vld [vmem:[%s11695_s1 + $0xf0] sm:$0xf0] }
  0x11   :  { %v5864_v47 = vld [vmem:[%s11695_s1 + $0x60] sm:$0xf]  ;;  %v7420_v48 = vld [vmem:[%s11695_s1 + $0x6c] sm:$0xf0]  ;;  %v6265_v50 = vor.u32 %v7520_v43, %v6264_v42  ;;  %1784 = vmatpush.bf16.msra.mxu1 %v6009_v45  ;;  %v7354_v40 = vld [vmem:[%s11696_s0 + $0x20] sm:$0xf0] }
  0x12   :  { %v5992_v49 = vld [vmem:[%s11695_s1 + $0x160] sm:$0xf]  ;;  %v7452_v51 = vld [vmem:[%s11695_s1 + $0x16c] sm:$0xf0]  ;;  %v5865_v56 = vor.u32 %v7420_v48, %v5864_v47  ;;  %1833 = vmatpush.bf16.msra.mxu2 %v6137_v46  ;;  %v7351_v41 = vld [vmem:[%s11696_s0 + $0xc] sm:$0xf] }
  0x13   :  { %v6120_v52 = vld [vmem:[%s11695_s1 + $0x260] sm:$0xf]  ;;  %v7484_v53 = vld [vmem:[%s11695_s1 + $0x26c] sm:$0xf0]  ;;  %v5993_v57 = vor.u32 %v7452_v51, %v5992_v49  ;;  %1882 = vmatpush.bf16.msra.mxu3 %v6265_v50  ;;  %v5602_v42 = vld [vmem:[%s11696_s0 + $0x24] sm:$0xf0]  ;;  %v5933_v49 = vor.u32 %v7434_v36, %v5930_v37 }
  0x14   :  { %v6248_v54 = vld [vmem:[%s11695_s1 + $0x360] sm:$0xf]  ;;  %v7516_v55 = vld [vmem:[%s11695_s1 + $0x36c] sm:$0xf0]  ;;  %v6121_v58 = vor.u32 %v7484_v53, %v6120_v52  ;;  %1736 = vmatpush.bf16.msra.mxu0 %v5865_v56  ;;  %v5914_v56 = vld [vmem:[%s11695_s1 + $0xd0] sm:$0xf0] }
  0x15   :  { %v5848_v59 = vld [vmem:[%s11695_s1 + $0x40] sm:$0xf]  ;;  %v7416_v60 = vld [vmem:[%s11695_s1 + $0x4c] sm:$0xf0]  ;;  %v6249_v62 = vor.u32 %v7516_v55, %v6248_v54  ;;  %1785 = vmatpush.bf16.msra.mxu1 %v5993_v57  ;;  %v8084_v54 = vor.u32 %v7354_v40, %v5600_v35  ;;  %v7430_v55 = vld [vmem:[%s11695_s1 + $0xc4] sm:$0xf]  ;;  %v8092_v57 = vor.u32 %v7351_v41, %v5602_v42 }
  0x16   :  { %v5976_v61 = vld [vmem:[%s11695_s1 + $0x140] sm:$0xf]  ;;  %v7448_v63 = vld [vmem:[%s11695_s1 + $0x14c] sm:$0xf0]  ;;  %v5849_v4 = vor.u32 %v7416_v60, %v5848_v59  ;;  %1834 = vmatpush.bf16.msra.mxu2 %v6121_v58  ;;  %v7367_v41 = vld [vmem:[%s11696_s0 + $0x88] sm:$0xf0] }
  0x17   :  { %v6104_v0 = vld [vmem:[%s11695_s1 + $0x240] sm:$0xf]  ;;  %v7480_v1 = vld [vmem:[%s11695_s1 + $0x24c] sm:$0xf0]  ;;  %v5977_v5 = vor.u32 %v7448_v63, %v5976_v61  ;;  %1883 = vmatpush.bf16.msra.mxu3 %v6249_v62  ;;  %v5917_v63 = vor.u32 %v7430_v55, %v5914_v56  ;;  %v7364_v42 = vld [vmem:[%s11696_s0 + $0x74] sm:$0xf] }
  0x18   :  { %v6232_v2 = vld [vmem:[%s11695_s1 + $0x340] sm:$0xf]  ;;  %v7512_v3 = vld [vmem:[%s11695_s1 + $0x34c] sm:$0xf0]  ;;  %v6105_v6 = vor.u32 %v7480_v1, %v6104_v0  ;;  %1737 = vmatpush.bf16.msra.mxu0 %v5849_v4 }
  0x19   :  { %v5832_v7 = vld [vmem:[%s11695_s1 + $0x20] sm:$0xf]  ;;  %v7412_v8 = vld [vmem:[%s11695_s1 + $0x2c] sm:$0xf0]  ;;  %v6233_v10 = vor.u32 %v7512_v3, %v6232_v2  ;;  %1786 = vmatpush.bf16.msra.mxu1 %v5977_v5 }
  0x1a   :  { %v5960_v9 = vld [vmem:[%s11695_s1 + $0x120] sm:$0xf]  ;;  %v7444_v11 = vld [vmem:[%s11695_s1 + $0x12c] sm:$0xf0]  ;;  %v5833_v17 = vor.u32 %v7412_v8, %v5832_v7  ;;  %1835 = vmatpush.bf16.msra.mxu2 %v6105_v6 }
  0x1b   :  { %v6088_v12 = vld [vmem:[%s11695_s1 + $0x220] sm:$0xf]  ;;  %v7476_v13 = vld [vmem:[%s11695_s1 + $0x22c] sm:$0xf0]  ;;  %v5961_v21 = vor.u32 %v7444_v11, %v5960_v9  ;;  %1884 = vmatpush.bf16.msra.mxu3 %v6233_v10  ;;  %v7426_v9 = vld [vmem:[%s11695_s1 + $0xa4] sm:$0xf] }
  0x1c   :  { %v6216_v14 = vld [vmem:[%s11695_s1 + $0x320] sm:$0xf]  ;;  %v7508_v15 = vld [vmem:[%s11695_s1 + $0x32c] sm:$0xf0]  ;;  %v6089_v22 = vor.u32 %v7476_v13, %v6088_v12  ;;  %1738 = vmatpush.bf16.msra.mxu0 %v5833_v17  ;;  %v5898_v10 = vld [vmem:[%s11695_s1 + $0xb0] sm:$0xf0] }
  0x1d   :  { %v5816_v16 = vld [vmem:[%s11695_s1] sm:$0xf]  ;;  %v7408_v18 = vld [vmem:[%s11695_s1 + $0xc] sm:$0xf0]  ;;  %v6217_v26 = vor.u32 %v7508_v15, %v6216_v14  ;;  %1787 = vmatpush.bf16.msra.mxu1 %v5961_v21  ;;  %v5901_v11 = vor.u32 %v7426_v9, %v5898_v10  ;;  %v7360_v17 = vld [vmem:[%s11696_s0 + $0x50] sm:$0xf0] }
  0x1e   :  { %v5944_v19 = vld [vmem:[%s11695_s1 + $0x100] sm:$0xf]  ;;  %v7440_v20 = vld [vmem:[%s11695_s1 + $0x10c] sm:$0xf0]  ;;  %v5817_v34 = vor.u32 %v7408_v18, %v5816_v16  ;;  %1836 = vmatpush.bf16.msra.mxu2 %v6089_v22  ;;  %v5620_v16 = vld [vmem:[%s11696_s0 + $0x38] sm:$0xf] }
  0x1f   :  { %v6072_v23 = vld [vmem:[%s11695_s1 + $0x200] sm:$0xf]  ;;  %v7472_v24 = vld [vmem:[%s11695_s1 + $0x20c] sm:$0xf0]  ;;  %v5945_v38 = vor.u32 %v7440_v20, %v5944_v19  ;;  %1885 = vmatpush.bf16.msra.mxu3 %v6217_v26  ;;  %v7357_v18 = vld [vmem:[%s11696_s0 + $0x3c] sm:$0xf] }
  0x20   :  { %v6200_v25 = vld [vmem:[%s11695_s1 + $0x300] sm:$0xf]  ;;  %v7504_v27 = vld [vmem:[%s11695_s1 + $0x30c] sm:$0xf0]  ;;  %v6073_v39 = vor.u32 %v7472_v24, %v6072_v23  ;;  %1739 = vmatpush.bf16.msra.mxu0 %v5817_v34  ;;  %v5622_v19 = vld [vmem:[%s11696_s0 + $0x54] sm:$0xf0]  ;;  %v8158_v24 = vor.u32 %v7360_v17, %v5620_v16 }
  0x21   :  { %v5592_v28 = vld [vmem:[%s11696_s0] sm:$0xf]  ;;  %v7628_v33 = vld [vmem:[%s11695_s1 + $0x6ec] sm:$0xf0]  ;;  %v6201_v43 = vor.u32 %v7504_v27, %v6200_v25  ;;  %1788 = vmatpush.bf16.msra.mxu1 %v5945_v38  ;;  %v7361_v21 = vld [vmem:[%s11696_s0 + $0x58] sm:$0xf0]  ;;  %v8160_v25 = vor.u32 %v7357_v18, %v5622_v19 }
  0x22   :  { %v5594_v31 = vld [vmem:[%s11696_s0 + $0x1c] sm:$0xf0]  ;;  %v7564_v46 = vld [vmem:[%s11695_s1 + $0x4ec] sm:$0xf0]  ;;  %v8071_v48 = vor.u32 %v7353_v29, %v5592_v28  ;;  %1837 = vmatpush.bf16.msra.mxu2 %v6073_v39  ;;  %v7358_v22 = vld [vmem:[%s11696_s0 + $0x44] sm:$0xf] }
  0x23   :  { %v6696_v32 = vld [vmem:[%s11695_s1 + $0x6e0] sm:$0xf]  ;;  %v7596_v50 = vld [vmem:[%s11695_s1 + $0x5ec] sm:$0xf0]  ;;  %v8082_v53 = vor.u32 %v7350_v30, %v5594_v31  ;;  %1886 = vmatpush.bf16.msra.mxu3 %v6201_v43  ;;  %11801 = vst [vmem:[#allocation4_spill] sm:$0xff] %v8158_v24 }
  0x24   :  { %v6697_v44 = vor.u32 %v7628_v33, %v6696_v32  ;;  %v6440_v45 = vld [vmem:[%s11695_s1 + $0x4e0] sm:$0xf]  ;;  %11799 = vst [vmem:[#allocation2_spill] sm:$0xff] %v8071_v48  ;;  %v7624_v52 = vld [vmem:[%s11695_s1 + $0x6cc] sm:$0xf0]  ;;  %1740 = vmatmul.bf16.vlgmr.msra.gmra.mxu0 %v8071_v48 }
  0x25   :  { %v6568_v47 = vld [vmem:[%s11695_s1 + $0x5e0] sm:$0xf]  ;;  %11800 = vst [vmem:[#allocation3_spill] sm:$0xff] %v8082_v53  ;;  %v6441_v58 = vor.u32 %v7564_v46, %v6440_v45  ;;  %v7560_v62 = vld [vmem:[%s11695_s1 + $0x4cc] sm:$0xf0]  ;;  %1789 = vmatmul.bf16.vlgmr.msra.gmra.mxu1 %v8082_v53  ;;  %1838 = vmatmul.bf16.vlgmr.msra.gmra.mxu2 %v8084_v54 }
  0x26   :  { %v6680_v51 = vld [vmem:[%s11695_s1 + $0x6c0] sm:$0xf]  ;;  %2026 = vmatpush.bf16.msrb.mxu2 %v6697_v44  ;;  %v6569_v59 = vor.u32 %v7596_v50, %v6568_v47  ;;  %v7592_v1 = vld [vmem:[%s11695_s1 + $0x5cc] sm:$0xf0]  ;;  %1887 = vmatmul.bf16.vlgmr.msra.gmra.mxu3 %v8092_v57  ;;  %11802 = vst [vmem:[#allocation5_spill] sm:$0xff] %v8160_v25 }
  0x27   :  { %v6681_v60 = vor.u32 %v7624_v52, %v6680_v51  ;;  %v6424_v61 = vld [vmem:[%s11695_s1 + $0x4c0] sm:$0xf]  ;;  %2075 = vmatpush.bf16.msrb.mxu3 %v5933_v49  ;;  %1928 = vmatpush.bf16.msrb.mxu0 %v6441_v58  ;;  %v7620_v4 = vld [vmem:[%s11695_s1 + $0x6ac] sm:$0xf0]  ;;  %v7422_v33 = vld [vmem:[%s11695_s1 + $0x84] sm:$0xf] }
  0x28   :  { %v6552_v0 = vld [vmem:[%s11695_s1 + $0x5c0] sm:$0xf]  ;;  %v6425_v2 = vor.u32 %v7560_v62, %v6424_v61  ;;  %1977 = vmatpush.bf16.msrb.mxu1 %v6569_v59  ;;  %v7556_v8 = vld [vmem:[%s11695_s1 + $0x4ac] sm:$0xf0]  ;;  %v5882_v34 = vld [vmem:[%s11695_s1 + $0x90] sm:$0xf0] }
  0x29   :  { %v6664_v3 = vld [vmem:[%s11695_s1 + $0x6a0] sm:$0xf]  ;;  %v6553_v6 = vor.u32 %v7592_v1, %v6552_v0  ;;  %v7588_v13 = vld [vmem:[%s11695_s1 + $0x5ac] sm:$0xf0]  ;;  %v5885_v36 = vor.u32 %v7422_v33, %v5882_v34  ;;  %v5656_v44 = vld [vmem:[%s11696_s0 + $0x78] sm:$0xf] }
  0x2a   :  { %v6408_v5 = vld [vmem:[%s11695_s1 + $0x4a0] sm:$0xf]  ;;  %2027 = vmatpush.bf16.msrb.mxu2 %v6681_v60  ;;  %v6665_v7 = vor.u32 %v7620_v4, %v6664_v3  ;;  %v7616_v29 = vld [vmem:[%s11695_s1 + $0x68c] sm:$0xf0]  ;;  %v7368_v45 = vld [vmem:[%s11696_s0 + $0x90] sm:$0xf0] }
  0x2b   :  { %2076 = vmatpush.bf16.msrb.mxu3 %v5917_v63  ;;  %v6536_v12 = vld [vmem:[%s11695_s1 + $0x5a0] sm:$0xf]  ;;  %1929 = vmatpush.bf16.msrb.mxu0 %v6425_v2  ;;  %v6409_v14 = vor.u32 %v7556_v8, %v6408_v5  ;;  %v7552_v32 = vld [vmem:[%s11695_s1 + $0x48c] sm:$0xf0]  ;;  %v7365_v46 = vld [vmem:[%s11696_s0 + $0x7c] sm:$0xf]  ;;  %v8222_v51 = vor.u32 %v7368_v45, %v5656_v44 }
  0x2c   :  { %1978 = vmatpush.bf16.msrb.mxu1 %v6553_v6  ;;  %v6537_v15 = vor.u32 %v7588_v13, %v6536_v12  ;;  %v5628_v20 = vld [vmem:[%s11696_s0 + $0x40] sm:$0xf]  ;;  %v7584_v38 = vld [vmem:[%s11695_s1 + $0x58c] sm:$0xf0]  ;;  %v5658_v47 = vld [vmem:[%s11696_s0 + $0x94] sm:$0xf0] }
  0x2d   :  { %v5630_v23 = vld [vmem:[%s11696_s0 + $0x5c] sm:$0xf0]  ;;  %v8162_v26 = vor.u32 %v7361_v21, %v5628_v20  ;;  %v5648_v40 = vld [vmem:[%s11696_s0 + $0x70] sm:$0xf]  ;;  %v8224_v52 = vor.u32 %v7365_v46, %v5658_v47  ;;  %v7418_v61 = vld [vmem:[%s11695_s1 + $0x64] sm:$0xf] }
  0x2e   :  { %2028 = vmatpush.bf16.msrb.mxu2 %v6665_v7  ;;  %v8164_v27 = vor.u32 %v7358_v22, %v5630_v23  ;;  %v6648_v28 = vld [vmem:[%s11695_s1 + $0x680] sm:$0xf]  ;;  %v5650_v43 = vld [vmem:[%s11696_s0 + $0x8c] sm:$0xf0]  ;;  %v8218_v49 = vor.u32 %v7367_v41, %v5648_v40  ;;  %v5866_v62 = vld [vmem:[%s11695_s1 + $0x70] sm:$0xf0] }
  0x2f   :  { %2077 = vmatpush.bf16.msrb.mxu3 %v5901_v11  ;;  %1930 = vmatpush.bf16.msrb.mxu0 %v6409_v14  ;;  %v6392_v30 = vld [vmem:[%s11695_s1 + $0x480] sm:$0xf]  ;;  %v6649_v31 = vor.u32 %v7616_v29, %v6648_v28  ;;  %v8220_v50 = vor.u32 %v7364_v42, %v5650_v43  ;;  %v7612_v56 = vld [vmem:[%s11695_s1 + $0x66c] sm:$0xf0]  ;;  %v5869_v0 = vor.u32 %v7418_v61, %v5866_v62  ;;  %v5676_v4 = vld [vmem:[%s11696_s0 + $0xa8] sm:$0xf] }
  0x30   :  { %1979 = vmatpush.bf16.msrb.mxu1 %v6537_v15  ;;  %v6393_v35 = vor.u32 %v7552_v32, %v6392_v30  ;;  %v6520_v37 = vld [vmem:[%s11695_s1 + $0x580] sm:$0xf]  ;;  %11803 = vst [vmem:[#allocation6_spill] sm:$0xff] %v8218_v49  ;;  %v7548_v60 = vld [vmem:[%s11695_s1 + $0x46c] sm:$0xf0] }
  0x31   :  { %v6521_v39 = vor.u32 %v7584_v38, %v6520_v37  ;;  %11804 = vst [vmem:[#allocation7_spill] sm:$0xff] %v8220_v50  ;;  %v6632_v55 = vld [vmem:[%s11695_s1 + $0x660] sm:$0xf]  ;;  %v7580_v2 = vld [vmem:[%s11695_s1 + $0x56c] sm:$0xf0] }
  0x32   :  { %2029 = vmatpush.bf16.msrb.mxu2 %v6649_v31  ;;  %v6376_v58 = vld [vmem:[%s11695_s1 + $0x460] sm:$0xf]  ;;  %v6633_v59 = vor.u32 %v7612_v56, %v6632_v55  ;;  %v7374_v5 = vld [vmem:[%s11696_s0 + $0xc0] sm:$0xf0]  ;;  %v7371_v6 = vld [vmem:[%s11696_s0 + $0xac] sm:$0xf] }
  0x33   :  { %1931 = vmatpush.bf16.msrb.mxu0 %v6393_v35  ;;  %2078 = vmatpush.bf16.msrb.mxu3 %v5885_v36  ;;  %v6377_v63 = vor.u32 %v7548_v60, %v6376_v58  ;;  %v6504_v1 = vld [vmem:[%s11695_s1 + $0x560] sm:$0xf]  ;;  %v5678_v7 = vld [vmem:[%s11696_s0 + $0xc4] sm:$0xf0]  ;;  %v5684_v8 = vld [vmem:[%s11696_s0 + $0xb0] sm:$0xf]  ;;  %v8278_v12 = vor.u32 %v7374_v5, %v5676_v4 }
  0x34   :  { %1745 = vmatmul.bf16.gmra.mxu0 %v8158_v24  ;;  %1980 = vmatpush.bf16.msrb.mxu1 %v6521_v39  ;;  %v6505_v3 = vor.u32 %v7580_v2, %v6504_v1  ;;  %v7375_v9 = vld [vmem:[%s11696_s0 + $0xc8] sm:$0xf0]  ;;  %v7372_v10 = vld [vmem:[%s11696_s0 + $0xb4] sm:$0xf]  ;;  %v5686_v11 = vld [vmem:[%s11696_s0 + $0xcc] sm:$0xf0]  ;;  %v8280_v13 = vor.u32 %v7371_v6, %v5678_v7 }
  0x35   :  { %1794 = vmatmul.bf16.gmra.mxu1 %v8160_v25  ;;  %1843 = vmatmul.bf16.gmra.mxu2 %v8162_v26  ;;  %11805 = vst [vmem:[#allocation8_spill] sm:$0xff] %v8278_v12  ;;  %v8282_v14 = vor.u32 %v7375_v9, %v5684_v8  ;;  %v8284_v15 = vor.u32 %v7372_v10, %v5686_v11  ;;  %v6616_v16 = vld [vmem:[%s11695_s1 + $0x640] sm:$0xf]  ;;  %v7608_v17 = vld [vmem:[%s11695_s1 + $0x64c] sm:$0xf0] }
  0x36   :  { %1892 = vmatmul.bf16.gmra.mxu3 %v8164_v27  ;;  %2030 = vmatpush.bf16.msrb.mxu2 %v6633_v59  ;;  %11806 = vst [vmem:[#allocation9_spill] sm:$0xff] %v8280_v13  ;;  %v6360_v18 = vld [vmem:[%s11695_s1 + $0x440] sm:$0xf]  ;;  %v6617_v19 = vor.u32 %v7608_v17, %v6616_v16  ;;  %v7544_v20 = vld [vmem:[%s11695_s1 + $0x44c] sm:$0xf0] }
  0x37   :  { %1932 = vmatpush.bf16.msrb.mxu0 %v6377_v63  ;;  %2079 = vmatpush.bf16.msrb.mxu3 %v5869_v0  ;;  %v7414_v21 = vld [vmem:[%s11695_s1 + $0x44] sm:$0xf]  ;;  %v5850_v22 = vld [vmem:[%s11695_s1 + $0x50] sm:$0xf0]  ;;  %v6361_v23 = vor.u32 %v7544_v20, %v6360_v18  ;;  %v6488_v29 = vld [vmem:[%s11695_s1 + $0x540] sm:$0xf] }
  0x38   :  { %1981 = vmatpush.bf16.msrb.mxu1 %v6505_v3  ;;  %v5853_v28 = vor.u32 %v7414_v21, %v5850_v22  ;;  %v7576_v30 = vld [vmem:[%s11695_s1 + $0x54c] sm:$0xf0]  ;;  %v5704_v32 = vld [vmem:[%s11696_s0 + $0xe0] sm:$0xf]  ;;  %v7381_v33 = vld [vmem:[%s11696_s0 + $0xf8] sm:$0xf0] }
  0x39   :  { %v6489_v31 = vor.u32 %v7576_v30, %v6488_v29  ;;  %v7378_v34 = vld [vmem:[%s11696_s0 + $0xe4] sm:$0xf]  ;;  %v5706_v35 = vld [vmem:[%s11696_s0 + $0xfc] sm:$0xf0]  ;;  %v5712_v36 = vld [vmem:[%s11696_s0 + $0xe8] sm:$0xf]  ;;  %v8338_v40 = vor.u32 %v7381_v33, %v5704_v32 }
  0x3a   :  { %2031 = vmatpush.bf16.msrb.mxu2 %v6617_v19  ;;  %v7382_v37 = vld [vmem:[%s11696_s0 + $0x100] sm:$0xf0]  ;;  %v7379_v38 = vld [vmem:[%s11696_s0 + $0xec] sm:$0xf]  ;;  %v5714_v39 = vld [vmem:[%s11696_s0 + $0x104] sm:$0xf0]  ;;  %v8340_v41 = vor.u32 %v7378_v34, %v5706_v35 }
  0x3b   :  { %1933 = vmatpush.bf16.msrb.mxu0 %v6361_v23  ;;  %2080 = vmatpush.bf16.msrb.mxu3 %v5853_v28  ;;  %11807 = vst [vmem:[#allocation10_spill] sm:$0xff] %v8338_v40  ;;  %v8342_v42 = vor.u32 %v7382_v37, %v5712_v36  ;;  %v8344_v43 = vor.u32 %v7379_v38, %v5714_v39  ;;  %v6600_v44 = vld [vmem:[%s11695_s1 + $0x620] sm:$0xf]  ;;  %v7604_v45 = vld [vmem:[%s11695_s1 + $0x62c] sm:$0xf0] }
  0x3c   :  { %1982 = vmatpush.bf16.msrb.mxu1 %v6489_v31  ;;  %11808 = vst [vmem:[#allocation11_spill] sm:$0xff] %v8340_v41  ;;  %v6344_v46 = vld [vmem:[%s11695_s1 + $0x420] sm:$0xf]  ;;  %v6601_v47 = vor.u32 %v7604_v45, %v6600_v44  ;;  %v7540_v55 = vld [vmem:[%s11695_s1 + $0x42c] sm:$0xf0] }
  0x3d   :  { %v7410_v56 = vld [vmem:[%s11695_s1 + $0x24] sm:$0xf]  ;;  %v5834_v58 = vld [vmem:[%s11695_s1 + $0x30] sm:$0xf0]  ;;  %v6345_v59 = vor.u32 %v7540_v55, %v6344_v46  ;;  %v6472_v61 = vld [vmem:[%s11695_s1 + $0x520] sm:$0xf] }
  0x3e   :  { %v5837_v60 = vor.u32 %v7410_v56, %v5834_v58  ;;  %v7572_v62 = vld [vmem:[%s11695_s1 + $0x52c] sm:$0xf0]  ;;  %2032 = vmatpush.bf16.msrb.mxu2 %v6601_v47  ;;  %v5732_v0 = vld [vmem:[%s11696_s0 + $0x118] sm:$0xf]  ;;  %v7388_v1 = vld [vmem:[%s11696_s0 + $0x130] sm:$0xf0] }
  0x3f   :  { %v6473_v63 = vor.u32 %v7572_v62, %v6472_v61  ;;  %1934 = vmatpush.bf16.msrb.mxu0 %v6345_v59  ;;  %v7385_v2 = vld [vmem:[%s11696_s0 + $0x11c] sm:$0xf]  ;;  %v5734_v3 = vld [vmem:[%s11696_s0 + $0x134] sm:$0xf0]  ;;  %v5740_v4 = vld [vmem:[%s11696_s0 + $0x120] sm:$0xf]  ;;  %v8398_v8 = vor.u32 %v7388_v1, %v5732_v0 }
  0x40   :  { %2081 = vmatpush.bf16.msrb.mxu3 %v5837_v60  ;;  %v7389_v5 = vld [vmem:[%s11696_s0 + $0x138] sm:$0xf0]  ;;  %v7386_v6 = vld [vmem:[%s11696_s0 + $0x124] sm:$0xf]  ;;  %v5742_v7 = vld [vmem:[%s11696_s0 + $0x13c] sm:$0xf0]  ;;  %v8400_v9 = vor.u32 %v7385_v2, %v5734_v3 }
  0x41   :  { %1983 = vmatpush.bf16.msrb.mxu1 %v6473_v63  ;;  %11809 = vst [vmem:[#allocation12_spill] sm:$0xff] %v8398_v8  ;;  %v8402_v10 = vor.u32 %v7389_v5, %v5740_v4  ;;  %v8404_v11 = vor.u32 %v7386_v6, %v5742_v7  ;;  %v6584_v16 = vld [vmem:[%s11695_s1 + $0x600] sm:$0xf]  ;;  %v7600_v17 = vld [vmem:[%s11695_s1 + $0x60c] sm:$0xf0] }
  0x42   :  { %11810 = vst [vmem:[#allocation13_spill] sm:$0xff] %v8400_v9  ;;  %v6328_v18 = vld [vmem:[%s11695_s1 + $0x400] sm:$0xf]  ;;  %v6585_v19 = vor.u32 %v7600_v17, %v6584_v16  ;;  %v7536_v20 = vld [vmem:[%s11695_s1 + $0x40c] sm:$0xf0] }
  0x43   :  { %v7406_v21 = vld [vmem:[%s11695_s1 + $0x4] sm:$0xf]  ;;  %v5818_v22 = vld [vmem:[%s11695_s1 + $0x10] sm:$0xf0]  ;;  %v6329_v23 = vor.u32 %v7536_v20, %v6328_v18  ;;  %v6456_v29 = vld [vmem:[%s11695_s1 + $0x500] sm:$0xf] }
  0x44   :  { %1750 = vmatmul.bf16.gmra.mxu0 %v8218_v49  ;;  %v5821_v28 = vor.u32 %v7406_v21, %v5818_v22  ;;  %v7568_v30 = vld [vmem:[%s11695_s1 + $0x50c] sm:$0xf0]  ;;  %2033 = vmatpush.bf16.msrb.mxu2 %v6585_v19  ;;  %v7395_v33 = vld [vmem:[%s11696_s0 + $0x168] sm:$0xf0]  ;;  %v7392_v34 = vld [vmem:[%s11696_s0 + $0x154] sm:$0xf] }
  0x45   :  { %1799 = vmatmul.bf16.gmra.mxu1 %v8220_v50  ;;  %1848 = vmatmul.bf16.gmra.mxu2 %v8222_v51  ;;  %v6457_v31 = vor.u32 %v7568_v30, %v6456_v29  ;;  %v5760_v32 = vld [vmem:[%s11696_s0 + $0x150] sm:$0xf]  ;;  %v5768_v36 = vld [vmem:[%s11696_s0 + $0x158] sm:$0xf]  ;;  %v7396_v37 = vld [vmem:[%s11696_s0 + $0x170] sm:$0xf0] }
  0x46   :  { %1897 = vmatmul.bf16.gmra.mxu3 %v8224_v52  ;;  %1935 = vmatpush.bf16.msrb.mxu0 %v6329_v23  ;;  %v5762_v35 = vld [vmem:[%s11696_s0 + $0x16c] sm:$0xf0]  ;;  %v7393_v38 = vld [vmem:[%s11696_s0 + $0x15c] sm:$0xf]  ;;  %v5770_v39 = vld [vmem:[%s11696_s0 + $0x174] sm:$0xf0]  ;;  %v8458_v44 = vor.u32 %v7395_v33, %v5760_v32  ;;  %v8462_v46 = vor.u32 %v7396_v37, %v5768_v36 }
  0x47   :  { %2082 = vmatpush.bf16.msrb.mxu3 %v5821_v28  ;;  %1984 = vmatpush.bf16.msrb.mxu1 %v6457_v31  ;;  %v8460_v45 = vor.u32 %v7392_v34, %v5762_v35  ;;  %v8464_v47 = vor.u32 %v7393_v38, %v5770_v39  ;;  %v7530_v55 = vld [vmem:[%s11695_s1 + $0x3e4] sm:$0xf]  ;;  %v6314_v56 = vld [vmem:[%s11695_s1 + $0x3f0] sm:$0xf0]  ;;  %v5788_v4 = vld [vmem:[%s11696_s0 + $0x188] sm:$0xf] }
  0x48   :  { %11811 = vst [vmem:[#allocation14_spill] sm:$0xff] %v8458_v44  ;;  %v7466_v58 = vld [vmem:[%s11695_s1 + $0x1e4] sm:$0xf]  ;;  %v6317_v59 = vor.u32 %v7530_v55, %v6314_v56  ;;  %v6058_v60 = vld [vmem:[%s11695_s1 + $0x1f0] sm:$0xf0] }
  0x49   :  { %11812 = vst [vmem:[#allocation15_spill] sm:$0xff] %v8460_v45  ;;  %v7562_v61 = vld [vmem:[%s11695_s1 + $0x4e4] sm:$0xf]  ;;  %v6442_v62 = vld [vmem:[%s11695_s1 + $0x4f0] sm:$0xf0]  ;;  %v6061_v63 = vor.u32 %v7466_v58, %v6058_v60 }
  0x4a   :  { %11813 = vst [vmem:[#allocation16_spill] sm:$0xff] %v8462_v46  ;;  %v6445_v0 = vor.u32 %v7562_v61, %v6442_v62  ;;  %2222 = vmatpush.bf16.msra.mxu2 %v6317_v59  ;;  %v7498_v1 = vld [vmem:[%s11695_s1 + $0x2e4] sm:$0xf]  ;;  %v6186_v2 = vld [vmem:[%s11695_s1 + $0x2f0] sm:$0xf0] }
  0x4b   :  { %11814 = vst [vmem:[#allocation17_spill] sm:$0xff] %v8464_v47  ;;  %2124 = vmatpush.bf16.msra.mxu0 %v6061_v63  ;;  %v6189_v3 = vor.u32 %v7498_v1, %v6186_v2  ;;  %v7402_v5 = vld [vmem:[%s11696_s0 + $0x1a0] sm:$0xf0]  ;;  %v7399_v6 = vld [vmem:[%s11696_s0 + $0x18c] sm:$0xf] }
  0x4c   :  { %2271 = vmatpush.bf16.msra.mxu3 %v6445_v0  ;;  %v5790_v7 = vld [vmem:[%s11696_s0 + $0x1a4] sm:$0xf0]  ;;  %v5796_v16 = vld [vmem:[%s11696_s0 + $0x190] sm:$0xf]  ;;  %v7403_v17 = vld [vmem:[%s11696_s0 + $0x1a8] sm:$0xf0]  ;;  %v8518_v20 = vor.u32 %v7402_v5, %v5788_v4 }
  0x4d   :  { %2173 = vmatpush.bf16.msra.mxu1 %v6189_v3  ;;  %v7400_v18 = vld [vmem:[%s11696_s0 + $0x194] sm:$0xf]  ;;  %v5798_v19 = vld [vmem:[%s11696_s0 + $0x1ac] sm:$0xf0]  ;;  %v8520_v21 = vor.u32 %v7399_v6, %v5790_v7  ;;  %v8522_v22 = vor.u32 %v7403_v17, %v5796_v16  ;;  %v7526_v28 = vld [vmem:[%s11695_s1 + $0x3c4] sm:$0xf] }
  0x4e   :  { %v8524_v23 = vor.u32 %v7400_v18, %v5798_v19  ;;  %v6298_v29 = vld [vmem:[%s11695_s1 + $0x3d0] sm:$0xf0]  ;;  %v7462_v30 = vld [vmem:[%s11695_s1 + $0x1c4] sm:$0xf]  ;;  %v314_v37 = vld [vmem:[%s11697_s2] sm:$0xf] }
  0x4f   :  { %11815 = vst [vmem:[#allocation18_spill] sm:$0xff] %v8520_v21  ;;  %v6301_v31 = vor.u32 %v7526_v28, %v6298_v29  ;;  %v6042_v32 = vld [vmem:[%s11695_s1 + $0x1d0] sm:$0xf0]  ;;  %v7558_v33 = vld [vmem:[%s11695_s1 + $0x4c4] sm:$0xf]  ;;  %v8557_v55 = vperm.slane %v314_v37, 0 }
  0x50   :  { %11816 = vst [vmem:[#allocation19_spill] sm:$0xff] %v8522_v22  ;;  %v6426_v34 = vld [vmem:[%s11695_s1 + $0x4d0] sm:$0xf0]  ;;  %v6045_v35 = vor.u32 %v7462_v30, %v6042_v32  ;;  %v7494_v38 = vld [vmem:[%s11695_s1 + $0x2c4] sm:$0xf] }
  0x51   :  { %11817 = vst [vmem:[#allocation20_spill] sm:$0xff] %v8524_v23  ;;  %v6429_v36 = vor.u32 %v7558_v33, %v6426_v34  ;;  %2223 = vmatpush.bf16.msra.mxu2 %v6301_v31  ;;  %v6170_v39 = vld [vmem:[%s11695_s1 + $0x2d0] sm:$0xf0]  ;;  %v5608_v58 = vld [vmem:[%s11696_s0 + $0x10] sm:$0xf] }
  0x52   :  { %2125 = vmatpush.bf16.msra.mxu0 %v6045_v35  ;;  %v6173_v56 = vor.u32 %v7494_v38, %v6170_v39  ;;  %v7355_v59 = vld [vmem:[%s11696_s0 + $0x28] sm:$0xf0]  ;;  %v7352_v60 = vld [vmem:[%s11696_s0 + $0x14] sm:$0xf]  ;;  %v5610_v61 = vld [vmem:[%s11696_s0 + $0x2c] sm:$0xf0] }
  0x53   :  { %2272 = vmatpush.bf16.msra.mxu3 %v6429_v36  ;;  %v5616_v62 = vld [vmem:[%s11696_s0 + $0x18] sm:$0xf]  ;;  %v7356_v63 = vld [vmem:[%s11696_s0 + $0x30] sm:$0xf0]  ;;  %v8577_v0 = vor.u32 %v7355_v59, %v5608_v58  ;;  %v8579_v2 = vor.u32 %v7352_v60, %v5610_v61  ;;  %v7522_v7 = vld [vmem:[%s11695_s1 + $0x3a4] sm:$0xf] }
  0x54   :  { %1755 = vmatmul.bf16.gmra.mxu0 %v8278_v12  ;;  %2174 = vmatpush.bf16.msra.mxu1 %v6173_v56  ;;  %v8581_v3 = vor.u32 %v7356_v63, %v5616_v62  ;;  %v6282_v16 = vld [vmem:[%s11695_s1 + $0x3b0] sm:$0xf0]  ;;  %v7458_v17 = vld [vmem:[%s11695_s1 + $0x1a4] sm:$0xf]  ;;  %v5636_v60 = vld [vmem:[%s11696_s0 + $0x48] sm:$0xf] }
  0x55   :  { %1804 = vmatmul.bf16.gmra.mxu1 %v8280_v13  ;;  %1853 = vmatmul.bf16.gmra.mxu2 %v8282_v14  ;;  %11818 = vst [vmem:[#allocation21_spill] sm:$0xff] %v8577_v0  ;;  %v6285_v18 = vor.u32 %v7522_v7, %v6282_v16  ;;  %v6026_v19 = vld [vmem:[%s11695_s1 + $0x1b0] sm:$0xf0]  ;;  %v7554_v28 = vld [vmem:[%s11695_s1 + $0x4a4] sm:$0xf] }
  0x56   :  { %1902 = vmatmul.bf16.gmra.mxu3 %v8284_v15  ;;  %11819 = vst [vmem:[#allocation22_spill] sm:$0xff] %v8579_v2  ;;  %v6410_v29 = vld [vmem:[%s11695_s1 + $0x4b0] sm:$0xf0]  ;;  %v6029_v31 = vor.u32 %v7458_v17, %v6026_v19  ;;  %v7490_v39 = vld [vmem:[%s11695_s1 + $0x2a4] sm:$0xf] }
  0x57   :  { %11820 = vst [vmem:[#allocation23_spill] sm:$0xff] %v8581_v3  ;;  %v6413_v32 = vor.u32 %v7554_v28, %v6410_v29  ;;  %2224 = vmatpush.bf16.msra.mxu2 %v6285_v18  ;;  %v6154_v56 = vld [vmem:[%s11695_s1 + $0x2b0] sm:$0xf0]  ;;  %v7362_v61 = vld [vmem:[%s11696_s0 + $0x60] sm:$0xf0] }
  0x58   :  { %2126 = vmatpush.bf16.msra.mxu0 %v6029_v31  ;;  %v6157_v59 = vor.u32 %v7490_v39, %v6154_v56  ;;  %v7359_v62 = vld [vmem:[%s11696_s0 + $0x4c] sm:$0xf]  ;;  %v5638_v63 = vld [vmem:[%s11696_s0 + $0x64] sm:$0xf0]  ;;  %v6394_v39 = vld [vmem:[%s11695_s1 + $0x490] sm:$0xf0] }
  0x59   :  { %2273 = vmatpush.bf16.msra.mxu3 %v6413_v32  ;;  %v8635_v18 = vor.u32 %v7359_v62, %v5638_v63  ;;  %v7518_v32 = vld [vmem:[%s11695_s1 + $0x384] sm:$0xf] }
  0x5a   :  { %2175 = vmatpush.bf16.msra.mxu1 %v6157_v59 }
  0x5b   :  { %11821 = vst [vmem:[#allocation24_spill] sm:$0xff] %v8635_v18 }
  0x64   :  { %1760 = vmatmul.bf16.gmra.mxu0 %v8338_v40 }
  0x65   :  { %1809 = vmatmul.bf16.gmra.mxu1 %v8340_v41  ;;  %1858 = vmatmul.bf16.gmra.mxu2 %v8342_v42 }
  0x66   :  { %1907 = vmatmul.bf16.gmra.mxu3 %v8344_v43 }
  0x74   :  { %1765 = vmatmul.bf16.gmra.mxu0 %v8398_v8 }
  0x75   :  { %1814 = vmatmul.bf16.gmra.mxu1 %v8400_v9  ;;  %1863 = vmatmul.bf16.gmra.mxu2 %v8402_v10 }
  0x76   :  { %1912 = vmatmul.bf16.gmra.mxu3 %v8404_v11 }
  0x84   :  { %1770 = vmatmul.bf16.gmra.mxu0 %v8458_v44 }
  0x85   :  { %1819 = vmatmul.bf16.gmra.mxu1 %v8460_v45  ;;  %1868 = vmatmul.bf16.gmra.mxu2 %v8462_v46 }
  0x86   :  { %1917 = vmatmul.bf16.gmra.mxu3 %v8464_v47 }
  0x94   :  { %1775 = vmatmul.bf16.gmra.mxu0 %v8518_v20 }
  0x95   :  { %1824 = vmatmul.bf16.gmra.mxu1 %v8520_v21  ;;  %1873 = vmatmul.bf16.gmra.mxu2 %v8522_v22 }
  0x96   :  { %1922 = vmatmul.bf16.gmra.mxu3 %v8524_v23 }
  0xa1   :  { %v1741_v1 = vpop.f32.mrf.mxu0 }
  0xa2   :  { %v1742_v4 = vadd.f32 %v1741_v1, %v8557_v55  ;;  %v1790_v5 = vpop.f32.mrf.mxu1  ;;  %v5644_v1 = vld [vmem:[%s11696_s0 + $0x50] sm:$0xf] }
  0xa4   :  { %v1791_v6 = vadd.f32 %v1790_v5, %v1742_v4  ;;  %1936 = vmatmul.bf16.vlgmr.msrb.gmra.mxu0 %v8577_v0  ;;  %v7363_v4 = vld [vmem:[%s11696_s0 + $0x68] sm:$0xf0] }
  0xa5   :  { %1985 = vmatmul.bf16.vlgmr.msrb.gmra.mxu1 %v8579_v2  ;;  %2034 = vmatmul.bf16.vlgmr.msrb.gmra.mxu2 %v8581_v3  ;;  %v8637_v19 = vor.u32 %v7363_v4, %v5644_v1 }
  0xa6   :  { %2083 = vmatmul.bf16.vlgmr.msrb.gmra.mxu3 %v8071_v48 }
  0xa7   :  { %11822 = vst [vmem:[#allocation25_spill] sm:$0xff] %v8637_v19 }
  0xa8   :  { %v1839_v30 = vpop.f32.mrf.mxu2 }
  0xa9   :  { %v1840_v33 = vadd.f32 %v1839_v30, %v1791_v6  ;;  %v1888_v34 = vpop.f32.mrf.mxu3  ;;  %v1743_v35 = vpop.f32.mrf.mxu0  ;;  %v8633_v6 = vor.u32 %v7362_v61, %v5636_v60 }
  0xaa   :  { %v1744_v36 = vadd.f32 %v1743_v35, %v8557_v55  ;;  %v1792_v37 = vpop.f32.mrf.mxu1 }
  0xab   :  { %v8607_v38 = vadd.f32 %v1888_v34, %v1840_v33  ;;  %v6266_v33 = vld [vmem:[%s11695_s1 + $0x390] sm:$0xf0]  ;;  %v7454_v34 = vld [vmem:[%s11695_s1 + $0x184] sm:$0xf] }
  0xac   :  { %v1793_v58 = vadd.f32 %v1792_v37, %v1744_v36  ;;  %v6269_v35 = vor.u32 %v7518_v32, %v6266_v33  ;;  %v6010_v36 = vld [vmem:[%s11695_s1 + $0x190] sm:$0xf0]  ;;  %v7550_v37 = vld [vmem:[%s11695_s1 + $0x484] sm:$0xf]  ;;  %v5666_v32 = vld [vmem:[%s11696_s0 + $0x9c] sm:$0xf0] }
  0xad   :  { %v6397_v59 = vor.u32 %v7550_v37, %v6394_v39  ;;  %v5672_v33 = vld [vmem:[%s11696_s0 + $0x88] sm:$0xf] }
  0xae   :  { %2225 = vmatpush.bf16.msra.mxu2 %v6269_v35 }
  0xaf   :  { %2274 = vmatpush.bf16.msra.mxu3 %v6397_v59 }
  0xb0   :  { %v1841_v5 = vpop.f32.mrf.mxu2 }
  0xb1   :  { %v1842_v7 = vadd.f32 %v1841_v5, %v1793_v58  ;;  %v1890_v16 = vpop.f32.mrf.mxu3  ;;  %v1746_v17 = vpop.f32.mrf.mxu0  ;;  %v6013_v58 = vor.u32 %v7454_v34, %v6010_v36  ;;  %v7486_v5 = vld [vmem:[%s11695_s1 + $0x284] sm:$0xf] }
  0xb2   :  { %v1747_v28 = vadd.f32 %v1746_v17, %v8557_v55  ;;  %v1795_v29 = vpop.f32.mrf.mxu1  ;;  %v7370_v34 = vld [vmem:[%s11696_s0 + $0xa0] sm:$0xf0] }
  0xb3   :  { %v8640_v30 = vadd.f32 %v1890_v16, %v1842_v7  ;;  %2127 = vmatpush.bf16.msra.mxu0 %v6013_v58  ;;  %v6138_v7 = vld [vmem:[%s11695_s1 + $0x290] sm:$0xf0]  ;;  %v8695_v59 = vor.u32 %v7370_v34, %v5672_v33 }
  0xb4   :  { %v1796_v31 = vadd.f32 %v1795_v29, %v1747_v28  ;;  %1941 = vmatmul.bf16.gmra.mxu0 %v8633_v6  ;;  %v6141_v17 = vor.u32 %v7486_v5, %v6138_v7  ;;  %v5664_v28 = vld [vmem:[%s11696_s0 + $0x80] sm:$0xf]  ;;  %v7369_v29 = vld [vmem:[%s11696_s0 + $0x98] sm:$0xf0]  ;;  %v6250_v5 = vld [vmem:[%s11695_s1 + $0x370] sm:$0xf0] }
  0xb5   :  { %1990 = vmatmul.bf16.gmra.mxu1 %v8635_v18  ;;  %2039 = vmatmul.bf16.gmra.mxu2 %v8637_v19  ;;  %v8691_v36 = vor.u32 %v7369_v29, %v5664_v28  ;;  %11824 = vst [vmem:[#allocation27_spill] sm:$0xff] %v8695_v59  ;;  %v7450_v7 = vld [vmem:[%s11695_s1 + $0x164] sm:$0xf]  ;;  %v6378_v29 = vld [vmem:[%s11695_s1 + $0x470] sm:$0xf0] }
  0xb6   :  { %2088 = vmatmul.bf16.gmra.mxu3 %v8158_v24  ;;  %2176 = vmatpush.bf16.msra.mxu1 %v6141_v17  ;;  %v5994_v17 = vld [vmem:[%s11695_s1 + $0x170] sm:$0xf0]  ;;  %v7546_v28 = vld [vmem:[%s11695_s1 + $0x464] sm:$0xf] }
  0xb7   :  { %v6381_v33 = vor.u32 %v7546_v28, %v6378_v29  ;;  %v5694_v28 = vld [vmem:[%s11696_s0 + $0xd4] sm:$0xf0]  ;;  %v5700_v29 = vld [vmem:[%s11696_s0 + $0xc0] sm:$0xf] }
  0xb8   :  { %v1844_v56 = vpop.f32.mrf.mxu2 }
  0xb9   :  { %v1845_v60 = vadd.f32 %v1844_v56, %v1796_v31  ;;  %v1893_v61 = vpop.f32.mrf.mxu3  ;;  %v1748_v62 = vpop.f32.mrf.mxu0  ;;  %v7366_v31 = vld [vmem:[%s11696_s0 + $0x84] sm:$0xf]  ;;  %2275 = vmatpush.bf16.msra.mxu3 %v6381_v33 }
  0xba   :  { %v1749_v63 = vadd.f32 %v1748_v62, %v8557_v55  ;;  %v1797_v1 = vpop.f32.mrf.mxu1  ;;  %v8693_v58 = vor.u32 %v7366_v31, %v5666_v32  ;;  %v5997_v32 = vor.u32 %v7450_v7, %v5994_v17  ;;  %v5692_v7 = vld [vmem:[%s11696_s0 + $0xb8] sm:$0xf]  ;;  %v7373_v17 = vld [vmem:[%s11696_s0 + $0xbc] sm:$0xf] }
  0xbb   :  { %v8665_v4 = vadd.f32 %v1893_v61, %v1845_v60 }
  0xbc   :  { %v1798_v16 = vadd.f32 %v1797_v1, %v1749_v63  ;;  %11823 = vst [vmem:[#allocation26_spill] sm:$0xff] %v8693_v58  ;;  %v7514_v1 = vld [vmem:[%s11695_s1 + $0x364] sm:$0xf]  ;;  %2128 = vmatpush.bf16.msra.mxu0 %v5997_v32 }
  0xc0   :  { %v1846_v35 = vpop.f32.mrf.mxu2 }
  0xc1   :  { %v1847_v37 = vadd.f32 %v1846_v35, %v1798_v16  ;;  %v1895_v39 = vpop.f32.mrf.mxu3  ;;  %v1751_v56 = vpop.f32.mrf.mxu0  ;;  %v6253_v16 = vor.u32 %v7514_v1, %v6250_v5  ;;  %v6122_v1 = vld [vmem:[%s11695_s1 + $0x270] sm:$0xf0] }
  0xc2   :  { %v1752_v60 = vadd.f32 %v1751_v56, %v8557_v55  ;;  %v1800_v61 = vpop.f32.mrf.mxu1 }
  0xc3   :  { %v8698_v62 = vadd.f32 %v1895_v39, %v1847_v37  ;;  %2226 = vmatpush.bf16.msra.mxu2 %v6253_v16  ;;  %v7376_v16 = vld [vmem:[%s11696_s0 + $0xd0] sm:$0xf0] }
  0xc4   :  { %v1801_v63 = vadd.f32 %v1800_v61, %v1752_v60  ;;  %1946 = vmatmul.bf16.gmra.mxu0 %v8691_v36  ;;  %v7482_v61 = vld [vmem:[%s11695_s1 + $0x264] sm:$0xf]  ;;  %v8749_v33 = vor.u32 %v7376_v16, %v5692_v7 }
  0xc5   :  { %1995 = vmatmul.bf16.gmra.mxu1 %v8693_v58  ;;  %2044 = vmatmul.bf16.gmra.mxu2 %v8695_v59  ;;  %v7446_v7 = vld [vmem:[%s11695_s1 + $0x144] sm:$0xf] }
  0xc6   :  { %2093 = vmatmul.bf16.gmra.mxu3 %v8218_v49 }
  0xc8   :  { %v1849_v31 = vpop.f32.mrf.mxu2 }
  0xc9   :  { %v1850_v34 = vadd.f32 %v1849_v31, %v1801_v63  ;;  %v1898_v35 = vpop.f32.mrf.mxu3  ;;  %v1753_v37 = vpop.f32.mrf.mxu0  ;;  %v6125_v63 = vor.u32 %v7482_v61, %v6122_v1  ;;  %v7377_v31 = vld [vmem:[%s11696_s0 + $0xd8] sm:$0xf0] }
  0xca   :  { %v1754_v39 = vadd.f32 %v1753_v37, %v8557_v55  ;;  %v1802_v56 = vpop.f32.mrf.mxu1 }
  0xcb   :  { %v8723_v60 = vadd.f32 %v1898_v35, %v1850_v34  ;;  %2177 = vmatpush.bf16.msra.mxu1 %v6125_v63  ;;  %v6234_v63 = vld [vmem:[%s11695_s1 + $0x350] sm:$0xf0] }
  0xcc   :  { %v1803_v5 = vadd.f32 %v1802_v56, %v1754_v39  ;;  %v8751_v39 = vor.u32 %v7373_v17, %v5694_v28  ;;  %v8753_v56 = vor.u32 %v7377_v31, %v5700_v29  ;;  %v5978_v17 = vld [vmem:[%s11695_s1 + $0x150] sm:$0xf0]  ;;  %v7542_v28 = vld [vmem:[%s11695_s1 + $0x444] sm:$0xf] }
  0xcd   :  { %v6362_v29 = vld [vmem:[%s11695_s1 + $0x450] sm:$0xf0] }
  0xce   :  { %11825 = vst [vmem:[#allocation28_spill] sm:$0xff] %v8751_v39 }
  0xcf   :  { %11826 = vst [vmem:[#allocation29_spill] sm:$0xff] %v8753_v56 }
  0xd0   :  { %v1851_v32 = vpop.f32.mrf.mxu2 }
  0xd1   :  { %v1852_v34 = vadd.f32 %v1851_v32, %v1803_v5  ;;  %v1900_v35 = vpop.f32.mrf.mxu3  ;;  %v1756_v37 = vpop.f32.mrf.mxu0  ;;  %v7510_v5 = vld [vmem:[%s11695_s1 + $0x344] sm:$0xf]  ;;  %v5981_v32 = vor.u32 %v7446_v7, %v5978_v17  ;;  %v6106_v7 = vld [vmem:[%s11695_s1 + $0x250] sm:$0xf0] }
  0xd2   :  { %v1757_v61 = vadd.f32 %v1756_v37, %v8557_v55  ;;  %v1805_v1 = vpop.f32.mrf.mxu1  ;;  %v6237_v16 = vor.u32 %v7510_v5, %v6234_v63 }
  0xd3   :  { %v8756_v49 = vadd.f32 %v1900_v35, %v1852_v34  ;;  %v6365_v34 = vor.u32 %v7542_v28, %v6362_v29  ;;  %2129 = vmatpush.bf16.msra.mxu0 %v5981_v32  ;;  %v7383_v28 = vld [vmem:[%s11696_s0 + $0x108] sm:$0xf0]  ;;  %v7380_v29 = vld [vmem:[%s11696_s0 + $0xf4] sm:$0xf] }
  0xd4   :  { %v1806_v59 = vadd.f32 %v1805_v1, %v1757_v61  ;;  %1951 = vmatmul.bf16.gmra.mxu0 %v8749_v33  ;;  %2227 = vmatpush.bf16.msra.mxu2 %v6237_v16  ;;  %v5720_v16 = vld [vmem:[%s11696_s0 + $0xf0] sm:$0xf]  ;;  %v7384_v32 = vld [vmem:[%s11696_s0 + $0x110] sm:$0xf0] }
  0xd5   :  { %2000 = vmatmul.bf16.gmra.mxu1 %v8751_v39  ;;  %2049 = vmatmul.bf16.gmra.mxu2 %v8753_v56 }
  0xd6   :  { %2098 = vmatmul.bf16.gmra.mxu3 %v8278_v12  ;;  %v7478_v12 = vld [vmem:[%s11695_s1 + $0x244] sm:$0xf] }
  0xd7   :  { %2276 = vmatpush.bf16.msra.mxu3 %v6365_v34 }
  0xd8   :  { %v1854_v31 = vpop.f32.mrf.mxu2 }
  0xd9   :  { %v1855_v35 = vadd.f32 %v1854_v31, %v1806_v59  ;;  %v1903_v37 = vpop.f32.mrf.mxu3  ;;  %v1758_v61 = vpop.f32.mrf.mxu0  ;;  %v6109_v59 = vor.u32 %v7478_v12, %v6106_v7  ;;  %v5722_v31 = vld [vmem:[%s11696_s0 + $0x10c] sm:$0xf0]  ;;  %v5728_v12 = vld [vmem:[%s11696_s0 + $0xf8] sm:$0xf] }
  0xda   :  { %v1759_v1 = vadd.f32 %v1758_v61, %v8557_v55  ;;  %v1807_v5 = vpop.f32.mrf.mxu1  ;;  %v8811_v7 = vor.u32 %v7384_v32, %v5728_v12 }
  0xdb   :  { %v8781_v63 = vadd.f32 %v1903_v37, %v1855_v35  ;;  %2178 = vmatpush.bf16.msra.mxu1 %v6109_v59  ;;  %v8807_v35 = vor.u32 %v7383_v28, %v5720_v16  ;;  %v6218_v59 = vld [vmem:[%s11695_s1 + $0x330] sm:$0xf0]  ;;  %v7538_v28 = vld [vmem:[%s11695_s1 + $0x424] sm:$0xf] }
  0xdc   :  { %v1808_v17 = vadd.f32 %v1807_v5, %v1759_v1  ;;  %v8809_v5 = vor.u32 %v7380_v29, %v5722_v31  ;;  %11828 = vst [vmem:[#allocation31_spill] sm:$0xff] %v8811_v7  ;;  %v5962_v16 = vld [vmem:[%s11695_s1 + $0x130] sm:$0xf0] }
  0xdd   :  { %v6346_v29 = vld [vmem:[%s11695_s1 + $0x430] sm:$0xf0] }
  0xde   :  { %11827 = vst [vmem:[#allocation30_spill] sm:$0xff] %v8809_v5  ;;  %v6349_v32 = vor.u32 %v7538_v28, %v6346_v29  ;;  %v7390_v28 = vld [vmem:[%s11696_s0 + $0x140] sm:$0xf0]  ;;  %v7387_v29 = vld [vmem:[%s11696_s0 + $0x12c] sm:$0xf] }
  0xe0   :  { %v1856_v34 = vpop.f32.mrf.mxu2  ;;  %2277 = vmatpush.bf16.msra.mxu3 %v6349_v32 }
  0xe1   :  { %v1857_v37 = vadd.f32 %v1856_v34, %v1808_v17  ;;  %v1905_v61 = vpop.f32.mrf.mxu3  ;;  %v1761_v1 = vpop.f32.mrf.mxu0  ;;  %v7506_v17 = vld [vmem:[%s11695_s1 + $0x324] sm:$0xf] }
  0xe2   :  { %v1762_v56 = vadd.f32 %v1761_v1, %v8557_v55  ;;  %v1810_v39 = vpop.f32.mrf.mxu1 }
  0xe3   :  { %v8814_v58 = vadd.f32 %v1905_v61, %v1857_v37 }
  0xe4   :  { %v1811_v24 = vadd.f32 %v1810_v39, %v1762_v56  ;;  %1956 = vmatmul.bf16.gmra.mxu0 %v8807_v35  ;;  %v7442_v39 = vld [vmem:[%s11695_s1 + $0x124] sm:$0xf]  ;;  %v6221_v56 = vor.u32 %v7506_v17, %v6218_v59 }
  0xe5   :  { %2005 = vmatmul.bf16.gmra.mxu1 %v8809_v5  ;;  %2054 = vmatmul.bf16.gmra.mxu2 %v8811_v7  ;;  %v5965_v12 = vor.u32 %v7442_v39, %v5962_v16  ;;  %v6090_v39 = vld [vmem:[%s11695_s1 + $0x230] sm:$0xf0] }
  0xe6   :  { %2103 = vmatmul.bf16.gmra.mxu3 %v8338_v40  ;;  %2228 = vmatpush.bf16.msra.mxu2 %v6221_v56  ;;  %v7474_v40 = vld [vmem:[%s11695_s1 + $0x224] sm:$0xf]  ;;  %v5748_v56 = vld [vmem:[%s11696_s0 + $0x128] sm:$0xf] }
  0xe7   :  { %2130 = vmatpush.bf16.msra.mxu0 %v5965_v12  ;;  %v7391_v12 = vld [vmem:[%s11696_s0 + $0x148] sm:$0xf0] }
  0xe8   :  { %v1859_v31 = vpop.f32.mrf.mxu2 }
  0xe9   :  { %v1860_v34 = vadd.f32 %v1859_v31, %v1811_v24  ;;  %v1908_v37 = vpop.f32.mrf.mxu3  ;;  %v1763_v61 = vpop.f32.mrf.mxu0  ;;  %v6093_v24 = vor.u32 %v7474_v40, %v6090_v39  ;;  %v5750_v31 = vld [vmem:[%s11696_s0 + $0x144] sm:$0xf0]  ;;  %v5756_v40 = vld [vmem:[%s11696_s0 + $0x130] sm:$0xf] }
  0xea   :  { %v1764_v1 = vadd.f32 %v1763_v61, %v8557_v55  ;;  %v1812_v17 = vpop.f32.mrf.mxu1  ;;  %v8869_v39 = vor.u32 %v7391_v12, %v5756_v40 }
  0xeb   :  { %v8839_v59 = vadd.f32 %v1908_v37, %v1860_v34  ;;  %2179 = vmatpush.bf16.msra.mxu1 %v6093_v24  ;;  %v8865_v34 = vor.u32 %v7390_v28, %v5748_v56  ;;  %v6202_v24 = vld [vmem:[%s11695_s1 + $0x310] sm:$0xf0]  ;;  %v7534_v28 = vld [vmem:[%s11695_s1 + $0x404] sm:$0xf] }
  0xec   :  { %v1813_v16 = vadd.f32 %v1812_v17, %v1764_v1  ;;  %v8867_v17 = vor.u32 %v7387_v29, %v5750_v31  ;;  %11830 = vst [vmem:[#allocation33_spill] sm:$0xff] %v8869_v39  ;;  %v5946_v56 = vld [vmem:[%s11695_s1 + $0x110] sm:$0xf0] }
  0xed   :  { %v6330_v29 = vld [vmem:[%s11695_s1 + $0x410] sm:$0xf0] }
  0xee   :  { %11829 = vst [vmem:[#allocation32_spill] sm:$0xff] %v8867_v17  ;;  %v6333_v12 = vor.u32 %v7534_v28, %v6330_v29  ;;  %v7397_v28 = vld [vmem:[%s11696_s0 + $0x178] sm:$0xf0]  ;;  %v7394_v29 = vld [vmem:[%s11696_s0 + $0x164] sm:$0xf] }
  0xf0   :  { %v1861_v32 = vpop.f32.mrf.mxu2  ;;  %2278 = vmatpush.bf16.msra.mxu3 %v6333_v12 }
  0xf1   :  { %v1862_v37 = vadd.f32 %v1861_v32, %v1813_v16  ;;  %v1910_v61 = vpop.f32.mrf.mxu3  ;;  %v1766_v1 = vpop.f32.mrf.mxu0  ;;  %v7502_v16 = vld [vmem:[%s11695_s1 + $0x304] sm:$0xf] }
  0xf2   :  { %v1767_v7 = vadd.f32 %v1766_v1, %v8557_v55  ;;  %v1815_v5 = vpop.f32.mrf.mxu1 }
  0xf3   :  { %v8872_v19 = vadd.f32 %v1910_v61, %v1862_v37 }
  0xf4   :  { %v1816_v18 = vadd.f32 %v1815_v5, %v1767_v7  ;;  %1961 = vmatmul.bf16.gmra.mxu0 %v8865_v34  ;;  %v7438_v5 = vld [vmem:[%s11695_s1 + $0x104] sm:$0xf]  ;;  %v6205_v7 = vor.u32 %v7502_v16, %v6202_v24 }
  0xf5   :  { %2010 = vmatmul.bf16.gmra.mxu1 %v8867_v17  ;;  %2059 = vmatmul.bf16.gmra.mxu2 %v8869_v39  ;;  %v5949_v40 = vor.u32 %v7438_v5, %v5946_v56  ;;  %v6074_v5 = vld [vmem:[%s11695_s1 + $0x210] sm:$0xf0] }
  0xf6   :  { %2108 = vmatmul.bf16.gmra.mxu3 %v8398_v8  ;;  %2229 = vmatpush.bf16.msra.mxu2 %v6205_v7  ;;  %v7470_v8 = vld [vmem:[%s11695_s1 + $0x204] sm:$0xf]  ;;  %v5776_v7 = vld [vmem:[%s11696_s0 + $0x160] sm:$0xf] }
  0xf7   :  { %2131 = vmatpush.bf16.msra.mxu0 %v5949_v40  ;;  %v7398_v40 = vld [vmem:[%s11696_s0 + $0x180] sm:$0xf0] }
  0xf8   :  { %v1864_v31 = vpop.f32.mrf.mxu2 }
  0xf9   :  { %v1865_v32 = vadd.f32 %v1864_v31, %v1816_v18  ;;  %v1913_v37 = vpop.f32.mrf.mxu3  ;;  %v1768_v61 = vpop.f32.mrf.mxu0  ;;  %v6077_v18 = vor.u32 %v7470_v8, %v6074_v5  ;;  %v5778_v31 = vld [vmem:[%s11696_s0 + $0x17c] sm:$0xf0]  ;;  %v5784_v8 = vld [vmem:[%s11696_s0 + $0x168] sm:$0xf] }
  0xfa   :  { %v1769_v1 = vadd.f32 %v1768_v61, %v8557_v55  ;;  %v1817_v16 = vpop.f32.mrf.mxu1  ;;  %v8927_v5 = vor.u32 %v7398_v40, %v5784_v8 }
  0xfb   :  { %v8897_v24 = vadd.f32 %v1913_v37, %v1865_v32  ;;  %2180 = vmatpush.bf16.msra.mxu1 %v6077_v18  ;;  %v8923_v32 = vor.u32 %v7397_v28, %v5776_v7  ;;  %v7437_v18 = vld [vmem:[%s11695_s1 + $0xf4] sm:$0xf0]  ;;  %v6570_v7 = vld [vmem:[%s11695_s1 + $0x5f0] sm:$0xf0]  ;;  %v6064_v28 = vld [vmem:[%s11695_s1 + $0x1e8] sm:$0xf] }
  0xfc   :  { %v1818_v56 = vadd.f32 %v1817_v16, %v1769_v1  ;;  %v8925_v16 = vor.u32 %v7394_v29, %v5778_v31  ;;  %11833 = vst [vmem:[#allocation36_spill] sm:$0xff] %v8927_v5  ;;  %v7469_v29 = vld [vmem:[%s11695_s1 + $0x1f4] sm:$0xf0] }
  0xfd   :  { %11831 = vst [vmem:[#allocation34_spill] sm:$0xff] %v8923_v32  ;;  %v6065_v40 = vor.u32 %v7469_v29, %v6064_v28  ;;  %v5806_v28 = vld [vmem:[%s11696_s0 + $0x1b4] sm:$0xf0]  ;;  %v5812_v29 = vld [vmem:[%s11696_s0 + $0x1a0] sm:$0xf] }
  0xfe   :  { %11832 = vst [vmem:[#allocation35_spill] sm:$0xff] %v8925_v16 }
  0xff   :  { %2467 = vmatpush.bf16.msrb.mxu3 %v6065_v40 }
 0x100   :  { %v1866_v12 = vpop.f32.mrf.mxu2 }
 0x101   :  { %v1867_v37 = vadd.f32 %v1866_v12, %v1818_v56  ;;  %v1915_v61 = vpop.f32.mrf.mxu3  ;;  %v1771_v1 = vpop.f32.mrf.mxu0  ;;  %v5936_v56 = vld [vmem:[%s11695_s1 + $0xe8] sm:$0xf] }
 0x102   :  { %v1772_v39 = vadd.f32 %v1771_v1, %v8557_v55  ;;  %v1820_v17 = vpop.f32.mrf.mxu1 }
 0x103   :  { %v8930_v48 = vadd.f32 %v1915_v61, %v1867_v37 }
 0x104   :  { %v1821_v3 = vadd.f32 %v1820_v17, %v1772_v39  ;;  %1966 = vmatmul.bf16.gmra.mxu0 %v8923_v32  ;;  %v7594_v17 = vld [vmem:[%s11695_s1 + $0x5e4] sm:$0xf]  ;;  %v5937_v39 = vor.u32 %v7437_v18, %v5936_v56 }
 0x105   :  { %2015 = vmatmul.bf16.gmra.mxu1 %v8925_v16  ;;  %2064 = vmatmul.bf16.gmra.mxu2 %v8927_v5  ;;  %v6573_v8 = vor.u32 %v7594_v17, %v6570_v7  ;;  %v5804_v5 = vld [vmem:[%s11696_s0 + $0x198] sm:$0xf]  ;;  %v7404_v17 = vld [vmem:[%s11696_s0 + $0x1b0] sm:$0xf0] }
 0x106   :  { %2113 = vmatmul.bf16.gmra.mxu3 %v8458_v44  ;;  %2418 = vmatpush.bf16.msrb.mxu2 %v5937_v39  ;;  %v7626_v39 = vld [vmem:[%s11695_s1 + $0x6e4] sm:$0xf]  ;;  %v6698_v7 = vld [vmem:[%s11695_s1 + $0x6f0] sm:$0xf0] }
 0x107   :  { %2320 = vmatpush.bf16.msrb.mxu0 %v6573_v8  ;;  %v6701_v8 = vor.u32 %v7626_v39, %v6698_v7  ;;  %v7465_v39 = vld [vmem:[%s11695_s1 + $0x1d4] sm:$0xf0] }
 0x108   :  { %v1869_v31 = vpop.f32.mrf.mxu2 }
 0x109   :  { %v1870_v12 = vadd.f32 %v1869_v31, %v1821_v3  ;;  %v1918_v37 = vpop.f32.mrf.mxu3  ;;  %v1773_v61 = vpop.f32.mrf.mxu0  ;;  %v7401_v3 = vld [vmem:[%s11696_s0 + $0x19c] sm:$0xf]  ;;  %2369 = vmatpush.bf16.msrb.mxu1 %v6701_v8 }
 0x10a   :  { %v1774_v1 = vadd.f32 %v1773_v61, %v8557_v55  ;;  %v1822_v56 = vpop.f32.mrf.mxu1  ;;  %v7405_v31 = vld [vmem:[%s11696_s0 + $0x1b8] sm:$0xf0] }
 0x10b   :  { %v8955_v18 = vadd.f32 %v1918_v37, %v1870_v12  ;;  %v8981_v12 = vor.u32 %v7404_v17, %v5804_v5  ;;  %v8985_v16 = vor.u32 %v7405_v31, %v5812_v29  ;;  %v7433_v5 = vld [vmem:[%s11695_s1 + $0xd4] sm:$0xf0]  ;;  %v6554_v17 = vld [vmem:[%s11695_s1 + $0x5d0] sm:$0xf0] }
 0x10c   :  { %v1823_v44 = vadd.f32 %v1822_v56, %v1774_v1  ;;  %v8983_v56 = vor.u32 %v7401_v3, %v5806_v28  ;;  %v6048_v3 = vld [vmem:[%s11695_s1 + $0x1c8] sm:$0xf] }
 0x10d   :  { %11834 = vst [vmem:[#allocation37_spill] sm:$0xff] %v8981_v12  ;;  %v6049_v29 = vor.u32 %v7465_v39, %v6048_v3 }
 0x10e   :  { %11835 = vst [vmem:[#allocation38_spill] sm:$0xff] %v8983_v56 }
 0x10f   :  { %2468 = vmatpush.bf16.msrb.mxu3 %v6049_v29 }
 0x110   :  { %v1871_v40 = vpop.f32.mrf.mxu2 }
 0x111   :  { %v1872_v37 = vadd.f32 %v1871_v40, %v1823_v44  ;;  %v1920_v61 = vpop.f32.mrf.mxu3  ;;  %v1776_v1 = vpop.f32.mrf.mxu0  ;;  %v5920_v44 = vld [vmem:[%s11695_s1 + $0xc8] sm:$0xf] }
 0x112   :  { %v1777_v2 = vadd.f32 %v1776_v1, %v8557_v55  ;;  %v1825_v23 = vpop.f32.mrf.mxu1 }
 0x113   :  { %v8988_v22 = vadd.f32 %v1920_v61, %v1872_v37 }
 0x114   :  { %v1826_v21 = vadd.f32 %v1825_v23, %v1777_v2  ;;  %1971 = vmatmul.bf16.gmra.mxu0 %v8981_v12  ;;  %v7590_v23 = vld [vmem:[%s11695_s1 + $0x5c4] sm:$0xf]  ;;  %v5921_v2 = vor.u32 %v7433_v5, %v5920_v44 }
 0x115   :  { %2020 = vmatmul.bf16.gmra.mxu1 %v8983_v56  ;;  %2069 = vmatmul.bf16.gmra.mxu2 %v8985_v16  ;;  %v6557_v28 = vor.u32 %v7590_v23, %v6554_v17  ;;  %v7622_v5 = vld [vmem:[%s11695_s1 + $0x6c4] sm:$0xf]  ;;  %v6682_v23 = vld [vmem:[%s11695_s1 + $0x6d0] sm:$0xf0] }
 0x116   :  { %2118 = vmatmul.bf16.gmra.mxu3 %v8518_v20  ;;  %2419 = vmatpush.bf16.msrb.mxu2 %v5921_v2 }
 0x117   :  { %2321 = vmatpush.bf16.msrb.mxu0 %v6557_v28 }
 0x118   :  { %v1874_v7 = vpop.f32.mrf.mxu2 }
 0x119   :  { %v1875_v31 = vadd.f32 %v1874_v7, %v1826_v21  ;;  %v1923_v8 = vpop.f32.mrf.mxu3  ;;  %v1778_v40 = vpop.f32.mrf.mxu0  ;;  %v6685_v21 = vor.u32 %v7622_v5, %v6682_v23 }
 0x11a   :  { %v1779_v37 = vadd.f32 %v1778_v40, %v8557_v55  ;;  %v1827_v61 = vpop.f32.mrf.mxu1 }
 0x11b   :  { %v9013_v1 = vadd.f32 %v1923_v8, %v1875_v31  ;;  %2370 = vmatpush.bf16.msrb.mxu1 %v6685_v21  ;;  %v5904_v31 = vld [vmem:[%s11695_s1 + $0xa8] sm:$0xf]  ;;  %v7586_v8 = vld [vmem:[%s11695_s1 + $0x5a4] sm:$0xf] }
 0x11c   :  { %v1828_v44 = vadd.f32 %v1827_v61, %v1779_v37  ;;  %v6538_v37 = vld [vmem:[%s11695_s1 + $0x5b0] sm:$0xf0]  ;;  %v6032_v61 = vld [vmem:[%s11695_s1 + $0x1a8] sm:$0xf] }
 0x11d   :  { %v6541_v23 = vor.u32 %v7586_v8, %v6538_v37 }
 0x11f   :  { %2322 = vmatpush.bf16.msrb.mxu0 %v6541_v23 }
 0x120   :  { %v1876_v17 = vpop.f32.mrf.mxu2 }
 0x121   :  { %v1877_v2 = vadd.f32 %v1876_v17, %v1828_v44  ;;  %v1925_v3 = vpop.f32.mrf.mxu3  ;;  %v1937_v55 = vpop.f32.mrf.mxu0  ;;  %v7461_v44 = vld [vmem:[%s11695_s1 + $0x1b4] sm:$0xf0] }
 0x122   :  { %v1938_v39 = vadd.f32 %v1937_v55, %v8607_v38  ;;  %v1986_v7 = vpop.f32.mrf.mxu1  ;;  %v7429_v38 = vld [vmem:[%s11695_s1 + $0xb4] sm:$0xf0]  ;;  %v6033_v21 = vor.u32 %v7461_v44, %v6032_v61 }
 0x123   :  { %v9022_v28 = vadd.f32 %v1925_v3, %v1877_v2  ;;  %v5905_v40 = vor.u32 %v7429_v38, %v5904_v31  ;;  %v7618_v31 = vld [vmem:[%s11695_s1 + $0x6a4] sm:$0xf]  ;;  %v6666_v38 = vld [vmem:[%s11695_s1 + $0x6b0] sm:$0xf0] }
 0x124   :  { %v1987_v29 = vadd.f32 %v1986_v7, %v1938_v39  ;;  %2132 = vmatmul.bf16.vlgmr.msra.gmra.mxu0 %v8082_v53  ;;  %2469 = vmatpush.bf16.msrb.mxu3 %v6033_v21  ;;  %v6669_v8 = vor.u32 %v7618_v31, %v6666_v38  ;;  %v6522_v38 = vld [vmem:[%s11695_s1 + $0x590] sm:$0xf0] }
 0x125   :  { %2181 = vmatmul.bf16.vlgmr.msra.gmra.mxu1 %v8084_v54  ;;  %2230 = vmatmul.bf16.vlgmr.msra.gmra.mxu2 %v8092_v57 }
 0x126   :  { %2279 = vmatmul.bf16.vlgmr.msra.gmra.mxu3 %v8577_v0  ;;  %2420 = vmatpush.bf16.msrb.mxu2 %v5905_v40 }
 0x127   :  { %2371 = vmatpush.bf16.msrb.mxu1 %v6669_v8  ;;  %v6016_v8 = vld [vmem:[%s11695_s1 + $0x188] sm:$0xf] }
 0x128   :  { %v2035_v5 = vpop.f32.mrf.mxu2 }
 0x129   :  { %v2036_v17 = vadd.f32 %v2035_v5, %v1987_v29  ;;  %v9046_v2 = vpop.f32.mrf.mxu3  ;;  %v1939_v3 = vpop.f32.mrf.mxu0 }
 0x12a   :  { %v1940_v55 = vadd.f32 %v1939_v3, %v8640_v30  ;;  %v1988_v39 = vpop.f32.mrf.mxu1 }
 0x12b   :  { %v3168_v37 = vmul.f32 0.01, %v2036_v17  ;;  %vm3104_vm0 = vcmp.ge.f32.partialorder %v2036_v17, 0.0 }
 0x12c   :  { %v1989_v7 = vadd.f32 %v1988_v39, %v1940_v55 }
 0x12d   :  { %v3232_v3 = vsel %vm3104_vm0, %v2036_v17, %v3168_v37  ;;  %v7582_v17 = vld [vmem:[%s11695_s1 + $0x584] sm:$0xf] }
 0x130   :  { %v2037_v29 = vpop.f32.mrf.mxu2 }
 0x131   :  { %v2038_v61 = vadd.f32 %v2037_v29, %v1989_v7  ;;  %v9055_v40 = vpop.f32.mrf.mxu3  ;;  %v1942_v30 = vpop.f32.mrf.mxu0  ;;  %v7425_v7 = vld [vmem:[%s11695_s1 + $0x94] sm:$0xf0] }
 0x132   :  { %v1943_v44 = vadd.f32 %v1942_v30, %v8665_v4  ;;  %v1991_v5 = vpop.f32.mrf.mxu1  ;;  %v5888_v4 = vld [vmem:[%s11695_s1 + $0x88] sm:$0xf]  ;;  %v7457_v29 = vld [vmem:[%s11695_s1 + $0x194] sm:$0xf0] }
 0x133   :  { %vm3108_vm1 = vcmp.ge.f32.partialorder %v2038_v61, 0.0  ;;  %v3172_v23 = vmul.f32 0.01, %v2038_v61  ;;  %v5889_v31 = vor.u32 %v7425_v7, %v5888_v4  ;;  %v6017_v30 = vor.u32 %v7457_v29, %v6016_v8  ;;  %v7614_v7 = vld [vmem:[%s11695_s1 + $0x684] sm:$0xf] }
 0x134   :  { %v1992_v21 = vadd.f32 %v1991_v5, %v1943_v44  ;;  %2137 = vmatmul.bf16.gmra.mxu0 %v8160_v25 }
 0x135   :  { %v3236_v55 = vsel %vm3108_vm1, %v2038_v61, %v3172_v23  ;;  %2186 = vmatmul.bf16.gmra.mxu1 %v8162_v26  ;;  %2235 = vmatmul.bf16.gmra.mxu2 %v8164_v27  ;;  %v6525_v61 = vor.u32 %v7582_v17, %v6522_v38  ;;  %v6650_v17 = vld [vmem:[%s11695_s1 + $0x690] sm:$0xf0] }
 0x136   :  { %v9061_v39 = vpack.c.bf16 %v3236_v55, %v3232_v3  ;;  %2284 = vmatmul.bf16.gmra.mxu3 %v8633_v6  ;;  %2421 = vmatpush.bf16.msrb.mxu2 %v5889_v31  ;;  %v6653_v38 = vor.u32 %v7614_v7, %v6650_v17 }
 0x137   :  { %2323 = vmatpush.bf16.msrb.mxu0 %v6525_v61  ;;  %2470 = vmatpush.bf16.msrb.mxu3 %v6017_v30 }
 0x138   :  { %11836 = vst [vmem:[#allocation39_spill] sm:$0xff] %v9061_v39  ;;  %v2040_v37 = vpop.f32.mrf.mxu2  ;;  %2372 = vmatpush.bf16.msrb.mxu1 %v6653_v38  ;;  %v6506_v38 = vld [vmem:[%s11695_s1 + $0x570] sm:$0xf0] }
 0x139   :  { %v2041_v44 = vadd.f32 %v2040_v37, %v1992_v21  ;;  %v9082_v5 = vpop.f32.mrf.mxu3  ;;  %v1944_v23 = vpop.f32.mrf.mxu0 }
 0x13a   :  { %v1945_v3 = vadd.f32 %v1944_v23, %v8698_v62  ;;  %v1993_v55 = vpop.f32.mrf.mxu1 }
 0x13b   :  { %v3176_v8 = vmul.f32 0.01, %v2041_v44  ;;  %vm3112_vm2 = vcmp.ge.f32.partialorder %v2041_v44, 0.0 }
 0x13c   :  { %v1994_v4 = vadd.f32 %v1993_v55, %v1945_v3 }
 0x13d   :  { %v3240_v3 = vsel %vm3112_vm2, %v2041_v44, %v3176_v8  ;;  %v7578_v44 = vld [vmem:[%s11695_s1 + $0x564] sm:$0xf]  ;;  %v7453_v8 = vld [vmem:[%s11695_s1 + $0x174] sm:$0xf0] }
 0x140   :  { %v2042_v21 = vpop.f32.mrf.mxu2 }
 0x141   :  { %v2043_v29 = vadd.f32 %v2042_v21, %v1994_v4  ;;  %v9091_v31 = vpop.f32.mrf.mxu3  ;;  %v1947_v62 = vpop.f32.mrf.mxu0  ;;  %v7421_v4 = vld [vmem:[%s11695_s1 + $0x74] sm:$0xf0]  ;;  %v6000_v21 = vld [vmem:[%s11695_s1 + $0x168] sm:$0xf] }
 0x142   :  { %v1948_v37 = vadd.f32 %v1947_v62, %v8723_v60  ;;  %v1996_v61 = vpop.f32.mrf.mxu1  ;;  %v5872_v60 = vld [vmem:[%s11695_s1 + $0x68] sm:$0xf]  ;;  %v6509_v62 = vor.u32 %v7578_v44, %v6506_v38  ;;  %v6634_v44 = vld [vmem:[%s11695_s1 + $0x670] sm:$0xf0] }
 0x143   :  { %vm3116_vm3 = vcmp.ge.f32.partialorder %v2043_v29, 0.0  ;;  %v3180_v30 = vmul.f32 0.01, %v2043_v29  ;;  %v5873_v17 = vor.u32 %v7421_v4, %v5872_v60 }
 0x144   :  { %v1997_v23 = vadd.f32 %v1996_v61, %v1948_v37  ;;  %2142 = vmatmul.bf16.gmra.mxu0 %v8220_v50  ;;  %v6001_v37 = vor.u32 %v7453_v8, %v6000_v21 }
 0x145   :  { %v3244_v55 = vsel %vm3116_vm3, %v2043_v29, %v3180_v30  ;;  %2191 = vmatmul.bf16.gmra.mxu1 %v8222_v51  ;;  %2240 = vmatmul.bf16.gmra.mxu2 %v8224_v52 }
 0x146   :  { %v9097_v7 = vpack.c.bf16 %v3244_v55, %v3240_v3  ;;  %2289 = vmatmul.bf16.gmra.mxu3 %v8691_v36  ;;  %2422 = vmatpush.bf16.msrb.mxu2 %v5873_v17 }
 0x147   :  { %2324 = vmatpush.bf16.msrb.mxu0 %v6509_v62  ;;  %2471 = vmatpush.bf16.msrb.mxu3 %v6001_v37 }
 0x148   :  { %11837 = vst [vmem:[#allocation40_spill] sm:$0xff] %v9097_v7  ;;  %v2045_v29 = vpop.f32.mrf.mxu2  ;;  %v7610_v7 = vld [vmem:[%s11695_s1 + $0x664] sm:$0xf] }
 0x149   :  { %v2046_v61 = vadd.f32 %v2045_v29, %v1997_v23  ;;  %v9118_v30 = vpop.f32.mrf.mxu3  ;;  %v1949_v3 = vpop.f32.mrf.mxu0  ;;  %v6637_v38 = vor.u32 %v7610_v7, %v6634_v44 }
 0x14a   :  { %v1950_v55 = vadd.f32 %v1949_v3, %v8756_v49  ;;  %v1998_v60 = vpop.f32.mrf.mxu1 }
 0x14b   :  { %2373 = vmatpush.bf16.msrb.mxu1 %v6637_v38  ;;  %v3184_v21 = vmul.f32 0.01, %v2046_v61  ;;  %vm3120_vm4 = vcmp.ge.f32.partialorder %v2046_v61, 0.0  ;;  %v6490_v38 = vld [vmem:[%s11695_s1 + $0x550] sm:$0xf0] }
 0x14c   :  { %v1999_v4 = vadd.f32 %v1998_v60, %v1950_v55 }
 0x14d   :  { %v3248_v55 = vsel %vm3120_vm4, %v2046_v61, %v3184_v21  ;;  %v7574_v61 = vld [vmem:[%s11695_s1 + $0x544] sm:$0xf]  ;;  %v7449_v21 = vld [vmem:[%s11695_s1 + $0x154] sm:$0xf0] }
 0x150   :  { %v2047_v23 = vpop.f32.mrf.mxu2 }
 0x151   :  { %v2048_v8 = vadd.f32 %v2047_v23, %v1999_v4  ;;  %v9127_v17 = vpop.f32.mrf.mxu3  ;;  %v1952_v49 = vpop.f32.mrf.mxu0  ;;  %v7417_v4 = vld [vmem:[%s11695_s1 + $0x54] sm:$0xf0]  ;;  %v5984_v23 = vld [vmem:[%s11695_s1 + $0x148] sm:$0xf] }
 0x152   :  { %v1953_v29 = vadd.f32 %v1952_v49, %v8781_v63  ;;  %v2001_v62 = vpop.f32.mrf.mxu1  ;;  %v5856_v63 = vld [vmem:[%s11695_s1 + $0x48] sm:$0xf]  ;;  %v6493_v49 = vor.u32 %v7574_v61, %v6490_v38  ;;  %v6618_v61 = vld [vmem:[%s11695_s1 + $0x650] sm:$0xf0] }
 0x153   :  { %vm3124_vm5 = vcmp.ge.f32.partialorder %v2048_v8, 0.0  ;;  %v3188_v37 = vmul.f32 0.01, %v2048_v8  ;;  %v5857_v44 = vor.u32 %v7417_v4, %v5856_v63 }
 0x154   :  { %v2002_v3 = vadd.f32 %v2001_v62, %v1953_v29  ;;  %2147 = vmatmul.bf16.gmra.mxu0 %v8280_v13  ;;  %v5985_v29 = vor.u32 %v7449_v21, %v5984_v23 }
 0x155   :  { %v3252_v60 = vsel %vm3124_vm5, %v2048_v8, %v3188_v37  ;;  %2196 = vmatmul.bf16.gmra.mxu1 %v8282_v14  ;;  %2245 = vmatmul.bf16.gmra.mxu2 %v8284_v15 }
 0x156   :  { %v9133_v7 = vpack.c.bf16 %v3252_v60, %v3248_v55  ;;  %2294 = vmatmul.bf16.gmra.mxu3 %v8749_v33  ;;  %2423 = vmatpush.bf16.msrb.mxu2 %v5857_v44 }
 0x157   :  { %2325 = vmatpush.bf16.msrb.mxu0 %v6493_v49  ;;  %2472 = vmatpush.bf16.msrb.mxu3 %v5985_v29 }
 0x158   :  { %11838 = vst [vmem:[#allocation41_spill] sm:$0xff] %v9133_v7  ;;  %v2050_v8 = vpop.f32.mrf.mxu2  ;;  %v7606_v7 = vld [vmem:[%s11695_s1 + $0x644] sm:$0xf] }
 0x159   :  { %v2051_v62 = vadd.f32 %v2050_v8, %v2002_v3  ;;  %v9154_v37 = vpop.f32.mrf.mxu3  ;;  %v1954_v55 = vpop.f32.mrf.mxu0  ;;  %v6621_v38 = vor.u32 %v7606_v7, %v6618_v61 }
 0x15a   :  { %v1955_v60 = vadd.f32 %v1954_v55, %v8814_v58  ;;  %v2003_v63 = vpop.f32.mrf.mxu1 }
 0x15b   :  { %2374 = vmatpush.bf16.msrb.mxu1 %v6621_v38  ;;  %v3192_v23 = vmul.f32 0.01, %v2051_v62  ;;  %vm3128_vm6 = vcmp.ge.f32.partialorder %v2051_v62, 0.0  ;;  %v6474_v38 = vld [vmem:[%s11695_s1 + $0x530] sm:$0xf0] }
 0x15c   :  { %v2004_v4 = vadd.f32 %v2003_v63, %v1955_v60 }
 0x15d   :  { %v3256_v60 = vsel %vm3128_vm6, %v2051_v62, %v3192_v23  ;;  %v7570_v62 = vld [vmem:[%s11695_s1 + $0x524] sm:$0xf]  ;;  %v7445_v23 = vld [vmem:[%s11695_s1 + $0x134] sm:$0xf0] }
 0x160   :  { %v2052_v3 = vpop.f32.mrf.mxu2 }
 0x161   :  { %v2053_v21 = vadd.f32 %v2052_v3, %v2004_v4  ;;  %v9163_v44 = vpop.f32.mrf.mxu3  ;;  %v1957_v58 = vpop.f32.mrf.mxu0  ;;  %v7413_v4 = vld [vmem:[%s11695_s1 + $0x34] sm:$0xf0]  ;;  %v5968_v3 = vld [vmem:[%s11695_s1 + $0x128] sm:$0xf] }
 0x162   :  { %v1958_v8 = vadd.f32 %v1957_v58, %v8839_v59  ;;  %v2006_v49 = vpop.f32.mrf.mxu1  ;;  %v5840_v59 = vld [vmem:[%s11695_s1 + $0x28] sm:$0xf]  ;;  %v6477_v58 = vor.u32 %v7570_v62, %v6474_v38  ;;  %v6602_v62 = vld [vmem:[%s11695_s1 + $0x630] sm:$0xf0] }
 0x163   :  { %vm3132_vm7 = vcmp.ge.f32.partialorder %v2053_v21, 0.0  ;;  %v3196_v29 = vmul.f32 0.01, %v2053_v21  ;;  %v5841_v61 = vor.u32 %v7413_v4, %v5840_v59 }
 0x164   :  { %v2007_v55 = vadd.f32 %v2006_v49, %v1958_v8  ;;  %2152 = vmatmul.bf16.gmra.mxu0 %v8340_v41  ;;  %v5969_v8 = vor.u32 %v7445_v23, %v5968_v3 }
 0x165   :  { %v3260_v63 = vsel %vm3132_vm7, %v2053_v21, %v3196_v29  ;;  %2201 = vmatmul.bf16.gmra.mxu1 %v8342_v42  ;;  %2250 = vmatmul.bf16.gmra.mxu2 %v8344_v43 }
 0x166   :  { %v9169_v7 = vpack.c.bf16 %v3260_v63, %v3256_v60  ;;  %2299 = vmatmul.bf16.gmra.mxu3 %v8807_v35  ;;  %2424 = vmatpush.bf16.msrb.mxu2 %v5841_v61 }
 0x167   :  { %2326 = vmatpush.bf16.msrb.mxu0 %v6477_v58  ;;  %2473 = vmatpush.bf16.msrb.mxu3 %v5969_v8 }
 0x168   :  { %11839 = vst [vmem:[#allocation42_spill] sm:$0xff] %v9169_v7  ;;  %v2055_v21 = vpop.f32.mrf.mxu2  ;;  %v7602_v7 = vld [vmem:[%s11695_s1 + $0x624] sm:$0xf] }
 0x169   :  { %v2056_v49 = vadd.f32 %v2055_v21, %v2007_v55  ;;  %v9190_v29 = vpop.f32.mrf.mxu3  ;;  %v1959_v60 = vpop.f32.mrf.mxu0  ;;  %v6605_v38 = vor.u32 %v7602_v7, %v6602_v62 }
 0x16a   :  { %v1960_v63 = vadd.f32 %v1959_v60, %v8872_v19  ;;  %v2008_v59 = vpop.f32.mrf.mxu1 }
 0x16b   :  { %2375 = vmatpush.bf16.msrb.mxu1 %v6605_v38  ;;  %v3200_v3 = vmul.f32 0.01, %v2056_v49  ;;  %vm3136_vm8 = vcmp.ge.f32.partialorder %v2056_v49, 0.0  ;;  %v6458_v38 = vld [vmem:[%s11695_s1 + $0x510] sm:$0xf0] }
 0x16c   :  { %v2009_v4 = vadd.f32 %v2008_v59, %v1960_v63 }
 0x16d   :  { %v3264_v63 = vsel %vm3136_vm8, %v2056_v49, %v3200_v3  ;;  %v7566_v49 = vld [vmem:[%s11695_s1 + $0x504] sm:$0xf]  ;;  %v7441_v3 = vld [vmem:[%s11695_s1 + $0x114] sm:$0xf0] }
 0x170   :  { %v2057_v55 = vpop.f32.mrf.mxu2 }
 0x171   :  { %v2058_v23 = vadd.f32 %v2057_v55, %v2009_v4  ;;  %v9199_v61 = vpop.f32.mrf.mxu3  ;;  %v1962_v19 = vpop.f32.mrf.mxu0  ;;  %v7409_v4 = vld [vmem:[%s11695_s1 + $0x14] sm:$0xf0]  ;;  %v5952_v55 = vld [vmem:[%s11695_s1 + $0x108] sm:$0xf] }
 0x172   :  { %v1963_v21 = vadd.f32 %v1962_v19, %v8897_v24  ;;  %v2011_v58 = vpop.f32.mrf.mxu1  ;;  %v5824_v24 = vld [vmem:[%s11695_s1 + $0x8] sm:$0xf]  ;;  %v6461_v19 = vor.u32 %v7566_v49, %v6458_v38  ;;  %v6586_v49 = vld [vmem:[%s11695_s1 + $0x610] sm:$0xf0] }
 0x173   :  { %vm3140_vm9 = vcmp.ge.f32.partialorder %v2058_v23, 0.0  ;;  %v3204_v8 = vmul.f32 0.01, %v2058_v23  ;;  %v5825_v62 = vor.u32 %v7409_v4, %v5824_v24 }
 0x174   :  { %v2012_v60 = vadd.f32 %v2011_v58, %v1963_v21  ;;  %2157 = vmatmul.bf16.gmra.mxu0 %v8400_v9  ;;  %v5953_v21 = vor.u32 %v7441_v3, %v5952_v55 }
 0x175   :  { %v3268_v59 = vsel %vm3140_vm9, %v2058_v23, %v3204_v8  ;;  %2206 = vmatmul.bf16.gmra.mxu1 %v8402_v10  ;;  %2255 = vmatmul.bf16.gmra.mxu2 %v8404_v11 }
 0x176   :  { %v9205_v7 = vpack.c.bf16 %v3268_v59, %v3264_v63  ;;  %2304 = vmatmul.bf16.gmra.mxu3 %v8865_v34  ;;  %2425 = vmatpush.bf16.msrb.mxu2 %v5825_v62 }
 0x177   :  { %2327 = vmatpush.bf16.msrb.mxu0 %v6461_v19  ;;  %2474 = vmatpush.bf16.msrb.mxu3 %v5953_v21 }
 0x178   :  { %11840 = vst [vmem:[#allocation43_spill] sm:$0xff] %v9205_v7  ;;  %v2060_v23 = vpop.f32.mrf.mxu2  ;;  %v7598_v7 = vld [vmem:[%s11695_s1 + $0x604] sm:$0xf] }
 0x179   :  { %v2061_v58 = vadd.f32 %v2060_v23, %v2012_v60  ;;  %v9226_v8 = vpop.f32.mrf.mxu3  ;;  %v1964_v63 = vpop.f32.mrf.mxu0  ;;  %v6589_v38 = vor.u32 %v7598_v7, %v6586_v49 }
 0x17a   :  { %v1965_v59 = vadd.f32 %v1964_v63, %v8930_v48  ;;  %v2013_v24 = vpop.f32.mrf.mxu1 }
 0x17b   :  { %2376 = vmatpush.bf16.msrb.mxu1 %v6589_v38  ;;  %v3208_v55 = vmul.f32 0.01, %v2061_v58  ;;  %vm3144_vm10 = vcmp.ge.f32.partialorder %v2061_v58, 0.0  ;;  %v7501_v38 = vld [vmem:[%s11695_s1 + $0x2f4] sm:$0xf0] }
 0x17c   :  { %v2014_v4 = vadd.f32 %v2013_v24, %v1965_v59 }
 0x17d   :  { %v3272_v59 = vsel %vm3144_vm10, %v2061_v58, %v3208_v55  ;;  %v6192_v58 = vld [vmem:[%s11695_s1 + $0x2e8] sm:$0xf]  ;;  %v7597_v55 = vld [vmem:[%s11695_s1 + $0x5f4] sm:$0xf0] }
 0x180   :  { %v2062_v60 = vpop.f32.mrf.mxu2 }
 0x181   :  { %v2063_v3 = vadd.f32 %v2062_v60, %v2014_v4  ;;  %v9235_v62 = vpop.f32.mrf.mxu3  ;;  %v1967_v48 = vpop.f32.mrf.mxu0  ;;  %v7565_v4 = vld [vmem:[%s11695_s1 + $0x4f4] sm:$0xf0]  ;;  %v6576_v60 = vld [vmem:[%s11695_s1 + $0x5e8] sm:$0xf] }
 0x182   :  { %v1968_v23 = vadd.f32 %v1967_v48, %v8955_v18  ;;  %v2016_v19 = vpop.f32.mrf.mxu1  ;;  %v6448_v18 = vld [vmem:[%s11695_s1 + $0x4e8] sm:$0xf]  ;;  %v6193_v48 = vor.u32 %v7501_v38, %v6192_v58  ;;  %v7533_v58 = vld [vmem:[%s11695_s1 + $0x3f4] sm:$0xf0] }
 0x183   :  { %vm3148_vm11 = vcmp.ge.f32.partialorder %v2063_v3, 0.0  ;;  %v3212_v21 = vmul.f32 0.01, %v2063_v3  ;;  %v6449_v49 = vor.u32 %v7565_v4, %v6448_v18  ;;  %v6320_v4 = vld [vmem:[%s11695_s1 + $0x3e8] sm:$0xf] }
 0x184   :  { %v2017_v63 = vadd.f32 %v2016_v19, %v1968_v23  ;;  %2162 = vmatmul.bf16.gmra.mxu0 %v8460_v45  ;;  %v6577_v23 = vor.u32 %v7597_v55, %v6576_v60  ;;  %v6321_v38 = vor.u32 %v7533_v58, %v6320_v4  ;;  %v11844_v4 = vld [vmem:[#allocation20_spill] sm:$0xff] }
 0x185   :  { %v3276_v24 = vsel %vm3148_vm11, %v2063_v3, %v3212_v21  ;;  %2211 = vmatmul.bf16.gmra.mxu1 %v8462_v46  ;;  %2260 = vmatmul.bf16.gmra.mxu2 %v8464_v47  ;;  %v11852_v46 = vld [vmem:[#allocation4_spill] sm:$0xff] }
 0x186   :  { %v9241_v7 = vpack.c.bf16 %v3276_v24, %v3272_v59  ;;  %2309 = vmatmul.bf16.gmra.mxu3 %v8923_v32  ;;  %2614 = vmatpush.bf16.msra.mxu2 %v6449_v49  ;;  %v11843_v32 = vld [vmem:[#allocation19_spill] sm:$0xff] }
 0x187   :  { %2516 = vmatpush.bf16.msra.mxu0 %v6193_v48  ;;  %2663 = vmatpush.bf16.msra.mxu3 %v6577_v23 }
 0x188   :  { %11841 = vst [vmem:[#allocation44_spill] sm:$0xff] %v9241_v7  ;;  %v2065_v3 = vpop.f32.mrf.mxu2  ;;  %2565 = vmatpush.bf16.msra.mxu1 %v6321_v38 }
 0x189   :  { %v2066_v19 = vadd.f32 %v2065_v3, %v2017_v63  ;;  %v9262_v21 = vpop.f32.mrf.mxu3  ;;  %v1969_v59 = vpop.f32.mrf.mxu0 }
 0x18a   :  { %v1970_v24 = vadd.f32 %v1969_v59, %v8988_v22  ;;  %v2018_v18 = vpop.f32.mrf.mxu1 }
 0x18b   :  { %v3216_v60 = vmul.f32 0.01, %v2066_v19  ;;  %vm3152_vm12 = vcmp.ge.f32.partialorder %v2066_v19, 0.0 }
 0x18c   :  { %v2019_v7 = vadd.f32 %v2018_v18, %v1970_v24  ;;  %v11842_v24 = vld [vmem:[#allocation18_spill] sm:$0xff] }
 0x18d   :  { %v3280_v18 = vsel %vm3152_vm12, %v2066_v19, %v3216_v60  ;;  %v6176_v19 = vld [vmem:[%s11695_s1 + $0x2c8] sm:$0xf]  ;;  %v7593_v60 = vld [vmem:[%s11695_s1 + $0x5d4] sm:$0xf0] }
 0x190   :  { %v2067_v63 = vpop.f32.mrf.mxu2 }
 0x191   :  { %v2068_v55 = vadd.f32 %v2067_v63, %v2019_v7  ;;  %v9271_v49 = vpop.f32.mrf.mxu3  ;;  %v1972_v22 = vpop.f32.mrf.mxu0  ;;  %v7561_v7 = vld [vmem:[%s11695_s1 + $0x4d4] sm:$0xf0]  ;;  %v6560_v63 = vld [vmem:[%s11695_s1 + $0x5c8] sm:$0xf] }
 0x192   :  { %v1973_v3 = vadd.f32 %v1972_v22, %v9013_v1  ;;  %v2021_v48 = vpop.f32.mrf.mxu1  ;;  %v6432_v1 = vld [vmem:[%s11695_s1 + $0x4c8] sm:$0xf] }
 0x193   :  { %vm3156_vm13 = vcmp.ge.f32.partialorder %v2068_v55, 0.0  ;;  %v3220_v23 = vmul.f32 0.01, %v2068_v55  ;;  %v6433_v38 = vor.u32 %v7561_v7, %v6432_v1 }
 0x194   :  { %v2022_v59 = vadd.f32 %v2021_v48, %v1973_v3  ;;  %2167 = vmatmul.bf16.gmra.mxu0 %v11842_v24  ;;  %v6561_v3 = vor.u32 %v7593_v60, %v6560_v63 }
 0x195   :  { %v3284_v39 = vsel %vm3156_vm13, %v2068_v55, %v3220_v23  ;;  %2216 = vmatmul.bf16.gmra.mxu1 %v11843_v32  ;;  %2265 = vmatmul.bf16.gmra.mxu2 %v11844_v4  ;;  %v11846_v32 = vld [vmem:[#allocation22_spill] sm:$0xff] }
 0x196   :  { %v9277_v58 = vpack.c.bf16 %v3284_v39, %v3280_v18  ;;  %2314 = vmatmul.bf16.gmra.mxu3 %v8981_v12  ;;  %v7497_v39 = vld [vmem:[%s11695_s1 + $0x2d4] sm:$0xf0]  ;;  %2615 = vmatpush.bf16.msra.mxu2 %v6433_v38  ;;  %v9307_v12 = vld [vmem:[%s11697_s2] sm:$0xf] }
 0x197   :  { %v6177_v22 = vor.u32 %v7497_v39, %v6176_v19  ;;  %2664 = vmatpush.bf16.msra.mxu3 %v6561_v3 }
 0x198   :  { %11845 = vst [vmem:[#allocation18_spill] sm:$0xff] %v9277_v58  ;;  %v2070_v55 = vpop.f32.mrf.mxu2  ;;  %v6304_v58 = vld [vmem:[%s11695_s1 + $0x3c8] sm:$0xf] }
 0x199   :  { %v2071_v48 = vadd.f32 %v2070_v55, %v2022_v59  ;;  %v9298_v23 = vpop.f32.mrf.mxu3  ;;  %v1974_v18 = vpop.f32.mrf.mxu0  ;;  %2517 = vmatpush.bf16.msra.mxu0 %v6177_v22  ;;  %v9310_v59 = vperm.slane %v9307_v12, 1 }
 0x19a   :  { %v1975_v1 = vadd.f32 %v1974_v18, %v9022_v28  ;;  %v2023_v7 = vpop.f32.mrf.mxu1  ;;  %v7529_v28 = vld [vmem:[%s11695_s1 + $0x3d4] sm:$0xf0] }
 0x19b   :  { %v6305_v38 = vor.u32 %v7529_v28, %v6304_v58  ;;  %v2085_v39 = vadd.f32 %v9046_v2, %v9310_v59  ;;  %v3224_v60 = vmul.f32 0.01, %v2071_v48  ;;  %vm3160_vm14 = vcmp.ge.f32.partialorder %v2071_v48, 0.0  ;;  %v11847_v28 = vld [vmem:[#allocation23_spill] sm:$0xff] }
 0x19c   :  { %v2024_v19 = vadd.f32 %v2023_v7, %v1975_v1 }
 0x19d   :  { %2566 = vmatpush.bf16.msra.mxu1 %v6305_v38  ;;  %v3288_v47 = vsel %vm3160_vm14, %v2071_v48, %v3224_v60  ;;  %v11848_v38 = vld [vmem:[#allocation2_spill] sm:$0xff]  ;;  %v6160_v48 = vld [vmem:[%s11695_s1 + $0x2a8] sm:$0xf]  ;;  %v7589_v60 = vld [vmem:[%s11695_s1 + $0x5b4] sm:$0xf0] }
 0x1a0   :  { %v2072_v63 = vpop.f32.mrf.mxu2 }
 0x1a1   :  { %v2073_v55 = vadd.f32 %v2072_v63, %v2024_v19  ;;  %v9317_v22 = vpop.f32.mrf.mxu3  ;;  %v2133_v3 = vpop.f32.mrf.mxu0  ;;  %v6416_v19 = vld [vmem:[%s11695_s1 + $0x4a8] sm:$0xf] }
 0x1a2   :  { %v2134_v18 = vadd.f32 %v2133_v3, %v2085_v39  ;;  %v2182_v4 = vpop.f32.mrf.mxu1  ;;  %v6544_v63 = vld [vmem:[%s11695_s1 + $0x5a8] sm:$0xf] }
 0x1a3   :  { %vm3164_vm15 = vcmp.ge.f32.partialorder %v2073_v55, 0.0  ;;  %v3228_v1 = vmul.f32 0.01, %v2073_v55 }
 0x1a4   :  { %v2183_v7 = vadd.f32 %v2182_v4, %v2134_v18  ;;  %2328 = vmatmul.bf16.vlgmr.msrb.gmra.mxu0 %v11846_v32  ;;  %v7557_v4 = vld [vmem:[%s11695_s1 + $0x4b4] sm:$0xf0] }
 0x1a5   :  { %v3292_v58 = vsel %vm3164_vm15, %v2073_v55, %v3228_v1  ;;  %2377 = vmatmul.bf16.vlgmr.msrb.gmra.mxu1 %v11847_v28  ;;  %2426 = vmatmul.bf16.vlgmr.msrb.gmra.mxu2 %v11848_v38  ;;  %v6417_v39 = vor.u32 %v7557_v4, %v6416_v19  ;;  %v2087_v55 = vadd.f32 %v9055_v40, %v9310_v59  ;;  %v6288_v28 = vld [vmem:[%s11695_s1 + $0x3a8] sm:$0xf]  ;;  %v7525_v40 = vld [vmem:[%s11695_s1 + $0x3b4] sm:$0xf0] }
 0x1a6   :  { %v9322_v2 = vpack.c.bf16 %v3292_v58, %v3288_v47  ;;  %2475 = vmatmul.bf16.vlgmr.msrb.gmra.mxu3 %v8082_v53  ;;  %v7493_v47 = vld [vmem:[%s11695_s1 + $0x2b4] sm:$0xf0]  ;;  %v6545_v1 = vor.u32 %v7589_v60, %v6544_v63 }
 0x1a7   :  { %v6161_v18 = vor.u32 %v7493_v47, %v6160_v48  ;;  %2616 = vmatpush.bf16.msra.mxu2 %v6417_v39  ;;  %v6289_v47 = vor.u32 %v7525_v40, %v6288_v28  ;;  %v6144_v28 = vld [vmem:[%s11695_s1 + $0x288] sm:$0xf]  ;;  %v7489_v40 = vld [vmem:[%s11695_s1 + $0x294] sm:$0xf0] }
 0x1a8   :  { %11849 = vst [vmem:[#allocation45_spill] sm:$0xff] %v9322_v2  ;;  %v2231_v3 = vpop.f32.mrf.mxu2  ;;  %2665 = vmatpush.bf16.msra.mxu3 %v6545_v1 }
 0x1a9   :  { %v2232_v58 = vadd.f32 %v2231_v3, %v2183_v7  ;;  %v2280_v19 = vpop.f32.mrf.mxu3  ;;  %v2135_v4 = vpop.f32.mrf.mxu0  ;;  %2518 = vmatpush.bf16.msra.mxu0 %v6161_v18  ;;  %2567 = vmatpush.bf16.msra.mxu1 %v6289_v47  ;;  %v2090_v7 = vadd.f32 %v9082_v5, %v9310_v59  ;;  %v7553_v5 = vld [vmem:[%s11695_s1 + $0x494] sm:$0xf0] }
 0x1aa   :  { %v2136_v2 = vadd.f32 %v2135_v4, %v2087_v55  ;;  %v2184_v53 = vpop.f32.mrf.mxu1  ;;  %v11851_v4 = vld [vmem:[#allocation25_spill] sm:$0xff] }
 0x1ab   :  { %v9345_v38 = vadd.f32 %v2280_v19, %v2232_v58  ;;  %v11850_v19 = vld [vmem:[#allocation24_spill] sm:$0xff]  ;;  %v7585_v47 = vld [vmem:[%s11695_s1 + $0x594] sm:$0xf0] }
 0x1ac   :  { %v2185_v48 = vadd.f32 %v2184_v53, %v2136_v2  ;;  %v6400_v53 = vld [vmem:[%s11695_s1 + $0x488] sm:$0xf] }
 0x1ad   :  { %v6401_v2 = vor.u32 %v7553_v5, %v6400_v53 }
 0x1af   :  { %2617 = vmatpush.bf16.msra.mxu2 %v6401_v2 }
 0x1b0   :  { %v2233_v39 = vpop.f32.mrf.mxu2 }
 0x1b1   :  { %v2234_v63 = vadd.f32 %v2233_v39, %v2185_v48  ;;  %v2282_v60 = vpop.f32.mrf.mxu3  ;;  %v2138_v55 = vpop.f32.mrf.mxu0  ;;  %v6528_v48 = vld [vmem:[%s11695_s1 + $0x588] sm:$0xf] }
 0x1b2   :  { %v2139_v3 = vadd.f32 %v2138_v55, %v2090_v7  ;;  %v2187_v18 = vpop.f32.mrf.mxu1  ;;  %v2092_v7 = vadd.f32 %v9091_v31, %v9310_v59  ;;  %v7521_v31 = vld [vmem:[%s11695_s1 + $0x394] sm:$0xf0] }
 0x1b3   :  { %v9355_v1 = vadd.f32 %v2282_v60, %v2234_v63  ;;  %v6145_v63 = vor.u32 %v7489_v40, %v6144_v28  ;;  %v6529_v60 = vor.u32 %v7585_v47, %v6528_v48 }
 0x1b4   :  { %v2188_v58 = vadd.f32 %v2187_v18, %v2139_v3  ;;  %2333 = vmatmul.bf16.gmra.mxu0 %v11850_v19 }
 0x1b5   :  { %2382 = vmatmul.bf16.gmra.mxu1 %v11851_v4  ;;  %2431 = vmatmul.bf16.gmra.mxu2 %v11852_v46  ;;  %v6272_v46 = vld [vmem:[%s11695_s1 + $0x388] sm:$0xf]  ;;  %v11855_v4 = vld [vmem:[#allocation6_spill] sm:$0xff] }
 0x1b6   :  { %2480 = vmatmul.bf16.gmra.mxu3 %v8160_v25  ;;  %2519 = vmatpush.bf16.msra.mxu0 %v6145_v63  ;;  %v6273_v40 = vor.u32 %v7521_v31, %v6272_v46  ;;  %v6384_v46 = vld [vmem:[%s11695_s1 + $0x468] sm:$0xf]  ;;  %v7485_v31 = vld [vmem:[%s11695_s1 + $0x274] sm:$0xf0] }
 0x1b7   :  { %2666 = vmatpush.bf16.msra.mxu3 %v6529_v60 }
 0x1b8   :  { %v2236_v39 = vpop.f32.mrf.mxu2  ;;  %2568 = vmatpush.bf16.msra.mxu1 %v6273_v40  ;;  %v7581_v40 = vld [vmem:[%s11695_s1 + $0x574] sm:$0xf0] }
 0x1b9   :  { %v2237_v55 = vadd.f32 %v2236_v39, %v2188_v58  ;;  %v2285_v3 = vpop.f32.mrf.mxu3  ;;  %v2140_v18 = vpop.f32.mrf.mxu0  ;;  %v2095_v58 = vadd.f32 %v9118_v30, %v9310_v59  ;;  %v7549_v30 = vld [vmem:[%s11695_s1 + $0x474] sm:$0xf0] }
 0x1ba   :  { %v2141_v53 = vadd.f32 %v2140_v18, %v2092_v7  ;;  %v2189_v5 = vpop.f32.mrf.mxu1  ;;  %v11854_v18 = vld [vmem:[#allocation27_spill] sm:$0xff] }
 0x1bb   :  { %v9381_v25 = vadd.f32 %v2285_v3, %v2237_v55  ;;  %v11853_v3 = vld [vmem:[#allocation26_spill] sm:$0xff] }
 0x1bc   :  { %v2190_v28 = vadd.f32 %v2189_v5, %v2141_v53  ;;  %v6128_v53 = vld [vmem:[%s11695_s1 + $0x268] sm:$0xf]  ;;  %v6385_v5 = vor.u32 %v7549_v30, %v6384_v46 }
 0x1be   :  { %2618 = vmatpush.bf16.msra.mxu2 %v6385_v5 }
 0x1c0   :  { %v2238_v2 = vpop.f32.mrf.mxu2 }
 0x1c1   :  { %v2239_v48 = vadd.f32 %v2238_v2, %v2190_v28  ;;  %v2287_v47 = vpop.f32.mrf.mxu3  ;;  %v2143_v7 = vpop.f32.mrf.mxu0  ;;  %v6512_v28 = vld [vmem:[%s11695_s1 + $0x568] sm:$0xf] }
 0x1c2   :  { %v2144_v39 = vadd.f32 %v2143_v7, %v2095_v58  ;;  %v2192_v63 = vpop.f32.mrf.mxu1  ;;  %v2097_v58 = vadd.f32 %v9127_v17, %v9310_v59  ;;  %v7517_v17 = vld [vmem:[%s11695_s1 + $0x374] sm:$0xf0] }
 0x1c3   :  { %v9391_v60 = vadd.f32 %v2287_v47, %v2239_v48  ;;  %v6129_v48 = vor.u32 %v7485_v31, %v6128_v53  ;;  %v6513_v47 = vor.u32 %v7581_v40, %v6512_v28 }
 0x1c4   :  { %v2193_v55 = vadd.f32 %v2192_v63, %v2144_v39  ;;  %2338 = vmatmul.bf16.gmra.mxu0 %v11853_v3 }
 0x1c5   :  { %2387 = vmatmul.bf16.gmra.mxu1 %v11854_v18  ;;  %2436 = vmatmul.bf16.gmra.mxu2 %v11855_v4  ;;  %v6256_v4 = vld [vmem:[%s11695_s1 + $0x368] sm:$0xf]  ;;  %v11858_v18 = vld [vmem:[#allocation8_spill] sm:$0xff] }
 0x1c6   :  { %2485 = vmatmul.bf16.gmra.mxu3 %v8220_v50  ;;  %2520 = vmatpush.bf16.msra.mxu0 %v6129_v48  ;;  %v6257_v31 = vor.u32 %v7517_v17, %v6256_v4  ;;  %v7545_v4 = vld [vmem:[%s11695_s1 + $0x454] sm:$0xf0] }
 0x1c7   :  { %2667 = vmatpush.bf16.msra.mxu3 %v6513_v47  ;;  %v7481_v17 = vld [vmem:[%s11695_s1 + $0x254] sm:$0xf0] }
 0x1c8   :  { %v2241_v2 = vpop.f32.mrf.mxu2  ;;  %2569 = vmatpush.bf16.msra.mxu1 %v6257_v31  ;;  %v7577_v31 = vld [vmem:[%s11695_s1 + $0x554] sm:$0xf0] }
 0x1c9   :  { %v2242_v7 = vadd.f32 %v2241_v2, %v2193_v55  ;;  %v2290_v39 = vpop.f32.mrf.mxu3  ;;  %v2145_v63 = vpop.f32.mrf.mxu0  ;;  %v2100_v55 = vadd.f32 %v9154_v37, %v9310_v59  ;;  %v6368_v37 = vld [vmem:[%s11695_s1 + $0x448] sm:$0xf] }
 0x1ca   :  { %v2146_v46 = vadd.f32 %v2145_v63, %v2097_v58  ;;  %v2194_v30 = vpop.f32.mrf.mxu1  ;;  %v11857_v63 = vld [vmem:[#allocation29_spill] sm:$0xff] }
 0x1cb   :  { %v9417_v50 = vadd.f32 %v2290_v39, %v2242_v7  ;;  %v11856_v39 = vld [vmem:[#allocation28_spill] sm:$0xff] }
 0x1cc   :  { %v2195_v53 = vadd.f32 %v2194_v30, %v2146_v46  ;;  %v6112_v46 = vld [vmem:[%s11695_s1 + $0x248] sm:$0xf]  ;;  %v6369_v30 = vor.u32 %v7545_v4, %v6368_v37 }
 0x1ce   :  { %2619 = vmatpush.bf16.msra.mxu2 %v6369_v30 }
 0x1d0   :  { %v2243_v5 = vpop.f32.mrf.mxu2 }
 0x1d1   :  { %v2244_v28 = vadd.f32 %v2243_v5, %v2195_v53  ;;  %v2292_v40 = vpop.f32.mrf.mxu3  ;;  %v2148_v58 = vpop.f32.mrf.mxu0  ;;  %v6496_v53 = vld [vmem:[%s11695_s1 + $0x548] sm:$0xf] }
 0x1d2   :  { %v2149_v2 = vadd.f32 %v2148_v58, %v2100_v55  ;;  %v2197_v48 = vpop.f32.mrf.mxu1  ;;  %v2102_v55 = vadd.f32 %v9163_v44, %v9310_v59  ;;  %v7513_v44 = vld [vmem:[%s11695_s1 + $0x354] sm:$0xf0] }
 0x1d3   :  { %v9427_v47 = vadd.f32 %v2292_v40, %v2244_v28  ;;  %v6113_v28 = vor.u32 %v7481_v17, %v6112_v46  ;;  %v6497_v40 = vor.u32 %v7577_v31, %v6496_v53 }
 0x1d4   :  { %v2198_v7 = vadd.f32 %v2197_v48, %v2149_v2  ;;  %2343 = vmatmul.bf16.gmra.mxu0 %v11856_v39 }
 0x1d5   :  { %2392 = vmatmul.bf16.gmra.mxu1 %v11857_v63  ;;  %2441 = vmatmul.bf16.gmra.mxu2 %v11858_v18  ;;  %v6240_v18 = vld [vmem:[%s11695_s1 + $0x348] sm:$0xf]  ;;  %v11861_v63 = vld [vmem:[#allocation10_spill] sm:$0xff] }
 0x1d6   :  { %2490 = vmatmul.bf16.gmra.mxu3 %v8280_v13  ;;  %2521 = vmatpush.bf16.msra.mxu0 %v6113_v28  ;;  %v6241_v17 = vor.u32 %v7513_v44, %v6240_v18  ;;  %v7541_v18 = vld [vmem:[%s11695_s1 + $0x434] sm:$0xf0] }
 0x1d7   :  { %2668 = vmatpush.bf16.msra.mxu3 %v6497_v40  ;;  %v7477_v44 = vld [vmem:[%s11695_s1 + $0x234] sm:$0xf0] }
 0x1d8   :  { %v2246_v5 = vpop.f32.mrf.mxu2  ;;  %2570 = vmatpush.bf16.msra.mxu1 %v6241_v17  ;;  %v7573_v17 = vld [vmem:[%s11695_s1 + $0x534] sm:$0xf0] }
 0x1d9   :  { %v2247_v58 = vadd.f32 %v2246_v5, %v2198_v7  ;;  %v2295_v2 = vpop.f32.mrf.mxu3  ;;  %v2150_v48 = vpop.f32.mrf.mxu0  ;;  %v2105_v7 = vadd.f32 %v9190_v29, %v9310_v59  ;;  %v6352_v29 = vld [vmem:[%s11695_s1 + $0x428] sm:$0xf] }
 0x1da   :  { %v2151_v37 = vadd.f32 %v2150_v48, %v2102_v55  ;;  %v2199_v4 = vpop.f32.mrf.mxu1  ;;  %v11860_v48 = vld [vmem:[#allocation31_spill] sm:$0xff] }
 0x1db   :  { %v9453_v13 = vadd.f32 %v2295_v2, %v2247_v58  ;;  %v11859_v2 = vld [vmem:[#allocation30_spill] sm:$0xff] }
 0x1dc   :  { %v2200_v46 = vadd.f32 %v2199_v4, %v2151_v37  ;;  %v6096_v37 = vld [vmem:[%s11695_s1 + $0x228] sm:$0xf]  ;;  %v6353_v4 = vor.u32 %v7541_v18, %v6352_v29 }
 0x1de   :  { %2620 = vmatpush.bf16.msra.mxu2 %v6353_v4 }
 0x1e0   :  { %v2248_v30 = vpop.f32.mrf.mxu2 }
 0x1e1   :  { %v2249_v53 = vadd.f32 %v2248_v30, %v2200_v46  ;;  %v2297_v31 = vpop.f32.mrf.mxu3  ;;  %v2153_v55 = vpop.f32.mrf.mxu0  ;;  %v6480_v46 = vld [vmem:[%s11695_s1 + $0x528] sm:$0xf] }
 0x1e2   :  { %v2154_v5 = vadd.f32 %v2153_v55, %v2105_v7  ;;  %v2202_v28 = vpop.f32.mrf.mxu1  ;;  %v2107_v7 = vadd.f32 %v9199_v61, %v9310_v59  ;;  %v7509_v61 = vld [vmem:[%s11695_s1 + $0x334] sm:$0xf0] }
 0x1e3   :  { %v9463_v40 = vadd.f32 %v2297_v31, %v2249_v53  ;;  %v6097_v53 = vor.u32 %v7477_v44, %v6096_v37  ;;  %v6481_v31 = vor.u32 %v7573_v17, %v6480_v46 }
 0x1e4   :  { %v2203_v58 = vadd.f32 %v2202_v28, %v2154_v5  ;;  %2348 = vmatmul.bf16.gmra.mxu0 %v11859_v2 }
 0x1e5   :  { %2397 = vmatmul.bf16.gmra.mxu1 %v11860_v48  ;;  %2446 = vmatmul.bf16.gmra.mxu2 %v11861_v63  ;;  %v6224_v63 = vld [vmem:[%s11695_s1 + $0x328] sm:$0xf]  ;;  %v11864_v48 = vld [vmem:[#allocation12_spill] sm:$0xff] }
 0x1e6   :  { %2495 = vmatmul.bf16.gmra.mxu3 %v8340_v41  ;;  %2522 = vmatpush.bf16.msra.mxu0 %v6097_v53  ;;  %v6225_v44 = vor.u32 %v7509_v61, %v6224_v63  ;;  %v7537_v63 = vld [vmem:[%s11695_s1 + $0x414] sm:$0xf0] }
 0x1e7   :  { %2669 = vmatpush.bf16.msra.mxu3 %v6481_v31  ;;  %v7473_v61 = vld [vmem:[%s11695_s1 + $0x214] sm:$0xf0] }
 0x1e8   :  { %v2251_v30 = vpop.f32.mrf.mxu2  ;;  %2571 = vmatpush.bf16.msra.mxu1 %v6225_v44  ;;  %v7569_v44 = vld [vmem:[%s11695_s1 + $0x514] sm:$0xf0] }
 0x1e9   :  { %v2252_v55 = vadd.f32 %v2251_v30, %v2203_v58  ;;  %v2300_v5 = vpop.f32.mrf.mxu3  ;;  %v2155_v28 = vpop.f32.mrf.mxu0  ;;  %v2110_v58 = vadd.f32 %v9226_v8, %v9310_v59  ;;  %v6336_v8 = vld [vmem:[%s11695_s1 + $0x408] sm:$0xf] }
 0x1ea   :  { %v2156_v29 = vadd.f32 %v2155_v28, %v2107_v7  ;;  %v2204_v18 = vpop.f32.mrf.mxu1  ;;  %v11863_v28 = vld [vmem:[#allocation33_spill] sm:$0xff] }
 0x1eb   :  { %v9489_v41 = vadd.f32 %v2300_v5, %v2252_v55  ;;  %v11862_v5 = vld [vmem:[#allocation32_spill] sm:$0xff] }
 0x1ec   :  { %v2205_v37 = vadd.f32 %v2204_v18, %v2156_v29  ;;  %v6080_v29 = vld [vmem:[%s11695_s1 + $0x208] sm:$0xf]  ;;  %v6337_v18 = vor.u32 %v7537_v63, %v6336_v8 }
 0x1ee   :  { %2621 = vmatpush.bf16.msra.mxu2 %v6337_v18 }
 0x1f0   :  { %v2253_v4 = vpop.f32.mrf.mxu2 }
 0x1f1   :  { %v2254_v46 = vadd.f32 %v2253_v4, %v2205_v37  ;;  %v2302_v17 = vpop.f32.mrf.mxu3  ;;  %v2158_v7 = vpop.f32.mrf.mxu0  ;;  %v6464_v37 = vld [vmem:[%s11695_s1 + $0x508] sm:$0xf] }
 0x1f2   :  { %v2159_v30 = vadd.f32 %v2158_v7, %v2110_v58  ;;  %v2207_v53 = vpop.f32.mrf.mxu1  ;;  %v2112_v58 = vadd.f32 %v9235_v62, %v9310_v59  ;;  %v7505_v62 = vld [vmem:[%s11695_s1 + $0x314] sm:$0xf0] }
 0x1f3   :  { %v9499_v31 = vadd.f32 %v2302_v17, %v2254_v46  ;;  %v6081_v46 = vor.u32 %v7473_v61, %v6080_v29  ;;  %v6465_v17 = vor.u32 %v7569_v44, %v6464_v37 }
 0x1f4   :  { %v2208_v55 = vadd.f32 %v2207_v53, %v2159_v30  ;;  %2353 = vmatmul.bf16.gmra.mxu0 %v11862_v5 }
 0x1f5   :  { %2402 = vmatmul.bf16.gmra.mxu1 %v11863_v28  ;;  %2451 = vmatmul.bf16.gmra.mxu2 %v11864_v48  ;;  %v6208_v48 = vld [vmem:[%s11695_s1 + $0x308] sm:$0xf]  ;;  %v11867_v28 = vld [vmem:[#allocation14_spill] sm:$0xff] }
 0x1f6   :  { %2500 = vmatmul.bf16.gmra.mxu3 %v8400_v9  ;;  %2523 = vmatpush.bf16.msra.mxu0 %v6081_v46  ;;  %v6209_v61 = vor.u32 %v7505_v62, %v6208_v48  ;;  %v6704_v62 = vld [vmem:[%s11695_s1 + $0x6e8] sm:$0xf] }
 0x1f7   :  { %2670 = vmatpush.bf16.msra.mxu3 %v6465_v17 }
 0x1f8   :  { %v2256_v4 = vpop.f32.mrf.mxu2  ;;  %2572 = vmatpush.bf16.msra.mxu1 %v6209_v61 }
 0x1f9   :  { %v2257_v7 = vadd.f32 %v2256_v4, %v2208_v55  ;;  %v2305_v30 = vpop.f32.mrf.mxu3  ;;  %v2160_v53 = vpop.f32.mrf.mxu0  ;;  %v2115_v55 = vadd.f32 %v9262_v21, %v9310_v59  ;;  %v2117_v21 = vadd.f32 %v9271_v49, %v9310_v59  ;;  %v7629_v49 = vld [vmem:[%s11695_s1 + $0x6f4] sm:$0xf0] }
 0x1fa   :  { %v2161_v8 = vadd.f32 %v2160_v53, %v2112_v58  ;;  %v2209_v63 = vpop.f32.mrf.mxu1  ;;  %v11866_v53 = vld [vmem:[#allocation36_spill] sm:$0xff] }
 0x1fb   :  { %v9525_v9 = vadd.f32 %v2305_v30, %v2257_v7  ;;  %v11865_v30 = vld [vmem:[#allocation35_spill] sm:$0xff] }
 0x1fc   :  { %v2210_v29 = vadd.f32 %v2209_v63, %v2161_v8  ;;  %v7467_v8 = vld [vmem:[%s11695_s1 + $0x1ec] sm:$0xf]  ;;  %v6066_v63 = vld [vmem:[%s11695_s1 + $0x1f8] sm:$0xf0] }
 0x200   :  { %v2258_v18 = vpop.f32.mrf.mxu2 }
 0x201   :  { %v2259_v37 = vadd.f32 %v2258_v18, %v2210_v29  ;;  %v2307_v44 = vpop.f32.mrf.mxu3  ;;  %v2163_v58 = vpop.f32.mrf.mxu0  ;;  %v6069_v18 = vor.u32 %v7467_v8, %v6066_v63  ;;  %v5938_v8 = vld [vmem:[%s11695_s1 + $0xf8] sm:$0xf0] }
 0x202   :  { %v2164_v4 = vadd.f32 %v2163_v58, %v2115_v55  ;;  %v2212_v46 = vpop.f32.mrf.mxu1 }
 0x203   :  { %v9535_v17 = vadd.f32 %v2307_v44, %v2259_v37  ;;  %v7499_v37 = vld [vmem:[%s11695_s1 + $0x2ec] sm:$0xf]  ;;  %v6194_v44 = vld [vmem:[%s11695_s1 + $0x2f8] sm:$0xf0]  ;;  %2810 = vmatpush.bf16.msrb.mxu2 %v6069_v18 }
 0x204   :  { %v2213_v7 = vadd.f32 %v2212_v46, %v2164_v4  ;;  %2358 = vmatmul.bf16.gmra.mxu0 %v11865_v30  ;;  %v6705_v46 = vor.u32 %v7629_v49, %v6704_v62 }
 0x205   :  { %2407 = vmatmul.bf16.gmra.mxu1 %v11866_v53  ;;  %2456 = vmatmul.bf16.gmra.mxu2 %v11867_v28 }
 0x206   :  { %2505 = vmatmul.bf16.gmra.mxu3 %v8460_v45  ;;  %v6197_v45 = vor.u32 %v7499_v37, %v6194_v44  ;;  %2712 = vmatpush.bf16.msrb.mxu0 %v6705_v46 }
 0x208   :  { %v2261_v48 = vpop.f32.mrf.mxu2  ;;  %2859 = vmatpush.bf16.msrb.mxu3 %v6197_v45  ;;  %v2122_v45 = vadd.f32 %v9317_v22, %v9310_v59  ;;  %v7495_v22 = vld [vmem:[%s11695_s1 + $0x2cc] sm:$0xf] }
 0x209   :  { %v2262_v29 = vadd.f32 %v2261_v48, %v2213_v7  ;;  %v2310_v61 = vpop.f32.mrf.mxu3  ;;  %v2165_v55 = vpop.f32.mrf.mxu0  ;;  %v7435_v48 = vld [vmem:[%s11695_s1 + $0xec] sm:$0xf] }
 0x20a   :  { %v2166_v58 = vadd.f32 %v2165_v55, %v2117_v21  ;;  %v2214_v4 = vpop.f32.mrf.mxu1  ;;  %v5941_v28 = vor.u32 %v7435_v48, %v5938_v8  ;;  %v2120_v21 = vadd.f32 %v9298_v23, %v9310_v59  ;;  %v7625_v59 = vld [vmem:[%s11695_s1 + $0x6d4] sm:$0xf0] }
 0x20b   :  { %v9561_v7 = vadd.f32 %v2310_v61, %v2262_v29 }
 0x20c   :  { %v2215_v63 = vadd.f32 %v2214_v4, %v2166_v58  ;;  %2761 = vmatpush.bf16.msrb.mxu1 %v5941_v28  ;;  %v7463_v28 = vld [vmem:[%s11695_s1 + $0x1cc] sm:$0xf]  ;;  %v6050_v58 = vld [vmem:[%s11695_s1 + $0x1d8] sm:$0xf0]  ;;  %v6688_v4 = vld [vmem:[%s11695_s1 + $0x6c8] sm:$0xf] }
 0x210   :  { %v2263_v62 = vpop.f32.mrf.mxu2 }
 0x211   :  { %v2264_v29 = vadd.f32 %v2263_v62, %v2215_v63  ;;  %v2312_v61 = vpop.f32.mrf.mxu3  ;;  %v2168_v55 = vpop.f32.mrf.mxu0  ;;  %v6053_v63 = vor.u32 %v7463_v28, %v6050_v58 }
 0x212   :  { %v2169_v18 = vadd.f32 %v2168_v55, %v2120_v21  ;;  %v2217_v49 = vpop.f32.mrf.mxu1  ;;  %v6178_v21 = vld [vmem:[%s11695_s1 + $0x2d8] sm:$0xf0] }
 0x213   :  { %v9571_v37 = vadd.f32 %v2312_v61, %v2264_v29  ;;  %v6689_v61 = vor.u32 %v7625_v59, %v6688_v4  ;;  %v6181_v55 = vor.u32 %v7495_v22, %v6178_v21  ;;  %2811 = vmatpush.bf16.msrb.mxu2 %v6053_v63  ;;  %v9612_v22 = vperm.slane %v9307_v12, 2 }
 0x214   :  { %v2218_v44 = vadd.f32 %v2217_v49, %v2169_v18  ;;  %2363 = vmatmul.bf16.gmra.mxu0 %v8983_v56  ;;  %v7431_v49 = vld [vmem:[%s11695_s1 + $0xcc] sm:$0xf] }
 0x215   :  { %2412 = vmatmul.bf16.gmra.mxu1 %v8985_v16  ;;  %2461 = vmatmul.bf16.gmra.mxu2 %v8518_v20 }
 0x216   :  { %2510 = vmatmul.bf16.gmra.mxu3 %v11842_v24  ;;  %2713 = vmatpush.bf16.msrb.mxu0 %v6689_v61 }
 0x217   :  { %2860 = vmatpush.bf16.msrb.mxu3 %v6181_v55 }
 0x218   :  { %v2266_v23 = vpop.f32.mrf.mxu2 }
 0x219   :  { %v2267_v46 = vadd.f32 %v2266_v23, %v2218_v44  ;;  %v2315_v48 = vpop.f32.mrf.mxu3  ;;  %v2170_v8 = vpop.f32.mrf.mxu0  ;;  %v5922_v44 = vld [vmem:[%s11695_s1 + $0xd8] sm:$0xf0] }
 0x21a   :  { %v2171_v62 = vadd.f32 %v2170_v8, %v2122_v45  ;;  %v2219_v29 = vpop.f32.mrf.mxu1  ;;  %v5925_v28 = vor.u32 %v7431_v49, %v5922_v44  ;;  %v7621_v44 = vld [vmem:[%s11695_s1 + $0x6b4] sm:$0xf0] }
 0x21b   :  { %v9597_v18 = vadd.f32 %v2315_v48, %v2267_v46 }
 0x21c   :  { %v2220_v23 = vadd.f32 %v2219_v29, %v2171_v62  ;;  %2762 = vmatpush.bf16.msrb.mxu1 %v5925_v28  ;;  %v6034_v62 = vld [vmem:[%s11695_s1 + $0x1b8] sm:$0xf0]  ;;  %v6672_v29 = vld [vmem:[%s11695_s1 + $0x6a8] sm:$0xf] }
 0x21d   :  { %v6162_v28 = vld [vmem:[%s11695_s1 + $0x2b8] sm:$0xf0] }
 0x220   :  { %v2268_v45 = vpop.f32.mrf.mxu2 }
 0x221   :  { %v2269_v58 = vadd.f32 %v2268_v45, %v2220_v23  ;;  %v2317_v4 = vpop.f32.mrf.mxu3  ;;  %v2329_v8 = vpop.f32.mrf.mxu0  ;;  %v7491_v23 = vld [vmem:[%s11695_s1 + $0x2ac] sm:$0xf] }
 0x222   :  { %v2330_v46 = vadd.f32 %v2329_v8, %v9345_v38  ;;  %v2378_v48 = vpop.f32.mrf.mxu1  ;;  %v7459_v38 = vld [vmem:[%s11695_s1 + $0x1ac] sm:$0xf]  ;;  %v6165_v8 = vor.u32 %v7491_v23, %v6162_v28 }
 0x223   :  { %v9606_v63 = vadd.f32 %v2317_v4, %v2269_v58  ;;  %v6037_v49 = vor.u32 %v7459_v38, %v6034_v62  ;;  %v6673_v4 = vor.u32 %v7621_v44, %v6672_v29 }
 0x224   :  { %v2379_v59 = vadd.f32 %v2378_v48, %v2330_v46  ;;  %2524 = vmatmul.bf16.vlgmr.msra.gmra.mxu0 %v8084_v54  ;;  %v7427_v48 = vld [vmem:[%s11695_s1 + $0xac] sm:$0xf]  ;;  %2861 = vmatpush.bf16.msrb.mxu3 %v6165_v8 }
 0x225   :  { %2573 = vmatmul.bf16.vlgmr.msra.gmra.mxu1 %v8092_v57  ;;  %2622 = vmatmul.bf16.vlgmr.msra.gmra.mxu2 %v8577_v0 }
 0x226   :  { %2671 = vmatmul.bf16.vlgmr.msra.gmra.mxu3 %v11846_v32  ;;  %2812 = vmatpush.bf16.msrb.mxu2 %v6037_v49  ;;  %v3169_v38 = vmul.f32 0.01, %v2379_v59  ;;  %vm3105_vm0 = vcmp.ge.f32.partialorder %v2379_v59, 0.0 }
 0x227   :  { %2714 = vmatpush.bf16.msrb.mxu0 %v6673_v4 }
 0x228   :  { %v2427_v21 = vpop.f32.mrf.mxu2  ;;  %v3233_v29 = vsel %vm3105_vm0, %v2379_v59, %v3169_v38  ;;  %v7455_v59 = vld [vmem:[%s11695_s1 + $0x18c] sm:$0xf]  ;;  %v7617_v38 = vld [vmem:[%s11695_s1 + $0x694] sm:$0xf0] }
 0x229   :  { %v2428_v61 = vadd.f32 %v2427_v21, %v9612_v22  ;;  %v2476_v55 = vpop.f32.mrf.mxu3  ;;  %v2331_v12 = vpop.f32.mrf.mxu0  ;;  %v5906_v21 = vld [vmem:[%s11695_s1 + $0xb8] sm:$0xf0] }
 0x22a   :  { %v2332_v45 = vadd.f32 %v2331_v12, %v9355_v1  ;;  %v2380_v58 = vpop.f32.mrf.mxu1  ;;  %v5909_v32 = vor.u32 %v7427_v48, %v5906_v21 }
 0x22b   :  { %v9635_v46 = vadd.f32 %v2476_v55, %v2428_v61 }
 0x22c   :  { %v2381_v62 = vadd.f32 %v2380_v58, %v2332_v45  ;;  %2763 = vmatpush.bf16.msrb.mxu1 %v5909_v32 }
 0x22e   :  { %vm3109_vm1 = vcmp.ge.f32.partialorder %v2381_v62, 0.0  ;;  %v3173_v1 = vmul.f32 0.01, %v2381_v62 }
 0x230   :  { %v3237_v61 = vsel %vm3109_vm1, %v2381_v62, %v3173_v1  ;;  %v2429_v55 = vpop.f32.mrf.mxu2  ;;  %v7487_v62 = vld [vmem:[%s11695_s1 + $0x28c] sm:$0xf]  ;;  %v6146_v1 = vld [vmem:[%s11695_s1 + $0x298] sm:$0xf0] }
 0x231   :  { %v9643_v12 = vpack.c.bf16 %v3237_v61, %v3233_v29  ;;  %v2430_v49 = vadd.f32 %v2429_v55, %v9612_v22  ;;  %v2478_v44 = vpop.f32.mrf.mxu3  ;;  %v2334_v23 = vpop.f32.mrf.mxu0 }
 0x232   :  { %v2335_v28 = vadd.f32 %v2334_v23, %v9381_v25  ;;  %v2383_v0 = vpop.f32.mrf.mxu1  ;;  %v6018_v25 = vld [vmem:[%s11695_s1 + $0x198] sm:$0xf0]  ;;  %v7423_v23 = vld [vmem:[%s11695_s1 + $0x8c] sm:$0xf] }
 0x233   :  { %11868 = vst [vmem:[#allocation24_spill] sm:$0xff] %v9643_v12  ;;  %v9647_v45 = vadd.f32 %v2478_v44, %v2430_v49  ;;  %v6021_v21 = vor.u32 %v7455_v59, %v6018_v25  ;;  %v6149_v49 = vor.u32 %v7487_v62, %v6146_v1 }
 0x234   :  { %v2384_v58 = vadd.f32 %v2383_v0, %v2335_v28  ;;  %2529 = vmatmul.bf16.gmra.mxu0 %v8162_v26  ;;  %v6656_v0 = vld [vmem:[%s11695_s1 + $0x688] sm:$0xf]  ;;  %v5890_v28 = vld [vmem:[%s11695_s1 + $0x98] sm:$0xf0] }
 0x235   :  { %2578 = vmatmul.bf16.gmra.mxu1 %v8164_v27  ;;  %2627 = vmatmul.bf16.gmra.mxu2 %v8633_v6  ;;  %v6657_v55 = vor.u32 %v7617_v38, %v6656_v0  ;;  %v5893_v25 = vor.u32 %v7423_v23, %v5890_v28 }
 0x236   :  { %2676 = vmatmul.bf16.gmra.mxu3 %v11850_v19  ;;  %2813 = vmatpush.bf16.msrb.mxu2 %v6021_v21  ;;  %vm3113_vm2 = vcmp.ge.f32.partialorder %v2384_v58, 0.0 }
 0x237   :  { %2715 = vmatpush.bf16.msrb.mxu0 %v6657_v55  ;;  %2862 = vmatpush.bf16.msrb.mxu3 %v6149_v49  ;;  %v7451_v55 = vld [vmem:[%s11695_s1 + $0x16c] sm:$0xf] }
 0x238   :  { %v2432_v32 = vpop.f32.mrf.mxu2  ;;  %2764 = vmatpush.bf16.msrb.mxu1 %v5893_v25  ;;  %v7483_v25 = vld [vmem:[%s11695_s1 + $0x26c] sm:$0xf] }
 0x239   :  { %v2433_v4 = vadd.f32 %v2432_v32, %v9612_v22  ;;  %v2481_v8 = vpop.f32.mrf.mxu3  ;;  %v2336_v48 = vpop.f32.mrf.mxu0  ;;  %v3177_v32 = vmul.f32 0.01, %v2384_v58 }
 0x23a   :  { %v2337_v29 = vadd.f32 %v2336_v48, %v9391_v60  ;;  %v2385_v61 = vpop.f32.mrf.mxu1 }
 0x23b   :  { %v9673_v44 = vadd.f32 %v2481_v8, %v2433_v4  ;;  %v3241_v0 = vsel %vm3113_vm2, %v2384_v58, %v3177_v32 }
 0x23c   :  { %v2386_v59 = vadd.f32 %v2385_v61, %v2337_v29 }
 0x23e   :  { %vm3117_vm3 = vcmp.ge.f32.partialorder %v2386_v59, 0.0  ;;  %v3181_v60 = vmul.f32 0.01, %v2386_v59 }
 0x240   :  { %v3245_v4 = vsel %vm3117_vm3, %v2386_v59, %v3181_v60  ;;  %v2434_v8 = vpop.f32.mrf.mxu2  ;;  %v7613_v59 = vld [vmem:[%s11695_s1 + $0x674] sm:$0xf0]  ;;  %v6130_v60 = vld [vmem:[%s11695_s1 + $0x278] sm:$0xf0] }
 0x241   :  { %v9681_v48 = vpack.c.bf16 %v3245_v4, %v3241_v0  ;;  %v2435_v21 = vadd.f32 %v2434_v8, %v9612_v22  ;;  %v2483_v38 = vpop.f32.mrf.mxu3  ;;  %v2339_v62 = vpop.f32.mrf.mxu0 }
 0x242   :  { %v2340_v1 = vadd.f32 %v2339_v62, %v9417_v50  ;;  %v2388_v12 = vpop.f32.mrf.mxu1  ;;  %v6002_v50 = vld [vmem:[%s11695_s1 + $0x178] sm:$0xf0]  ;;  %v7419_v62 = vld [vmem:[%s11695_s1 + $0x6c] sm:$0xf] }
 0x243   :  { %11869 = vst [vmem:[#allocation26_spill] sm:$0xff] %v9681_v48  ;;  %v9685_v29 = vadd.f32 %v2483_v38, %v2435_v21  ;;  %v6005_v32 = vor.u32 %v7451_v55, %v6002_v50  ;;  %v6133_v21 = vor.u32 %v7483_v25, %v6130_v60 }
 0x244   :  { %v2389_v61 = vadd.f32 %v2388_v12, %v2340_v1  ;;  %2534 = vmatmul.bf16.gmra.mxu0 %v8222_v51  ;;  %v6640_v12 = vld [vmem:[%s11695_s1 + $0x668] sm:$0xf]  ;;  %v5874_v1 = vld [vmem:[%s11695_s1 + $0x78] sm:$0xf0] }
 0x245   :  { %2583 = vmatmul.bf16.gmra.mxu1 %v8224_v52  ;;  %2632 = vmatmul.bf16.gmra.mxu2 %v8691_v36  ;;  %v6641_v8 = vor.u32 %v7613_v59, %v6640_v12  ;;  %v5877_v50 = vor.u32 %v7419_v62, %v5874_v1 }
 0x246   :  { %2681 = vmatmul.bf16.gmra.mxu3 %v11853_v3  ;;  %2814 = vmatpush.bf16.msrb.mxu2 %v6005_v32  ;;  %vm3121_vm4 = vcmp.ge.f32.partialorder %v2389_v61, 0.0 }
 0x247   :  { %2716 = vmatpush.bf16.msrb.mxu0 %v6641_v8  ;;  %2863 = vmatpush.bf16.msrb.mxu3 %v6133_v21  ;;  %v7447_v8 = vld [vmem:[%s11695_s1 + $0x14c] sm:$0xf] }
 0x248   :  { %v2437_v58 = vpop.f32.mrf.mxu2  ;;  %2765 = vmatpush.bf16.msrb.mxu1 %v5877_v50  ;;  %v7479_v50 = vld [vmem:[%s11695_s1 + $0x24c] sm:$0xf] }
 0x249   :  { %v2438_v49 = vadd.f32 %v2437_v58, %v9612_v22  ;;  %v2486_v23 = vpop.f32.mrf.mxu3  ;;  %v2341_v28 = vpop.f32.mrf.mxu0  ;;  %v3185_v58 = vmul.f32 0.01, %v2389_v61 }
 0x24a   :  { %v2342_v0 = vadd.f32 %v2341_v28, %v9427_v47  ;;  %v2390_v4 = vpop.f32.mrf.mxu1 }
 0x24b   :  { %v9711_v38 = vadd.f32 %v2486_v23, %v2438_v49  ;;  %v3249_v12 = vsel %vm3121_vm4, %v2389_v61, %v3185_v58 }
 0x24c   :  { %v2391_v55 = vadd.f32 %v2390_v4, %v2342_v0 }
 0x24e   :  { %vm3125_vm5 = vcmp.ge.f32.partialorder %v2391_v55, 0.0  ;;  %v3189_v47 = vmul.f32 0.01, %v2391_v55 }
 0x250   :  { %v3253_v49 = vsel %vm3125_vm5, %v2391_v55, %v3189_v47  ;;  %v2439_v23 = vpop.f32.mrf.mxu2  ;;  %v7609_v55 = vld [vmem:[%s11695_s1 + $0x654] sm:$0xf0]  ;;  %v6114_v47 = vld [vmem:[%s11695_s1 + $0x258] sm:$0xf0] }
 0x251   :  { %v9719_v28 = vpack.c.bf16 %v3253_v49, %v3249_v12  ;;  %v2440_v32 = vadd.f32 %v2439_v23, %v9612_v22  ;;  %v2488_v59 = vpop.f32.mrf.mxu3  ;;  %v2344_v25 = vpop.f32.mrf.mxu0 }
 0x252   :  { %v2345_v60 = vadd.f32 %v2344_v25, %v9453_v13  ;;  %v2393_v48 = vpop.f32.mrf.mxu1  ;;  %v5986_v13 = vld [vmem:[%s11695_s1 + $0x158] sm:$0xf0]  ;;  %v7415_v25 = vld [vmem:[%s11695_s1 + $0x4c] sm:$0xf] }
 0x253   :  { %11870 = vst [vmem:[#allocation28_spill] sm:$0xff] %v9719_v28  ;;  %v9723_v0 = vadd.f32 %v2488_v59, %v2440_v32  ;;  %v5989_v58 = vor.u32 %v7447_v8, %v5986_v13  ;;  %v6117_v32 = vor.u32 %v7479_v50, %v6114_v47 }
 0x254   :  { %v2394_v4 = vadd.f32 %v2393_v48, %v2345_v60  ;;  %2539 = vmatmul.bf16.gmra.mxu0 %v8282_v14  ;;  %v6624_v48 = vld [vmem:[%s11695_s1 + $0x648] sm:$0xf]  ;;  %v5858_v60 = vld [vmem:[%s11695_s1 + $0x58] sm:$0xf0] }
 0x255   :  { %2588 = vmatmul.bf16.gmra.mxu1 %v8284_v15  ;;  %2637 = vmatmul.bf16.gmra.mxu2 %v8749_v33  ;;  %v6625_v23 = vor.u32 %v7609_v55, %v6624_v48  ;;  %v5861_v13 = vor.u32 %v7415_v25, %v5858_v60 }
 0x256   :  { %2686 = vmatmul.bf16.gmra.mxu3 %v11856_v39  ;;  %2815 = vmatpush.bf16.msrb.mxu2 %v5989_v58  ;;  %vm3129_vm6 = vcmp.ge.f32.partialorder %v2394_v4, 0.0 }
 0x257   :  { %2717 = vmatpush.bf16.msrb.mxu0 %v6625_v23  ;;  %2864 = vmatpush.bf16.msrb.mxu3 %v6117_v32  ;;  %v7443_v23 = vld [vmem:[%s11695_s1 + $0x12c] sm:$0xf] }
 0x258   :  { %v2442_v61 = vpop.f32.mrf.mxu2  ;;  %2766 = vmatpush.bf16.msrb.mxu1 %v5861_v13  ;;  %v7475_v13 = vld [vmem:[%s11695_s1 + $0x22c] sm:$0xf] }
 0x259   :  { %v2443_v21 = vadd.f32 %v2442_v61, %v9612_v22  ;;  %v2491_v62 = vpop.f32.mrf.mxu3  ;;  %v2346_v1 = vpop.f32.mrf.mxu0  ;;  %v3193_v61 = vmul.f32 0.01, %v2394_v4 }
 0x25a   :  { %v2347_v12 = vadd.f32 %v2346_v1, %v9463_v40  ;;  %v2395_v49 = vpop.f32.mrf.mxu1 }
 0x25b   :  { %v9749_v59 = vadd.f32 %v2491_v62, %v2443_v21  ;;  %v3257_v48 = vsel %vm3129_vm6, %v2394_v4, %v3193_v61 }
 0x25c   :  { %v2396_v8 = vadd.f32 %v2395_v49, %v2347_v12 }
 0x25e   :  { %vm3133_vm7 = vcmp.ge.f32.partialorder %v2396_v8, 0.0  ;;  %v3197_v40 = vmul.f32 0.01, %v2396_v8 }
 0x260   :  { %v3261_v21 = vsel %vm3133_vm7, %v2396_v8, %v3197_v40  ;;  %v2444_v62 = vpop.f32.mrf.mxu2  ;;  %v7605_v8 = vld [vmem:[%s11695_s1 + $0x634] sm:$0xf0]  ;;  %v6098_v40 = vld [vmem:[%s11695_s1 + $0x238] sm:$0xf0] }
 0x261   :  { %v9757_v1 = vpack.c.bf16 %v3261_v21, %v3257_v48  ;;  %v2445_v58 = vadd.f32 %v2444_v62, %v9612_v22  ;;  %v2493_v55 = vpop.f32.mrf.mxu3  ;;  %v2349_v50 = vpop.f32.mrf.mxu0 }
 0x262   :  { %v2350_v47 = vadd.f32 %v2349_v50, %v9489_v41  ;;  %v2398_v28 = vpop.f32.mrf.mxu1  ;;  %v5970_v41 = vld [vmem:[%s11695_s1 + $0x138] sm:$0xf0]  ;;  %v7411_v50 = vld [vmem:[%s11695_s1 + $0x2c] sm:$0xf] }
 0x263   :  { %11871 = vst [vmem:[#allocation30_spill] sm:$0xff] %v9757_v1  ;;  %v9761_v12 = vadd.f32 %v2493_v55, %v2445_v58  ;;  %v5973_v61 = vor.u32 %v7443_v23, %v5970_v41  ;;  %v6101_v58 = vor.u32 %v7475_v13, %v6098_v40 }
 0x264   :  { %v2399_v49 = vadd.f32 %v2398_v28, %v2350_v47  ;;  %2544 = vmatmul.bf16.gmra.mxu0 %v8342_v42  ;;  %v6608_v28 = vld [vmem:[%s11695_s1 + $0x628] sm:$0xf]  ;;  %v5842_v47 = vld [vmem:[%s11695_s1 + $0x38] sm:$0xf0] }
 0x265   :  { %2593 = vmatmul.bf16.gmra.mxu1 %v8344_v43  ;;  %2642 = vmatmul.bf16.gmra.mxu2 %v8807_v35  ;;  %v6609_v62 = vor.u32 %v7605_v8, %v6608_v28  ;;  %v5845_v41 = vor.u32 %v7411_v50, %v5842_v47 }
 0x266   :  { %2691 = vmatmul.bf16.gmra.mxu3 %v11859_v2  ;;  %2816 = vmatpush.bf16.msrb.mxu2 %v5973_v61  ;;  %vm3137_vm8 = vcmp.ge.f32.partialorder %v2399_v49, 0.0 }
 0x267   :  { %2718 = vmatpush.bf16.msrb.mxu0 %v6609_v62  ;;  %2865 = vmatpush.bf16.msrb.mxu3 %v6101_v58  ;;  %v7439_v62 = vld [vmem:[%s11695_s1 + $0x10c] sm:$0xf] }
 0x268   :  { %v2447_v4 = vpop.f32.mrf.mxu2  ;;  %2767 = vmatpush.bf16.msrb.mxu1 %v5845_v41  ;;  %v7471_v41 = vld [vmem:[%s11695_s1 + $0x20c] sm:$0xf] }
 0x269   :  { %v2448_v32 = vadd.f32 %v2447_v4, %v9612_v22  ;;  %v2496_v25 = vpop.f32.mrf.mxu3  ;;  %v2351_v60 = vpop.f32.mrf.mxu0  ;;  %v3201_v4 = vmul.f32 0.01, %v2399_v49 }
 0x26a   :  { %v2352_v48 = vadd.f32 %v2351_v60, %v9499_v31  ;;  %v2400_v21 = vpop.f32.mrf.mxu1 }
 0x26b   :  { %v9787_v55 = vadd.f32 %v2496_v25, %v2448_v32  ;;  %v3265_v28 = vsel %vm3137_vm8, %v2399_v49, %v3201_v4 }
 0x26c   :  { %v2401_v23 = vadd.f32 %v2400_v21, %v2352_v48 }
 0x26e   :  { %vm3141_vm9 = vcmp.ge.f32.partialorder %v2401_v23, 0.0  ;;  %v3205_v31 = vmul.f32 0.01, %v2401_v23 }
 0x270   :  { %v3269_v32 = vsel %vm3141_vm9, %v2401_v23, %v3205_v31  ;;  %v2449_v25 = vpop.f32.mrf.mxu2  ;;  %v7601_v23 = vld [vmem:[%s11695_s1 + $0x614] sm:$0xf0]  ;;  %v6082_v31 = vld [vmem:[%s11695_s1 + $0x218] sm:$0xf0] }
 0x271   :  { %v9795_v60 = vpack.c.bf16 %v3269_v32, %v3265_v28  ;;  %v2450_v61 = vadd.f32 %v2449_v25, %v9612_v22  ;;  %v2498_v8 = vpop.f32.mrf.mxu3  ;;  %v2354_v13 = vpop.f32.mrf.mxu0 }
 0x272   :  { %v2355_v40 = vadd.f32 %v2354_v13, %v9525_v9  ;;  %v2403_v1 = vpop.f32.mrf.mxu1  ;;  %v5954_v9 = vld [vmem:[%s11695_s1 + $0x118] sm:$0xf0]  ;;  %v7407_v13 = vld [vmem:[%s11695_s1 + $0xc] sm:$0xf] }
 0x273   :  { %11872 = vst [vmem:[#allocation32_spill] sm:$0xff] %v9795_v60  ;;  %v9799_v48 = vadd.f32 %v2498_v8, %v2450_v61  ;;  %v5957_v4 = vor.u32 %v7439_v62, %v5954_v9  ;;  %v6085_v61 = vor.u32 %v7471_v41, %v6082_v31 }
 0x274   :  { %v2404_v21 = vadd.f32 %v2403_v1, %v2355_v40  ;;  %2549 = vmatmul.bf16.gmra.mxu0 %v8402_v10  ;;  %v6592_v1 = vld [vmem:[%s11695_s1 + $0x608] sm:$0xf]  ;;  %v5826_v40 = vld [vmem:[%s11695_s1 + $0x18] sm:$0xf0] }
 0x275   :  { %2598 = vmatmul.bf16.gmra.mxu1 %v8404_v11  ;;  %2647 = vmatmul.bf16.gmra.mxu2 %v8865_v34  ;;  %v6593_v25 = vor.u32 %v7601_v23, %v6592_v1  ;;  %v5829_v9 = vor.u32 %v7407_v13, %v5826_v40  ;;  %v11876_v13 = vld [vmem:[#allocation34_spill] sm:$0xff]  ;;  %v6322_v40 = vld [vmem:[%s11695_s1 + $0x3f8] sm:$0xf0] }
 0x276   :  { %2696 = vmatmul.bf16.gmra.mxu3 %v11862_v5  ;;  %2817 = vmatpush.bf16.msrb.mxu2 %v5957_v4  ;;  %vm3145_vm10 = vcmp.ge.f32.partialorder %v2404_v21, 0.0 }
 0x277   :  { %2719 = vmatpush.bf16.msrb.mxu0 %v6593_v25  ;;  %2866 = vmatpush.bf16.msrb.mxu3 %v6085_v61  ;;  %v11874_v25 = vld [vmem:[#allocation16_spill] sm:$0xff]  ;;  %v11875_v61 = vld [vmem:[#allocation17_spill] sm:$0xff] }
 0x278   :  { %v2452_v49 = vpop.f32.mrf.mxu2  ;;  %2768 = vmatpush.bf16.msrb.mxu1 %v5829_v9 }
 0x279   :  { %v2453_v58 = vadd.f32 %v2452_v49, %v9612_v22  ;;  %v2501_v50 = vpop.f32.mrf.mxu3  ;;  %v2356_v47 = vpop.f32.mrf.mxu0  ;;  %v3209_v49 = vmul.f32 0.01, %v2404_v21 }
 0x27a   :  { %v2357_v28 = vadd.f32 %v2356_v47, %v9535_v17  ;;  %v2405_v32 = vpop.f32.mrf.mxu1 }
 0x27b   :  { %v9825_v8 = vadd.f32 %v2501_v50, %v2453_v58  ;;  %v3273_v1 = vsel %vm3145_vm10, %v2404_v21, %v3209_v49  ;;  %v7595_v21 = vld [vmem:[%s11695_s1 + $0x5ec] sm:$0xf] }
 0x27c   :  { %v2406_v62 = vadd.f32 %v2405_v32, %v2357_v28 }
 0x27e   :  { %vm3149_vm11 = vcmp.ge.f32.partialorder %v2406_v62, 0.0  ;;  %v3213_v17 = vmul.f32 0.01, %v2406_v62 }
 0x280   :  { %v3277_v58 = vsel %vm3149_vm11, %v2406_v62, %v3213_v17  ;;  %v2454_v50 = vpop.f32.mrf.mxu2  ;;  %v7627_v17 = vld [vmem:[%s11695_s1 + $0x6ec] sm:$0xf] }
 0x281   :  { %v9833_v47 = vpack.c.bf16 %v3277_v58, %v3273_v1  ;;  %v2455_v4 = vadd.f32 %v2454_v50, %v9612_v22  ;;  %v2503_v23 = vpop.f32.mrf.mxu3  ;;  %v2359_v41 = vpop.f32.mrf.mxu0  ;;  %v6706_v1 = vld [vmem:[%s11695_s1 + $0x6f8] sm:$0xf0] }
 0x282   :  { %v2360_v31 = vadd.f32 %v2359_v41, %v9561_v7  ;;  %v2408_v60 = vpop.f32.mrf.mxu1  ;;  %v6578_v7 = vld [vmem:[%s11695_s1 + $0x5f8] sm:$0xf0] }
 0x283   :  { %11873 = vst [vmem:[#allocation36_spill] sm:$0xff] %v9833_v47  ;;  %v9837_v28 = vadd.f32 %v2503_v23, %v2455_v4  ;;  %v6581_v62 = vor.u32 %v7595_v21, %v6578_v7  ;;  %v6709_v23 = vor.u32 %v7627_v17, %v6706_v1  ;;  %v7563_v7 = vld [vmem:[%s11695_s1 + $0x4ec] sm:$0xf] }
 0x284   :  { %v2409_v32 = vadd.f32 %v2408_v60, %v2360_v31  ;;  %2554 = vmatmul.bf16.gmra.mxu0 %v11874_v25  ;;  %v7531_v60 = vld [vmem:[%s11695_s1 + $0x3ec] sm:$0xf] }
 0x285   :  { %2603 = vmatmul.bf16.gmra.mxu1 %v11875_v61  ;;  %2652 = vmatmul.bf16.gmra.mxu2 %v11876_v13  ;;  %v6325_v9 = vor.u32 %v7531_v60, %v6322_v40  ;;  %v6450_v60 = vld [vmem:[%s11695_s1 + $0x4f8] sm:$0xf0] }
 0x286   :  { %2701 = vmatmul.bf16.gmra.mxu3 %v11865_v30  ;;  %3006 = vmatpush.bf16.msra.mxu2 %v6581_v62  ;;  %v3217_v40 = vmul.f32 0.01, %v2409_v32  ;;  %v6453_v47 = vor.u32 %v7563_v7, %v6450_v60  ;;  %vm3153_vm12 = vcmp.ge.f32.partialorder %v2409_v32, 0.0  ;;  %v11879_v7 = vld [vmem:[#allocation20_spill] sm:$0xff]  ;;  %v6306_v60 = vld [vmem:[%s11695_s1 + $0x3d8] sm:$0xf0] }
 0x287   :  { %2908 = vmatpush.bf16.msra.mxu0 %v6325_v9  ;;  %3055 = vmatpush.bf16.msra.mxu3 %v6709_v23 }
 0x288   :  { %v2457_v49 = vpop.f32.mrf.mxu2  ;;  %2957 = vmatpush.bf16.msra.mxu1 %v6453_v47  ;;  %v3281_v62 = vsel %vm3153_vm12, %v2409_v32, %v3217_v40  ;;  %v11880_v47 = vld [vmem:[#allocation37_spill] sm:$0xff]  ;;  %v7591_v32 = vld [vmem:[%s11695_s1 + $0x5cc] sm:$0xf] }
 0x289   :  { %v2458_v58 = vadd.f32 %v2457_v49, %v9612_v22  ;;  %v2506_v50 = vpop.f32.mrf.mxu3  ;;  %v2361_v4 = vpop.f32.mrf.mxu0 }
 0x28a   :  { %v2362_v41 = vadd.f32 %v2361_v4, %v9571_v37  ;;  %v2410_v31 = vpop.f32.mrf.mxu1 }
 0x28b   :  { %v9863_v21 = vadd.f32 %v2506_v50, %v2458_v58 }
 0x28c   :  { %v2411_v49 = vadd.f32 %v2410_v31, %v2362_v41  ;;  %v11878_v31 = vld [vmem:[#allocation19_spill] sm:$0xff] }
 0x28e   :  { %vm3157_vm13 = vcmp.ge.f32.partialorder %v2411_v49, 0.0  ;;  %v3221_v37 = vmul.f32 0.01, %v2411_v49 }
 0x290   :  { %v3285_v9 = vsel %vm3157_vm13, %v2411_v49, %v3221_v37  ;;  %v2459_v17 = vpop.f32.mrf.mxu2 }
 0x291   :  { %v9871_v1 = vpack.c.bf16 %v3285_v9, %v3281_v62  ;;  %v2460_v58 = vadd.f32 %v2459_v17, %v9612_v22  ;;  %v2508_v50 = vpop.f32.mrf.mxu3  ;;  %v2364_v4 = vpop.f32.mrf.mxu0  ;;  %v7623_v62 = vld [vmem:[%s11695_s1 + $0x6cc] sm:$0xf]  ;;  %v6690_v9 = vld [vmem:[%s11695_s1 + $0x6d8] sm:$0xf0] }
 0x292   :  { %v2365_v23 = vadd.f32 %v2364_v4, %v9597_v18  ;;  %v2413_v30 = vpop.f32.mrf.mxu1  ;;  %v6562_v18 = vld [vmem:[%s11695_s1 + $0x5d8] sm:$0xf0]  ;;  %v6693_v4 = vor.u32 %v7623_v62, %v6690_v9 }
 0x293   :  { %11877 = vst [vmem:[#allocation16_spill] sm:$0xff] %v9871_v1  ;;  %v9875_v13 = vadd.f32 %v2508_v50, %v2460_v58  ;;  %v6565_v49 = vor.u32 %v7591_v32, %v6562_v18  ;;  %v7559_v18 = vld [vmem:[%s11695_s1 + $0x4cc] sm:$0xf] }
 0x294   :  { %v2414_v41 = vadd.f32 %v2413_v30, %v2365_v23  ;;  %2559 = vmatmul.bf16.gmra.mxu0 %v11878_v31  ;;  %v7527_v30 = vld [vmem:[%s11695_s1 + $0x3cc] sm:$0xf]  ;;  %3056 = vmatpush.bf16.msra.mxu3 %v6693_v4 }
 0x295   :  { %2608 = vmatmul.bf16.gmra.mxu1 %v11879_v7  ;;  %2657 = vmatmul.bf16.gmra.mxu2 %v11880_v47  ;;  %v6309_v37 = vor.u32 %v7527_v30, %v6306_v60  ;;  %v6434_v30 = vld [vmem:[%s11695_s1 + $0x4d8] sm:$0xf0] }
 0x296   :  { %2706 = vmatmul.bf16.gmra.mxu3 %v8983_v56  ;;  %3007 = vmatpush.bf16.msra.mxu2 %v6565_v49  ;;  %v3225_v60 = vmul.f32 0.01, %v2414_v41  ;;  %v6437_v56 = vor.u32 %v7559_v18, %v6434_v30  ;;  %vm3161_vm14 = vcmp.ge.f32.partialorder %v2414_v41, 0.0  ;;  %v11882_v18 = vld [vmem:[#allocation2_spill] sm:$0xff]  ;;  %v6290_v30 = vld [vmem:[%s11695_s1 + $0x3b8] sm:$0xf0] }
 0x297   :  { %2909 = vmatpush.bf16.msra.mxu0 %v6309_v37 }
 0x298   :  { %v2462_v40 = vpop.f32.mrf.mxu2  ;;  %2958 = vmatpush.bf16.msra.mxu1 %v6437_v56  ;;  %v3289_v49 = vsel %vm3161_vm14, %v2414_v41, %v3225_v60  ;;  %v11883_v56 = vld [vmem:[#allocation3_spill] sm:$0xff]  ;;  %v6674_v60 = vld [vmem:[%s11695_s1 + $0x6b8] sm:$0xf0] }
 0x299   :  { %v2463_v17 = vadd.f32 %v2462_v40, %v9612_v22  ;;  %v2511_v58 = vpop.f32.mrf.mxu3  ;;  %v2366_v50 = vpop.f32.mrf.mxu0  ;;  %v7523_v41 = vld [vmem:[%s11695_s1 + $0x3ac] sm:$0xf] }
 0x29a   :  { %v2367_v23 = vadd.f32 %v2366_v50, %v9606_v63  ;;  %v2415_v1 = vpop.f32.mrf.mxu1 }
 0x29b   :  { %v9901_v32 = vadd.f32 %v2511_v58, %v2463_v17 }
 0x29c   :  { %v2416_v40 = vadd.f32 %v2415_v1, %v2367_v23  ;;  %v11881_v23 = vld [vmem:[#allocation23_spill] sm:$0xff] }
 0x29e   :  { %vm3165_vm15 = vcmp.ge.f32.partialorder %v2416_v40, 0.0  ;;  %v3229_v63 = vmul.f32 0.01, %v2416_v40 }
 0x2a0   :  { %v3293_v37 = vsel %vm3165_vm15, %v2416_v40, %v3229_v63  ;;  %v2464_v62 = vpop.f32.mrf.mxu2  ;;  %v6293_v63 = vor.u32 %v7523_v41, %v6290_v30 }
 0x2a1   :  { %v9909_v9 = vpack.c.bf16 %v3293_v37, %v3289_v49  ;;  %v2465_v17 = vadd.f32 %v2464_v62, %v9612_v22  ;;  %v2513_v58 = vpop.f32.mrf.mxu3  ;;  %v2525_v50 = vpop.f32.mrf.mxu0  ;;  %v7587_v22 = vld [vmem:[%s11695_s1 + $0x5ac] sm:$0xf] }
 0x2a2   :  { %v2526_v4 = vadd.f32 %v2525_v50, %v9635_v46  ;;  %v2574_v47 = vpop.f32.mrf.mxu1  ;;  %v6546_v46 = vld [vmem:[%s11695_s1 + $0x5b8] sm:$0xf0]  ;;  %2910 = vmatpush.bf16.msra.mxu0 %v6293_v63 }
 0x2a3   :  { %v9913_v7 = vadd.f32 %v2513_v58, %v2465_v17  ;;  %v11884_v63 = vld [vmem:[#allocation25_spill] sm:$0xff] }
 0x2a4   :  { %v2575_v1 = vadd.f32 %v2574_v47, %v2526_v4  ;;  %2720 = vmatmul.bf16.vlgmr.msrb.gmra.mxu0 %v11881_v23  ;;  %v6549_v47 = vor.u32 %v7587_v22, %v6546_v46 }
 0x2a5   :  { %2769 = vmatmul.bf16.vlgmr.msrb.gmra.mxu1 %v11882_v18  ;;  %2818 = vmatmul.bf16.vlgmr.msrb.gmra.mxu2 %v11883_v56  ;;  %v7555_v18 = vld [vmem:[%s11695_s1 + $0x4ac] sm:$0xf]  ;;  %v6418_v56 = vld [vmem:[%s11695_s1 + $0x4b8] sm:$0xf0] }
 0x2a6   :  { %2867 = vmatmul.bf16.vlgmr.msrb.gmra.mxu3 %v8084_v54  ;;  %v7619_v54 = vld [vmem:[%s11695_s1 + $0x6ac] sm:$0xf]  ;;  %3008 = vmatpush.bf16.msra.mxu2 %v6549_v47 }
 0x2a7   :  { %v6677_v49 = vor.u32 %v7619_v54, %v6674_v60 }
 0x2a8   :  { %v2623_v40 = vpop.f32.mrf.mxu2 }
 0x2a9   :  { %v2624_v37 = vadd.f32 %v2623_v40, %v2575_v1  ;;  %v2672_v62 = vpop.f32.mrf.mxu3  ;;  %v2527_v17 = vpop.f32.mrf.mxu0  ;;  %3057 = vmatpush.bf16.msra.mxu3 %v6677_v49  ;;  %v6421_v1 = vor.u32 %v7555_v18, %v6418_v56  ;;  %v11885_v49 = vld [vmem:[#allocation4_spill] sm:$0xff]  ;;  %v6658_v18 = vld [vmem:[%s11695_s1 + $0x698] sm:$0xf0] }
 0x2aa   :  { %v2528_v58 = vadd.f32 %v2527_v17, %v9647_v45  ;;  %v2576_v50 = vpop.f32.mrf.mxu1  ;;  %v7519_v17 = vld [vmem:[%s11695_s1 + $0x38c] sm:$0xf] }
 0x2ab   :  { %v9938_v4 = vadd.f32 %v2672_v62, %v2624_v37  ;;  %2959 = vmatpush.bf16.msra.mxu1 %v6421_v1  ;;  %v11886_v37 = vld [vmem:[#allocation5_spill] sm:$0xff]  ;;  %v7583_v62 = vld [vmem:[%s11695_s1 + $0x58c] sm:$0xf] }
 0x2ac   :  { %v2577_v22 = vadd.f32 %v2576_v50, %v2528_v58  ;;  %v6274_v50 = vld [vmem:[%s11695_s1 + $0x398] sm:$0xf0] }
 0x2b0   :  { %v2625_v46 = vpop.f32.mrf.mxu2 }
 0x2b1   :  { %v2626_v41 = vadd.f32 %v2625_v46, %v2577_v22  ;;  %v2674_v47 = vpop.f32.mrf.mxu3  ;;  %v2530_v45 = vpop.f32.mrf.mxu0  ;;  %v6277_v22 = vor.u32 %v7519_v17, %v6274_v50 }
 0x2b2   :  { %v2531_v30 = vadd.f32 %v2530_v45, %v9673_v44  ;;  %v2579_v54 = vpop.f32.mrf.mxu1  ;;  %v6530_v44 = vld [vmem:[%s11695_s1 + $0x598] sm:$0xf0] }
 0x2b3   :  { %v9947_v60 = vadd.f32 %v2674_v47, %v2626_v41  ;;  %v6533_v58 = vor.u32 %v7583_v62, %v6530_v44  ;;  %2911 = vmatpush.bf16.msra.mxu0 %v6277_v22  ;;  %v11887_v22 = vld [vmem:[#allocation27_spill] sm:$0xff] }
 0x2b4   :  { %v2580_v40 = vadd.f32 %v2579_v54, %v2531_v30  ;;  %2725 = vmatmul.bf16.gmra.mxu0 %v11884_v63 }
 0x2b5   :  { %2774 = vmatmul.bf16.gmra.mxu1 %v11885_v49  ;;  %2823 = vmatmul.bf16.gmra.mxu2 %v11886_v37  ;;  %v7551_v49 = vld [vmem:[%s11695_s1 + $0x48c] sm:$0xf]  ;;  %v6402_v37 = vld [vmem:[%s11695_s1 + $0x498] sm:$0xf0] }
 0x2b6   :  { %2872 = vmatmul.bf16.gmra.mxu3 %v8162_v26  ;;  %v7615_v26 = vld [vmem:[%s11695_s1 + $0x68c] sm:$0xf]  ;;  %3009 = vmatpush.bf16.msra.mxu2 %v6533_v58 }
 0x2b7   :  { %v6661_v1 = vor.u32 %v7615_v26, %v6658_v18 }
 0x2b8   :  { %v2628_v56 = vpop.f32.mrf.mxu2 }
 0x2b9   :  { %v2629_v46 = vadd.f32 %v2628_v56, %v2580_v40  ;;  %v2677_v41 = vpop.f32.mrf.mxu3  ;;  %v2532_v47 = vpop.f32.mrf.mxu0  ;;  %3058 = vmatpush.bf16.msra.mxu3 %v6661_v1  ;;  %v6405_v40 = vor.u32 %v7551_v49, %v6402_v37  ;;  %v11888_v1 = vld [vmem:[#allocation6_spill] sm:$0xff]  ;;  %v6642_v49 = vld [vmem:[%s11695_s1 + $0x678] sm:$0xf0] }
 0x2ba   :  { %v2533_v45 = vadd.f32 %v2532_v47, %v9685_v29  ;;  %v2581_v30 = vpop.f32.mrf.mxu1  ;;  %v7515_v47 = vld [vmem:[%s11695_s1 + $0x36c] sm:$0xf] }
 0x2bb   :  { %v9972_v54 = vadd.f32 %v2677_v41, %v2629_v46  ;;  %2960 = vmatpush.bf16.msra.mxu1 %v6405_v40  ;;  %v11889_v46 = vld [vmem:[#allocation7_spill] sm:$0xff] }
 0x2bc   :  { %v2582_v62 = vadd.f32 %v2581_v30, %v2533_v45  ;;  %v7579_v41 = vld [vmem:[%s11695_s1 + $0x56c] sm:$0xf]  ;;  %v6258_v30 = vld [vmem:[%s11695_s1 + $0x378] sm:$0xf0] }
 0x2c0   :  { %v2630_v44 = vpop.f32.mrf.mxu2 }
 0x2c1   :  { %v2631_v17 = vadd.f32 %v2630_v44, %v2582_v62  ;;  %v2679_v58 = vpop.f32.mrf.mxu3  ;;  %v2535_v29 = vpop.f32.mrf.mxu0  ;;  %v6261_v62 = vor.u32 %v7515_v47, %v6258_v30 }
 0x2c2   :  { %v2536_v50 = vadd.f32 %v2535_v29, %v9711_v38  ;;  %v2584_v26 = vpop.f32.mrf.mxu1  ;;  %v6514_v38 = vld [vmem:[%s11695_s1 + $0x578] sm:$0xf0] }
 0x2c3   :  { %v9981_v18 = vadd.f32 %v2679_v58, %v2631_v17  ;;  %v6517_v45 = vor.u32 %v7579_v41, %v6514_v38  ;;  %2912 = vmatpush.bf16.msra.mxu0 %v6261_v62  ;;  %v11890_v62 = vld [vmem:[#allocation29_spill] sm:$0xff] }
 0x2c4   :  { %v2585_v56 = vadd.f32 %v2584_v26, %v2536_v50  ;;  %2730 = vmatmul.bf16.gmra.mxu0 %v11887_v22 }
 0x2c5   :  { %2779 = vmatmul.bf16.gmra.mxu1 %v11888_v1  ;;  %2828 = vmatmul.bf16.gmra.mxu2 %v11889_v46  ;;  %v7547_v1 = vld [vmem:[%s11695_s1 + $0x46c] sm:$0xf]  ;;  %v6386_v46 = vld [vmem:[%s11695_s1 + $0x478] sm:$0xf0] }
 0x2c6   :  { %2877 = vmatmul.bf16.gmra.mxu3 %v8222_v51  ;;  %v7611_v51 = vld [vmem:[%s11695_s1 + $0x66c] sm:$0xf]  ;;  %3010 = vmatpush.bf16.msra.mxu2 %v6517_v45 }
 0x2c7   :  { %v6645_v40 = vor.u32 %v7611_v51, %v6642_v49 }
 0x2c8   :  { %v2633_v37 = vpop.f32.mrf.mxu2 }
 0x2c9   :  { %v2634_v44 = vadd.f32 %v2633_v37, %v2585_v56  ;;  %v2682_v17 = vpop.f32.mrf.mxu3  ;;  %v2537_v58 = vpop.f32.mrf.mxu0  ;;  %3059 = vmatpush.bf16.msra.mxu3 %v6645_v40  ;;  %v6389_v56 = vor.u32 %v7547_v1, %v6386_v46  ;;  %v11891_v40 = vld [vmem:[#allocation8_spill] sm:$0xff]  ;;  %v6626_v1 = vld [vmem:[%s11695_s1 + $0x658] sm:$0xf0] }
 0x2ca   :  { %v2538_v29 = vadd.f32 %v2537_v58, %v9723_v0  ;;  %v2586_v50 = vpop.f32.mrf.mxu1  ;;  %v7511_v58 = vld [vmem:[%s11695_s1 + $0x34c] sm:$0xf] }
 0x2cb   :  { %v10006_v26 = vadd.f32 %v2682_v17, %v2634_v44  ;;  %2961 = vmatpush.bf16.msra.mxu1 %v6389_v56  ;;  %v11892_v44 = vld [vmem:[#allocation9_spill] sm:$0xff]  ;;  %v7575_v17 = vld [vmem:[%s11695_s1 + $0x54c] sm:$0xf] }
 0x2cc   :  { %v2587_v41 = vadd.f32 %v2586_v50, %v2538_v29  ;;  %v6242_v50 = vld [vmem:[%s11695_s1 + $0x358] sm:$0xf0] }
 0x2d0   :  { %v2635_v38 = vpop.f32.mrf.mxu2 }
 0x2d1   :  { %v2636_v47 = vadd.f32 %v2635_v38, %v2587_v41  ;;  %v2684_v45 = vpop.f32.mrf.mxu3  ;;  %v2540_v0 = vpop.f32.mrf.mxu0  ;;  %v6245_v41 = vor.u32 %v7511_v58, %v6242_v50 }
 0x2d2   :  { %v2541_v30 = vadd.f32 %v2540_v0, %v9749_v59  ;;  %v2589_v51 = vpop.f32.mrf.mxu1  ;;  %v6498_v59 = vld [vmem:[%s11695_s1 + $0x558] sm:$0xf0] }
 0x2d3   :  { %v10015_v49 = vadd.f32 %v2684_v45, %v2636_v47  ;;  %v6501_v29 = vor.u32 %v7575_v17, %v6498_v59  ;;  %2913 = vmatpush.bf16.msra.mxu0 %v6245_v41  ;;  %v11893_v41 = vld [vmem:[#allocation31_spill] sm:$0xff] }
 0x2d4   :  { %v2590_v37 = vadd.f32 %v2589_v51, %v2541_v30  ;;  %2735 = vmatmul.bf16.gmra.mxu0 %v11890_v62 }
 0x2d5   :  { %2784 = vmatmul.bf16.gmra.mxu1 %v11891_v40  ;;  %2833 = vmatmul.bf16.gmra.mxu2 %v11892_v44  ;;  %v7543_v40 = vld [vmem:[%s11695_s1 + $0x44c] sm:$0xf]  ;;  %v6370_v44 = vld [vmem:[%s11695_s1 + $0x458] sm:$0xf0] }
 0x2d6   :  { %2882 = vmatmul.bf16.gmra.mxu3 %v8282_v14  ;;  %v7607_v14 = vld [vmem:[%s11695_s1 + $0x64c] sm:$0xf]  ;;  %3011 = vmatpush.bf16.msra.mxu2 %v6501_v29 }
 0x2d7   :  { %v6629_v56 = vor.u32 %v7607_v14, %v6626_v1 }
 0x2d8   :  { %v2638_v46 = vpop.f32.mrf.mxu2 }
 0x2d9   :  { %v2639_v38 = vadd.f32 %v2638_v46, %v2590_v37  ;;  %v2687_v47 = vpop.f32.mrf.mxu3  ;;  %v2542_v45 = vpop.f32.mrf.mxu0  ;;  %3060 = vmatpush.bf16.msra.mxu3 %v6629_v56  ;;  %v6373_v37 = vor.u32 %v7543_v40, %v6370_v44  ;;  %v11894_v56 = vld [vmem:[#allocation10_spill] sm:$0xff]  ;;  %v6610_v40 = vld [vmem:[%s11695_s1 + $0x638] sm:$0xf0] }
 0x2da   :  { %v2543_v0 = vadd.f32 %v2542_v45, %v9761_v12  ;;  %v2591_v30 = vpop.f32.mrf.mxu1  ;;  %v7507_v45 = vld [vmem:[%s11695_s1 + $0x32c] sm:$0xf] }
 0x2db   :  { %v10040_v51 = vadd.f32 %v2687_v47, %v2639_v38  ;;  %2962 = vmatpush.bf16.msra.mxu1 %v6373_v37  ;;  %v11895_v38 = vld [vmem:[#allocation11_spill] sm:$0xff] }
 0x2dc   :  { %v2592_v17 = vadd.f32 %v2591_v30, %v2543_v0  ;;  %v7571_v47 = vld [vmem:[%s11695_s1 + $0x52c] sm:$0xf]  ;;  %v6226_v30 = vld [vmem:[%s11695_s1 + $0x338] sm:$0xf0] }
 0x2e0   :  { %v2640_v59 = vpop.f32.mrf.mxu2 }
 0x2e1   :  { %v2641_v58 = vadd.f32 %v2640_v59, %v2592_v17  ;;  %v2689_v29 = vpop.f32.mrf.mxu3  ;;  %v2545_v12 = vpop.f32.mrf.mxu0  ;;  %v6229_v17 = vor.u32 %v7507_v45, %v6226_v30 }
 0x2e2   :  { %v2546_v50 = vadd.f32 %v2545_v12, %v9787_v55  ;;  %v2594_v14 = vpop.f32.mrf.mxu1  ;;  %v6482_v55 = vld [vmem:[%s11695_s1 + $0x538] sm:$0xf0] }
 0x2e3   :  { %v10049_v1 = vadd.f32 %v2689_v29, %v2641_v58  ;;  %v6485_v0 = vor.u32 %v7571_v47, %v6482_v55  ;;  %2914 = vmatpush.bf16.msra.mxu0 %v6229_v17  ;;  %v11896_v17 = vld [vmem:[#allocation33_spill] sm:$0xff] }
 0x2e4   :  { %v2595_v46 = vadd.f32 %v2594_v14, %v2546_v50  ;;  %2740 = vmatmul.bf16.gmra.mxu0 %v11893_v41 }
 0x2e5   :  { %2789 = vmatmul.bf16.gmra.mxu1 %v11894_v56  ;;  %2838 = vmatmul.bf16.gmra.mxu2 %v11895_v38  ;;  %v7539_v56 = vld [vmem:[%s11695_s1 + $0x42c] sm:$0xf]  ;;  %v6354_v38 = vld [vmem:[%s11695_s1 + $0x438] sm:$0xf0] }
 0x2e6   :  { %2887 = vmatmul.bf16.gmra.mxu3 %v8342_v42  ;;  %v7603_v42 = vld [vmem:[%s11695_s1 + $0x62c] sm:$0xf]  ;;  %3012 = vmatpush.bf16.msra.mxu2 %v6485_v0 }
 0x2e7   :  { %v6613_v37 = vor.u32 %v7603_v42, %v6610_v40 }
 0x2e8   :  { %v2643_v44 = vpop.f32.mrf.mxu2 }
 0x2e9   :  { %v2644_v59 = vadd.f32 %v2643_v44, %v2595_v46  ;;  %v2692_v58 = vpop.f32.mrf.mxu3  ;;  %v2547_v29 = vpop.f32.mrf.mxu0  ;;  %3061 = vmatpush.bf16.msra.mxu3 %v6613_v37  ;;  %v6357_v46 = vor.u32 %v7539_v56, %v6354_v38  ;;  %v11897_v37 = vld [vmem:[#allocation12_spill] sm:$0xff]  ;;  %v6594_v56 = vld [vmem:[%s11695_s1 + $0x618] sm:$0xf0] }
 0x2ea   :  { %v2548_v12 = vadd.f32 %v2547_v29, %v9799_v48  ;;  %v2596_v50 = vpop.f32.mrf.mxu1  ;;  %v7503_v29 = vld [vmem:[%s11695_s1 + $0x30c] sm:$0xf] }
 0x2eb   :  { %v10074_v14 = vadd.f32 %v2692_v58, %v2644_v59  ;;  %2963 = vmatpush.bf16.msra.mxu1 %v6357_v46  ;;  %v11898_v59 = vld [vmem:[#allocation13_spill] sm:$0xff]  ;;  %v7567_v58 = vld [vmem:[%s11695_s1 + $0x50c] sm:$0xf] }
 0x2ec   :  { %v2597_v47 = vadd.f32 %v2596_v50, %v2548_v12  ;;  %v6210_v50 = vld [vmem:[%s11695_s1 + $0x318] sm:$0xf0] }
 0x2f0   :  { %v2645_v55 = vpop.f32.mrf.mxu2 }
 0x2f1   :  { %v2646_v45 = vadd.f32 %v2645_v55, %v2597_v47  ;;  %v2694_v0 = vpop.f32.mrf.mxu3  ;;  %v2550_v48 = vpop.f32.mrf.mxu0  ;;  %v6213_v47 = vor.u32 %v7503_v29, %v6210_v50 }
 0x2f2   :  { %v2551_v30 = vadd.f32 %v2550_v48, %v9825_v8  ;;  %v2599_v42 = vpop.f32.mrf.mxu1  ;;  %v6466_v8 = vld [vmem:[%s11695_s1 + $0x518] sm:$0xf0] }
 0x2f3   :  { %v10083_v40 = vadd.f32 %v2694_v0, %v2646_v45  ;;  %v6469_v12 = vor.u32 %v7567_v58, %v6466_v8  ;;  %2915 = vmatpush.bf16.msra.mxu0 %v6213_v47  ;;  %v11899_v47 = vld [vmem:[#allocation14_spill] sm:$0xff] }
 0x2f4   :  { %v2600_v44 = vadd.f32 %v2599_v42, %v2551_v30  ;;  %2745 = vmatmul.bf16.gmra.mxu0 %v11896_v17 }
 0x2f5   :  { %2794 = vmatmul.bf16.gmra.mxu1 %v11897_v37  ;;  %2843 = vmatmul.bf16.gmra.mxu2 %v11898_v59  ;;  %v7535_v37 = vld [vmem:[%s11695_s1 + $0x40c] sm:$0xf]  ;;  %v6338_v59 = vld [vmem:[%s11695_s1 + $0x418] sm:$0xf0] }
 0x2f6   :  { %2892 = vmatmul.bf16.gmra.mxu3 %v8402_v10  ;;  %v7599_v10 = vld [vmem:[%s11695_s1 + $0x60c] sm:$0xf]  ;;  %3013 = vmatpush.bf16.msra.mxu2 %v6469_v12 }
 0x2f7   :  { %v6597_v46 = vor.u32 %v7599_v10, %v6594_v56 }
 0x2f8   :  { %v2648_v38 = vpop.f32.mrf.mxu2 }
 0x2f9   :  { %v2649_v55 = vadd.f32 %v2648_v38, %v2600_v44  ;;  %v2697_v45 = vpop.f32.mrf.mxu3  ;;  %v2552_v0 = vpop.f32.mrf.mxu0  ;;  %3062 = vmatpush.bf16.msra.mxu3 %v6597_v46  ;;  %v6341_v44 = vor.u32 %v7535_v37, %v6338_v59  ;;  %v11900_v46 = vld [vmem:[#allocation15_spill] sm:$0xff] }
 0x2fa   :  { %v2553_v48 = vadd.f32 %v2552_v0, %v9837_v28  ;;  %v2601_v30 = vpop.f32.mrf.mxu1 }
 0x2fb   :  { %v10108_v42 = vadd.f32 %v2697_v45, %v2649_v55  ;;  %2964 = vmatpush.bf16.msra.mxu1 %v6341_v44 }
 0x2fc   :  { %v2602_v58 = vadd.f32 %v2601_v30, %v2553_v48 }
 0x300   :  { %v2650_v8 = vpop.f32.mrf.mxu2 }
 0x301   :  { %v2651_v29 = vadd.f32 %v2650_v8, %v2602_v58  ;;  %v2699_v12 = vpop.f32.mrf.mxu3  ;;  %v2555_v28 = vpop.f32.mrf.mxu0 }
 0x302   :  { %v2556_v50 = vadd.f32 %v2555_v28, %v9863_v21  ;;  %v2604_v10 = vpop.f32.mrf.mxu1 }
 0x303   :  { %v10117_v56 = vadd.f32 %v2699_v12, %v2651_v29 }
 0x304   :  { %v2605_v38 = vadd.f32 %v2604_v10, %v2556_v50  ;;  %2750 = vmatmul.bf16.gmra.mxu0 %v11866_v53 }
 0x305   :  { %2799 = vmatmul.bf16.gmra.mxu1 %v11899_v47  ;;  %2848 = vmatmul.bf16.gmra.mxu2 %v11900_v46 }
 0x306   :  { %2897 = vmatmul.bf16.gmra.mxu3 %v11874_v25 }
 0x308   :  { %v2653_v55 = vpop.f32.mrf.mxu2 }
 0x309   :  { %v2654_v45 = vadd.f32 %v2653_v55, %v2605_v38  ;;  %v2702_v0 = vpop.f32.mrf.mxu3  ;;  %v2557_v48 = vpop.f32.mrf.mxu0 }
 0x30a   :  { %v2558_v30 = vadd.f32 %v2557_v48, %v9875_v13  ;;  %v2606_v37 = vpop.f32.mrf.mxu1  ;;  %v7208_v48 = vld [vmem:[%s11698_s3 + $0x3e0] sm:$0xf] }
 0x30b   :  { %v10124_v21 = vadd.f32 %v2702_v0, %v2654_v45  ;;  %v7080_v45 = vld [vmem:[%s11698_s3 + $0x2e0] sm:$0xf] }
 0x30c   :  { %v2607_v59 = vadd.f32 %v2606_v37, %v2558_v30 }
 0x310   :  { %v2655_v58 = vpop.f32.mrf.mxu2 }
 0x311   :  { %v2656_v44 = vadd.f32 %v2655_v58, %v2607_v59  ;;  %v2704_v8 = vpop.f32.mrf.mxu3  ;;  %v2560_v29 = vpop.f32.mrf.mxu0  ;;  %v7756_v59 = vld [vmem:[%s11698_s3 + $0x3ec] sm:$0xf0]  ;;  %v6952_v58 = vld [vmem:[%s11698_s3 + $0x1e0] sm:$0xf] }
 0x312   :  { %v2561_v12 = vadd.f32 %v2560_v29, %v9901_v32  ;;  %v2609_v28 = vpop.f32.mrf.mxu1 }
 0x313   :  { %v10127_v50 = vadd.f32 %v2704_v8, %v2656_v44  ;;  %v7692_v44 = vld [vmem:[%s11698_s3 + $0x1ec] sm:$0xf0] }
 0x314   :  { %v2610_v25 = vadd.f32 %v2609_v28, %v2561_v12  ;;  %2755 = vmatmul.bf16.gmra.mxu0 %v8985_v16  ;;  %v7792_v28 = vld [vmem:[%s11697_s2] sm:$0xf] }
 0x315   :  { %2804 = vmatmul.bf16.gmra.mxu1 %v8518_v20  ;;  %2853 = vmatmul.bf16.gmra.mxu2 %v11842_v24  ;;  %v7724_v20 = vld [vmem:[%s11698_s3 + $0x2ec] sm:$0xf0] }
 0x316   :  { %2902 = vmatmul.bf16.gmra.mxu3 %v11878_v31  ;;  %v7081_v0 = vor.u32 %v7724_v20, %v7080_v45  ;;  %v6824_v31 = vld [vmem:[%s11698_s3 + $0xe0] sm:$0xf]  ;;  %v11901_v45 = vld [vmem:[#allocation21_spill] sm:$0xff] }
 0x317   :  { %v11902_v20 = vld [vmem:[#allocation22_spill] sm:$0xff] }
 0x318   :  { %v2658_v13 = vpop.f32.mrf.mxu2  ;;  %4204 = vmatpush.bf16.msrb.mxu2 %v7081_v0 }
 0x319   :  { %v2659_v10 = vadd.f32 %v2658_v13, %v2610_v25  ;;  %v2707_v38 = vpop.f32.mrf.mxu3  ;;  %v2562_v47 = vpop.f32.mrf.mxu0  ;;  %v10163_v25 = vperm.slane %v7792_v28, 3  ;;  %v7209_v13 = vor.u32 %v7756_v59, %v7208_v48  ;;  %v7720_v59 = vld [vmem:[%s11698_s3 + $0x2cc] sm:$0xf0] }
 0x31a   :  { %v2563_v46 = vadd.f32 %v2562_v47, %v9913_v7  ;;  %v2611_v55 = vpop.f32.mrf.mxu1  ;;  %v7660_v7 = vld [vmem:[%s11698_s3 + $0xec] sm:$0xf0] }
 0x31b   :  { %v10134_v32 = vadd.f32 %v2707_v38, %v2659_v10  ;;  %v6825_v37 = vor.u32 %v7660_v7, %v6824_v31  ;;  %v6953_v10 = vor.u32 %v7692_v44, %v6952_v58  ;;  %4253 = vmatpush.bf16.msrb.mxu3 %v7209_v13  ;;  %v7656_v28 = vld [vmem:[%s11698_s3 + $0xcc] sm:$0xf0]  ;;  %v7192_v13 = vld [vmem:[%s11698_s3 + $0x3c0] sm:$0xf] }
 0x31c   :  { %v2612_v24 = vadd.f32 %v2611_v55, %v2563_v46 }
 0x31d   :  { %4106 = vmatpush.bf16.msrb.mxu0 %v6825_v37  ;;  %4155 = vmatpush.bf16.msrb.mxu1 %v6953_v10 }
 0x320   :  { %v2660_v30 = vpop.f32.mrf.mxu2 }
 0x321   :  { %v2661_v8 = vadd.f32 %v2660_v30, %v2612_v24  ;;  %v2709_v29 = vpop.f32.mrf.mxu3  ;;  %v2721_v12 = vpop.f32.mrf.mxu0 }
 0x322   :  { %v2722_v38 = vadd.f32 %v2721_v12, %v9938_v4  ;;  %v2770_v47 = vpop.f32.mrf.mxu1  ;;  %v6808_v12 = vld [vmem:[%s11698_s3 + $0xc0] sm:$0xf] }
 0x323   :  { %v10166_v46 = vadd.f32 %v2709_v29, %v2661_v8  ;;  %v2771_v55 = vadd.f32 %v2770_v47, %v10163_v25  ;;  %v7752_v47 = vld [vmem:[%s11698_s3 + $0x3cc] sm:$0xf0] }
 0x324   :  { %2916 = vmatmul.bf16.vlgmr.msra.gmra.mxu0 %v8092_v57  ;;  %v3170_v7 = vmul.f32 0.01, %v2722_v38  ;;  %vm3106_vm0 = vcmp.ge.f32.partialorder %v2722_v38, 0.0  ;;  %v7064_v57 = vld [vmem:[%s11698_s3 + $0x2c0] sm:$0xf] }
 0x325   :  { %2965 = vmatmul.bf16.vlgmr.msra.gmra.mxu1 %v11901_v45  ;;  %3014 = vmatmul.bf16.vlgmr.msra.gmra.mxu2 %v11902_v20  ;;  %v7065_v58 = vor.u32 %v7720_v59, %v7064_v57  ;;  %v7688_v45 = vld [vmem:[%s11698_s3 + $0x1cc] sm:$0xf0] }
 0x326   :  { %3063 = vmatmul.bf16.vlgmr.msra.gmra.mxu3 %v11881_v23  ;;  %v3234_v44 = vsel %vm3106_vm0, %v2722_v38, %v3170_v7  ;;  %v6809_v38 = vor.u32 %v7656_v28, %v6808_v12 }
 0x327   :  { %4205 = vmatpush.bf16.msrb.mxu2 %v7065_v58 }
 0x328   :  { %v2819_v24 = vpop.f32.mrf.mxu2  ;;  %4107 = vmatpush.bf16.msrb.mxu0 %v6809_v38  ;;  %v6792_v38 = vld [vmem:[%s11698_s3 + $0xa0] sm:$0xf] }
 0x329   :  { %v2820_v0 = vadd.f32 %v2819_v24, %v2771_v55  ;;  %v2868_v31 = vpop.f32.mrf.mxu3  ;;  %v2723_v4 = vpop.f32.mrf.mxu0  ;;  %v6936_v55 = vld [vmem:[%s11698_s3 + $0x1c0] sm:$0xf] }
 0x32a   :  { %v2724_v48 = vadd.f32 %v2723_v4, %v9947_v60  ;;  %v2772_v30 = vpop.f32.mrf.mxu1  ;;  %v6937_v4 = vor.u32 %v7688_v45, %v6936_v55  ;;  %v7176_v55 = vld [vmem:[%s11698_s3 + $0x3a0] sm:$0xf] }
 0x32b   :  { %v10174_v37 = vadd.f32 %v2868_v31, %v2820_v0  ;;  %v2773_v60 = vadd.f32 %v2772_v30, %v10163_v25  ;;  %v7193_v31 = vor.u32 %v7752_v47, %v7192_v13  ;;  %v7652_v47 = vld [vmem:[%s11698_s3 + $0xac] sm:$0xf0] }
 0x32c   :  { %vm3110_vm1 = vcmp.ge.f32.partialorder %v2724_v48, 0.0  ;;  %v3174_v23 = vmul.f32 0.01, %v2724_v48  ;;  %4156 = vmatpush.bf16.msrb.mxu1 %v6937_v4 }
 0x32d   :  { %4254 = vmatpush.bf16.msrb.mxu3 %v7193_v31  ;;  %v7684_v31 = vld [vmem:[%s11698_s3 + $0x1ac] sm:$0xf0] }
 0x32e   :  { %v3238_v8 = vsel %vm3110_vm1, %v2724_v48, %v3174_v23 }
 0x32f   :  { %v10182_v29 = vpack.c.bf16 %v3238_v8, %v3234_v44 }
 0x330   :  { %v2821_v10 = vpop.f32.mrf.mxu2 }
 0x331   :  { %v2822_v20 = vadd.f32 %v2821_v10, %v2773_v60  ;;  %v2870_v24 = vpop.f32.mrf.mxu3  ;;  %v2726_v0 = vpop.f32.mrf.mxu0 }
 0x332   :  { %v2727_v7 = vadd.f32 %v2726_v0, %v9972_v54  ;;  %v2775_v48 = vpop.f32.mrf.mxu1  ;;  %v6920_v0 = vld [vmem:[%s11698_s3 + $0x1a0] sm:$0xf] }
 0x333   :  { %v10204_v30 = vadd.f32 %v2870_v24, %v2822_v20  ;;  %v2776_v57 = vadd.f32 %v2775_v48, %v10163_v25  ;;  %v6793_v20 = vor.u32 %v7652_v47, %v6792_v38  ;;  %v7748_v24 = vld [vmem:[%s11698_s3 + $0x3ac] sm:$0xf0]  ;;  %v6776_v47 = vld [vmem:[%s11698_s3 + $0x80] sm:$0xf] }
 0x334   :  { %2921 = vmatmul.bf16.gmra.mxu0 %v8164_v27  ;;  %v3178_v44 = vmul.f32 0.01, %v2727_v7  ;;  %vm3114_vm2 = vcmp.ge.f32.partialorder %v2727_v7, 0.0  ;;  %v7048_v27 = vld [vmem:[%s11698_s3 + $0x2a0] sm:$0xf] }
 0x335   :  { %2970 = vmatmul.bf16.gmra.mxu1 %v8633_v6  ;;  %3019 = vmatmul.bf16.gmra.mxu2 %v11850_v19  ;;  %v7716_v6 = vld [vmem:[%s11698_s3 + $0x2ac] sm:$0xf0] }
 0x336   :  { %3068 = vmatmul.bf16.gmra.mxu3 %v11884_v63  ;;  %v7049_v63 = vor.u32 %v7716_v6, %v7048_v27  ;;  %v3242_v28 = vsel %vm3114_vm2, %v2727_v7, %v3178_v44  ;;  %4108 = vmatpush.bf16.msrb.mxu0 %v6793_v20 }
 0x338   :  { %v2824_v59 = vpop.f32.mrf.mxu2  ;;  %4206 = vmatpush.bf16.msrb.mxu2 %v7049_v63 }
 0x339   :  { %v2825_v23 = vadd.f32 %v2824_v59, %v2776_v57  ;;  %v2873_v58 = vpop.f32.mrf.mxu3  ;;  %v2728_v54 = vpop.f32.mrf.mxu0  ;;  %v7177_v57 = vor.u32 %v7748_v24, %v7176_v55  ;;  %v6921_v59 = vor.u32 %v7684_v31, %v6920_v0  ;;  %v7648_v55 = vld [vmem:[%s11698_s3 + $0x8c] sm:$0xf0]  ;;  %v6904_v31 = vld [vmem:[%s11698_s3 + $0x180] sm:$0xf] }
 0x33a   :  { %v2729_v8 = vadd.f32 %v2728_v54, %v9981_v18  ;;  %v2777_v60 = vpop.f32.mrf.mxu1  ;;  %v6777_v24 = vor.u32 %v7648_v55, %v6776_v47  ;;  %v7744_v0 = vld [vmem:[%s11698_s3 + $0x38c] sm:$0xf0]  ;;  %v7144_v47 = vld [vmem:[%s11698_s3 + $0x360] sm:$0xf] }
 0x33b   :  { %v10212_v12 = vadd.f32 %v2873_v58, %v2825_v23  ;;  %v2778_v18 = vadd.f32 %v2777_v60, %v10163_v25  ;;  %4255 = vmatpush.bf16.msrb.mxu3 %v7177_v57  ;;  %4157 = vmatpush.bf16.msrb.mxu1 %v6921_v59 }
 0x33c   :  { %vm3118_vm3 = vcmp.ge.f32.partialorder %v2729_v8, 0.0  ;;  %v3182_v19 = vmul.f32 0.01, %v2729_v8  ;;  %4109 = vmatpush.bf16.msrb.mxu0 %v6777_v24  ;;  %v6888_v24 = vld [vmem:[%s11698_s3 + $0x160] sm:$0xf] }
 0x33e   :  { %v3246_v13 = vsel %vm3118_vm3, %v2729_v8, %v3182_v19 }
 0x33f   :  { %v10220_v10 = vpack.c.bf16 %v3246_v13, %v3242_v28 }
 0x340   :  { %v2826_v45 = vpop.f32.mrf.mxu2 }
 0x341   :  { %v2827_v4 = vadd.f32 %v2826_v45, %v2778_v18  ;;  %v2875_v7 = vpop.f32.mrf.mxu3  ;;  %v2731_v48 = vpop.f32.mrf.mxu0  ;;  %v7160_v45 = vld [vmem:[%s11698_s3 + $0x380] sm:$0xf] }
 0x342   :  { %v2732_v23 = vadd.f32 %v2731_v48, %v10006_v26  ;;  %v2780_v58 = vpop.f32.mrf.mxu1  ;;  %v7161_v59 = vor.u32 %v7744_v0, %v7160_v45  ;;  %v7676_v0 = vld [vmem:[%s11698_s3 + $0x16c] sm:$0xf0] }
 0x343   :  { %v10242_v54 = vadd.f32 %v2875_v7, %v2827_v4  ;;  %v2781_v44 = vadd.f32 %v2780_v58, %v10163_v25  ;;  %v7680_v4 = vld [vmem:[%s11698_s3 + $0x18c] sm:$0xf0] }
 0x344   :  { %2926 = vmatmul.bf16.gmra.mxu0 %v8224_v52  ;;  %v3186_v6 = vmul.f32 0.01, %v2732_v23  ;;  %vm3122_vm4 = vcmp.ge.f32.partialorder %v2732_v23, 0.0  ;;  %v7032_v52 = vld [vmem:[%s11698_s3 + $0x280] sm:$0xf]  ;;  %4256 = vmatpush.bf16.msrb.mxu3 %v7161_v59 }
 0x345   :  { %2975 = vmatmul.bf16.gmra.mxu1 %v8691_v36  ;;  %3024 = vmatmul.bf16.gmra.mxu2 %v11853_v3  ;;  %v7712_v36 = vld [vmem:[%s11698_s3 + $0x28c] sm:$0xf0] }
 0x346   :  { %3073 = vmatmul.bf16.gmra.mxu3 %v11887_v22  ;;  %v7033_v22 = vor.u32 %v7712_v36, %v7032_v52  ;;  %v3250_v13 = vsel %vm3122_vm4, %v2732_v23, %v3186_v6  ;;  %v6905_v23 = vor.u32 %v7680_v4, %v6904_v31 }
 0x348   :  { %v2829_v8 = vpop.f32.mrf.mxu2  ;;  %4207 = vmatpush.bf16.msrb.mxu2 %v7033_v22  ;;  %4158 = vmatpush.bf16.msrb.mxu1 %v6905_v23 }
 0x349   :  { %v2830_v60 = vadd.f32 %v2829_v8, %v2781_v44  ;;  %v2878_v27 = vpop.f32.mrf.mxu3  ;;  %v2733_v26 = vpop.f32.mrf.mxu0 }
 0x34a   :  { %v2734_v19 = vadd.f32 %v2733_v26, %v10015_v49  ;;  %v2782_v63 = vpop.f32.mrf.mxu1 }
 0x34b   :  { %v10250_v28 = vadd.f32 %v2878_v27, %v2830_v60  ;;  %v2783_v49 = vadd.f32 %v2782_v63, %v10163_v25 }
 0x34c   :  { %vm3126_vm5 = vcmp.ge.f32.partialorder %v2734_v19, 0.0  ;;  %v3190_v3 = vmul.f32 0.01, %v2734_v19 }
 0x34e   :  { %v3254_v18 = vsel %vm3126_vm5, %v2734_v19, %v3190_v3 }
 0x34f   :  { %v10258_v38 = vpack.c.bf16 %v3254_v18, %v3250_v13  ;;  %v6760_v18 = vld [vmem:[%s11698_s3 + $0x60] sm:$0xf] }
 0x350   :  { %v2831_v20 = vpop.f32.mrf.mxu2 }
 0x351   :  { %v2832_v7 = vadd.f32 %v2831_v20, %v2783_v49  ;;  %v2880_v48 = vpop.f32.mrf.mxu3  ;;  %v2736_v57 = vpop.f32.mrf.mxu0  ;;  %v7644_v49 = vld [vmem:[%s11698_s3 + $0x6c] sm:$0xf0] }
 0x352   :  { %v2737_v58 = vadd.f32 %v2736_v57, %v10040_v51  ;;  %v2785_v44 = vpop.f32.mrf.mxu1  ;;  %v6761_v45 = vor.u32 %v7644_v49, %v6760_v18  ;;  %v7740_v20 = vld [vmem:[%s11698_s3 + $0x36c] sm:$0xf0]  ;;  %v6889_v57 = vor.u32 %v7676_v0, %v6888_v24  ;;  %v6872_v49 = vld [vmem:[%s11698_s3 + $0x140] sm:$0xf] }
 0x353   :  { %v10280_v8 = vadd.f32 %v2880_v48, %v2832_v7  ;;  %v2786_v60 = vadd.f32 %v2785_v44, %v10163_v25  ;;  %v7145_v48 = vor.u32 %v7740_v20, %v7144_v47  ;;  %v7736_v18 = vld [vmem:[%s11698_s3 + $0x34c] sm:$0xf0] }
 0x354   :  { %2931 = vmatmul.bf16.gmra.mxu0 %v8284_v15  ;;  %v3194_v19 = vmul.f32 0.01, %v2737_v58  ;;  %vm3130_vm6 = vcmp.ge.f32.partialorder %v2737_v58, 0.0  ;;  %v7016_v15 = vld [vmem:[%s11698_s3 + $0x260] sm:$0xf]  ;;  %4159 = vmatpush.bf16.msrb.mxu1 %v6889_v57 }
 0x355   :  { %2980 = vmatmul.bf16.gmra.mxu1 %v8749_v33  ;;  %3029 = vmatmul.bf16.gmra.mxu2 %v11856_v39  ;;  %v7708_v33 = vld [vmem:[%s11698_s3 + $0x26c] sm:$0xf0] }
 0x356   :  { %3078 = vmatmul.bf16.gmra.mxu3 %v11890_v62  ;;  %v7017_v62 = vor.u32 %v7708_v33, %v7016_v15  ;;  %v3258_v3 = vsel %vm3130_vm6, %v2737_v58, %v3194_v19  ;;  %4110 = vmatpush.bf16.msrb.mxu0 %v6761_v45  ;;  %v7672_v47 = vld [vmem:[%s11698_s3 + $0x14c] sm:$0xf0] }
 0x357   :  { %4257 = vmatpush.bf16.msrb.mxu3 %v7145_v48  ;;  %v6873_v0 = vor.u32 %v7672_v47, %v6872_v49  ;;  %v7664_v47 = vld [vmem:[%s11698_s3 + $0x10c] sm:$0xf0] }
 0x358   :  { %v2834_v27 = vpop.f32.mrf.mxu2  ;;  %4208 = vmatpush.bf16.msrb.mxu2 %v7017_v62  ;;  %v7640_v62 = vld [vmem:[%s11698_s3 + $0x4c] sm:$0xf0] }
 0x359   :  { %v2835_v26 = vadd.f32 %v2834_v27, %v2786_v60  ;;  %v2883_v6 = vpop.f32.mrf.mxu3  ;;  %v2738_v51 = vpop.f32.mrf.mxu0  ;;  %4160 = vmatpush.bf16.msrb.mxu1 %v6873_v0 }
 0x35a   :  { %v2739_v63 = vadd.f32 %v2738_v51, %v10049_v1  ;;  %v2787_v52 = vpop.f32.mrf.mxu1 }
 0x35b   :  { %v10288_v36 = vadd.f32 %v2883_v6, %v2835_v26  ;;  %v2788_v1 = vadd.f32 %v2787_v52, %v10163_v25 }
 0x35c   :  { %vm3134_vm7 = vcmp.ge.f32.partialorder %v2739_v63, 0.0  ;;  %v3198_v39 = vmul.f32 0.01, %v2739_v63 }
 0x35e   :  { %v3262_v22 = vsel %vm3134_vm7, %v2739_v63, %v3198_v39  ;;  %v6744_v39 = vld [vmem:[%s11698_s3 + $0x40] sm:$0xf] }
 0x35f   :  { %v10296_v13 = vpack.c.bf16 %v3262_v22, %v3258_v3  ;;  %v7128_v3 = vld [vmem:[%s11698_s3 + $0x340] sm:$0xf] }
 0x360   :  { %v2836_v55 = vpop.f32.mrf.mxu2  ;;  %v7129_v24 = vor.u32 %v7736_v18, %v7128_v3  ;;  %v7632_v3 = vld [vmem:[%s11698_s3 + $0xc] sm:$0xf0] }
 0x361   :  { %v2837_v31 = vadd.f32 %v2836_v55, %v2788_v1  ;;  %v2885_v4 = vpop.f32.mrf.mxu3  ;;  %v2741_v7 = vpop.f32.mrf.mxu0  ;;  %v6745_v1 = vor.u32 %v7640_v62, %v6744_v39  ;;  %v6712_v62 = vld [vmem:[%s11698_s3] sm:$0xf] }
 0x362   :  { %v2742_v59 = vadd.f32 %v2741_v7, %v10074_v14  ;;  %v2790_v23 = vpop.f32.mrf.mxu1  ;;  %4258 = vmatpush.bf16.msrb.mxu3 %v7129_v24  ;;  %v7696_v24 = vld [vmem:[%s11698_s3 + $0x20c] sm:$0xf0] }
 0x363   :  { %v10318_v58 = vadd.f32 %v2885_v4, %v2837_v31  ;;  %v2791_v44 = vadd.f32 %v2790_v23, %v10163_v25  ;;  %4111 = vmatpush.bf16.msrb.mxu0 %v6745_v1 }
 0x364   :  { %2936 = vmatmul.bf16.gmra.mxu0 %v8344_v43  ;;  %v3202_v6 = vmul.f32 0.01, %v2742_v59  ;;  %vm3138_vm8 = vcmp.ge.f32.partialorder %v2742_v59, 0.0  ;;  %v7000_v43 = vld [vmem:[%s11698_s3 + $0x240] sm:$0xf] }
 0x365   :  { %2985 = vmatmul.bf16.gmra.mxu1 %v8807_v35  ;;  %3034 = vmatmul.bf16.gmra.mxu2 %v11859_v2  ;;  %v7704_v35 = vld [vmem:[%s11698_s3 + $0x24c] sm:$0xf0] }
 0x366   :  { %3083 = vmatmul.bf16.gmra.mxu3 %v11893_v41  ;;  %v7001_v41 = vor.u32 %v7704_v35, %v7000_v43  ;;  %v3266_v52 = vsel %vm3138_vm8, %v2742_v59, %v3202_v6  ;;  %v7668_v6 = vld [vmem:[%s11698_s3 + $0x12c] sm:$0xf0] }
 0x368   :  { %v2839_v60 = vpop.f32.mrf.mxu2  ;;  %4209 = vmatpush.bf16.msrb.mxu2 %v7001_v41 }
 0x369   :  { %v2840_v27 = vadd.f32 %v2839_v60, %v2791_v44  ;;  %v2888_v26 = vpop.f32.mrf.mxu3  ;;  %v2743_v14 = vpop.f32.mrf.mxu0 }
 0x36a   :  { %v2744_v51 = vadd.f32 %v2743_v14, %v10083_v40  ;;  %v2792_v19 = vpop.f32.mrf.mxu1  ;;  %v6856_v14 = vld [vmem:[%s11698_s3 + $0x120] sm:$0xf] }
 0x36b   :  { %v10326_v63 = vadd.f32 %v2888_v26, %v2840_v27  ;;  %v2793_v40 = vadd.f32 %v2792_v19, %v10163_v25  ;;  %v6728_v26 = vld [vmem:[%s11698_s3 + $0x20] sm:$0xf]  ;;  %v6857_v35 = vor.u32 %v7668_v6, %v6856_v14 }
 0x36c   :  { %vm3142_vm9 = vcmp.ge.f32.partialorder %v2744_v51, 0.0  ;;  %v3206_v2 = vmul.f32 0.01, %v2744_v51  ;;  %v7096_v6 = vld [vmem:[%s11698_s3 + $0x300] sm:$0xf] }
 0x36d   :  { %4161 = vmatpush.bf16.msrb.mxu1 %v6857_v35 }
 0x36e   :  { %v3270_v15 = vsel %vm3142_vm9, %v2744_v51, %v3206_v2 }
 0x36f   :  { %v10334_v33 = vpack.c.bf16 %v3270_v15, %v3266_v52  ;;  %v7112_v52 = vld [vmem:[%s11698_s3 + $0x320] sm:$0xf]  ;;  %v7732_v15 = vld [vmem:[%s11698_s3 + $0x32c] sm:$0xf0] }
 0x370   :  { %v2841_v22 = vpop.f32.mrf.mxu2  ;;  %v7113_v39 = vor.u32 %v7732_v15, %v7112_v52 }
 0x371   :  { %v10355_v55 = vadd.f32 %v2841_v22, %v2793_v40  ;;  %v10357_v45 = vpop.f32.mrf.mxu3  ;;  %v2746_v20 = vpop.f32.mrf.mxu0  ;;  %v6840_v22 = vld [vmem:[%s11698_s3 + $0x100] sm:$0xf] }
 0x372   :  { %v2747_v31 = vadd.f32 %v2746_v20, %v10108_v42  ;;  %v2795_v4 = vpop.f32.mrf.mxu1  ;;  %v6968_v20 = vld [vmem:[%s11698_s3 + $0x200] sm:$0xf]  ;;  %4259 = vmatpush.bf16.msrb.mxu3 %v7113_v39 }
 0x373   :  { %v2796_v7 = vadd.f32 %v2795_v4, %v10163_v25  ;;  %v6713_v4 = vor.u32 %v7632_v3, %v6712_v62  ;;  %v11906_v62 = vld [vmem:[#allocation37_spill] sm:$0xff]  ;;  %v11907_v3 = vld [vmem:[#allocation38_spill] sm:$0xff] }
 0x374   :  { %2941 = vmatmul.bf16.gmra.mxu0 %v8404_v11  ;;  %v3210_v44 = vmul.f32 0.01, %v2747_v31  ;;  %vm3146_vm10 = vcmp.ge.f32.partialorder %v2747_v31, 0.0  ;;  %v6984_v11 = vld [vmem:[%s11698_s3 + $0x220] sm:$0xf] }
 0x375   :  { %2990 = vmatmul.bf16.gmra.mxu1 %v8865_v34  ;;  %3039 = vmatmul.bf16.gmra.mxu2 %v11862_v5  ;;  %v7700_v34 = vld [vmem:[%s11698_s3 + $0x22c] sm:$0xf0] }
 0x376   :  { %3088 = vmatmul.bf16.gmra.mxu3 %v11896_v17  ;;  %v6985_v17 = vor.u32 %v7700_v34, %v6984_v11  ;;  %v3274_v51 = vsel %vm3146_vm10, %v2747_v31, %v3210_v44 }
 0x378   :  { %v2844_v48 = vpop.f32.mrf.mxu2  ;;  %4210 = vmatpush.bf16.msrb.mxu2 %v6985_v17 }
 0x379   :  { %v2845_v57 = vadd.f32 %v2844_v48, %v2796_v7  ;;  %v2893_v59 = vpop.f32.mrf.mxu3  ;;  %v2748_v23 = vpop.f32.mrf.mxu0  ;;  %v6841_v7 = vor.u32 %v7664_v47, %v6840_v22  ;;  %v6969_v48 = vor.u32 %v7696_v24, %v6968_v20 }
 0x37a   :  { %v2749_v42 = vadd.f32 %v2748_v23, %v10117_v56  ;;  %v2797_v60 = vpop.f32.mrf.mxu1  ;;  %v7636_v56 = vld [vmem:[%s11698_s3 + $0x2c] sm:$0xf0]  ;;  %v11904_v23 = vld [vmem:[#allocation35_spill] sm:$0xff] }
 0x37b   :  { %v10366_v27 = vadd.f32 %v2893_v59, %v2845_v57  ;;  %v6729_v43 = vor.u32 %v7636_v56, %v6728_v26  ;;  %v2798_v41 = vadd.f32 %v2797_v60, %v10163_v25  ;;  %4162 = vmatpush.bf16.msrb.mxu1 %v6841_v7  ;;  %v11903_v59 = vld [vmem:[#allocation34_spill] sm:$0xff] }
 0x37c   :  { %vm3150_vm11 = vcmp.ge.f32.partialorder %v2749_v42, 0.0  ;;  %v3214_v5 = vmul.f32 0.01, %v2749_v42  ;;  %4211 = vmatpush.bf16.msrb.mxu2 %v6969_v48 }
 0x37d   :  { %4112 = vmatpush.bf16.msrb.mxu0 %v6729_v43 }
 0x37e   :  { %v3278_v19 = vsel %vm3150_vm11, %v2749_v42, %v3214_v5 }
 0x37f   :  { %v10386_v2 = vpack.c.bf16 %v3278_v19, %v3274_v51 }
 0x380   :  { %v2846_v40 = vpop.f32.mrf.mxu2 }
 0x381   :  { %v10404_v1 = vadd.f32 %v2846_v40, %v2798_v41  ;;  %v10406_v18 = vpop.f32.mrf.mxu3  ;;  %v2751_v49 = vpop.f32.mrf.mxu0  ;;  %4113 = vmatpush.bf16.msrb.mxu0 %v6713_v4  ;;  %v11905_v40 = vld [vmem:[#allocation20_spill] sm:$0xff] }
 0x382   :  { %v2752_v0 = vadd.f32 %v2751_v49, %v10124_v21  ;;  %v2800_v31 = vpop.f32.mrf.mxu1 }
 0x383   :  { %v2801_v57 = vadd.f32 %v2800_v31, %v10163_v25 }
 0x384   :  { %2946 = vmatmul.bf16.gmra.mxu0 %v11875_v61  ;;  %v3218_v11 = vmul.f32 0.01, %v2752_v0  ;;  %vm3154_vm12 = vcmp.ge.f32.partialorder %v2752_v0, 0.0 }
 0x385   :  { %2995 = vmatmul.bf16.gmra.mxu1 %v11903_v59  ;;  %3044 = vmatmul.bf16.gmra.mxu2 %v11904_v23  ;;  %v7658_v23 = vld [vmem:[%s11698_s3 + $0xe4] sm:$0xf] }
 0x386   :  { %3093 = vmatmul.bf16.gmra.mxu3 %v11866_v53  ;;  %v3282_v26 = vsel %vm3154_vm12, %v2752_v0, %v3218_v11 }
 0x388   :  { %v2849_v44 = vpop.f32.mrf.mxu2 }
 0x389   :  { %v2850_v21 = vadd.f32 %v2849_v44, %v2801_v57  ;;  %v2898_v42 = vpop.f32.mrf.mxu3  ;;  %v2753_v60 = vpop.f32.mrf.mxu0 }
 0x38a   :  { %v2754_v34 = vadd.f32 %v2753_v60, %v10127_v50  ;;  %v2802_v5 = vpop.f32.mrf.mxu1  ;;  %v7728_v50 = vld [vmem:[%s11698_s3 + $0x30c] sm:$0xf0]  ;;  %v7210_v60 = vld [vmem:[%s11698_s3 + $0x3f0] sm:$0xf0] }
 0x38b   :  { %v10424_v61 = vadd.f32 %v2898_v42, %v2850_v21  ;;  %v2803_v53 = vadd.f32 %v2802_v5, %v10163_v25  ;;  %v7097_v19 = vor.u32 %v7728_v50, %v7096_v6  ;;  %v6826_v42 = vld [vmem:[%s11698_s3 + $0xf0] sm:$0xf0] }
 0x38c   :  { %vm3158_vm13 = vcmp.ge.f32.partialorder %v2754_v34, 0.0  ;;  %v3222_v17 = vmul.f32 0.01, %v2754_v34 }
 0x38d   :  { %4260 = vmatpush.bf16.msrb.mxu3 %v7097_v19 }
 0x38e   :  { %v3286_v56 = vsel %vm3158_vm13, %v2754_v34, %v3222_v17  ;;  %v6829_v17 = vor.u32 %v7658_v23, %v6826_v42 }
 0x38f   :  { %v10426_v14 = vpack.c.bf16 %v3286_v56, %v3282_v26  ;;  %v7690_v56 = vld [vmem:[%s11698_s3 + $0x1e4] sm:$0xf] }
 0x390   :  { %v2851_v51 = vpop.f32.mrf.mxu2  ;;  %4302 = vmatpush.bf16.msra.mxu0 %v6829_v17  ;;  %v11910_v17 = vld [vmem:[#allocation40_spill] sm:$0xff] }
 0x391   :  { %v10435_v43 = vadd.f32 %v2851_v51, %v2803_v53  ;;  %v10437_v35 = vpop.f32.mrf.mxu3  ;;  %v2756_v41 = vpop.f32.mrf.mxu0  ;;  %v6954_v53 = vld [vmem:[%s11698_s3 + $0x1f0] sm:$0xf0]  ;;  %v11908_v51 = vld [vmem:[#allocation39_spill] sm:$0xff] }
 0x392   :  { %v2757_v52 = vadd.f32 %v2756_v41, %v10134_v32  ;;  %v2805_v15 = vpop.f32.mrf.mxu1  ;;  %v6957_v50 = vor.u32 %v7690_v56, %v6954_v53  ;;  %v11909_v41 = vld [vmem:[#allocation24_spill] sm:$0xff]  ;;  %v11911_v53 = vld [vmem:[#allocation26_spill] sm:$0xff] }
 0x393   :  { %v2806_v39 = vadd.f32 %v2805_v15, %v10163_v25 }
 0x394   :  { %2951 = vmatmul.bf16.gmra.mxu0 %v11905_v40  ;;  %v3226_v24 = vmul.f32 0.01, %v2757_v52  ;;  %vm3162_vm14 = vcmp.ge.f32.partialorder %v2757_v52, 0.0  ;;  %4351 = vmatpush.bf16.msra.mxu1 %v6957_v50 }
 0x395   :  { %3000 = vmatmul.bf16.gmra.mxu1 %v11906_v62  ;;  %3049 = vmatmul.bf16.gmra.mxu2 %v11907_v3 }
 0x396   :  { %3098 = vmatmul.bf16.gmra.mxu3 %v8985_v16  ;;  %v3290_v7 = vsel %vm3162_vm14, %v2757_v52, %v3226_v24  ;;  %v7722_v16 = vld [vmem:[%s11698_s3 + $0x2e4] sm:$0xf] }
 0x397   :  { %v7654_v24 = vld [vmem:[%s11698_s3 + $0xc4] sm:$0xf] }
 0x398   :  { %v2854_v22 = vpop.f32.mrf.mxu2 }
 0x399   :  { %v2855_v49 = vadd.f32 %v2854_v22, %v2806_v39  ;;  %v2903_v47 = vpop.f32.mrf.mxu3  ;;  %v2758_v20 = vpop.f32.mrf.mxu0 }
 0x39a   :  { %v2759_v0 = vadd.f32 %v2758_v20, %v10166_v46  ;;  %v2807_v32 = vpop.f32.mrf.mxu1  ;;  %v7082_v46 = vld [vmem:[%s11698_s3 + $0x2f0] sm:$0xf0]  ;;  %v7718_v20 = vld [vmem:[%s11698_s3 + $0x2c4] sm:$0xf] }
 0x39b   :  { %v10446_v31 = vadd.f32 %v2903_v47, %v2855_v49  ;;  %v2808_v59 = vadd.f32 %v2807_v32, %v10163_v25  ;;  %v7085_v21 = vor.u32 %v7722_v16, %v7082_v46  ;;  %v7754_v25 = vld [vmem:[%s11698_s3 + $0x3e4] sm:$0xf] }
 0x39c   :  { %vm3166_vm15 = vcmp.ge.f32.partialorder %v2759_v0, 0.0  ;;  %v3230_v4 = vmul.f32 0.01, %v2759_v0  ;;  %v7213_v26 = vor.u32 %v7754_v25, %v7210_v60 }
 0x39d   :  { %4400 = vmatpush.bf16.msra.mxu2 %v7085_v21  ;;  %v6938_v21 = vld [vmem:[%s11698_s3 + $0x1d0] sm:$0xf0] }
 0x39e   :  { %v3294_v48 = vsel %vm3166_vm15, %v2759_v0, %v3230_v4  ;;  %4449 = vmatpush.bf16.msra.mxu3 %v7213_v26  ;;  %v7750_v4 = vld [vmem:[%s11698_s3 + $0x3c4] sm:$0xf] }
 0x39f   :  { %v10448_v57 = vpack.c.bf16 %v3294_v48, %v3290_v7  ;;  %v7194_v7 = vld [vmem:[%s11698_s3 + $0x3d0] sm:$0xf0] }
 0x3a0   :  { %v2856_v44 = vpop.f32.mrf.mxu2  ;;  %v7197_v23 = vor.u32 %v7750_v4, %v7194_v7 }
 0x3a1   :  { %v10469_v11 = vadd.f32 %v2856_v44, %v2808_v59  ;;  %v10471_v34 = vpop.f32.mrf.mxu3  ;;  %v2917_v5 = vpop.f32.mrf.mxu0  ;;  %v7686_v44 = vld [vmem:[%s11698_s3 + $0x1c4] sm:$0xf] }
 0x3a2   :  { %v2966_v6 = vpop.f32.mrf.mxu1  ;;  %v2918_v19 = vadd.f32 %v2917_v5, %v10174_v37  ;;  %v7066_v37 = vld [vmem:[%s11698_s3 + $0x2d0] sm:$0xf0]  ;;  %v6941_v25 = vor.u32 %v7686_v44, %v6938_v21  ;;  %4450 = vmatpush.bf16.msra.mxu3 %v7197_v23 }
 0x3a3   :  { %v7069_v32 = vor.u32 %v7718_v20, %v7066_v37  ;;  %v7714_v20 = vld [vmem:[%s11698_s3 + $0x2a4] sm:$0xf]  ;;  %v6922_v23 = vld [vmem:[%s11698_s3 + $0x1b0] sm:$0xf0] }
 0x3a4   :  { %4114 = vmatmul.bf16.vlgmr.msrb.gmra.mxu0 %v11908_v51  ;;  %v2967_v15 = vadd.f32 %v2966_v6, %v2918_v19  ;;  %4352 = vmatpush.bf16.msra.mxu1 %v6941_v25  ;;  %v7650_v37 = vld [vmem:[%s11698_s3 + $0xa4] sm:$0xf] }
 0x3a5   :  { %4163 = vmatmul.bf16.vlgmr.msrb.gmra.mxu1 %v11909_v41  ;;  %4212 = vmatmul.bf16.vlgmr.msrb.gmra.mxu2 %v10182_v29 }
 0x3a6   :  { %4401 = vmatpush.bf16.msra.mxu2 %v7069_v32  ;;  %v7746_v32 = vld [vmem:[%s11698_s3 + $0x3a4] sm:$0xf] }
 0x3a8   :  { %v3015_v52 = vpop.f32.mrf.mxu2 }
 0x3a9   :  { %v3064_v40 = vpop.f32.mrf.mxu3  ;;  %v2919_v39 = vpop.f32.mrf.mxu0  ;;  %v3016_v3 = vadd.f32 %v3015_v52, %v2967_v15 }
 0x3aa   :  { %v2968_v62 = vpop.f32.mrf.mxu1  ;;  %v2920_v22 = vadd.f32 %v2919_v39, %v10204_v30  ;;  %v6810_v30 = vld [vmem:[%s11698_s3 + $0xd0] sm:$0xf0] }
 0x3ab   :  { %v3065_v49 = vadd.f32 %v3064_v40, %v3016_v3  ;;  %v6813_v46 = vor.u32 %v7654_v24, %v6810_v30  ;;  %v7178_v30 = vld [vmem:[%s11698_s3 + $0x3b0] sm:$0xf0] }
 0x3ac   :  { %v2969_v47 = vadd.f32 %v2968_v62, %v2920_v22 }
 0x3ad   :  { %v3171_v60 = vmul.f32 0.01, %v3065_v49  ;;  %4303 = vmatpush.bf16.msra.mxu0 %v6813_v46  ;;  %vm3107_vm0 = vcmp.ge.f32.partialorder %v3065_v49, 0.0  ;;  %v7682_v46 = vld [vmem:[%s11698_s3 + $0x1a4] sm:$0xf] }
 0x3ae   :  { %v6925_v21 = vor.u32 %v7682_v46, %v6922_v23  ;;  %v6906_v46 = vld [vmem:[%s11698_s3 + $0x190] sm:$0xf0] }
 0x3af   :  { %v3235_v6 = vsel %vm3107_vm0, %v3065_v49, %v3171_v60  ;;  %v7050_v49 = vld [vmem:[%s11698_s3 + $0x2b0] sm:$0xf0]  ;;  %v11912_v60 = vld [vmem:[#allocation41_spill] sm:$0xff] }
 0x3b0   :  { %v3017_v0 = vpop.f32.mrf.mxu2  ;;  %4353 = vmatpush.bf16.msra.mxu1 %v6925_v21 }
 0x3b1   :  { %v3018_v48 = vadd.f32 %v3017_v0, %v2969_v47  ;;  %v3066_v59 = vpop.f32.mrf.mxu3  ;;  %v2922_v16 = vpop.f32.mrf.mxu0  ;;  %v7053_v0 = vor.u32 %v7714_v20, %v7050_v49  ;;  %v7710_v49 = vld [vmem:[%s11698_s3 + $0x284] sm:$0xf] }
 0x3b2   :  { %v2971_v42 = vpop.f32.mrf.mxu1  ;;  %v2923_v56 = vadd.f32 %v2922_v16, %v10212_v12  ;;  %v7181_v16 = vor.u32 %v7746_v32, %v7178_v30  ;;  %v7162_v32 = vld [vmem:[%s11698_s3 + $0x390] sm:$0xf0] }
 0x3b3   :  { %v3067_v5 = vadd.f32 %v3066_v59, %v3018_v48  ;;  %4402 = vmatpush.bf16.msra.mxu2 %v7053_v0 }
 0x3b4   :  { %4119 = vmatmul.bf16.gmra.mxu0 %v11910_v17  ;;  %v2972_v15 = vadd.f32 %v2971_v42, %v2923_v56  ;;  %4451 = vmatpush.bf16.msra.mxu3 %v7181_v16  ;;  %v11913_v56 = vld [vmem:[#allocation28_spill] sm:$0xff]  ;;  %v7678_v16 = vld [vmem:[%s11698_s3 + $0x184] sm:$0xf] }
 0x3b5   :  { %vm3111_vm1 = vcmp.ge.f32.partialorder %v3067_v5, 0.0  ;;  %v3175_v26 = vmul.f32 0.01, %v3067_v5  ;;  %4168 = vmatmul.bf16.gmra.mxu1 %v11911_v53  ;;  %4217 = vmatmul.bf16.gmra.mxu2 %v10220_v10 }
 0x3b7   :  { %v3239_v50 = vsel %vm3111_vm1, %v3067_v5, %v3175_v26 }
 0x3b8   :  { %v10512_v19 = vpack.c.bf16 %v3239_v50, %v3235_v6  ;;  %v3020_v52 = vpop.f32.mrf.mxu2 }
 0x3b9   :  { %v3069_v40 = vpop.f32.mrf.mxu3  ;;  %v2924_v39 = vpop.f32.mrf.mxu0  ;;  %v3021_v3 = vadd.f32 %v3020_v52, %v2972_v15 }
 0x3ba   :  { %v2973_v62 = vpop.f32.mrf.mxu1  ;;  %4261 = vmatmul.bf16.vlgmr.msrb.gmra.mxu3 %v10512_v19  ;;  %v2925_v22 = vadd.f32 %v2924_v39, %v10242_v54  ;;  %v6794_v54 = vld [vmem:[%s11698_s3 + $0xb0] sm:$0xf0] }
 0x3bb   :  { %v3070_v47 = vadd.f32 %v3069_v40, %v3021_v3  ;;  %v6797_v59 = vor.u32 %v7650_v37, %v6794_v54  ;;  %v7646_v37 = vld [vmem:[%s11698_s3 + $0x84] sm:$0xf] }
 0x3bc   :  { %v2974_v12 = vadd.f32 %v2973_v62, %v2925_v22  ;;  %v7742_v54 = vld [vmem:[%s11698_s3 + $0x384] sm:$0xf] }
 0x3bd   :  { %v3179_v42 = vmul.f32 0.01, %v3070_v47  ;;  %4304 = vmatpush.bf16.msra.mxu0 %v6797_v59  ;;  %vm3115_vm2 = vcmp.ge.f32.partialorder %v3070_v47, 0.0  ;;  %v7165_v59 = vor.u32 %v7742_v54, %v7162_v32  ;;  %v7738_v54 = vld [vmem:[%s11698_s3 + $0x364] sm:$0xf] }
 0x3be   :  { %v7146_v32 = vld [vmem:[%s11698_s3 + $0x370] sm:$0xf0] }
 0x3bf   :  { %v3243_v6 = vsel %vm3115_vm2, %v3070_v47, %v3179_v42  ;;  %v7034_v47 = vld [vmem:[%s11698_s3 + $0x290] sm:$0xf0]  ;;  %4452 = vmatpush.bf16.msra.mxu3 %v7165_v59  ;;  %v7149_v59 = vor.u32 %v7738_v54, %v7146_v32  ;;  %v7734_v32 = vld [vmem:[%s11698_s3 + $0x344] sm:$0xf] }
 0x3c0   :  { %v3022_v24 = vpop.f32.mrf.mxu2  ;;  %v7037_v0 = vor.u32 %v7710_v49, %v7034_v47  ;;  %v6746_v54 = vld [vmem:[%s11698_s3 + $0x50] sm:$0xf0] }
 0x3c1   :  { %v3023_v4 = vadd.f32 %v3022_v24, %v2974_v12  ;;  %v3071_v7 = vpop.f32.mrf.mxu3  ;;  %v2927_v48 = vpop.f32.mrf.mxu0 }
 0x3c2   :  { %v2976_v44 = vpop.f32.mrf.mxu1  ;;  %v2928_v26 = vadd.f32 %v2927_v48, %v10250_v28  ;;  %4403 = vmatpush.bf16.msra.mxu2 %v7037_v0 }
 0x3c3   :  { %v3072_v25 = vadd.f32 %v3071_v7, %v3023_v4  ;;  %4453 = vmatpush.bf16.msra.mxu3 %v7149_v59 }
 0x3c4   :  { %4124 = vmatmul.bf16.gmra.mxu0 %v11912_v60  ;;  %v2977_v40 = vadd.f32 %v2976_v44, %v2928_v26  ;;  %v6909_v44 = vor.u32 %v7678_v16, %v6906_v46  ;;  %v7674_v16 = vld [vmem:[%s11698_s3 + $0x164] sm:$0xf]  ;;  %v6890_v46 = vld [vmem:[%s11698_s3 + $0x170] sm:$0xf0] }
 0x3c5   :  { %vm3119_vm3 = vcmp.ge.f32.partialorder %v3072_v25, 0.0  ;;  %v3183_v5 = vmul.f32 0.01, %v3072_v25  ;;  %4173 = vmatmul.bf16.gmra.mxu1 %v11913_v56  ;;  %4222 = vmatmul.bf16.gmra.mxu2 %v10258_v38 }
 0x3c6   :  { %4354 = vmatpush.bf16.msra.mxu1 %v6909_v44  ;;  %v6893_v44 = vor.u32 %v7674_v16, %v6890_v46  ;;  %v7670_v46 = vld [vmem:[%s11698_s3 + $0x144] sm:$0xf] }
 0x3c7   :  { %v3247_v50 = vsel %vm3119_vm3, %v3072_v25, %v3183_v5  ;;  %v11914_v25 = vld [vmem:[#allocation42_spill] sm:$0xff] }
 0x3c8   :  { %v10544_v52 = vpack.c.bf16 %v3247_v50, %v3243_v6  ;;  %v3025_v15 = vpop.f32.mrf.mxu2  ;;  %v11915_v6 = vld [vmem:[#allocation30_spill] sm:$0xff] }
 0x3c9   :  { %v3074_v39 = vpop.f32.mrf.mxu3  ;;  %v2929_v62 = vpop.f32.mrf.mxu0  ;;  %v3026_v22 = vadd.f32 %v3025_v15, %v2977_v40 }
 0x3ca   :  { %v2978_v3 = vpop.f32.mrf.mxu1  ;;  %4266 = vmatmul.bf16.gmra.mxu3 %v10544_v52  ;;  %v2930_v12 = vadd.f32 %v2929_v62, %v10280_v8  ;;  %v6778_v8 = vld [vmem:[%s11698_s3 + $0x90] sm:$0xf0]  ;;  %4355 = vmatpush.bf16.msra.mxu1 %v6893_v44 }
 0x3cb   :  { %v3075_v20 = vadd.f32 %v3074_v39, %v3026_v22  ;;  %v6781_v48 = vor.u32 %v7646_v37, %v6778_v8  ;;  %v7706_v37 = vld [vmem:[%s11698_s3 + $0x264] sm:$0xf] }
 0x3cc   :  { %v2979_v28 = vadd.f32 %v2978_v3, %v2930_v12 }
 0x3cd   :  { %v3187_v21 = vmul.f32 0.01, %v3075_v20  ;;  %4305 = vmatpush.bf16.msra.mxu0 %v6781_v48  ;;  %vm3123_vm4 = vcmp.ge.f32.partialorder %v3075_v20, 0.0 }
 0x3cf   :  { %v3251_v50 = vsel %vm3123_vm4, %v3075_v20, %v3187_v21  ;;  %v7018_v20 = vld [vmem:[%s11698_s3 + $0x270] sm:$0xf0] }
 0x3d0   :  { %v3027_v24 = vpop.f32.mrf.mxu2  ;;  %v7021_v8 = vor.u32 %v7706_v37, %v7018_v20 }
 0x3d1   :  { %v3028_v30 = vadd.f32 %v3027_v24, %v2979_v28  ;;  %v3076_v4 = vpop.f32.mrf.mxu3  ;;  %v2932_v7 = vpop.f32.mrf.mxu0  ;;  %v7642_v24 = vld [vmem:[%s11698_s3 + $0x64] sm:$0xf] }
 0x3d2   :  { %v2981_v23 = vpop.f32.mrf.mxu1  ;;  %v2933_v26 = vadd.f32 %v2932_v7, %v10288_v36  ;;  %4404 = vmatpush.bf16.msra.mxu2 %v7021_v8  ;;  %v7002_v8 = vld [vmem:[%s11698_s3 + $0x250] sm:$0xf0] }
 0x3d3   :  { %v3077_v42 = vadd.f32 %v3076_v4, %v3028_v30 }
 0x3d4   :  { %4129 = vmatmul.bf16.gmra.mxu0 %v11914_v25  ;;  %v2982_v62 = vadd.f32 %v2981_v23, %v2933_v26 }
 0x3d5   :  { %vm3127_vm5 = vcmp.ge.f32.partialorder %v3077_v42, 0.0  ;;  %v3191_v5 = vmul.f32 0.01, %v3077_v42  ;;  %4178 = vmatmul.bf16.gmra.mxu1 %v11915_v6  ;;  %4227 = vmatmul.bf16.gmra.mxu2 %v10296_v13 }
 0x3d7   :  { %v3255_v15 = vsel %vm3127_vm5, %v3077_v42, %v3191_v5  ;;  %v11916_v5 = vld [vmem:[#allocation43_spill] sm:$0xff] }
 0x3d8   :  { %v10576_v40 = vpack.c.bf16 %v3255_v15, %v3251_v50  ;;  %v3030_v39 = vpop.f32.mrf.mxu2  ;;  %v11917_v15 = vld [vmem:[#allocation32_spill] sm:$0xff] }
 0x3d9   :  { %v3079_v3 = vpop.f32.mrf.mxu3  ;;  %v2934_v22 = vpop.f32.mrf.mxu0  ;;  %v3031_v28 = vadd.f32 %v3030_v39, %v2982_v62 }
 0x3da   :  { %v2983_v12 = vpop.f32.mrf.mxu1  ;;  %4271 = vmatmul.bf16.gmra.mxu3 %v10576_v40  ;;  %v2935_v49 = vadd.f32 %v2934_v22, %v10318_v58  ;;  %v6762_v58 = vld [vmem:[%s11698_s3 + $0x70] sm:$0xf0] }
 0x3db   :  { %v3080_v47 = vadd.f32 %v3079_v3, %v3031_v28  ;;  %v6765_v48 = vor.u32 %v7642_v24, %v6762_v58 }
 0x3dc   :  { %v2984_v36 = vadd.f32 %v2983_v12, %v2935_v49  ;;  %v2891_v12 = vadd.f32 %v10357_v45, %v10355_v55  ;;  %v7638_v55 = vld [vmem:[%s11698_s3 + $0x44] sm:$0xf] }
 0x3dd   :  { %v3195_v21 = vmul.f32 0.01, %v3080_v47  ;;  %4306 = vmatpush.bf16.msra.mxu0 %v6765_v48  ;;  %vm3131_vm6 = vcmp.ge.f32.partialorder %v3080_v47, 0.0  ;;  %v6749_v59 = vor.u32 %v7638_v55, %v6746_v54  ;;  %v7698_v55 = vld [vmem:[%s11698_s3 + $0x224] sm:$0xf] }
 0x3de   :  { %v7666_v54 = vld [vmem:[%s11698_s3 + $0x124] sm:$0xf] }
 0x3df   :  { %v3259_v39 = vsel %vm3131_vm6, %v3080_v47, %v3195_v21  ;;  %v7702_v47 = vld [vmem:[%s11698_s3 + $0x244] sm:$0xf] }
 0x3e0   :  { %v3032_v0 = vpop.f32.mrf.mxu2  ;;  %v7005_v58 = vor.u32 %v7702_v47, %v7002_v8 }
 0x3e1   :  { %v3033_v30 = vadd.f32 %v3032_v0, %v2984_v36  ;;  %v3081_v4 = vpop.f32.mrf.mxu3  ;;  %v2937_v7 = vpop.f32.mrf.mxu0  ;;  %4307 = vmatpush.bf16.msra.mxu0 %v6749_v59 }
 0x3e2   :  { %v2986_v23 = vpop.f32.mrf.mxu1  ;;  %v2938_v50 = vadd.f32 %v2937_v7, %v10326_v63  ;;  %4405 = vmatpush.bf16.msra.mxu2 %v7005_v58 }
 0x3e3   :  { %v3082_v42 = vadd.f32 %v3081_v4, %v3033_v30  ;;  %v7130_v30 = vld [vmem:[%s11698_s3 + $0x350] sm:$0xf0] }
 0x3e4   :  { %4134 = vmatmul.bf16.gmra.mxu0 %v11916_v5  ;;  %v2987_v28 = vadd.f32 %v2986_v23, %v2938_v50  ;;  %v7133_v16 = vor.u32 %v7734_v32, %v7130_v30  ;;  %v6874_v23 = vld [vmem:[%s11698_s3 + $0x150] sm:$0xf0] }
 0x3e5   :  { %vm3135_vm7 = vcmp.ge.f32.partialorder %v3082_v42, 0.0  ;;  %v3199_v26 = vmul.f32 0.01, %v3082_v42  ;;  %4183 = vmatmul.bf16.gmra.mxu1 %v11917_v15  ;;  %4232 = vmatmul.bf16.gmra.mxu2 %v10334_v33  ;;  %v6877_v21 = vor.u32 %v7670_v46, %v6874_v23  ;;  %v11918_v50 = vld [vmem:[#allocation44_spill] sm:$0xff]  ;;  %v7630_v23 = vld [vmem:[%s11698_s3 + $0x4] sm:$0xf] }
 0x3e6   :  { %4454 = vmatpush.bf16.msra.mxu3 %v7133_v16  ;;  %v6858_v32 = vld [vmem:[%s11698_s3 + $0x130] sm:$0xf0] }
 0x3e7   :  { %v3263_v62 = vsel %vm3135_vm7, %v3082_v42, %v3199_v26  ;;  %4356 = vmatpush.bf16.msra.mxu1 %v6877_v21  ;;  %v6861_v59 = vor.u32 %v7666_v54, %v6858_v32  ;;  %v7662_v21 = vld [vmem:[%s11698_s3 + $0x104] sm:$0xf]  ;;  %v2901_v54 = vadd.f32 %v10437_v35, %v10435_v43 }
 0x3e8   :  { %v10608_v3 = vpack.c.bf16 %v3263_v62, %v3259_v39  ;;  %v3035_v22 = vpop.f32.mrf.mxu2 }
 0x3e9   :  { %v3084_v49 = vpop.f32.mrf.mxu3  ;;  %v2939_v36 = vpop.f32.mrf.mxu0  ;;  %v3036_v20 = vadd.f32 %v3035_v22, %v2987_v28  ;;  %v11919_v22 = vld [vmem:[#allocation36_spill] sm:$0xff] }
 0x3ea   :  { %v2988_v37 = vpop.f32.mrf.mxu1  ;;  %4276 = vmatmul.bf16.gmra.mxu3 %v10608_v3  ;;  %v2940_v63 = vadd.f32 %v2939_v36, %v2891_v12 }
 0x3eb   :  { %v3085_v24 = vadd.f32 %v3084_v49, %v3036_v20  ;;  %4357 = vmatpush.bf16.msra.mxu1 %v6861_v59 }
 0x3ec   :  { %v2989_v0 = vadd.f32 %v2988_v37, %v2940_v63  ;;  %v2896_v37 = vadd.f32 %v10406_v18, %v10404_v1  ;;  %v7634_v1 = vld [vmem:[%s11698_s3 + $0x24] sm:$0xf] }
 0x3ed   :  { %v3203_v42 = vmul.f32 0.01, %v3085_v24  ;;  %vm3139_vm8 = vcmp.ge.f32.partialorder %v3085_v24, 0.0 }
 0x3ef   :  { %v3267_v12 = vsel %vm3139_vm8, %v3085_v24, %v3203_v42  ;;  %v6986_v24 = vld [vmem:[%s11698_s3 + $0x230] sm:$0xf0] }
 0x3f0   :  { %v3037_v45 = vpop.f32.mrf.mxu2  ;;  %v6989_v18 = vor.u32 %v7698_v55, %v6986_v24  ;;  %v11921_v24 = vld [vmem:[#allocation16_spill] sm:$0xff] }
 0x3f1   :  { %v3038_v4 = vadd.f32 %v3037_v45, %v2989_v0  ;;  %v3086_v7 = vpop.f32.mrf.mxu3  ;;  %v2942_v48 = vpop.f32.mrf.mxu0  ;;  %v6730_v45 = vld [vmem:[%s11698_s3 + $0x30] sm:$0xf0] }
 0x3f2   :  { %v2991_v44 = vpop.f32.mrf.mxu1  ;;  %v2943_v62 = vadd.f32 %v2942_v48, %v10366_v27  ;;  %v6733_v58 = vor.u32 %v7634_v1, %v6730_v45  ;;  %4406 = vmatpush.bf16.msra.mxu2 %v6989_v18  ;;  %v7114_v48 = vld [vmem:[%s11698_s3 + $0x330] sm:$0xf0] }
 0x3f3   :  { %v3087_v26 = vadd.f32 %v3086_v7, %v3038_v4  ;;  %v7730_v7 = vld [vmem:[%s11698_s3 + $0x324] sm:$0xf] }
 0x3f4   :  { %4139 = vmatmul.bf16.gmra.mxu0 %v11918_v50  ;;  %v2992_v20 = vadd.f32 %v2991_v44, %v2943_v62  ;;  %v7117_v46 = vor.u32 %v7730_v7, %v7114_v48  ;;  %v6714_v44 = vld [vmem:[%s11698_s3 + $0x10] sm:$0xf0] }
 0x3f5   :  { %vm3143_vm9 = vcmp.ge.f32.partialorder %v3087_v26, 0.0  ;;  %v3207_v39 = vmul.f32 0.01, %v3087_v26  ;;  %4188 = vmatmul.bf16.gmra.mxu1 %v11919_v22  ;;  %4237 = vmatmul.bf16.gmra.mxu2 %v10386_v2  ;;  %v6842_v62 = vld [vmem:[%s11698_s3 + $0x110] sm:$0xf0] }
 0x3f6   :  { %4308 = vmatpush.bf16.msra.mxu0 %v6733_v58  ;;  %4455 = vmatpush.bf16.msra.mxu3 %v7117_v46 }
 0x3f7   :  { %v3271_v28 = vsel %vm3143_vm9, %v3087_v26, %v3207_v39 }
 0x3f8   :  { %v10641_v49 = vpack.c.bf16 %v3271_v28, %v3267_v12  ;;  %v3040_v36 = vpop.f32.mrf.mxu2  ;;  %v7694_v12 = vld [vmem:[%s11698_s3 + $0x204] sm:$0xf] }
 0x3f9   :  { %v3089_v63 = vpop.f32.mrf.mxu3  ;;  %v2944_v0 = vpop.f32.mrf.mxu0  ;;  %v3041_v8 = vadd.f32 %v3040_v36, %v2992_v20  ;;  %v6717_v36 = vor.u32 %v7630_v23, %v6714_v44  ;;  %v6970_v20 = vld [vmem:[%s11698_s3 + $0x210] sm:$0xf0] }
 0x3fa   :  { %v2993_v47 = vpop.f32.mrf.mxu1  ;;  %4281 = vmatmul.bf16.gmra.mxu3 %v10641_v49  ;;  %v2945_v27 = vadd.f32 %v2944_v0, %v2896_v37  ;;  %v6845_v37 = vor.u32 %v7662_v21, %v6842_v62 }
 0x3fb   :  { %v3090_v30 = vadd.f32 %v3089_v63, %v3041_v8  ;;  %v11920_v8 = vld [vmem:[#allocation18_spill] sm:$0xff]  ;;  %4309 = vmatpush.bf16.msra.mxu0 %v6717_v36 }
 0x3fc   :  { %v2994_v4 = vadd.f32 %v2993_v47, %v2945_v27  ;;  %v6973_v47 = vor.u32 %v7694_v12, %v6970_v20  ;;  %4358 = vmatpush.bf16.msra.mxu1 %v6845_v37  ;;  %v11922_v12 = vld [vmem:[#allocation45_spill] sm:$0xff] }
 0x3fd   :  { %v3211_v63 = vmul.f32 0.01, %v3090_v30  ;;  %vm3147_vm10 = vcmp.ge.f32.partialorder %v3090_v30, 0.0 }
 0x3fe   :  { %4407 = vmatpush.bf16.msra.mxu2 %v6973_v47  ;;  %v2906_v47 = vadd.f32 %v10471_v34, %v10469_v11  ;;  %v10721_v11 = vld [vmem:[%s11699_s4] sm:$0xf]  ;;  %v6832_v34 = vld [vmem:[%s11698_s3 + $0xe8] sm:$0xf] }
 0x3ff   :  { %v3275_v1 = vsel %vm3147_vm10, %v3090_v30, %v3211_v63  ;;  %v7726_v30 = vld [vmem:[%s11698_s3 + $0x304] sm:$0xf] }
 0x400   :  { %v3042_v16 = vpop.f32.mrf.mxu2 }
 0x401   :  { %v3043_v42 = vadd.f32 %v3042_v16, %v2994_v4  ;;  %v3091_v26 = vpop.f32.mrf.mxu3  ;;  %v2947_v39 = vpop.f32.mrf.mxu0  ;;  %v7098_v16 = vld [vmem:[%s11698_s3 + $0x310] sm:$0xf0] }
 0x402   :  { %v2996_v28 = vpop.f32.mrf.mxu1  ;;  %v2948_v55 = vadd.f32 %v2947_v39, %v10424_v61  ;;  %v7101_v46 = vor.u32 %v7726_v30, %v7098_v16  ;;  %v10736_v30 = vperm.slane %v10721_v11, 0 }
 0x403   :  { %v3092_v0 = vadd.f32 %v3091_v26, %v3043_v42 }
 0x404   :  { %4144 = vmatmul.bf16.gmra.mxu0 %v11920_v8  ;;  %v2997_v32 = vadd.f32 %v2996_v28, %v2948_v55  ;;  %4456 = vmatpush.bf16.msra.mxu3 %v7101_v46  ;;  %v6960_v46 = vld [vmem:[%s11698_s3 + $0x1e8] sm:$0xf] }
 0x405   :  { %vm3151_vm11 = vcmp.ge.f32.partialorder %v3092_v0, 0.0  ;;  %v3215_v27 = vmul.f32 0.01, %v3092_v0  ;;  %4193 = vmatmul.bf16.gmra.mxu1 %v11921_v24  ;;  %4242 = vmatmul.bf16.gmra.mxu2 %v10426_v14 }
 0x407   :  { %v3279_v18 = vsel %vm3151_vm11, %v3092_v0, %v3215_v27 }
 0x408   :  { %v10692_v45 = vpack.c.bf16 %v3279_v18, %v3275_v1  ;;  %v3045_v58 = vpop.f32.mrf.mxu2  ;;  %v7088_v18 = vld [vmem:[%s11698_s3 + $0x2e8] sm:$0xf] }
 0x409   :  { %v3094_v4 = vpop.f32.mrf.mxu3  ;;  %v2949_v7 = vpop.f32.mrf.mxu0  ;;  %v3046_v61 = vadd.f32 %v3045_v58, %v2997_v32 }
 0x40a   :  { %v2998_v48 = vpop.f32.mrf.mxu1  ;;  %4286 = vmatmul.bf16.gmra.mxu3 %v10692_v45  ;;  %v2950_v59 = vadd.f32 %v2949_v7, %v2901_v54  ;;  %v7661_v7 = vld [vmem:[%s11698_s3 + $0xf4] sm:$0xf0] }
 0x40b   :  { %v3095_v23 = vadd.f32 %v3094_v4, %v3046_v61  ;;  %v6833_v61 = vor.u32 %v7661_v7, %v6832_v34 }
 0x40c   :  { %v2999_v44 = vadd.f32 %v2998_v48, %v2950_v59  ;;  %v7216_v48 = vld [vmem:[%s11698_s3 + $0x3e8] sm:$0xf]  ;;  %v7757_v59 = vld [vmem:[%s11698_s3 + $0x3f4] sm:$0xf0] }
 0x40d   :  { %v3219_v39 = vmul.f32 0.01, %v3095_v23  ;;  %vm3155_vm12 = vcmp.ge.f32.partialorder %v3095_v23, 0.0  ;;  %v7217_v16 = vor.u32 %v7757_v59, %v7216_v48  ;;  %4498 = vmatpush.bf16.msrb.mxu0 %v6833_v61  ;;  %v6816_v48 = vld [vmem:[%s11698_s3 + $0xc8] sm:$0xf] }
 0x40e   :  { %v7657_v61 = vld [vmem:[%s11698_s3 + $0xd4] sm:$0xf0]  ;;  %v7200_v59 = vld [vmem:[%s11698_s3 + $0x3c8] sm:$0xf] }
 0x40f   :  { %v3283_v37 = vsel %vm3155_vm12, %v3095_v23, %v3219_v39  ;;  %v7693_v23 = vld [vmem:[%s11698_s3 + $0x1f4] sm:$0xf0]  ;;  %4645 = vmatpush.bf16.msrb.mxu3 %v7217_v16  ;;  %v6817_v16 = vor.u32 %v7657_v61, %v6816_v48  ;;  %v6928_v61 = vld [vmem:[%s11698_s3 + $0x1a8] sm:$0xf] }
 0x410   :  { %v3047_v43 = vpop.f32.mrf.mxu2  ;;  %v7749_v48 = vld [vmem:[%s11698_s3 + $0x3b4] sm:$0xf0] }
 0x411   :  { %v3048_v35 = vadd.f32 %v3047_v43, %v2999_v44  ;;  %v3096_v21 = vpop.f32.mrf.mxu3  ;;  %v2952_v42 = vpop.f32.mrf.mxu0  ;;  %4499 = vmatpush.bf16.msrb.mxu0 %v6817_v16 }
 0x412   :  { %v3001_v26 = vpop.f32.mrf.mxu1  ;;  %v2953_v36 = vadd.f32 %v2952_v42, %v10446_v31  ;;  %v7725_v31 = vld [vmem:[%s11698_s3 + $0x2f4] sm:$0xf0] }
 0x413   :  { %v3097_v62 = vadd.f32 %v3096_v21, %v3048_v35  ;;  %v7089_v54 = vor.u32 %v7725_v31, %v7088_v18  ;;  %v6961_v35 = vor.u32 %v7693_v23, %v6960_v46  ;;  %v7753_v46 = vld [vmem:[%s11698_s3 + $0x3d4] sm:$0xf0]  ;;  %v6944_v23 = vld [vmem:[%s11698_s3 + $0x1c8] sm:$0xf] }
 0x414   :  { %4149 = vmatmul.bf16.gmra.mxu0 %v11922_v12  ;;  %v3002_v27 = vadd.f32 %v3001_v26, %v2953_v36 }
 0x415   :  { %vm3159_vm13 = vcmp.ge.f32.partialorder %v3097_v62, 0.0  ;;  %v3223_v28 = vmul.f32 0.01, %v3097_v62  ;;  %4198 = vmatmul.bf16.gmra.mxu1 %v9909_v9  ;;  %4247 = vmatmul.bf16.gmra.mxu2 %v10448_v57 }
 0x416   :  { %4596 = vmatpush.bf16.msrb.mxu2 %v7089_v54  ;;  %4547 = vmatpush.bf16.msrb.mxu1 %v6961_v35 }
 0x417   :  { %v3287_v20 = vsel %vm3159_vm13, %v3097_v62, %v3223_v28 }
 0x418   :  { %v10707_v63 = vpack.c.bf16 %v3287_v20, %v3283_v37  ;;  %v3050_v0 = vpop.f32.mrf.mxu2 }
 0x419   :  { %v3099_v55 = vpop.f32.mrf.mxu3  ;;  %v2954_v1 = vpop.f32.mrf.mxu0  ;;  %v3051_v32 = vadd.f32 %v3050_v0, %v3002_v27 }
 0x41a   :  { %v3003_v58 = vpop.f32.mrf.mxu1  ;;  %4291 = vmatmul.bf16.gmra.mxu3 %v10707_v63  ;;  %v2955_v4 = vadd.f32 %v2954_v1, %v2906_v47 }
 0x41b   :  { %v3100_v44 = vadd.f32 %v3099_v55, %v3051_v32  ;;  %v7072_v32 = vld [vmem:[%s11698_s3 + $0x2c8] sm:$0xf] }
 0x41c   :  { %v3004_v43 = vadd.f32 %v3003_v58, %v2955_v4  ;;  %v7721_v4 = vld [vmem:[%s11698_s3 + $0x2d4] sm:$0xf0] }
 0x41d   :  { %v3227_v36 = vmul.f32 0.01, %v3100_v44  ;;  %vm3163_vm14 = vcmp.ge.f32.partialorder %v3100_v44, 0.0  ;;  %v7073_v7 = vor.u32 %v7721_v4, %v7072_v32  ;;  %v7653_v32 = vld [vmem:[%s11698_s3 + $0xb4] sm:$0xf0] }
 0x41e   :  { %v7184_v4 = vld [vmem:[%s11698_s3 + $0x3a8] sm:$0xf] }
 0x41f   :  { %v3291_v47 = vsel %vm3163_vm14, %v3100_v44, %v3227_v36  ;;  %v7689_v44 = vld [vmem:[%s11698_s3 + $0x1d4] sm:$0xf0]  ;;  %4597 = vmatpush.bf16.msrb.mxu2 %v7073_v7 }
 0x420   :  { %v3052_v21 = vpop.f32.mrf.mxu2  ;;  %v6945_v35 = vor.u32 %v7689_v44, %v6944_v23 }
 0x421   :  { %v3053_v42 = vadd.f32 %v3052_v21, %v3004_v43  ;;  %v4115_v26 = vpop.f32.mrf.mxu0  ;;  %v3101_v39 = vpop.f32.mrf.mxu3  ;;  %v7201_v43 = vor.u32 %v7753_v46, %v7200_v59  ;;  %v7685_v59 = vld [vmem:[%s11698_s3 + $0x1b4] sm:$0xf0]  ;;  %v7185_v46 = vor.u32 %v7749_v48, %v7184_v4 }
 0x422   :  { %v4116_v62 = vadd.f32 %v4115_v26, %v10736_v30  ;;  %v4164_v28 = vpop.f32.mrf.mxu1  ;;  %4548 = vmatpush.bf16.msrb.mxu1 %v6945_v35  ;;  %v6929_v23 = vor.u32 %v7685_v59, %v6928_v61  ;;  %v7649_v48 = vld [vmem:[%s11698_s3 + $0x94] sm:$0xf0]  ;;  %v7168_v61 = vld [vmem:[%s11698_s3 + $0x388] sm:$0xf] }
 0x423   :  { %v3102_v37 = vadd.f32 %v3101_v39, %v3053_v42  ;;  %4646 = vmatpush.bf16.msrb.mxu3 %v7201_v43 }
 0x424   :  { %v4165_v20 = vadd.f32 %v4164_v28, %v4116_v62  ;;  %4310 = vmatmul.bf16.vlgmr.msra.gmra.mxu0 %v11908_v51 }
 0x425   :  { %vm3167_vm15 = vcmp.ge.f32.partialorder %v3102_v37, 0.0  ;;  %v3231_v0 = vmul.f32 0.01, %v3102_v37  ;;  %4359 = vmatmul.bf16.vlgmr.msra.gmra.mxu1 %v11909_v41  ;;  %4408 = vmatmul.bf16.vlgmr.msra.gmra.mxu2 %v10182_v29 }
 0x426   :  { %4549 = vmatpush.bf16.msrb.mxu1 %v6929_v23  ;;  %v6912_v23 = vld [vmem:[%s11698_s3 + $0x188] sm:$0xf] }
 0x427   :  { %v3295_v27 = vsel %vm3167_vm15, %v3102_v37, %v3231_v0  ;;  %v7056_v0 = vld [vmem:[%s11698_s3 + $0x2a8] sm:$0xf]  ;;  %4647 = vmatpush.bf16.msrb.mxu3 %v7185_v46  ;;  %v7745_v46 = vld [vmem:[%s11698_s3 + $0x394] sm:$0xf0] }
 0x428   :  { %v10748_v55 = vpack.c.bf16 %v3295_v27, %v3291_v47  ;;  %v4213_v1 = vpop.f32.mrf.mxu2  ;;  %v7717_v47 = vld [vmem:[%s11698_s3 + $0x2b4] sm:$0xf0] }
 0x429   :  { %v4214_v18 = vadd.f32 %v4213_v1, %v4165_v20  ;;  %v4117_v31 = vpop.f32.mrf.mxu0 }
 0x42a   :  { %v4118_v58 = vadd.f32 %v4117_v31, %v10736_v30  ;;  %v4166_v54 = vpop.f32.mrf.mxu1  ;;  %4296 = vmatmul.bf16.gmra.mxu3 %v10748_v55  ;;  %v7057_v31 = vor.u32 %v7717_v47, %v7056_v0 }
 0x42c   :  { %v4167_v34 = vadd.f32 %v4166_v54, %v4118_v58  ;;  %4598 = vmatpush.bf16.msrb.mxu2 %v7057_v31  ;;  %v6800_v54 = vld [vmem:[%s11698_s3 + $0xa8] sm:$0xf] }
 0x42d   :  { %v6801_v7 = vor.u32 %v7653_v32, %v6800_v54 }
 0x42f   :  { %4500 = vmatpush.bf16.msrb.mxu0 %v6801_v7  ;;  %v6784_v7 = vld [vmem:[%s11698_s3 + $0x88] sm:$0xf] }
 0x430   :  { %v4215_v21 = vpop.f32.mrf.mxu2 }
 0x431   :  { %v4216_v42 = vadd.f32 %v4215_v21, %v4167_v34  ;;  %v4120_v26 = vpop.f32.mrf.mxu0 }
 0x432   :  { %v4121_v39 = vadd.f32 %v4120_v26, %v10736_v30  ;;  %v4169_v62 = vpop.f32.mrf.mxu1 }
 0x434   :  { %v4170_v28 = vadd.f32 %v4169_v62, %v4121_v39  ;;  %4315 = vmatmul.bf16.gmra.mxu0 %v11910_v17 }
 0x435   :  { %4364 = vmatmul.bf16.gmra.mxu1 %v11911_v53  ;;  %4413 = vmatmul.bf16.gmra.mxu2 %v10220_v10 }
 0x438   :  { %v4218_v36 = vpop.f32.mrf.mxu2 }
 0x439   :  { %v4219_v37 = vadd.f32 %v4218_v36, %v4170_v28  ;;  %v4122_v20 = vpop.f32.mrf.mxu0 }
 0x43a   :  { %v4123_v27 = vadd.f32 %v4122_v20, %v10736_v30  ;;  %v4171_v1 = vpop.f32.mrf.mxu1  ;;  %4457 = vmatmul.bf16.vlgmr.msra.gmra.mxu3 %v10512_v19 }
 0x43c   :  { %v4172_v58 = vadd.f32 %v4171_v1, %v4123_v27  ;;  %v7040_v27 = vld [vmem:[%s11698_s3 + $0x288] sm:$0xf]  ;;  %v7713_v1 = vld [vmem:[%s11698_s3 + $0x294] sm:$0xf0] }
 0x43d   :  { %v4262_v34 = vpop.f32.mrf.mxu3  ;;  %v7041_v32 = vor.u32 %v7713_v1, %v7040_v27 }
 0x43e   :  { %v4263_v16 = vadd.f32 %v4262_v34, %v4214_v18 }
 0x43f   :  { %4599 = vmatpush.bf16.msrb.mxu2 %v7041_v32 }
 0x440   :  { %v4220_v44 = vpop.f32.mrf.mxu2  ;;  %v4954_v18 = vmul.f32 0.01, %v4263_v16  ;;  %vm4890_vm0 = vcmp.ge.f32.partialorder %v4263_v16, 0.0 }
 0x441   :  { %v4221_v43 = vadd.f32 %v4220_v44, %v4172_v58  ;;  %v4125_v35 = vpop.f32.mrf.mxu0  ;;  %v7681_v44 = vld [vmem:[%s11698_s3 + $0x194] sm:$0xf0] }
 0x442   :  { %v4126_v21 = vadd.f32 %v4125_v35, %v10736_v30  ;;  %v4174_v26 = vpop.f32.mrf.mxu1  ;;  %v10818_v31 = vsel %vm4890_vm0, %v4263_v16, %v4954_v18  ;;  %v6785_v16 = vor.u32 %v7649_v48, %v6784_v7  ;;  %v7709_v7 = vld [vmem:[%s11698_s3 + $0x274] sm:$0xf0] }
 0x444   :  { %v4175_v39 = vadd.f32 %v4174_v26, %v4126_v21  ;;  %4320 = vmatmul.bf16.gmra.mxu0 %v11912_v60  ;;  %v7169_v21 = vor.u32 %v7745_v46, %v7168_v61  ;;  %v6913_v26 = vor.u32 %v7681_v44, %v6912_v23  ;;  %v6768_v44 = vld [vmem:[%s11698_s3 + $0x68] sm:$0xf] }
 0x445   :  { %v4264_v62 = vpop.f32.mrf.mxu3  ;;  %4369 = vmatmul.bf16.gmra.mxu1 %v11913_v56  ;;  %4418 = vmatmul.bf16.gmra.mxu2 %v10258_v38 }
 0x446   :  { %v4265_v28 = vadd.f32 %v4264_v62, %v4216_v42  ;;  %4501 = vmatpush.bf16.msrb.mxu0 %v6785_v16  ;;  %4648 = vmatpush.bf16.msrb.mxu3 %v7169_v21  ;;  %v7645_v21 = vld [vmem:[%s11698_s3 + $0x74] sm:$0xf0] }
 0x447   :  { %4550 = vmatpush.bf16.msrb.mxu1 %v6913_v26 }
 0x448   :  { %vm4894_vm1 = vcmp.ge.f32.partialorder %v4265_v28, 0.0  ;;  %v4958_v36 = vmul.f32 0.01, %v4265_v28  ;;  %v4223_v20 = vpop.f32.mrf.mxu2 }
 0x449   :  { %v10810_v0 = vadd.f32 %v4223_v20, %v4175_v39  ;;  %v4127_v47 = vpop.f32.mrf.mxu0 }
 0x44a   :  { %v10820_v58 = vsel %vm4894_vm1, %v4265_v28, %v4958_v36  ;;  %v4128_v42 = vadd.f32 %v4127_v47, %v10736_v30  ;;  %v4176_v54 = vpop.f32.mrf.mxu1  ;;  %4462 = vmatmul.bf16.gmra.mxu3 %v10544_v52 }
 0x44c   :  { %v4177_v34 = vadd.f32 %v4176_v54, %v4128_v42 }
 0x44d   :  { %v4267_v59 = vpop.f32.mrf.mxu3 }
 0x44e   :  { %v4268_v35 = vadd.f32 %v4267_v59, %v4219_v37 }
 0x450   :  { %v4225_v39 = vpop.f32.mrf.mxu2  ;;  %v4962_v37 = vmul.f32 0.01, %v4268_v35  ;;  %vm4898_vm2 = vcmp.ge.f32.partialorder %v4268_v35, 0.0 }
 0x451   :  { %v4226_v62 = vadd.f32 %v4225_v39, %v4177_v34  ;;  %v4130_v18 = vpop.f32.mrf.mxu0  ;;  %v7024_v34 = vld [vmem:[%s11698_s3 + $0x268] sm:$0xf]  ;;  %v6769_v39 = vor.u32 %v7645_v21, %v6768_v44 }
 0x452   :  { %v4131_v28 = vadd.f32 %v4130_v18, %v10736_v30  ;;  %v4179_v36 = vpop.f32.mrf.mxu1  ;;  %v10858_v59 = vsel %vm4898_vm2, %v4268_v35, %v4962_v37  ;;  %v7152_v35 = vld [vmem:[%s11698_s3 + $0x368] sm:$0xf]  ;;  %v7741_v18 = vld [vmem:[%s11698_s3 + $0x374] sm:$0xf0] }
 0x453   :  { %4502 = vmatpush.bf16.msrb.mxu0 %v6769_v39 }
 0x454   :  { %v4180_v20 = vadd.f32 %v4179_v36, %v4131_v28  ;;  %4325 = vmatmul.bf16.gmra.mxu0 %v11914_v25  ;;  %v6896_v28 = vld [vmem:[%s11698_s3 + $0x168] sm:$0xf]  ;;  %v7677_v36 = vld [vmem:[%s11698_s3 + $0x174] sm:$0xf0] }
 0x455   :  { %v4269_v47 = vpop.f32.mrf.mxu3  ;;  %4374 = vmatmul.bf16.gmra.mxu1 %v11915_v6  ;;  %4423 = vmatmul.bf16.gmra.mxu2 %v10296_v13  ;;  %v6897_v37 = vor.u32 %v7677_v36, %v6896_v28 }
 0x456   :  { %v4270_v27 = vadd.f32 %v4269_v47, %v4221_v43  ;;  %v7025_v43 = vor.u32 %v7709_v7, %v7024_v34  ;;  %v7153_v47 = vor.u32 %v7741_v18, %v7152_v35  ;;  %v7008_v35 = vld [vmem:[%s11698_s3 + $0x248] sm:$0xf] }
 0x457   :  { %4551 = vmatpush.bf16.msrb.mxu1 %v6897_v37 }
 0x458   :  { %vm4902_vm3 = vcmp.ge.f32.partialorder %v4270_v27, 0.0  ;;  %v4966_v1 = vmul.f32 0.01, %v4270_v27  ;;  %v4228_v42 = vpop.f32.mrf.mxu2  ;;  %4600 = vmatpush.bf16.msrb.mxu2 %v7025_v43  ;;  %4649 = vmatpush.bf16.msrb.mxu3 %v7153_v47 }
 0x459   :  { %v10848_v54 = vadd.f32 %v4228_v42, %v4180_v20  ;;  %v4132_v32 = vpop.f32.mrf.mxu0 }
 0x45a   :  { %v4133_v48 = vadd.f32 %v4132_v32, %v10736_v30  ;;  %v4181_v61 = vpop.f32.mrf.mxu1  ;;  %4467 = vmatmul.bf16.gmra.mxu3 %v10576_v40  ;;  %v10860_v16 = vsel %vm4902_vm3, %v4270_v27, %v4966_v1 }
 0x45c   :  { %v4182_v23 = vadd.f32 %v4181_v61, %v4133_v48 }
 0x45d   :  { %v4272_v26 = vpop.f32.mrf.mxu3 }
 0x45e   :  { %v4273_v20 = vadd.f32 %v4272_v26, %v10810_v0  ;;  %v7705_v26 = vld [vmem:[%s11698_s3 + $0x254] sm:$0xf0] }
 0x460   :  { %v4230_v27 = vpop.f32.mrf.mxu2  ;;  %v4970_v0 = vmul.f32 0.01, %v4273_v20  ;;  %vm4906_vm4 = vcmp.ge.f32.partialorder %v4273_v20, 0.0 }
 0x461   :  { %v4231_v1 = vadd.f32 %v4230_v27, %v4182_v23  ;;  %v4135_v42 = vpop.f32.mrf.mxu0  ;;  %v6752_v27 = vld [vmem:[%s11698_s3 + $0x48] sm:$0xf] }
 0x462   :  { %v4136_v32 = vadd.f32 %v4135_v42, %v10736_v30  ;;  %v4184_v34 = vpop.f32.mrf.mxu1  ;;  %v10897_v28 = vsel %vm4906_vm4, %v4273_v20, %v4970_v0  ;;  %v7641_v42 = vld [vmem:[%s11698_s3 + $0x54] sm:$0xf0]  ;;  %v7136_v20 = vld [vmem:[%s11698_s3 + $0x348] sm:$0xf] }
 0x463   :  { %v7673_v0 = vld [vmem:[%s11698_s3 + $0x154] sm:$0xf0] }
 0x464   :  { %v4185_v7 = vadd.f32 %v4184_v34, %v4136_v32  ;;  %4330 = vmatmul.bf16.gmra.mxu0 %v11916_v5  ;;  %v6753_v34 = vor.u32 %v7641_v42, %v6752_v27 }
 0x465   :  { %v4274_v48 = vpop.f32.mrf.mxu3  ;;  %4379 = vmatmul.bf16.gmra.mxu1 %v11917_v15  ;;  %4428 = vmatmul.bf16.gmra.mxu2 %v10334_v33 }
 0x466   :  { %v4275_v61 = vadd.f32 %v4274_v48, %v4226_v62  ;;  %v7009_v62 = vor.u32 %v7705_v26, %v7008_v35  ;;  %v6880_v48 = vld [vmem:[%s11698_s3 + $0x148] sm:$0xf]  ;;  %4503 = vmatpush.bf16.msrb.mxu0 %v6753_v34 }
 0x468   :  { %vm4910_vm5 = vcmp.ge.f32.partialorder %v4275_v61, 0.0  ;;  %v4974_v43 = vmul.f32 0.01, %v4275_v61  ;;  %v4233_v44 = vpop.f32.mrf.mxu2  ;;  %4601 = vmatpush.bf16.msrb.mxu2 %v7009_v62 }
 0x469   :  { %v10887_v21 = vadd.f32 %v4233_v44, %v4185_v7  ;;  %v4137_v23 = vpop.f32.mrf.mxu0  ;;  %v7737_v7 = vld [vmem:[%s11698_s3 + $0x354] sm:$0xf0]  ;;  %v6881_v44 = vor.u32 %v7673_v0, %v6880_v48 }
 0x46a   :  { %v4138_v39 = vadd.f32 %v4137_v23, %v10736_v30  ;;  %v4186_v18 = vpop.f32.mrf.mxu1  ;;  %4472 = vmatmul.bf16.gmra.mxu3 %v10608_v3  ;;  %v10899_v36 = vsel %vm4910_vm5, %v4275_v61, %v4974_v43  ;;  %v7137_v43 = vor.u32 %v7737_v7, %v7136_v20  ;;  %v6992_v7 = vld [vmem:[%s11698_s3 + $0x228] sm:$0xf]  ;;  %v7701_v48 = vld [vmem:[%s11698_s3 + $0x234] sm:$0xf0] }
 0x46b   :  { %4552 = vmatpush.bf16.msrb.mxu1 %v6881_v44 }
 0x46c   :  { %v4187_v37 = vadd.f32 %v4186_v18, %v4138_v39  ;;  %4650 = vmatpush.bf16.msrb.mxu3 %v7137_v43 }
 0x46d   :  { %v4277_v32 = vpop.f32.mrf.mxu3 }
 0x46e   :  { %v4278_v61 = vadd.f32 %v4277_v32, %v10848_v54 }
 0x470   :  { %v4235_v23 = vpop.f32.mrf.mxu2  ;;  %v4978_v54 = vmul.f32 0.01, %v4278_v61  ;;  %vm4914_vm6 = vcmp.ge.f32.partialorder %v4278_v61, 0.0 }
 0x471   :  { %v4236_v35 = vadd.f32 %v4235_v23, %v4187_v37  ;;  %v4140_v26 = vpop.f32.mrf.mxu0 }
 0x472   :  { %v4141_v39 = vadd.f32 %v4140_v26, %v10736_v30  ;;  %v4189_v18 = vpop.f32.mrf.mxu1  ;;  %v10936_v44 = vsel %vm4914_vm6, %v4278_v61, %v4978_v54  ;;  %v7120_v61 = vld [vmem:[%s11698_s3 + $0x328] sm:$0xf] }
 0x473   :  { %11923 = vst [vmem:[#allocation17_spill] sm:$0xff] %v10936_v44 }
 0x474   :  { %v4190_v62 = vadd.f32 %v4189_v18, %v4141_v39  ;;  %4335 = vmatmul.bf16.gmra.mxu0 %v11918_v50  ;;  %v6736_v18 = vld [vmem:[%s11698_s3 + $0x28] sm:$0xf] }
 0x475   :  { %v4279_v27 = vpop.f32.mrf.mxu3  ;;  %4384 = vmatmul.bf16.gmra.mxu1 %v11919_v22  ;;  %4433 = vmatmul.bf16.gmra.mxu2 %v10386_v2 }
 0x476   :  { %v4280_v42 = vadd.f32 %v4279_v27, %v4231_v1  ;;  %v6993_v1 = vor.u32 %v7701_v48, %v6992_v7 }
 0x478   :  { %vm4918_vm7 = vcmp.ge.f32.partialorder %v4280_v42, 0.0  ;;  %v4982_v20 = vmul.f32 0.01, %v4280_v42  ;;  %v4238_v32 = vpop.f32.mrf.mxu2  ;;  %4602 = vmatpush.bf16.msrb.mxu2 %v6993_v1 }
 0x479   :  { %v10926_v34 = vadd.f32 %v4238_v32, %v4190_v62  ;;  %v4142_v37 = vpop.f32.mrf.mxu0  ;;  %v7637_v62 = vld [vmem:[%s11698_s3 + $0x34] sm:$0xf0] }
 0x47a   :  { %v4143_v0 = vadd.f32 %v4142_v37, %v10736_v30  ;;  %v4191_v43 = vpop.f32.mrf.mxu1  ;;  %4477 = vmatmul.bf16.gmra.mxu3 %v10641_v49  ;;  %v10938_v23 = vsel %vm4918_vm7, %v4280_v42, %v4982_v20  ;;  %v6737_v54 = vor.u32 %v7637_v62, %v6736_v18  ;;  %v7733_v42 = vld [vmem:[%s11698_s3 + $0x334] sm:$0xf0]  ;;  %v6864_v20 = vld [vmem:[%s11698_s3 + $0x128] sm:$0xf] }
 0x47b   :  { %11924 = vst [vmem:[#allocation19_spill] sm:$0xff] %v10938_v23  ;;  %v7669_v32 = vld [vmem:[%s11698_s3 + $0x134] sm:$0xf0]  ;;  %v7121_v7 = vor.u32 %v7733_v42, %v7120_v61 }
 0x47c   :  { %v4192_v39 = vadd.f32 %v4191_v43, %v4143_v0  ;;  %v6865_v48 = vor.u32 %v7669_v32, %v6864_v20  ;;  %4504 = vmatpush.bf16.msrb.mxu0 %v6737_v54  ;;  %v6720_v43 = vld [vmem:[%s11698_s3 + $0x8] sm:$0xf]  ;;  %v7633_v62 = vld [vmem:[%s11698_s3 + $0x14] sm:$0xf0] }
 0x47d   :  { %v4282_v27 = vpop.f32.mrf.mxu3  ;;  %4651 = vmatpush.bf16.msrb.mxu3 %v7121_v7  ;;  %v6721_v54 = vor.u32 %v7633_v62, %v6720_v43  ;;  %v7665_v42 = vld [vmem:[%s11698_s3 + $0x114] sm:$0xf0] }
 0x47e   :  { %v4283_v37 = vadd.f32 %v4282_v27, %v10887_v21  ;;  %4553 = vmatpush.bf16.msrb.mxu1 %v6865_v48  ;;  %v6848_v21 = vld [vmem:[%s11698_s3 + $0x108] sm:$0xf]  ;;  %v7697_v20 = vld [vmem:[%s11698_s3 + $0x214] sm:$0xf0] }
 0x47f   :  { %v6849_v32 = vor.u32 %v7665_v42, %v6848_v21 }
 0x480   :  { %v4240_v0 = vpop.f32.mrf.mxu2  ;;  %v4986_v43 = vmul.f32 0.01, %v4283_v37  ;;  %4505 = vmatpush.bf16.msrb.mxu0 %v6721_v54  ;;  %vm4922_vm8 = vcmp.ge.f32.partialorder %v4283_v37, 0.0 }
 0x481   :  { %v4241_v1 = vadd.f32 %v4240_v0, %v4192_v39  ;;  %v4145_v18 = vpop.f32.mrf.mxu0  ;;  %v6976_v39 = vld [vmem:[%s11698_s3 + $0x208] sm:$0xf] }
 0x482   :  { %v4146_v61 = vadd.f32 %v4145_v18, %v10736_v30  ;;  %v4194_v27 = vpop.f32.mrf.mxu1  ;;  %v6977_v7 = vor.u32 %v7697_v20, %v6976_v39  ;;  %4554 = vmatpush.bf16.msrb.mxu1 %v6849_v32  ;;  %v10985_v42 = vsel %vm4922_vm8, %v4283_v37, %v4986_v43  ;;  %v7104_v20 = vld [vmem:[%s11698_s3 + $0x308] sm:$0xf] }
 0x483   :  { %11925 = vst [vmem:[#allocation23_spill] sm:$0xff] %v10985_v42 }
 0x484   :  { %v4195_v48 = vadd.f32 %v4194_v27, %v4146_v61  ;;  %4340 = vmatmul.bf16.gmra.mxu0 %v11920_v8  ;;  %4603 = vmatpush.bf16.msrb.mxu2 %v6977_v7 }
 0x485   :  { %v4284_v0 = vpop.f32.mrf.mxu3  ;;  %4389 = vmatmul.bf16.gmra.mxu1 %v11921_v24  ;;  %4438 = vmatmul.bf16.gmra.mxu2 %v10426_v14 }
 0x486   :  { %v4285_v18 = vadd.f32 %v4284_v0, %v4236_v35 }
 0x488   :  { %vm4926_vm9 = vcmp.ge.f32.partialorder %v4285_v18, 0.0  ;;  %v4990_v62 = vmul.f32 0.01, %v4285_v18  ;;  %v4243_v26 = vpop.f32.mrf.mxu2 }
 0x489   :  { %v4244_v47 = vadd.f32 %v4243_v26, %v4195_v48  ;;  %v4147_v21 = vpop.f32.mrf.mxu0  ;;  %v7729_v26 = vld [vmem:[%s11698_s3 + $0x314] sm:$0xf0] }
 0x48a   :  { %v4148_v61 = vadd.f32 %v4147_v21, %v10736_v30  ;;  %v4196_v27 = vpop.f32.mrf.mxu1  ;;  %4482 = vmatmul.bf16.gmra.mxu3 %v10692_v45  ;;  %v10987_v39 = vsel %vm4926_vm9, %v4285_v18, %v4990_v62  ;;  %v7105_v7 = vor.u32 %v7729_v26, %v7104_v20 }
 0x48b   :  { %11926 = vst [vmem:[#allocation2_spill] sm:$0xff] %v10987_v39 }
 0x48c   :  { %v4197_v54 = vadd.f32 %v4196_v27, %v4148_v61  ;;  %4652 = vmatpush.bf16.msrb.mxu3 %v7105_v7  ;;  %v7090_v7 = vld [vmem:[%s11698_s3 + $0x2f8] sm:$0xf0] }
 0x48d   :  { %v4287_v32 = vpop.f32.mrf.mxu3 }
 0x48e   :  { %v4288_v48 = vadd.f32 %v4287_v32, %v10926_v34  ;;  %v7723_v32 = vld [vmem:[%s11698_s3 + $0x2ec] sm:$0xf] }
 0x490   :  { %v4245_v37 = vpop.f32.mrf.mxu2  ;;  %v4994_v27 = vmul.f32 0.01, %v4288_v48  ;;  %vm4930_vm10 = vcmp.ge.f32.partialorder %v4288_v48, 0.0 }
 0x491   :  { %v4246_v0 = vadd.f32 %v4245_v37, %v4197_v54  ;;  %v4150_v43 = vpop.f32.mrf.mxu0 }
 0x492   :  { %v4151_v18 = vadd.f32 %v4150_v43, %v10736_v30  ;;  %v4199_v62 = vpop.f32.mrf.mxu1 }
 0x494   :  { %v4200_v21 = vadd.f32 %v4199_v62, %v4151_v18  ;;  %4345 = vmatmul.bf16.gmra.mxu0 %v11922_v12  ;;  %v11012_v18 = vsel %vm4930_vm10, %v4288_v48, %v4994_v27  ;;  %v7755_v48 = vld [vmem:[%s11698_s3 + $0x3ec] sm:$0xf] }
 0x495   :  { %v4289_v61 = vpop.f32.mrf.mxu3  ;;  %4394 = vmatmul.bf16.gmra.mxu1 %v9909_v9  ;;  %4443 = vmatmul.bf16.gmra.mxu2 %v10448_v57  ;;  %11927 = vst [vmem:[#allocation3_spill] sm:$0xff] %v11012_v18 }
 0x496   :  { %v4290_v35 = vadd.f32 %v4289_v61, %v4241_v1  ;;  %v7093_v1 = vor.u32 %v7723_v32, %v7090_v7  ;;  %v6962_v32 = vld [vmem:[%s11698_s3 + $0x1f8] sm:$0xf0] }
 0x498   :  { %vm4934_vm11 = vcmp.ge.f32.partialorder %v4290_v35, 0.0  ;;  %v4998_v34 = vmul.f32 0.01, %v4290_v35  ;;  %v4248_v20 = vpop.f32.mrf.mxu2  ;;  %4792 = vmatpush.bf16.msra.mxu2 %v7093_v1 }
 0x499   :  { %v11002_v26 = vadd.f32 %v4248_v20, %v4200_v21  ;;  %v4152_v54 = vpop.f32.mrf.mxu0  ;;  %v7659_v20 = vld [vmem:[%s11698_s3 + $0xec] sm:$0xf] }
 0x49a   :  { %v4153_v37 = vadd.f32 %v4152_v54, %v10736_v30  ;;  %v4201_v43 = vpop.f32.mrf.mxu1  ;;  %4487 = vmatmul.bf16.gmra.mxu3 %v10707_v63  ;;  %v11014_v62 = vsel %vm4934_vm11, %v4290_v35, %v4998_v34  ;;  %v6834_v30 = vld [vmem:[%s11698_s3 + $0xf8] sm:$0xf0]  ;;  %v7691_v54 = vld [vmem:[%s11698_s3 + $0x1ec] sm:$0xf] }
 0x49b   :  { %11928 = vst [vmem:[#allocation25_spill] sm:$0xff] %v11014_v62  ;;  %v6837_v35 = vor.u32 %v7659_v20, %v6834_v30  ;;  %v7218_v34 = vld [vmem:[%s11698_s3 + $0x3f8] sm:$0xf0]  ;;  %v6965_v1 = vor.u32 %v7691_v54, %v6962_v32 }
 0x49c   :  { %v4202_v61 = vadd.f32 %v4201_v43, %v4153_v37  ;;  %v11037_v37 = vperm.slane %v10721_v11, 1  ;;  %v7221_v43 = vor.u32 %v7755_v48, %v7218_v34 }
 0x49d   :  { %v4292_v27 = vpop.f32.mrf.mxu3  ;;  %4694 = vmatpush.bf16.msra.mxu0 %v6837_v35  ;;  %4743 = vmatpush.bf16.msra.mxu1 %v6965_v1  ;;  %v7751_v1 = vld [vmem:[%s11698_s3 + $0x3cc] sm:$0xf] }
 0x49e   :  { %v4293_v7 = vadd.f32 %v4292_v27, %v4244_v47  ;;  %4841 = vmatpush.bf16.msra.mxu3 %v7221_v43  ;;  %v6818_v43 = vld [vmem:[%s11698_s3 + $0xd8] sm:$0xf0] }
 0x4a0   :  { %v4250_v20 = vpop.f32.mrf.mxu2  ;;  %v5002_v11 = vmul.f32 0.01, %v4293_v7  ;;  %vm4938_vm12 = vcmp.ge.f32.partialorder %v4293_v7, 0.0 }
 0x4a1   :  { %v4251_v30 = vadd.f32 %v4250_v20, %v4202_v61  ;;  %v4311_v21 = vpop.f32.mrf.mxu0 }
 0x4a2   :  { %v4312_v46 = vadd.f32 %v4311_v21, %v11037_v37  ;;  %v4360_v4 = vpop.f32.mrf.mxu1 }
 0x4a4   :  { %v4361_v18 = vadd.f32 %v4360_v4, %v4312_v46  ;;  %4506 = vmatmul.bf16.vlgmr.msrb.gmra.mxu0 %v11908_v51  ;;  %v11047_v4 = vsel %vm4938_vm12, %v4293_v7, %v5002_v11  ;;  %v7655_v7 = vld [vmem:[%s11698_s3 + $0xcc] sm:$0xf] }
 0x4a5   :  { %v4294_v62 = vpop.f32.mrf.mxu3  ;;  %4555 = vmatmul.bf16.vlgmr.msrb.gmra.mxu1 %v11909_v41  ;;  %4604 = vmatmul.bf16.vlgmr.msrb.gmra.mxu2 %v10182_v29  ;;  %11929 = vst [vmem:[#allocation4_spill] sm:$0xff] %v11047_v4  ;;  %v6821_v11 = vor.u32 %v7655_v7, %v6818_v43 }
 0x4a6   :  { %v4295_v47 = vadd.f32 %v4294_v62, %v4246_v0  ;;  %v7719_v0 = vld [vmem:[%s11698_s3 + $0x2cc] sm:$0xf]  ;;  %v7074_v62 = vld [vmem:[%s11698_s3 + $0x2d8] sm:$0xf0] }
 0x4a7   :  { %v7077_v32 = vor.u32 %v7719_v0, %v7074_v62  ;;  %4695 = vmatpush.bf16.msra.mxu0 %v6821_v11 }
 0x4a8   :  { %vm4942_vm13 = vcmp.ge.f32.partialorder %v4295_v47, 0.0  ;;  %v5006_v48 = vmul.f32 0.01, %v4295_v47  ;;  %v4409_v27 = vpop.f32.mrf.mxu2 }
 0x4a9   :  { %v11043_v35 = vadd.f32 %v4409_v27, %v4361_v18  ;;  %v4313_v61 = vpop.f32.mrf.mxu0  ;;  %v6946_v27 = vld [vmem:[%s11698_s3 + $0x1d8] sm:$0xf0]  ;;  %4793 = vmatpush.bf16.msra.mxu2 %v7077_v32 }
 0x4aa   :  { %v4314_v21 = vadd.f32 %v4313_v61, %v11037_v37  ;;  %v4362_v34 = vpop.f32.mrf.mxu1  ;;  %4492 = vmatmul.bf16.gmra.mxu3 %v10748_v55  ;;  %v11049_v46 = vsel %vm4942_vm13, %v4295_v47, %v5006_v48  ;;  %v7202_v47 = vld [vmem:[%s11698_s3 + $0x3d8] sm:$0xf0]  ;;  %v7687_v48 = vld [vmem:[%s11698_s3 + $0x1cc] sm:$0xf] }
 0x4ab   :  { %11930 = vst [vmem:[#allocation5_spill] sm:$0xff] %v11049_v46 }
 0x4ac   :  { %v4363_v54 = vadd.f32 %v4362_v34, %v4314_v21  ;;  %v7205_v21 = vor.u32 %v7751_v1, %v7202_v47  ;;  %v6949_v34 = vor.u32 %v7687_v48, %v6946_v27  ;;  %v7058_v47 = vld [vmem:[%s11698_s3 + $0x2b8] sm:$0xf0] }
 0x4ad   :  { %v4297_v20 = vpop.f32.mrf.mxu3 }
 0x4ae   :  { %v4298_v61 = vadd.f32 %v4297_v20, %v11002_v26  ;;  %4842 = vmatpush.bf16.msra.mxu3 %v7205_v21  ;;  %4744 = vmatpush.bf16.msra.mxu1 %v6949_v34 }
 0x4b0   :  { %v4411_v0 = vpop.f32.mrf.mxu2  ;;  %v5010_v26 = vmul.f32 0.01, %v4298_v61  ;;  %vm4946_vm14 = vcmp.ge.f32.partialorder %v4298_v61, 0.0 }
 0x4b1   :  { %v4412_v62 = vadd.f32 %v4411_v0, %v4363_v54  ;;  %v4316_v7 = vpop.f32.mrf.mxu0  ;;  %v7651_v0 = vld [vmem:[%s11698_s3 + $0xac] sm:$0xf] }
 0x4b2   :  { %v4317_v43 = vadd.f32 %v4316_v7, %v11037_v37  ;;  %v4365_v18 = vpop.f32.mrf.mxu1  ;;  %v6802_v7 = vld [vmem:[%s11698_s3 + $0xb8] sm:$0xf0] }
 0x4b4   :  { %v4366_v4 = vadd.f32 %v4365_v18, %v4317_v43  ;;  %4511 = vmatmul.bf16.gmra.mxu0 %v11910_v17  ;;  %v7715_v18 = vld [vmem:[%s11698_s3 + $0x2ac] sm:$0xf] }
 0x4b5   :  { %v4299_v46 = vpop.f32.mrf.mxu3  ;;  %4560 = vmatmul.bf16.gmra.mxu1 %v11911_v53  ;;  %4609 = vmatmul.bf16.gmra.mxu2 %v10220_v10 }
 0x4b6   :  { %v4300_v32 = vadd.f32 %v4299_v46, %v4251_v30  ;;  %v7061_v30 = vor.u32 %v7715_v18, %v7058_v47  ;;  %v11092_v46 = vsel %vm4946_vm14, %v4298_v61, %v5010_v26  ;;  %v7747_v61 = vld [vmem:[%s11698_s3 + $0x3ac] sm:$0xf]  ;;  %v6805_v26 = vor.u32 %v7651_v0, %v6802_v7 }
 0x4b7   :  { %11931 = vst [vmem:[#allocation27_spill] sm:$0xff] %v11092_v46 }
 0x4b8   :  { %vm4950_vm15 = vcmp.ge.f32.partialorder %v4300_v32, 0.0  ;;  %v5014_v1 = vmul.f32 0.01, %v4300_v32  ;;  %v4414_v20 = vpop.f32.mrf.mxu2  ;;  %4794 = vmatpush.bf16.msra.mxu2 %v7061_v30  ;;  %4696 = vmatpush.bf16.msra.mxu0 %v6805_v26 }
 0x4b9   :  { %v11082_v11 = vadd.f32 %v4414_v20, %v4366_v4  ;;  %v4318_v54 = vpop.f32.mrf.mxu0  ;;  %v6930_v20 = vld [vmem:[%s11698_s3 + $0x1b8] sm:$0xf0] }
 0x4ba   :  { %v4319_v48 = vadd.f32 %v4318_v54, %v11037_v37  ;;  %v4367_v27 = vpop.f32.mrf.mxu1  ;;  %4653 = vmatmul.bf16.vlgmr.msrb.gmra.mxu3 %v10512_v19  ;;  %v11094_v21 = vsel %vm4950_vm15, %v4300_v32, %v5014_v1  ;;  %v7186_v32 = vld [vmem:[%s11698_s3 + $0x3b8] sm:$0xf0]  ;;  %v7683_v1 = vld [vmem:[%s11698_s3 + $0x1ac] sm:$0xf] }
 0x4bb   :  { %11932 = vst [vmem:[#allocation6_spill] sm:$0xff] %v11094_v21  ;;  %v7189_v18 = vor.u32 %v7747_v61, %v7186_v32  ;;  %v6933_v47 = vor.u32 %v7683_v1, %v6930_v20  ;;  %v7711_v1 = vld [vmem:[%s11698_s3 + $0x28c] sm:$0xf]  ;;  %v7042_v20 = vld [vmem:[%s11698_s3 + $0x298] sm:$0xf0] }
 0x4bc   :  { %v4368_v34 = vadd.f32 %v4367_v27, %v4319_v48 }
 0x4bd   :  { %v4458_v43 = vpop.f32.mrf.mxu3  ;;  %4843 = vmatpush.bf16.msra.mxu3 %v7189_v18  ;;  %4745 = vmatpush.bf16.msra.mxu1 %v6933_v47 }
 0x4be   :  { %v4459_v54 = vadd.f32 %v4458_v43, %v11043_v35 }
 0x4c0   :  { %v4416_v48 = vpop.f32.mrf.mxu2  ;;  %v4955_v35 = vmul.f32 0.01, %v4459_v54  ;;  %vm4891_vm0 = vcmp.ge.f32.partialorder %v4459_v54, 0.0 }
 0x4c1   :  { %v4417_v27 = vadd.f32 %v4416_v48, %v4368_v34  ;;  %v4321_v30 = vpop.f32.mrf.mxu0 }
 0x4c2   :  { %v4322_v0 = vadd.f32 %v4321_v30, %v11037_v37  ;;  %v4370_v7 = vpop.f32.mrf.mxu1  ;;  %v11129_v18 = vsel %vm4891_vm0, %v4459_v54, %v4955_v35  ;;  %v6786_v54 = vld [vmem:[%s11698_s3 + $0x98] sm:$0xf0] }
 0x4c4   :  { %v4371_v4 = vadd.f32 %v4370_v7, %v4322_v0  ;;  %4516 = vmatmul.bf16.gmra.mxu0 %v11912_v60  ;;  %v7647_v0 = vld [vmem:[%s11698_s3 + $0x8c] sm:$0xf] }
 0x4c5   :  { %v4460_v46 = vpop.f32.mrf.mxu3  ;;  %4565 = vmatmul.bf16.gmra.mxu1 %v11913_v56  ;;  %4614 = vmatmul.bf16.gmra.mxu2 %v10258_v38  ;;  %v7743_v7 = vld [vmem:[%s11698_s3 + $0x38c] sm:$0xf] }
 0x4c6   :  { %v4461_v61 = vadd.f32 %v4460_v46, %v4412_v62 }
 0x4c8   :  { %vm4895_vm1 = vcmp.ge.f32.partialorder %v4461_v61, 0.0  ;;  %v4959_v43 = vmul.f32 0.01, %v4461_v61  ;;  %v4419_v26 = vpop.f32.mrf.mxu2 }
 0x4c9   :  { %v11121_v32 = vadd.f32 %v4419_v26, %v4371_v4  ;;  %v4323_v34 = vpop.f32.mrf.mxu0  ;;  %v7045_v4 = vor.u32 %v7711_v1, %v7042_v20  ;;  %v7679_v26 = vld [vmem:[%s11698_s3 + $0x18c] sm:$0xf] }
 0x4ca   :  { %v11131_v47 = vsel %vm4895_vm1, %v4461_v61, %v4959_v43  ;;  %v4324_v62 = vadd.f32 %v4323_v34, %v11037_v37  ;;  %v4372_v46 = vpop.f32.mrf.mxu1  ;;  %4658 = vmatmul.bf16.gmra.mxu3 %v10544_v52  ;;  %v6789_v61 = vor.u32 %v7647_v0, %v6786_v54  ;;  %v7170_v43 = vld [vmem:[%s11698_s3 + $0x398] sm:$0xf0] }
 0x4cb   :  { %4795 = vmatpush.bf16.msra.mxu2 %v7045_v4  ;;  %v6914_v34 = vld [vmem:[%s11698_s3 + $0x198] sm:$0xf0]  ;;  %v7173_v20 = vor.u32 %v7743_v7, %v7170_v43 }
 0x4cc   :  { %v4373_v30 = vadd.f32 %v4372_v46, %v4324_v62  ;;  %v6917_v62 = vor.u32 %v7679_v26, %v6914_v34  ;;  %4697 = vmatpush.bf16.msra.mxu0 %v6789_v61  ;;  %v7026_v26 = vld [vmem:[%s11698_s3 + $0x278] sm:$0xf0] }
 0x4cd   :  { %v4463_v35 = vpop.f32.mrf.mxu3  ;;  %4844 = vmatpush.bf16.msra.mxu3 %v7173_v20 }
 0x4ce   :  { %v4464_v1 = vadd.f32 %v4463_v35, %v11082_v11  ;;  %4746 = vmatpush.bf16.msra.mxu1 %v6917_v62 }
 0x4d0   :  { %v4421_v46 = vpop.f32.mrf.mxu2  ;;  %v4963_v11 = vmul.f32 0.01, %v4464_v1  ;;  %vm4899_vm2 = vcmp.ge.f32.partialorder %v4464_v1, 0.0 }
 0x4d1   :  { %v4422_v4 = vadd.f32 %v4421_v46, %v4373_v30  ;;  %v4326_v0 = vpop.f32.mrf.mxu0 }
 0x4d2   :  { %v4327_v54 = vadd.f32 %v4326_v0, %v11037_v37  ;;  %v4375_v48 = vpop.f32.mrf.mxu1  ;;  %v7643_v0 = vld [vmem:[%s11698_s3 + $0x6c] sm:$0xf] }
 0x4d4   :  { %v4376_v21 = vadd.f32 %v4375_v48, %v4327_v54  ;;  %4521 = vmatmul.bf16.gmra.mxu0 %v11914_v25  ;;  %v7707_v48 = vld [vmem:[%s11698_s3 + $0x26c] sm:$0xf]  ;;  %v6770_v54 = vld [vmem:[%s11698_s3 + $0x78] sm:$0xf0] }
 0x4d5   :  { %v4465_v42 = vpop.f32.mrf.mxu3  ;;  %4570 = vmatmul.bf16.gmra.mxu1 %v11915_v6  ;;  %4619 = vmatmul.bf16.gmra.mxu2 %v10296_v13 }
 0x4d6   :  { %v4466_v7 = vadd.f32 %v4465_v42, %v4417_v27  ;;  %v7029_v42 = vor.u32 %v7707_v48, %v7026_v26  ;;  %v11170_v27 = vsel %vm4899_vm2, %v4464_v1, %v4963_v11  ;;  %v7739_v1 = vld [vmem:[%s11698_s3 + $0x36c] sm:$0xf] }
 0x4d8   :  { %vm4903_vm3 = vcmp.ge.f32.partialorder %v4466_v7, 0.0  ;;  %v4967_v35 = vmul.f32 0.01, %v4466_v7  ;;  %v4424_v61 = vpop.f32.mrf.mxu2  ;;  %4796 = vmatpush.bf16.msra.mxu2 %v7029_v42 }
 0x4d9   :  { %v11160_v43 = vadd.f32 %v4424_v61, %v4376_v21  ;;  %v4328_v30 = vpop.f32.mrf.mxu0  ;;  %v7675_v61 = vld [vmem:[%s11698_s3 + $0x16c] sm:$0xf] }
 0x4da   :  { %v4329_v34 = vadd.f32 %v4328_v30, %v11037_v37  ;;  %v4377_v20 = vpop.f32.mrf.mxu1  ;;  %4663 = vmatmul.bf16.gmra.mxu3 %v10576_v40  ;;  %v11172_v62 = vsel %vm4903_vm3, %v4466_v7, %v4967_v35  ;;  %v6773_v7 = vor.u32 %v7643_v0, %v6770_v54  ;;  %v7154_v35 = vld [vmem:[%s11698_s3 + $0x378] sm:$0xf0] }
 0x4db   :  { %v6898_v30 = vld [vmem:[%s11698_s3 + $0x178] sm:$0xf0]  ;;  %v7157_v26 = vor.u32 %v7739_v1, %v7154_v35 }
 0x4dc   :  { %v4378_v46 = vadd.f32 %v4377_v20, %v4329_v34  ;;  %v6901_v34 = vor.u32 %v7675_v61, %v6898_v30  ;;  %4698 = vmatpush.bf16.msra.mxu0 %v6773_v7  ;;  %v7010_v61 = vld [vmem:[%s11698_s3 + $0x258] sm:$0xf0] }
 0x4dd   :  { %v4468_v11 = vpop.f32.mrf.mxu3  ;;  %4845 = vmatpush.bf16.msra.mxu3 %v7157_v26 }
 0x4de   :  { %v4469_v48 = vadd.f32 %v4468_v11, %v11121_v32  ;;  %4747 = vmatpush.bf16.msra.mxu1 %v6901_v34 }
 0x4e0   :  { %v4426_v20 = vpop.f32.mrf.mxu2  ;;  %v4971_v32 = vmul.f32 0.01, %v4469_v48  ;;  %vm4907_vm4 = vcmp.ge.f32.partialorder %v4469_v48, 0.0 }
 0x4e1   :  { %v4427_v42 = vadd.f32 %v4426_v20, %v4378_v46  ;;  %v4331_v0 = vpop.f32.mrf.mxu0 }
 0x4e2   :  { %v4332_v54 = vadd.f32 %v4331_v0, %v11037_v37  ;;  %v4380_v21 = vpop.f32.mrf.mxu1  ;;  %v7639_v0 = vld [vmem:[%s11698_s3 + $0x4c] sm:$0xf] }
 0x4e4   :  { %v4381_v39 = vadd.f32 %v4380_v21, %v4332_v54  ;;  %4526 = vmatmul.bf16.gmra.mxu0 %v11916_v5  ;;  %v7703_v21 = vld [vmem:[%s11698_s3 + $0x24c] sm:$0xf]  ;;  %v6754_v54 = vld [vmem:[%s11698_s3 + $0x58] sm:$0xf0] }
 0x4e5   :  { %v4470_v44 = vpop.f32.mrf.mxu3  ;;  %4575 = vmatmul.bf16.gmra.mxu1 %v11917_v15  ;;  %4624 = vmatmul.bf16.gmra.mxu2 %v10334_v33 }
 0x4e6   :  { %v4471_v1 = vadd.f32 %v4470_v44, %v4422_v4  ;;  %v7013_v44 = vor.u32 %v7703_v21, %v7010_v61  ;;  %v11209_v4 = vsel %vm4907_vm4, %v4469_v48, %v4971_v32  ;;  %v7735_v48 = vld [vmem:[%s11698_s3 + $0x34c] sm:$0xf] }
 0x4e7   :  { %11933 = vst [vmem:[#allocation7_spill] sm:$0xff] %v11209_v4 }
 0x4e8   :  { %vm4911_vm5 = vcmp.ge.f32.partialorder %v4471_v1, 0.0  ;;  %v4975_v11 = vmul.f32 0.01, %v4471_v1  ;;  %v4429_v7 = vpop.f32.mrf.mxu2  ;;  %4797 = vmatpush.bf16.msra.mxu2 %v7013_v44 }
 0x4e9   :  { %v11199_v35 = vadd.f32 %v4429_v7, %v4381_v39  ;;  %v4333_v46 = vpop.f32.mrf.mxu0  ;;  %v7671_v7 = vld [vmem:[%s11698_s3 + $0x14c] sm:$0xf] }
 0x4ea   :  { %v4334_v30 = vadd.f32 %v4333_v46, %v11037_v37  ;;  %v4382_v26 = vpop.f32.mrf.mxu1  ;;  %4668 = vmatmul.bf16.gmra.mxu3 %v10608_v3  ;;  %v11211_v34 = vsel %vm4911_vm5, %v4471_v1, %v4975_v11  ;;  %v6757_v1 = vor.u32 %v7639_v0, %v6754_v54  ;;  %v7138_v11 = vld [vmem:[%s11698_s3 + $0x358] sm:$0xf0] }
 0x4eb   :  { %v6882_v46 = vld [vmem:[%s11698_s3 + $0x158] sm:$0xf0]  ;;  %v7141_v61 = vor.u32 %v7735_v48, %v7138_v11 }
 0x4ec   :  { %v4383_v20 = vadd.f32 %v4382_v26, %v4334_v30  ;;  %v6885_v30 = vor.u32 %v7671_v7, %v6882_v46  ;;  %4699 = vmatpush.bf16.msra.mxu0 %v6757_v1  ;;  %v6994_v7 = vld [vmem:[%s11698_s3 + $0x238] sm:$0xf0] }
 0x4ed   :  { %v4473_v32 = vpop.f32.mrf.mxu3  ;;  %4846 = vmatpush.bf16.msra.mxu3 %v7141_v61 }
 0x4ee   :  { %v4474_v21 = vadd.f32 %v4473_v32, %v11160_v43  ;;  %4748 = vmatpush.bf16.msra.mxu1 %v6885_v30 }
 0x4f0   :  { %v4431_v26 = vpop.f32.mrf.mxu2  ;;  %v4979_v43 = vmul.f32 0.01, %v4474_v21  ;;  %vm4915_vm6 = vcmp.ge.f32.partialorder %v4474_v21, 0.0 }
 0x4f1   :  { %v4432_v44 = vadd.f32 %v4431_v26, %v4383_v20  ;;  %v4336_v0 = vpop.f32.mrf.mxu0 }
 0x4f2   :  { %v4337_v54 = vadd.f32 %v4336_v0, %v11037_v37  ;;  %v4385_v39 = vpop.f32.mrf.mxu1  ;;  %v7635_v0 = vld [vmem:[%s11698_s3 + $0x2c] sm:$0xf] }
 0x4f4   :  { %v4386_v23 = vadd.f32 %v4385_v39, %v4337_v54  ;;  %4531 = vmatmul.bf16.gmra.mxu0 %v11918_v50  ;;  %v7699_v39 = vld [vmem:[%s11698_s3 + $0x22c] sm:$0xf]  ;;  %v6738_v54 = vld [vmem:[%s11698_s3 + $0x38] sm:$0xf0] }
 0x4f5   :  { %v4475_v4 = vpop.f32.mrf.mxu3  ;;  %4580 = vmatmul.bf16.gmra.mxu1 %v11919_v22  ;;  %4629 = vmatmul.bf16.gmra.mxu2 %v10386_v2 }
 0x4f6   :  { %v4476_v48 = vadd.f32 %v4475_v4, %v4427_v42  ;;  %v6997_v42 = vor.u32 %v7699_v39, %v6994_v7  ;;  %v11248_v4 = vsel %vm4915_vm6, %v4474_v21, %v4979_v43  ;;  %v7731_v21 = vld [vmem:[%s11698_s3 + $0x32c] sm:$0xf] }
 0x4f7   :  { %11934 = vst [vmem:[#allocation29_spill] sm:$0xff] %v11248_v4 }
 0x4f8   :  { %vm4919_vm7 = vcmp.ge.f32.partialorder %v4476_v48, 0.0  ;;  %v4983_v32 = vmul.f32 0.01, %v4476_v48  ;;  %v4434_v1 = vpop.f32.mrf.mxu2  ;;  %4798 = vmatpush.bf16.msra.mxu2 %v6997_v42  ;;  %v7631_v42 = vld [vmem:[%s11698_s3 + $0xc] sm:$0xf] }
 0x4f9   :  { %v11238_v11 = vadd.f32 %v4434_v1, %v4386_v23  ;;  %v4338_v20 = vpop.f32.mrf.mxu0  ;;  %v7667_v1 = vld [vmem:[%s11698_s3 + $0x12c] sm:$0xf]  ;;  %v6722_v23 = vld [vmem:[%s11698_s3 + $0x18] sm:$0xf0] }
 0x4fa   :  { %v4339_v46 = vadd.f32 %v4338_v20, %v11037_v37  ;;  %v4387_v61 = vpop.f32.mrf.mxu1  ;;  %4673 = vmatmul.bf16.gmra.mxu3 %v10641_v49  ;;  %v11250_v30 = vsel %vm4919_vm7, %v4476_v48, %v4983_v32  ;;  %v6741_v48 = vor.u32 %v7635_v0, %v6738_v54  ;;  %v7122_v32 = vld [vmem:[%s11698_s3 + $0x338] sm:$0xf0] }
 0x4fb   :  { %11935 = vst [vmem:[#allocation8_spill] sm:$0xff] %v11250_v30  ;;  %v6866_v20 = vld [vmem:[%s11698_s3 + $0x138] sm:$0xf0]  ;;  %v7125_v7 = vor.u32 %v7731_v21, %v7122_v32 }
 0x4fc   :  { %v4388_v26 = vadd.f32 %v4387_v61, %v4339_v46  ;;  %v6869_v46 = vor.u32 %v7667_v1, %v6866_v20  ;;  %4700 = vmatpush.bf16.msra.mxu0 %v6741_v48  ;;  %v6725_v48 = vor.u32 %v7631_v42, %v6722_v23  ;;  %v6850_v32 = vld [vmem:[%s11698_s3 + $0x118] sm:$0xf0] }
 0x4fd   :  { %v4478_v43 = vpop.f32.mrf.mxu3  ;;  %4847 = vmatpush.bf16.msra.mxu3 %v7125_v7  ;;  %v6978_v1 = vld [vmem:[%s11698_s3 + $0x218] sm:$0xf0] }
 0x4fe   :  { %v4479_v39 = vadd.f32 %v4478_v43, %v11199_v35  ;;  %4749 = vmatpush.bf16.msra.mxu1 %v6869_v46  ;;  %v7663_v35 = vld [vmem:[%s11698_s3 + $0x10c] sm:$0xf] }
 0x4ff   :  { %v6853_v20 = vor.u32 %v7663_v35, %v6850_v32 }
 0x500   :  { %v4436_v61 = vpop.f32.mrf.mxu2  ;;  %v4987_v23 = vmul.f32 0.01, %v4479_v39  ;;  %4701 = vmatpush.bf16.msra.mxu0 %v6725_v48  ;;  %vm4923_vm8 = vcmp.ge.f32.partialorder %v4479_v39, 0.0 }
 0x501   :  { %v4437_v0 = vadd.f32 %v4436_v61, %v4388_v26  ;;  %v4341_v54 = vpop.f32.mrf.mxu0  ;;  %v7695_v26 = vld [vmem:[%s11698_s3 + $0x20c] sm:$0xf] }
 0x502   :  { %v4342_v21 = vadd.f32 %v4341_v54, %v11037_v37  ;;  %v4390_v43 = vpop.f32.mrf.mxu1  ;;  %v6981_v7 = vor.u32 %v7695_v26, %v6978_v1  ;;  %4750 = vmatpush.bf16.msra.mxu1 %v6853_v20  ;;  %v11297_v32 = vsel %vm4923_vm8, %v4479_v39, %v4987_v23  ;;  %v7727_v1 = vld [vmem:[%s11698_s3 + $0x30c] sm:$0xf] }
 0x504   :  { %v4391_v46 = vadd.f32 %v4390_v43, %v4342_v21  ;;  %4536 = vmatmul.bf16.gmra.mxu0 %v11920_v8  ;;  %4799 = vmatpush.bf16.msra.mxu2 %v6981_v7 }
 0x505   :  { %v4480_v61 = vpop.f32.mrf.mxu3  ;;  %4585 = vmatmul.bf16.gmra.mxu1 %v11921_v24  ;;  %4634 = vmatmul.bf16.gmra.mxu2 %v10426_v14 }
 0x506   :  { %v4481_v42 = vadd.f32 %v4480_v61, %v4432_v44 }
 0x508   :  { %vm4927_vm9 = vcmp.ge.f32.partialorder %v4481_v42, 0.0  ;;  %v4991_v54 = vmul.f32 0.01, %v4481_v42  ;;  %v4439_v4 = vpop.f32.mrf.mxu2 }
 0x509   :  { %v4440_v30 = vadd.f32 %v4439_v4, %v4391_v46  ;;  %v4343_v35 = vpop.f32.mrf.mxu0  ;;  %v7106_v4 = vld [vmem:[%s11698_s3 + $0x318] sm:$0xf0] }
 0x50a   :  { %v4344_v21 = vadd.f32 %v4343_v35, %v11037_v37  ;;  %v4392_v43 = vpop.f32.mrf.mxu1  ;;  %4678 = vmatmul.bf16.gmra.mxu3 %v10692_v45  ;;  %v11299_v26 = vsel %vm4927_vm9, %v4481_v42, %v4991_v54  ;;  %v7109_v7 = vor.u32 %v7727_v1, %v7106_v4 }
 0x50c   :  { %v4393_v48 = vadd.f32 %v4392_v43, %v4344_v21  ;;  %4848 = vmatpush.bf16.msra.mxu3 %v7109_v7 }
 0x50d   :  { %v4483_v20 = vpop.f32.mrf.mxu3 }
 0x50e   :  { %v4484_v46 = vadd.f32 %v4483_v20, %v11238_v11 }
 0x510   :  { %v4441_v39 = vpop.f32.mrf.mxu2  ;;  %v4995_v43 = vmul.f32 0.01, %v4484_v46  ;;  %vm4931_vm10 = vcmp.ge.f32.partialorder %v4484_v46, 0.0 }
 0x511   :  { %v4442_v61 = vadd.f32 %v4441_v39, %v4393_v48  ;;  %v4346_v23 = vpop.f32.mrf.mxu0 }
 0x512   :  { %v4347_v42 = vadd.f32 %v4346_v23, %v11037_v37  ;;  %v4395_v54 = vpop.f32.mrf.mxu1  ;;  %v11316_v39 = vsel %vm4931_vm10, %v4484_v46, %v4995_v43 }
 0x513   :  { %11936 = vst [vmem:[#allocation9_spill] sm:$0xff] %v11316_v39 }
 0x514   :  { %v4396_v35 = vadd.f32 %v4395_v54, %v4347_v42  ;;  %4541 = vmatmul.bf16.gmra.mxu0 %v11922_v12 }
 0x515   :  { %v4485_v21 = vpop.f32.mrf.mxu3  ;;  %4590 = vmatmul.bf16.gmra.mxu1 %v9909_v9  ;;  %4639 = vmatmul.bf16.gmra.mxu2 %v10448_v57 }
 0x516   :  { %v4486_v44 = vadd.f32 %v4485_v21, %v4437_v0 }
 0x518   :  { %vm4935_vm11 = vcmp.ge.f32.partialorder %v4486_v44, 0.0  ;;  %v4999_v11 = vmul.f32 0.01, %v4486_v44  ;;  %v4444_v1 = vpop.f32.mrf.mxu2 }
 0x519   :  { %v4445_v4 = vadd.f32 %v4444_v1, %v4396_v35  ;;  %v4348_v48 = vpop.f32.mrf.mxu0  ;;  %v11325_v35 = vld [vmem:[%s11699_s4] sm:$0xf] }
 0x51a   :  { %v4349_v20 = vadd.f32 %v4348_v48, %v11037_v37  ;;  %v4397_v7 = vpop.f32.mrf.mxu1  ;;  %4683 = vmatmul.bf16.gmra.mxu3 %v10707_v63  ;;  %v11318_v23 = vsel %vm4935_vm11, %v4486_v44, %v4999_v11  ;;  %v11328_v37 = vperm.slane %v11325_v35, 2 }
 0x51c   :  { %v4398_v54 = vadd.f32 %v4397_v7, %v4349_v20 }
 0x51d   :  { %v4488_v0 = vpop.f32.mrf.mxu3 }
 0x51e   :  { %v4489_v21 = vadd.f32 %v4488_v0, %v4440_v30 }
 0x520   :  { %v4446_v1 = vpop.f32.mrf.mxu2  ;;  %v5003_v30 = vmul.f32 0.01, %v4489_v21  ;;  %vm4939_vm12 = vcmp.ge.f32.partialorder %v4489_v21, 0.0 }
 0x521   :  { %v4447_v48 = vadd.f32 %v4446_v1, %v4398_v54  ;;  %v4507_v46 = vpop.f32.mrf.mxu0 }
 0x522   :  { %v4508_v44 = vadd.f32 %v4507_v46, %v11328_v37  ;;  %v4556_v43 = vpop.f32.mrf.mxu1 }
 0x524   :  { %v4557_v11 = vadd.f32 %v4556_v43, %v4508_v44  ;;  %4702 = vmatmul.bf16.vlgmr.msra.gmra.mxu0 %v11908_v51  ;;  %v11336_v44 = vsel %vm4939_vm12, %v4489_v21, %v5003_v30  ;;  %v7789_v21 = vld [vmem:[%s11700_s5 + $0xf8] sm:$0xff] }
 0x525   :  { %v4490_v20 = vpop.f32.mrf.mxu3  ;;  %4751 = vmatmul.bf16.vlgmr.msra.gmra.mxu1 %v11909_v41  ;;  %4800 = vmatmul.bf16.vlgmr.msra.gmra.mxu2 %v10182_v29  ;;  %v7773_v30 = vld [vmem:[%s11700_s5 + $0x78] sm:$0xff] }
 0x526   :  { %v4491_v7 = vadd.f32 %v4490_v20, %v4442_v61  ;;  %v7781_v61 = vld [vmem:[%s11700_s5 + $0xb8] sm:$0xff]  ;;  %5521 = vmatpush.bf16.msrb.mxu3 %v7789_v21  ;;  %5423 = vmatpush.bf16.msrb.mxu1 %v7773_v30 }
 0x527   :  { %5472 = vmatpush.bf16.msrb.mxu2 %v7781_v61  ;;  %v7765_v20 = vld [vmem:[%s11700_s5 + $0x38] sm:$0xff] }
 0x528   :  { %vm4943_vm13 = vcmp.ge.f32.partialorder %v4491_v7, 0.0  ;;  %v5007_v0 = vmul.f32 0.01, %v4491_v7  ;;  %v4605_v42 = vpop.f32.mrf.mxu2  ;;  %5374 = vmatpush.bf16.msrb.mxu0 %v7765_v20 }
 0x529   :  { %v4606_v39 = vadd.f32 %v4605_v42, %v4557_v11  ;;  %v4509_v54 = vpop.f32.mrf.mxu0 }
 0x52a   :  { %v4510_v1 = vadd.f32 %v4509_v54, %v11328_v37  ;;  %v4558_v46 = vpop.f32.mrf.mxu1  ;;  %4688 = vmatmul.bf16.gmra.mxu3 %v10748_v55  ;;  %v11338_v51 = vsel %vm4943_vm13, %v4491_v7, %v5007_v0 }
 0x52c   :  { %v4559_v41 = vadd.f32 %v4558_v46, %v4510_v1 }
 0x52d   :  { %v4493_v43 = vpop.f32.mrf.mxu3 }
 0x52e   :  { %v4494_v42 = vadd.f32 %v4493_v43, %v4445_v4 }
 0x530   :  { %v4607_v11 = vpop.f32.mrf.mxu2  ;;  %v5011_v61 = vmul.f32 0.01, %v4494_v42  ;;  %vm4947_vm14 = vcmp.ge.f32.partialorder %v4494_v42, 0.0 }
 0x531   :  { %v4608_v7 = vadd.f32 %v4607_v11, %v4559_v41  ;;  %v4512_v0 = vpop.f32.mrf.mxu0 }
 0x532   :  { %v4513_v54 = vadd.f32 %v4512_v0, %v11328_v37  ;;  %v4561_v1 = vpop.f32.mrf.mxu1  ;;  %v11360_v30 = vsel %vm4947_vm14, %v4494_v42, %v5011_v61  ;;  %v7788_v42 = vld [vmem:[%s11700_s5 + $0xf0] sm:$0xff] }
 0x533   :  { %5522 = vmatpush.bf16.msrb.mxu3 %v7788_v42 }
 0x534   :  { %v4562_v4 = vadd.f32 %v4561_v1, %v4513_v54  ;;  %4707 = vmatmul.bf16.gmra.mxu0 %v11910_v17 }
 0x535   :  { %v4495_v46 = vpop.f32.mrf.mxu3  ;;  %4756 = vmatmul.bf16.gmra.mxu1 %v11911_v53  ;;  %4805 = vmatmul.bf16.gmra.mxu2 %v10220_v10 }
 0x536   :  { %v4496_v43 = vadd.f32 %v4495_v46, %v4447_v48  ;;  %v7780_v48 = vld [vmem:[%s11700_s5 + $0xb0] sm:$0xff] }
 0x537   :  { %5473 = vmatpush.bf16.msrb.mxu2 %v7780_v48  ;;  %v7772_v46 = vld [vmem:[%s11700_s5 + $0x70] sm:$0xff] }
 0x538   :  { %vm4951_vm15 = vcmp.ge.f32.partialorder %v4496_v43, 0.0  ;;  %v5015_v41 = vmul.f32 0.01, %v4496_v43  ;;  %v4610_v11 = vpop.f32.mrf.mxu2  ;;  %5424 = vmatpush.bf16.msrb.mxu1 %v7772_v46 }
 0x539   :  { %v4611_v29 = vadd.f32 %v4610_v11, %v4562_v4  ;;  %v4514_v0 = vpop.f32.mrf.mxu0 }
 0x53a   :  { %v4515_v20 = vadd.f32 %v4514_v0, %v11328_v37  ;;  %v4563_v21 = vpop.f32.mrf.mxu1  ;;  %4849 = vmatmul.bf16.vlgmr.msra.gmra.mxu3 %v10512_v19  ;;  %v11362_v17 = vsel %vm4951_vm15, %v4496_v43, %v5015_v41  ;;  %v7764_v19 = vld [vmem:[%s11700_s5 + $0x30] sm:$0xff] }
 0x53b   :  { %v5111_v10 = vpack.c.bf16 %v11362_v17, %v11360_v30  ;;  %5375 = vmatpush.bf16.msrb.mxu0 %v7764_v19 }
 0x53c   :  { %v4564_v53 = vadd.f32 %v4563_v21, %v4515_v20 }
 0x53d   :  { %v4654_v54 = vpop.f32.mrf.mxu3 }
 0x53e   :  { %v4655_v1 = vadd.f32 %v4654_v54, %v4606_v39 }
 0x540   :  { %v4612_v4 = vpop.f32.mrf.mxu2  ;;  %v4956_v20 = vmul.f32 0.01, %v4655_v1  ;;  %vm4892_vm0 = vcmp.ge.f32.partialorder %v4655_v1, 0.0 }
 0x541   :  { %v4613_v61 = vadd.f32 %v4612_v4, %v4564_v53  ;;  %v4517_v43 = vpop.f32.mrf.mxu0 }
 0x542   :  { %v4518_v41 = vadd.f32 %v4517_v43, %v11328_v37  ;;  %v4566_v11 = vpop.f32.mrf.mxu1  ;;  %v11382_v43 = vsel %vm4892_vm0, %v4655_v1, %v4956_v20 }
 0x544   :  { %v4567_v39 = vadd.f32 %v4566_v11, %v4518_v41  ;;  %4712 = vmatmul.bf16.gmra.mxu0 %v11912_v60  ;;  %v7763_v11 = vld [vmem:[%s11700_s5 + $0x28] sm:$0xff] }
 0x545   :  { %v4656_v0 = vpop.f32.mrf.mxu3  ;;  %4761 = vmatmul.bf16.gmra.mxu1 %v11913_v56  ;;  %4810 = vmatmul.bf16.gmra.mxu2 %v10258_v38 }
 0x546   :  { %v4657_v21 = vadd.f32 %v4656_v0, %v4608_v7  ;;  %v7779_v7 = vld [vmem:[%s11700_s5 + $0xa8] sm:$0xff]  ;;  %5376 = vmatpush.bf16.msrb.mxu0 %v7763_v11 }
 0x547   :  { %5474 = vmatpush.bf16.msrb.mxu2 %v7779_v7 }
 0x548   :  { %vm4896_vm1 = vcmp.ge.f32.partialorder %v4657_v21, 0.0  ;;  %v4960_v53 = vmul.f32 0.01, %v4657_v21  ;;  %v4615_v48 = vpop.f32.mrf.mxu2 }
 0x549   :  { %v4616_v54 = vadd.f32 %v4615_v48, %v4567_v39  ;;  %v4519_v4 = vpop.f32.mrf.mxu0  ;;  %v7771_v39 = vld [vmem:[%s11700_s5 + $0x68] sm:$0xff] }
 0x54a   :  { %v11384_v19 = vsel %vm4896_vm1, %v4657_v21, %v4960_v53  ;;  %v4520_v42 = vadd.f32 %v4519_v4, %v11328_v37  ;;  %v4568_v60 = vpop.f32.mrf.mxu1  ;;  %4854 = vmatmul.bf16.gmra.mxu3 %v10544_v52  ;;  %v7787_v52 = vld [vmem:[%s11700_s5 + $0xe8] sm:$0xff]  ;;  %5425 = vmatpush.bf16.msrb.mxu1 %v7771_v39 }
 0x54b   :  { %v5084_v38 = vpack.c.bf16 %v11384_v19, %v11382_v43  ;;  %5523 = vmatpush.bf16.msrb.mxu3 %v7787_v52 }
 0x54c   :  { %v4569_v56 = vadd.f32 %v4568_v60, %v4520_v42 }
 0x54d   :  { %v4659_v46 = vpop.f32.mrf.mxu3 }
 0x54e   :  { %v4660_v41 = vadd.f32 %v4659_v46, %v4611_v29 }
 0x550   :  { %v4617_v1 = vpop.f32.mrf.mxu2  ;;  %v4964_v4 = vmul.f32 0.01, %v4660_v41  ;;  %vm4900_vm2 = vcmp.ge.f32.partialorder %v4660_v41, 0.0 }
 0x551   :  { %v4618_v0 = vadd.f32 %v4617_v1, %v4569_v56  ;;  %v4522_v20 = vpop.f32.mrf.mxu0 }
 0x552   :  { %v4523_v21 = vadd.f32 %v4522_v20, %v11328_v37  ;;  %v4571_v53 = vpop.f32.mrf.mxu1  ;;  %v11408_v52 = vsel %vm4900_vm2, %v4660_v41, %v4964_v4  ;;  %v7786_v41 = vld [vmem:[%s11700_s5 + $0xe0] sm:$0xff] }
 0x553   :  { %5524 = vmatpush.bf16.msrb.mxu3 %v7786_v41 }
 0x554   :  { %v4572_v29 = vadd.f32 %v4571_v53, %v4523_v21  ;;  %4717 = vmatmul.bf16.gmra.mxu0 %v11914_v25  ;;  %v7770_v53 = vld [vmem:[%s11700_s5 + $0x60] sm:$0xff] }
 0x555   :  { %v4661_v48 = vpop.f32.mrf.mxu3  ;;  %4766 = vmatmul.bf16.gmra.mxu1 %v11915_v6  ;;  %4815 = vmatmul.bf16.gmra.mxu2 %v10296_v13 }
 0x556   :  { %v4662_v42 = vadd.f32 %v4661_v48, %v4613_v61  ;;  %v7778_v61 = vld [vmem:[%s11700_s5 + $0xa0] sm:$0xff]  ;;  %5426 = vmatpush.bf16.msrb.mxu1 %v7770_v53 }
 0x557   :  { %5475 = vmatpush.bf16.msrb.mxu2 %v7778_v61 }
 0x558   :  { %vm4904_vm3 = vcmp.ge.f32.partialorder %v4662_v42, 0.0  ;;  %v4968_v60 = vmul.f32 0.01, %v4662_v42  ;;  %v4620_v56 = vpop.f32.mrf.mxu2 }
 0x559   :  { %v4621_v7 = vadd.f32 %v4620_v56, %v4572_v29  ;;  %v4524_v46 = vpop.f32.mrf.mxu0 }
 0x55a   :  { %v4525_v1 = vadd.f32 %v4524_v46, %v11328_v37  ;;  %v4573_v11 = vpop.f32.mrf.mxu1  ;;  %4859 = vmatmul.bf16.gmra.mxu3 %v10576_v40  ;;  %v11410_v25 = vsel %vm4904_vm3, %v4662_v42, %v4968_v60  ;;  %v7762_v40 = vld [vmem:[%s11700_s5 + $0x20] sm:$0xff] }
 0x55b   :  { %v5088_v13 = vpack.c.bf16 %v11410_v25, %v11408_v52  ;;  %5377 = vmatpush.bf16.msrb.mxu0 %v7762_v40 }
 0x55c   :  { %v4574_v6 = vadd.f32 %v4573_v11, %v4525_v1 }
 0x55d   :  { %v4664_v39 = vpop.f32.mrf.mxu3 }
 0x55e   :  { %v4665_v20 = vadd.f32 %v4664_v39, %v4616_v54 }
 0x560   :  { %v4622_v21 = vpop.f32.mrf.mxu2  ;;  %v4972_v56 = vmul.f32 0.01, %v4665_v20  ;;  %vm4908_vm4 = vcmp.ge.f32.partialorder %v4665_v20, 0.0 }
 0x561   :  { %v4623_v29 = vadd.f32 %v4622_v21, %v4574_v6  ;;  %v4527_v48 = vpop.f32.mrf.mxu0 }
 0x562   :  { %v4528_v4 = vadd.f32 %v4527_v48, %v11328_v37  ;;  %v4576_v42 = vpop.f32.mrf.mxu1  ;;  %v11432_v40 = vsel %vm4908_vm4, %v4665_v20, %v4972_v56  ;;  %v7785_v20 = vld [vmem:[%s11700_s5 + $0xd8] sm:$0xff] }
 0x563   :  { %5525 = vmatpush.bf16.msrb.mxu3 %v7785_v20 }
 0x564   :  { %v4577_v54 = vadd.f32 %v4576_v42, %v4528_v4  ;;  %4722 = vmatmul.bf16.gmra.mxu0 %v11916_v5  ;;  %v7769_v4 = vld [vmem:[%s11700_s5 + $0x58] sm:$0xff] }
 0x565   :  { %v4666_v60 = vpop.f32.mrf.mxu3  ;;  %4771 = vmatmul.bf16.gmra.mxu1 %v11917_v15  ;;  %4820 = vmatmul.bf16.gmra.mxu2 %v10334_v33 }
 0x566   :  { %v4667_v46 = vadd.f32 %v4666_v60, %v4618_v0  ;;  %v7777_v0 = vld [vmem:[%s11700_s5 + $0x98] sm:$0xff]  ;;  %5427 = vmatpush.bf16.msrb.mxu1 %v7769_v4 }
 0x567   :  { %5476 = vmatpush.bf16.msrb.mxu2 %v7777_v0  ;;  %v7760_v0 = vld [vmem:[%s11700_s5 + $0x10] sm:$0xff] }
 0x568   :  { %vm4912_vm5 = vcmp.ge.f32.partialorder %v4667_v46, 0.0  ;;  %v4976_v1 = vmul.f32 0.01, %v4667_v46  ;;  %v4625_v11 = vpop.f32.mrf.mxu2 }
 0x569   :  { %v4626_v6 = vadd.f32 %v4625_v11, %v4577_v54  ;;  %v4529_v61 = vpop.f32.mrf.mxu0 }
 0x56a   :  { %v4530_v39 = vadd.f32 %v4529_v61, %v11328_v37  ;;  %v4578_v21 = vpop.f32.mrf.mxu1  ;;  %4864 = vmatmul.bf16.gmra.mxu3 %v10608_v3  ;;  %v11434_v5 = vsel %vm4912_vm5, %v4667_v46, %v4976_v1  ;;  %v7761_v3 = vld [vmem:[%s11700_s5 + $0x18] sm:$0xff] }
 0x56b   :  { %v5092_v33 = vpack.c.bf16 %v11434_v5, %v11432_v40  ;;  %5378 = vmatpush.bf16.msrb.mxu0 %v7761_v3 }
 0x56c   :  { %v4579_v15 = vadd.f32 %v4578_v21, %v4530_v39 }
 0x56d   :  { %v4669_v41 = vpop.f32.mrf.mxu3 }
 0x56e   :  { %v4670_v53 = vadd.f32 %v4669_v41, %v4621_v7 }
 0x56f   :  { %5379 = vmatpush.bf16.msrb.mxu0 %v7760_v0 }
 0x570   :  { %v4627_v48 = vpop.f32.mrf.mxu2  ;;  %v4980_v1 = vmul.f32 0.01, %v4670_v53  ;;  %vm4916_vm6 = vcmp.ge.f32.partialorder %v4670_v53, 0.0 }
 0x571   :  { %v4628_v42 = vadd.f32 %v4627_v48, %v4579_v15  ;;  %v4532_v54 = vpop.f32.mrf.mxu0 }
 0x572   :  { %v4533_v60 = vadd.f32 %v4532_v54, %v11328_v37  ;;  %v4581_v56 = vpop.f32.mrf.mxu1  ;;  %v11465_v41 = vsel %vm4916_vm6, %v4670_v53, %v4980_v1  ;;  %v7759_v54 = vld [vmem:[%s11700_s5 + $0x8] sm:$0xff] }
 0x573   :  { %v7775_v53 = vld [vmem:[%s11700_s5 + $0x88] sm:$0xff]  ;;  %5380 = vmatpush.bf16.msrb.mxu0 %v7759_v54 }
 0x574   :  { %v4582_v7 = vadd.f32 %v4581_v56, %v4533_v60  ;;  %4727 = vmatmul.bf16.gmra.mxu0 %v11918_v50  ;;  %v7768_v50 = vld [vmem:[%s11700_s5 + $0x50] sm:$0xff] }
 0x575   :  { %v4671_v46 = vpop.f32.mrf.mxu3  ;;  %4776 = vmatmul.bf16.gmra.mxu1 %v11919_v22  ;;  %4825 = vmatmul.bf16.gmra.mxu2 %v10386_v2  ;;  %v7776_v2 = vld [vmem:[%s11700_s5 + $0x90] sm:$0xff] }
 0x576   :  { %v4672_v11 = vadd.f32 %v4671_v46, %v4623_v29  ;;  %5428 = vmatpush.bf16.msrb.mxu1 %v7768_v50  ;;  %5477 = vmatpush.bf16.msrb.mxu2 %v7776_v2 }
 0x578   :  { %vm4920_vm7 = vcmp.ge.f32.partialorder %v4672_v11, 0.0  ;;  %v4984_v61 = vmul.f32 0.01, %v4672_v11  ;;  %v4630_v39 = vpop.f32.mrf.mxu2 }
 0x579   :  { %v4631_v21 = vadd.f32 %v4630_v39, %v4582_v7  ;;  %v4534_v15 = vpop.f32.mrf.mxu0  ;;  %v7784_v7 = vld [vmem:[%s11700_s5 + $0xd0] sm:$0xff] }
 0x57a   :  { %v4535_v22 = vadd.f32 %v4534_v15, %v11328_v37  ;;  %v4583_v29 = vpop.f32.mrf.mxu1  ;;  %4869 = vmatmul.bf16.gmra.mxu3 %v10641_v49  ;;  %v11467_v48 = vsel %vm4920_vm7, %v4672_v11, %v4984_v61  ;;  %v7767_v49 = vld [vmem:[%s11700_s5 + $0x48] sm:$0xff]  ;;  %5478 = vmatpush.bf16.msrb.mxu2 %v7775_v53  ;;  %v7758_v11 = vld [vmem:[%s11700_s5] sm:$0xff] }
 0x57b   :  { %v5096_v3 = vpack.c.bf16 %v11467_v48, %v11465_v41  ;;  %5429 = vmatpush.bf16.msrb.mxu1 %v7767_v49  ;;  %v7766_v61 = vld [vmem:[%s11700_s5 + $0x40] sm:$0xff]  ;;  %5526 = vmatpush.bf16.msrb.mxu3 %v7784_v7 }
 0x57c   :  { %v4584_v20 = vadd.f32 %v4583_v29, %v4535_v22  ;;  %5381 = vmatpush.bf16.msrb.mxu0 %v7758_v11  ;;  %v7783_v11 = vld [vmem:[%s11700_s5 + $0xc8] sm:$0xff] }
 0x57d   :  { %v4674_v4 = vpop.f32.mrf.mxu3 }
 0x57e   :  { %v4675_v60 = vadd.f32 %v4674_v4, %v4626_v6  ;;  %v7774_v6 = vld [vmem:[%s11700_s5 + $0x80] sm:$0xff] }
 0x57f   :  { %5430 = vmatpush.bf16.msrb.mxu1 %v7766_v61  ;;  %5479 = vmatpush.bf16.msrb.mxu2 %v7774_v6 }
 0x580   :  { %v4632_v56 = vpop.f32.mrf.mxu2  ;;  %v4988_v2 = vmul.f32 0.01, %v4675_v60  ;;  %vm4924_vm8 = vcmp.ge.f32.partialorder %v4675_v60, 0.0  ;;  %5527 = vmatpush.bf16.msrb.mxu3 %v7783_v11 }
 0x581   :  { %v4633_v46 = vadd.f32 %v4632_v56, %v4584_v20  ;;  %v4537_v1 = vpop.f32.mrf.mxu0 }
 0x582   :  { %v4538_v39 = vadd.f32 %v4537_v1, %v11328_v37  ;;  %v4586_v15 = vpop.f32.mrf.mxu1 }
 0x584   :  { %v4587_v0 = vadd.f32 %v4586_v15, %v4538_v39  ;;  %4732 = vmatmul.bf16.gmra.mxu0 %v11920_v8  ;;  %v11498_v8 = vsel %vm4924_vm8, %v4675_v60, %v4988_v2 }
 0x585   :  { %v4676_v50 = vpop.f32.mrf.mxu3  ;;  %4781 = vmatmul.bf16.gmra.mxu1 %v11921_v24  ;;  %4830 = vmatmul.bf16.gmra.mxu2 %v10426_v14 }
 0x586   :  { %v4677_v22 = vadd.f32 %v4676_v50, %v4628_v42 }
 0x588   :  { %vm4928_vm9 = vcmp.ge.f32.partialorder %v4677_v22, 0.0  ;;  %v4992_v29 = vmul.f32 0.01, %v4677_v22  ;;  %v4635_v20 = vpop.f32.mrf.mxu2 }
 0x589   :  { %v4636_v4 = vadd.f32 %v4635_v20, %v4587_v0  ;;  %v4539_v54 = vpop.f32.mrf.mxu0 }
 0x58a   :  { %v4540_v49 = vadd.f32 %v4539_v54, %v11328_v37  ;;  %v4588_v53 = vpop.f32.mrf.mxu1  ;;  %4874 = vmatmul.bf16.gmra.mxu3 %v10692_v45  ;;  %v11500_v56 = vsel %vm4928_vm9, %v4677_v22, %v4992_v29 }
 0x58b   :  { %v5100_v14 = vpack.c.bf16 %v11500_v56, %v11498_v8 }
 0x58c   :  { %v4589_v24 = vadd.f32 %v4588_v53, %v4540_v49 }
 0x58d   :  { %v4679_v42 = vpop.f32.mrf.mxu3 }
 0x58e   :  { %v4680_v7 = vadd.f32 %v4679_v42, %v4631_v21 }
 0x590   :  { %v4637_v1 = vpop.f32.mrf.mxu2  ;;  %v4996_v21 = vmul.f32 0.01, %v4680_v7  ;;  %vm4932_vm10 = vcmp.ge.f32.partialorder %v4680_v7, 0.0 }
 0x591   :  { %v4638_v61 = vadd.f32 %v4637_v1, %v4589_v24  ;;  %v4542_v6 = vpop.f32.mrf.mxu0 }
 0x592   :  { %v4543_v39 = vadd.f32 %v4542_v6, %v11328_v37  ;;  %v4591_v45 = vpop.f32.mrf.mxu1  ;;  %v11513_v49 = vsel %vm4932_vm10, %v4680_v7, %v4996_v21  ;;  %v11938_v6 = vpack.c.bf16 %v11131_v47, %v11129_v18 }
 0x594   :  { %v4592_v60 = vadd.f32 %v4591_v45, %v4543_v39  ;;  %4737 = vmatmul.bf16.gmra.mxu0 %v11922_v12 }
 0x595   :  { %v4681_v15 = vpop.f32.mrf.mxu3  ;;  %4786 = vmatmul.bf16.gmra.mxu1 %v9909_v9  ;;  %4835 = vmatmul.bf16.gmra.mxu2 %v10448_v57 }
 0x596   :  { %v4682_v0 = vadd.f32 %v4681_v15, %v4633_v46 }
 0x598   :  { %vm4936_vm11 = vcmp.ge.f32.partialorder %v4682_v0, 0.0  ;;  %v5000_v50 = vmul.f32 0.01, %v4682_v0  ;;  %v4640_v2 = vpop.f32.mrf.mxu2 }
 0x599   :  { %v4641_v22 = vadd.f32 %v4640_v2, %v4592_v60  ;;  %v4544_v29 = vpop.f32.mrf.mxu0  ;;  %v11548_v2 = vperm.slane %v11325_v35, 3 }
 0x59a   :  { %v4545_v20 = vadd.f32 %v4544_v29, %v11328_v37  ;;  %v4593_v54 = vpop.f32.mrf.mxu1  ;;  %4879 = vmatmul.bf16.gmra.mxu3 %v10707_v63  ;;  %v11515_v12 = vsel %vm4936_vm11, %v4682_v0, %v5000_v50  ;;  %v7782_v37 = vld [vmem:[%s11700_s5 + $0xc0] sm:$0xff]  ;;  %v11937_v63 = vpack.c.bf16 %v10820_v58, %v10818_v31  ;;  %v11939_v0 = vpack.c.bf16 %v10860_v16, %v10858_v59 }
 0x59b   :  { %v5104_v9 = vpack.c.bf16 %v11515_v12, %v11513_v49  ;;  %5528 = vmatpush.bf16.msrb.mxu3 %v7782_v37 }
 0x59c   :  { %v4594_v57 = vadd.f32 %v4593_v54, %v4545_v20 }
 0x59d   :  { %v4684_v46 = vpop.f32.mrf.mxu3 }
 0x59e   :  { %v4685_v53 = vadd.f32 %v4684_v46, %v4636_v4 }
 0x5a0   :  { %v4642_v24 = vpop.f32.mrf.mxu2  ;;  %v5004_v4 = vmul.f32 0.01, %v4685_v53  ;;  %vm4940_vm12 = vcmp.ge.f32.partialorder %v4685_v53, 0.0 }
 0x5a1   :  { %v4643_v42 = vadd.f32 %v4642_v24, %v4594_v57  ;;  %v4703_v1 = vpop.f32.mrf.mxu0 }
 0x5a2   :  { %v4752_v11 = vpop.f32.mrf.mxu1  ;;  %v11532_v31 = vsel %vm4940_vm12, %v4685_v53, %v5004_v4  ;;  %v4704_v16 = vadd.f32 %v4703_v1, %v11548_v2  ;;  %v11941_v1 = vpack.c.bf16 %v10899_v36, %v10897_v28  ;;  %v11942_v4 = vld [vmem:[#allocation7_spill] sm:$0xff] }
 0x5a4   :  { %5382 = vmatmul.bf16.vlgmr.msrb.gmra.mxu0 %v11937_v63  ;;  %v4753_v35 = vadd.f32 %v4752_v11, %v4704_v16  ;;  %v11944_v16 = vld [vmem:[#allocation19_spill] sm:$0xff] }
 0x5a5   :  { %v4686_v7 = vpop.f32.mrf.mxu3  ;;  %5431 = vmatmul.bf16.vlgmr.msrb.gmra.mxu1 %v11938_v6  ;;  %5480 = vmatmul.bf16.vlgmr.msrb.gmra.mxu2 %v5084_v38 }
 0x5a6   :  { %v4687_v39 = vadd.f32 %v4686_v7, %v4638_v61 }
 0x5a8   :  { %vm4944_vm13 = vcmp.ge.f32.partialorder %v4687_v39, 0.0  ;;  %v5008_v45 = vmul.f32 0.01, %v4687_v39  ;;  %v4801_v60 = vpop.f32.mrf.mxu2 }
 0x5a9   :  { %v4705_v15 = vpop.f32.mrf.mxu0 }
 0x5aa   :  { %v4754_v21 = vpop.f32.mrf.mxu1  ;;  %4884 = vmatmul.bf16.gmra.mxu3 %v10748_v55  ;;  %v11534_v58 = vsel %vm4944_vm13, %v4687_v39, %v5008_v45  ;;  %v11940_v55 = vpack.c.bf16 %v11172_v62, %v11170_v27  ;;  %v4706_v25 = vadd.f32 %v4705_v15, %v11548_v2  ;;  %v11943_v39 = vpack.c.bf16 %v11211_v34, %v11942_v4 }
 0x5ab   :  { %v5108_v18 = vpack.c.bf16 %v11534_v58, %v11532_v31 }
 0x5ad   :  { %v4689_v47 = vpop.f32.mrf.mxu3 }
 0x5ae   :  { %v4690_v43 = vadd.f32 %v4689_v47, %v4641_v22 }
 0x5b0   :  { %v4803_v19 = vpop.f32.mrf.mxu2  ;;  %v5012_v22 = vmul.f32 0.01, %v4690_v43  ;;  %vm4948_vm14 = vcmp.ge.f32.partialorder %v4690_v43, 0.0 }
 0x5b1   :  { %v4708_v38 = vpop.f32.mrf.mxu0 }
 0x5b2   :  { %v4757_v61 = vpop.f32.mrf.mxu1  ;;  %v11551_v46 = vsel %vm4948_vm14, %v4690_v43, %v5012_v22  ;;  %v4709_v47 = vadd.f32 %v4708_v38, %v11548_v2 }
 0x5b4   :  { %5387 = vmatmul.bf16.gmra.mxu0 %v11939_v0  ;;  %v4758_v34 = vadd.f32 %v4757_v61, %v4709_v47 }
 0x5b5   :  { %v4691_v50 = vpop.f32.mrf.mxu3  ;;  %5436 = vmatmul.bf16.gmra.mxu1 %v11940_v55  ;;  %5485 = vmatmul.bf16.gmra.mxu2 %v5088_v13  ;;  %v4802_v13 = vadd.f32 %v4801_v60, %v4753_v35 }
 0x5b6   :  { %v4692_v29 = vadd.f32 %v4691_v50, %v4643_v42  ;;  %v4755_v42 = vadd.f32 %v4754_v21, %v4706_v25  ;;  %v11947_v25 = vld [vmem:[#allocation8_spill] sm:$0xff] }
 0x5b8   :  { %vm4952_vm15 = vcmp.ge.f32.partialorder %v4692_v29, 0.0  ;;  %v5016_v20 = vmul.f32 0.01, %v4692_v29  ;;  %v4806_v54 = vpop.f32.mrf.mxu2  ;;  %v4804_v7 = vadd.f32 %v4803_v19, %v4755_v42 }
 0x5b9   :  { %v4710_v59 = vpop.f32.mrf.mxu0  ;;  %v4807_v40 = vadd.f32 %v4806_v54, %v4758_v34 }
 0x5ba   :  { %v4759_v57 = vpop.f32.mrf.mxu1  ;;  %v11553_v27 = vsel %vm4952_vm15, %v4692_v29, %v5016_v20  ;;  %v4711_v50 = vadd.f32 %v4710_v59, %v11548_v2 }
 0x5bb   :  { %v5112_v62 = vpack.c.bf16 %v11553_v27, %v11551_v46 }
 0x5bc   :  { %v4760_v55 = vadd.f32 %v4759_v57, %v4711_v50  ;;  %v11953_v50 = vpack.c.bf16 %v11299_v26, %v11297_v32 }
 0x5bd   :  { %v4850_v52 = vpop.f32.mrf.mxu3 }
 0x5be   :  { %v4851_v37 = vadd.f32 %v4850_v52, %v4802_v13  ;;  %v11945_v52 = vld [vmem:[#allocation17_spill] sm:$0xff] }
 0x5bf   :  { %v11946_v35 = vpack.c.bf16 %v11944_v16, %v11945_v52  ;;  %v11948_v13 = vld [vmem:[#allocation29_spill] sm:$0xff] }
 0x5c0   :  { %v4808_v53 = vpop.f32.mrf.mxu2  ;;  %v4957_v11 = vmul.f32 0.01, %v4851_v37  ;;  %vm4893_vm0 = vcmp.ge.f32.partialorder %v4851_v37, 0.0  ;;  %v11949_v42 = vpack.c.bf16 %v11947_v25, %v11948_v13 }
 0x5c1   :  { %v4713_v24 = vpop.f32.mrf.mxu0  ;;  %v4809_v20 = vadd.f32 %v4808_v53, %v4760_v55 }
 0x5c2   :  { %v4762_v63 = vpop.f32.mrf.mxu1  ;;  %v5021_v28 = vsel %vm4893_vm0, %v4851_v37, %v4957_v11  ;;  %v4714_v37 = vadd.f32 %v4713_v24, %v11548_v2 }
 0x5c4   :  { %5392 = vmatmul.bf16.gmra.mxu0 %v11941_v1  ;;  %v4763_v11 = vadd.f32 %v4762_v63, %v4714_v37 }
 0x5c5   :  { %v4852_v6 = vpop.f32.mrf.mxu3  ;;  %5441 = vmatmul.bf16.gmra.mxu1 %v11943_v39  ;;  %5490 = vmatmul.bf16.gmra.mxu2 %v5092_v33 }
 0x5c6   :  { %v4853_v45 = vadd.f32 %v4852_v6, %v4804_v7 }
 0x5c8   :  { %vm4897_vm1 = vcmp.ge.f32.partialorder %v4853_v45, 0.0  ;;  %v4961_v60 = vmul.f32 0.01, %v4853_v45  ;;  %v4811_v15 = vpop.f32.mrf.mxu2 }
 0x5c9   :  { %v4715_v21 = vpop.f32.mrf.mxu0  ;;  %v4812_v41 = vadd.f32 %v4811_v15, %v4763_v11 }
 0x5ca   :  { %v5025_v36 = vsel %vm4897_vm1, %v4853_v45, %v4961_v60  ;;  %v4764_v43 = vpop.f32.mrf.mxu1  ;;  %v4716_v45 = vadd.f32 %v4715_v21, %v11548_v2 }
 0x5cb   :  { %v5085_v19 = vpack.c.bf16 %v5025_v36, %v5021_v28 }
 0x5cc   :  { %v4765_v60 = vadd.f32 %v4764_v43, %v4716_v45 }
 0x5cd   :  { %v4855_v0 = vpop.f32.mrf.mxu3  ;;  %5529 = vmatmul.bf16.vlgmr.msrb.gmra.mxu3 %v5085_v19  ;;  %v11950_v19 = vld [vmem:[#allocation2_spill] sm:$0xff] }
 0x5ce   :  { %v4856_v22 = vadd.f32 %v4855_v0, %v4807_v40  ;;  %v11951_v0 = vld [vmem:[#allocation23_spill] sm:$0xff] }
 0x5cf   :  { %v11952_v34 = vpack.c.bf16 %v11950_v19, %v11951_v0  ;;  %v11959_v19 = vld [vmem:[#allocation5_spill] sm:$0xff]  ;;  %v11960_v0 = vld [vmem:[#allocation4_spill] sm:$0xff] }
 0x5d0   :  { %v4813_v5 = vpop.f32.mrf.mxu2  ;;  %v4965_v61 = vmul.f32 0.01, %v4856_v22  ;;  %vm4901_vm2 = vcmp.ge.f32.partialorder %v4856_v22, 0.0 }
 0x5d1   :  { %v4718_v33 = vpop.f32.mrf.mxu0  ;;  %v4814_v36 = vadd.f32 %v4813_v5, %v4765_v60 }
 0x5d2   :  { %v4767_v29 = vpop.f32.mrf.mxu1  ;;  %v5029_v1 = vsel %vm4901_vm2, %v4856_v22, %v4965_v61  ;;  %v4719_v5 = vadd.f32 %v4718_v33, %v11548_v2  ;;  %v11955_v61 = vld [vmem:[#allocation3_spill] sm:$0xff] }
 0x5d4   :  { %5397 = vmatmul.bf16.gmra.mxu0 %v11946_v35  ;;  %v4768_v32 = vadd.f32 %v4767_v29, %v4719_v5 }
 0x5d5   :  { %v4857_v38 = vpop.f32.mrf.mxu3  ;;  %5446 = vmatmul.bf16.gmra.mxu1 %v11949_v42  ;;  %5495 = vmatmul.bf16.gmra.mxu2 %v5096_v3  ;;  %v11954_v42 = vld [vmem:[#allocation25_spill] sm:$0xff] }
 0x5d6   :  { %v4858_v54 = vadd.f32 %v4857_v38, %v4809_v20 }
 0x5d8   :  { %vm4905_vm3 = vcmp.ge.f32.partialorder %v4858_v54, 0.0  ;;  %v4969_v59 = vmul.f32 0.01, %v4858_v54  ;;  %v4816_v57 = vpop.f32.mrf.mxu2 }
 0x5d9   :  { %v4720_v53 = vpop.f32.mrf.mxu0  ;;  %v4817_v8 = vadd.f32 %v4816_v57, %v4768_v32 }
 0x5da   :  { %v4769_v7 = vpop.f32.mrf.mxu1  ;;  %v5033_v6 = vsel %vm4905_vm3, %v4858_v54, %v4969_v59  ;;  %v4721_v26 = vadd.f32 %v4720_v53, %v11548_v2  ;;  %v11956_v54 = vpack.c.bf16 %v11954_v42, %v11955_v61  ;;  %v11957_v59 = vld [vmem:[#allocation9_spill] sm:$0xff] }
 0x5db   :  { %v5089_v4 = vpack.c.bf16 %v5033_v6, %v5029_v1  ;;  %v11958_v37 = vpack.c.bf16 %v11318_v23, %v11957_v59 }
 0x5dc   :  { %v4770_v35 = vadd.f32 %v4769_v7, %v4721_v26 }
 0x5dd   :  { %v4860_v39 = vpop.f32.mrf.mxu3  ;;  %5534 = vmatmul.bf16.gmra.mxu3 %v5089_v4 }
 0x5de   :  { %v4861_v47 = vadd.f32 %v4860_v39, %v4812_v41 }
 0x5e0   :  { %v4818_v48 = vpop.f32.mrf.mxu2  ;;  %v4973_v63 = vmul.f32 0.01, %v4861_v47  ;;  %vm4909_vm4 = vcmp.ge.f32.partialorder %v4861_v47, 0.0 }
 0x5e1   :  { %v4723_v3 = vpop.f32.mrf.mxu0  ;;  %v4819_v13 = vadd.f32 %v4818_v48, %v4770_v35 }
 0x5e2   :  { %v4772_v28 = vpop.f32.mrf.mxu1  ;;  %v5037_v22 = vsel %vm4909_vm4, %v4861_v47, %v4973_v63  ;;  %v4724_v6 = vadd.f32 %v4723_v3, %v11548_v2 }
 0x5e4   :  { %5402 = vmatmul.bf16.gmra.mxu0 %v11952_v34  ;;  %v4773_v23 = vadd.f32 %v4772_v28, %v4724_v6  ;;  %v11961_v34 = vpack.c.bf16 %v11959_v19, %v11960_v0 }
 0x5e5   :  { %v4862_v24 = vpop.f32.mrf.mxu3  ;;  %5451 = vmatmul.bf16.gmra.mxu1 %v11953_v50  ;;  %5500 = vmatmul.bf16.gmra.mxu2 %v5100_v14  ;;  %v11962_v50 = vpack.c.bf16 %v11338_v51, %v11336_v44 }
 0x5e6   :  { %v4863_v15 = vadd.f32 %v4862_v24, %v4814_v36 }
 0x5e8   :  { %vm4913_vm5 = vcmp.ge.f32.partialorder %v4863_v15, 0.0  ;;  %v4977_v21 = vmul.f32 0.01, %v4863_v15  ;;  %v4821_v43 = vpop.f32.mrf.mxu2 }
 0x5e9   :  { %v4725_v40 = vpop.f32.mrf.mxu0  ;;  %v4822_v49 = vadd.f32 %v4821_v43, %v4773_v23 }
 0x5ea   :  { %v4774_v55 = vpop.f32.mrf.mxu1  ;;  %v5041_v20 = vsel %vm4913_vm5, %v4863_v15, %v4977_v21  ;;  %v4726_v48 = vadd.f32 %v4725_v40, %v11548_v2 }
 0x5eb   :  { %v5093_v16 = vpack.c.bf16 %v5041_v20, %v5037_v22 }
 0x5ec   :  { %v4775_v60 = vadd.f32 %v4774_v55, %v4726_v48 }
 0x5ed   :  { %v4865_v52 = vpop.f32.mrf.mxu3  ;;  %5539 = vmatmul.bf16.gmra.mxu3 %v5093_v16 }
 0x5ee   :  { %v4866_v38 = vadd.f32 %v4865_v52, %v4817_v8  ;;  %v11963_v8 = vld [vmem:[#allocation6_spill] sm:$0xff] }
 0x5f0   :  { %v4823_v56 = vpop.f32.mrf.mxu2  ;;  %v4981_v29 = vmul.f32 0.01, %v4866_v38  ;;  %vm4917_vm6 = vcmp.ge.f32.partialorder %v4866_v38, 0.0 }
 0x5f1   :  { %v4728_v14 = vpop.f32.mrf.mxu0  ;;  %v4824_v36 = vadd.f32 %v4823_v56, %v4775_v60  ;;  %v11964_v56 = vld [vmem:[#allocation27_spill] sm:$0xff] }
 0x5f2   :  { %v4777_v25 = vpop.f32.mrf.mxu1  ;;  %v5045_v4 = vsel %vm4917_vm6, %v4866_v38, %v4981_v29  ;;  %v4729_v43 = vadd.f32 %v4728_v14, %v11548_v2  ;;  %v11965_v35 = vpack.c.bf16 %v11963_v8, %v11964_v56 }
 0x5f4   :  { %5407 = vmatmul.bf16.gmra.mxu0 %v11956_v54  ;;  %v4778_v44 = vadd.f32 %v4777_v25, %v4729_v43 }
 0x5f5   :  { %v4867_v33 = vpop.f32.mrf.mxu3  ;;  %5456 = vmatmul.bf16.gmra.mxu1 %v11958_v37  ;;  %5505 = vmatmul.bf16.gmra.mxu2 %v5104_v9 }
 0x5f6   :  { %v4868_v57 = vadd.f32 %v4867_v33, %v4819_v13 }
 0x5f8   :  { %vm4921_vm7 = vcmp.ge.f32.partialorder %v4868_v57, 0.0  ;;  %v4985_v53 = vmul.f32 0.01, %v4868_v57  ;;  %v4826_v7 = vpop.f32.mrf.mxu2 }
 0x5f9   :  { %v4730_v1 = vpop.f32.mrf.mxu0  ;;  %v4827_v31 = vadd.f32 %v4826_v7, %v4778_v44 }
 0x5fa   :  { %v5049_v39 = vsel %vm4921_vm7, %v4868_v57, %v4985_v53  ;;  %v4779_v11 = vpop.f32.mrf.mxu1  ;;  %v4731_v51 = vadd.f32 %v4730_v1, %v11548_v2 }
 0x5fb   :  { %v5097_v45 = vpack.c.bf16 %v5049_v39, %v5045_v4 }
 0x5fd   :  { %v4870_v41 = vpop.f32.mrf.mxu3  ;;  %5544 = vmatmul.bf16.gmra.mxu3 %v5097_v45 }
 0x5fe   :  { %v4871_v47 = vadd.f32 %v4870_v41, %v4822_v49 }
 0x600   :  { %v4828_v12 = vpop.f32.mrf.mxu2  ;;  %v4989_v28 = vmul.f32 0.01, %v4871_v47  ;;  %vm4925_vm8 = vcmp.ge.f32.partialorder %v4871_v47, 0.0 }
 0x601   :  { %v4733_v9 = vpop.f32.mrf.mxu0 }
 0x602   :  { %v4782_v3 = vpop.f32.mrf.mxu1  ;;  %v5053_v5 = vsel %vm4925_vm8, %v4871_v47, %v4989_v28  ;;  %v4734_v61 = vadd.f32 %v4733_v9, %v11548_v2 }
 0x604   :  { %5412 = vmatmul.bf16.gmra.mxu0 %v11961_v34  ;;  %v4783_v30 = vadd.f32 %v4782_v3, %v4734_v61 }
 0x605   :  { %v4872_v24 = vpop.f32.mrf.mxu3  ;;  %5461 = vmatmul.bf16.gmra.mxu1 %v11962_v50  ;;  %5510 = vmatmul.bf16.gmra.mxu2 %v5108_v18  ;;  %v4780_v18 = vadd.f32 %v4779_v11, %v4731_v51 }
 0x606   :  { %v4873_v63 = vadd.f32 %v4872_v24, %v4824_v36 }
 0x607   :  { %v4829_v32 = vadd.f32 %v4828_v12, %v4780_v18 }
 0x608   :  { %vm4929_vm9 = vcmp.ge.f32.partialorder %v4873_v63, 0.0  ;;  %v4993_v15 = vmul.f32 0.01, %v4873_v63  ;;  %v4831_v21 = vpop.f32.mrf.mxu2 }
 0x609   :  { %v4735_v40 = vpop.f32.mrf.mxu0  ;;  %v4832_v46 = vadd.f32 %v4831_v21, %v4783_v30 }
 0x60a   :  { %v5057_v55 = vsel %vm4929_vm9, %v4873_v63, %v4993_v15  ;;  %v4784_v16 = vpop.f32.mrf.mxu1  ;;  %v4736_v17 = vadd.f32 %v4735_v40, %v11548_v2 }
 0x60b   :  { %v5101_v22 = vpack.c.bf16 %v5057_v55, %v5053_v5 }
 0x60c   :  { %v4785_v27 = vadd.f32 %v4784_v16, %v4736_v17 }
 0x60d   :  { %v4875_v20 = vpop.f32.mrf.mxu3  ;;  %5549 = vmatmul.bf16.gmra.mxu3 %v5101_v22 }
 0x60e   :  { %v4876_v52 = vadd.f32 %v4875_v20, %v4827_v31  ;;  %v11629_v20 = vld [vmem:[%s11701_s6] ss:$0 sm:$0xff] }
 0x610   :  { %v4833_v58 = vpop.f32.mrf.mxu2  ;;  %v4997_v38 = vmul.f32 0.01, %v4876_v52  ;;  %vm4933_vm10 = vcmp.ge.f32.partialorder %v4876_v52, 0.0 }
 0x611   :  { %v4738_v26 = vpop.f32.mrf.mxu0  ;;  %v4834_v53 = vadd.f32 %v4833_v58, %v4785_v27 }
 0x612   :  { %v4787_v42 = vpop.f32.mrf.mxu1  ;;  %v5061_v33 = vsel %vm4933_vm10, %v4876_v52, %v4997_v38  ;;  %v4739_v45 = vadd.f32 %v4738_v26, %v11548_v2 }
 0x614   :  { %5417 = vmatmul.bf16.gmra.mxu0 %v11965_v35  ;;  %v4788_v9 = vadd.f32 %v4787_v42, %v4739_v45 }
 0x615   :  { %v4877_v14 = vpop.f32.mrf.mxu3  ;;  %5466 = vmatmul.bf16.gmra.mxu1 %v5111_v10  ;;  %5515 = vmatmul.bf16.gmra.mxu2 %v5112_v62 }
 0x616   :  { %v4878_v25 = vadd.f32 %v4877_v14, %v4829_v32 }
 0x618   :  { %vm4937_vm11 = vcmp.ge.f32.partialorder %v4878_v25, 0.0  ;;  %v5001_v13 = vmul.f32 0.01, %v4878_v25  ;;  %v4836_v54 = vpop.f32.mrf.mxu2 }
 0x619   :  { %v4740_v10 = vpop.f32.mrf.mxu0  ;;  %v4837_v36 = vadd.f32 %v4836_v54, %v4788_v9 }
 0x61a   :  { %v5065_v59 = vsel %vm4937_vm11, %v4878_v25, %v5001_v13  ;;  %v4789_v57 = vpop.f32.mrf.mxu1  ;;  %v4741_v60 = vadd.f32 %v4740_v10, %v11548_v2 }
 0x61b   :  { %v5105_v37 = vpack.c.bf16 %v5065_v59, %v5061_v33 }
 0x61c   :  { %v4790_v19 = vadd.f32 %v4789_v57, %v4741_v60 }
 0x61d   :  { %v4880_v29 = vpop.f32.mrf.mxu3  ;;  %5554 = vmatmul.bf16.gmra.mxu3 %v5105_v37 }
 0x61e   :  { %v4881_v62 = vadd.f32 %v4880_v29, %v4832_v46 }
 0x620   :  { %v4838_v7 = vpop.f32.mrf.mxu2  ;;  %v5005_v6 = vmul.f32 0.01, %v4881_v62  ;;  %vm4941_vm12 = vcmp.ge.f32.partialorder %v4881_v62, 0.0 }
 0x621   :  { %v5383_v39 = vpop.f32.mrf.mxu0  ;;  %v4839_v3 = vadd.f32 %v4838_v7, %v4790_v19 }
 0x622   :  { %v5069_v41 = vsel %vm4941_vm12, %v4881_v62, %v5005_v6  ;;  %v5432_v49 = vpop.f32.mrf.mxu1  ;;  %v5384_v51 = vadd.f32 %v11629_v20, %v5383_v39 }
 0x624   :  { %v5433_v58 = vadd.f32 %v5432_v49, %v5384_v51 }
 0x625   :  { %v4882_v1 = vpop.f32.mrf.mxu3 }
 0x626   :  { %v4883_v4 = vadd.f32 %v4882_v1, %v4834_v53 }
 0x628   :  { %vm4945_vm13 = vcmp.ge.f32.partialorder %v4883_v4, 0.0  ;;  %v5009_v11 = vmul.f32 0.01, %v4883_v4  ;;  %v5481_v47 = vpop.f32.mrf.mxu2 }
 0x629   :  { %v5385_v0 = vpop.f32.mrf.mxu0  ;;  %v5482_v18 = vadd.f32 %v5481_v47, %v5433_v58 }
 0x62a   :  { %v5073_v23 = vsel %vm4945_vm13, %v4883_v4, %v5009_v11  ;;  %v5434_v63 = vpop.f32.mrf.mxu1  ;;  %v5386_v26 = vadd.f32 %v11629_v20, %v5385_v0 }
 0x62b   :  { %v5109_v48 = vpack.c.bf16 %v5073_v23, %v5069_v41 }
 0x62c   :  { %v5435_v56 = vadd.f32 %v5434_v63, %v5386_v26 }
 0x62d   :  { %v4885_v12 = vpop.f32.mrf.mxu3  ;;  %5559 = vmatmul.bf16.gmra.mxu3 %v5109_v48 }
 0x62e   :  { %v4886_v34 = vadd.f32 %v4885_v12, %v4837_v36 }
 0x630   :  { %v5013_v50 = vmul.f32 0.01, %v4886_v34  ;;  %vm4949_vm14 = vcmp.ge.f32.partialorder %v4886_v34, 0.0  ;;  %v5483_v15 = vpop.f32.mrf.mxu2 }
 0x631   :  { %v5388_v55 = vpop.f32.mrf.mxu0  ;;  %v5484_v38 = vadd.f32 %v5483_v15, %v5435_v56 }
 0x632   :  { %v5077_v43 = vsel %vm4949_vm14, %v4886_v34, %v5013_v50  ;;  %v5437_v2 = vpop.f32.mrf.mxu1  ;;  %v5389_v13 = vadd.f32 %v11629_v20, %v5388_v55 }
 0x634   :  { %v5438_v54 = vadd.f32 %v5437_v2, %v5389_v13 }
 0x635   :  { %v4887_v24 = vpop.f32.mrf.mxu3 }
 0x636   :  { %v4888_v28 = vadd.f32 %v4887_v24, %v4839_v3 }
 0x638   :  { %vm4953_vm15 = vcmp.ge.f32.partialorder %v4888_v28, 0.0  ;;  %v5017_v21 = vmul.f32 0.01, %v4888_v28  ;;  %v5486_v22 = vpop.f32.mrf.mxu2 }
 0x639   :  { %v5390_v44 = vpop.f32.mrf.mxu0  ;;  %v5487_v33 = vadd.f32 %v5486_v22, %v5438_v54 }
 0x63a   :  { %v5081_v40 = vsel %vm4953_vm15, %v4888_v28, %v5017_v21  ;;  %v5439_v16 = vpop.f32.mrf.mxu1  ;;  %v5391_v30 = vadd.f32 %v11629_v20, %v5390_v44 }
 0x63b   :  { %v5113_v5 = vpack.c.bf16 %v5081_v40, %v5077_v43 }
 0x63c   :  { %v5440_v46 = vadd.f32 %v5439_v16, %v5391_v30 }
 0x63d   :  { %5564 = vmatmul.bf16.gmra.mxu3 %v5113_v5 }
 0x640   :  { %v5488_v31 = vpop.f32.mrf.mxu2 }
 0x641   :  { %v5393_v52 = vpop.f32.mrf.mxu0  ;;  %v5489_v27 = vadd.f32 %v5488_v31, %v5440_v46 }
 0x642   :  { %v5442_v35 = vpop.f32.mrf.mxu1  ;;  %v5394_v57 = vadd.f32 %v11629_v20, %v5393_v52 }
 0x644   :  { %v5443_v6 = vadd.f32 %v5442_v35, %v5394_v57 }
 0x648   :  { %v5491_v14 = vpop.f32.mrf.mxu2 }
 0x649   :  { %v5395_v61 = vpop.f32.mrf.mxu0  ;;  %v5492_v39 = vadd.f32 %v5491_v14, %v5443_v6 }
 0x64a   :  { %v5444_v59 = vpop.f32.mrf.mxu1  ;;  %v5396_v45 = vadd.f32 %v11629_v20, %v5395_v61 }
 0x64c   :  { %v5445_v49 = vadd.f32 %v5444_v59, %v5396_v45 }
 0x650   :  { %v5530_v32 = vpop.f32.mrf.mxu3  ;;  %v5493_v37 = vpop.f32.mrf.mxu2 }
 0x651   :  { %v5531_v8 = vadd.f32 %v5530_v32, %v5482_v18  ;;  %v5398_v10 = vpop.f32.mrf.mxu0  ;;  %v5494_v12 = vadd.f32 %v5493_v37, %v5445_v49 }
 0x652   :  { %v5447_v53 = vpop.f32.mrf.mxu1  ;;  %v5399_v47 = vadd.f32 %v11629_v20, %v5398_v10 }
 0x653   :  { %5570 = vst [vmem:[%s11702_s7] sm:$0xff] %v5531_v8 }
 0x654   :  { %v5448_v19 = vadd.f32 %v5447_v53, %v5399_v47 }
 0x658   :  { %v5532_v25 = vpop.f32.mrf.mxu3  ;;  %v5496_v1 = vpop.f32.mrf.mxu2 }
 0x659   :  { %v5533_v42 = vadd.f32 %v5532_v25, %v5484_v38  ;;  %v5400_v4 = vpop.f32.mrf.mxu0  ;;  %v5497_v3 = vadd.f32 %v5496_v1, %v5448_v19 }
 0x65a   :  { %v5449_v23 = vpop.f32.mrf.mxu1  ;;  %v5401_v50 = vadd.f32 %v11629_v20, %v5400_v4 }
 0x65b   :  { %5571 = vst [vmem:[%s11702_s7 + $0x8] sm:$0xff] %v5533_v42 }
 0x65c   :  { %v5450_v15 = vadd.f32 %v5449_v23, %v5401_v50 }
 0x660   :  { %v5535_v29 = vpop.f32.mrf.mxu3  ;;  %v5498_v48 = vpop.f32.mrf.mxu2 }
 0x661   :  { %v5536_v17 = vadd.f32 %v5535_v29, %v5487_v33  ;;  %v5403_v9 = vpop.f32.mrf.mxu0  ;;  %v5499_v21 = vadd.f32 %v5498_v48, %v5450_v15 }
 0x662   :  { %v5452_v0 = vpop.f32.mrf.mxu1  ;;  %v5404_v55 = vadd.f32 %v11629_v20, %v5403_v9 }
 0x663   :  { %5572 = vst [vmem:[%s11702_s7 + $0x10] sm:$0xff] %v5536_v17 }
 0x664   :  { %v5453_v44 = vadd.f32 %v5452_v0, %v5404_v55 }
 0x668   :  { %v5537_v62 = vpop.f32.mrf.mxu3  ;;  %v5501_v34 = vpop.f32.mrf.mxu2 }
 0x669   :  { %v5538_v7 = vadd.f32 %v5537_v62, %v5489_v27  ;;  %v5405_v63 = vpop.f32.mrf.mxu0  ;;  %v5502_v51 = vadd.f32 %v5501_v34, %v5453_v44 }
 0x66a   :  { %v5454_v43 = vpop.f32.mrf.mxu1  ;;  %v5406_v31 = vadd.f32 %v11629_v20, %v5405_v63 }
 0x66b   :  { %5573 = vst [vmem:[%s11702_s7 + $0x18] sm:$0xff] %v5538_v7 }
 0x66c   :  { %v5455_v32 = vadd.f32 %v5454_v43, %v5406_v31 }
 0x670   :  { %v5540_v11 = vpop.f32.mrf.mxu3  ;;  %v5503_v40 = vpop.f32.mrf.mxu2 }
 0x671   :  { %v5541_v41 = vadd.f32 %v5540_v11, %v5492_v39  ;;  %v5408_v22 = vpop.f32.mrf.mxu0  ;;  %v5504_v8 = vadd.f32 %v5503_v40, %v5455_v32 }
 0x672   :  { %v5457_v58 = vpop.f32.mrf.mxu1  ;;  %v5409_v35 = vadd.f32 %v11629_v20, %v5408_v22 }
 0x673   :  { %5574 = vst [vmem:[%s11702_s7 + $0x20] sm:$0xff] %v5541_v41 }
 0x674   :  { %v5458_v13 = vadd.f32 %v5457_v58, %v5409_v35 }
 0x678   :  { %v5542_v60 = vpop.f32.mrf.mxu3  ;;  %v5506_v52 = vpop.f32.mrf.mxu2 }
 0x679   :  { %v5543_v36 = vadd.f32 %v5542_v60, %v5494_v12  ;;  %v5410_v26 = vpop.f32.mrf.mxu0  ;;  %v5507_v42 = vadd.f32 %v5506_v52, %v5458_v13 }
 0x67a   :  { %v5459_v38 = vpop.f32.mrf.mxu1  ;;  %v5411_v33 = vadd.f32 %v11629_v20, %v5410_v26 }
 0x67b   :  { %5575 = vst [vmem:[%s11702_s7 + $0x28] sm:$0xff] %v5543_v36 }
 0x67c   :  { %v5460_v37 = vadd.f32 %v5459_v38, %v5411_v33 }
 0x680   :  { %v5545_v24 = vpop.f32.mrf.mxu3  ;;  %v5508_v25 = vpop.f32.mrf.mxu2 }
 0x681   :  { %v5546_v28 = vadd.f32 %v5545_v24, %v5497_v3  ;;  %v5413_v61 = vpop.f32.mrf.mxu0  ;;  %v5509_v17 = vadd.f32 %v5508_v25, %v5460_v37 }
 0x682   :  { %v5462_v29 = vpop.f32.mrf.mxu1  ;;  %v5414_v46 = vadd.f32 %v11629_v20, %v5413_v61 }
 0x683   :  { %5576 = vst [vmem:[%s11702_s7 + $0x30] sm:$0xff] %v5546_v28 }
 0x684   :  { %v5463_v57 = vadd.f32 %v5462_v29, %v5414_v46 }
 0x688   :  { %v5547_v5 = vpop.f32.mrf.mxu3  ;;  %v5511_v30 = vpop.f32.mrf.mxu2 }
 0x689   :  { %v5548_v2 = vadd.f32 %v5547_v5, %v5499_v21  ;;  %v5415_v62 = vpop.f32.mrf.mxu0  ;;  %v5512_v53 = vadd.f32 %v5511_v30, %v5463_v57 }
 0x68a   :  { %v5464_v7 = vpop.f32.mrf.mxu1  ;;  %v5416_v4 = vadd.f32 %v11629_v20, %v5415_v62 }
 0x68b   :  { %5577 = vst [vmem:[%s11702_s7 + $0x38] sm:$0xff] %v5548_v2 }
 0x68c   :  { %v5465_v45 = vadd.f32 %v5464_v7, %v5416_v4 }
 0x690   :  { %v5550_v16 = vpop.f32.mrf.mxu3  ;;  %v5513_v1 = vpop.f32.mrf.mxu2 }
 0x691   :  { %v5551_v18 = vadd.f32 %v5550_v16, %v5502_v51  ;;  %v5418_v11 = vpop.f32.mrf.mxu0  ;;  %v5514_v41 = vadd.f32 %v5513_v1, %v5465_v45 }
 0x692   :  { %v5419_v48 = vadd.f32 %v11629_v20, %v5418_v11  ;;  %v5467_v12 = vpop.f32.mrf.mxu1 }
 0x693   :  { %5578 = vst [vmem:[%s11702_s7 + $0x40] sm:$0xff] %v5551_v18 }
 0x694   :  { %v5468_v60 = vadd.f32 %v5467_v12, %v5419_v48 }
 0x698   :  { %v5552_v56 = vpop.f32.mrf.mxu3  ;;  %v5516_v9 = vpop.f32.mrf.mxu2 }
 0x699   :  { %v5553_v14 = vadd.f32 %v5552_v56, %v5504_v8  ;;  %v5420_v47 = vpop.f32.mrf.mxu0  ;;  %v5517_v36 = vadd.f32 %v5516_v9, %v5468_v60 }
 0x69a   :  { %v5421_v0 = vadd.f32 %v11629_v20, %v5420_v47  ;;  %v5469_v3 = vpop.f32.mrf.mxu1 }
 0x69b   :  { %5579 = vst [vmem:[%s11702_s7 + $0x48] sm:$0xff] %v5553_v14 }
 0x69c   :  { %v5470_v50 = vadd.f32 %v5469_v3, %v5421_v0 }
 0x6a0   :  { %v5555_v54 = vpop.f32.mrf.mxu3  ;;  %v5518_v24 = vpop.f32.mrf.mxu2 }
 0x6a1   :  { %v5556_v59 = vadd.f32 %v5555_v54, %v5507_v42  ;;  %v5519_v28 = vadd.f32 %v5518_v24, %v5470_v50 }
 0x6a3   :  { %5580 = vst [vmem:[%s11702_s7 + $0x50] sm:$0xff] %v5556_v59 }
 0x6a8   :  { %v5557_v10 = vpop.f32.mrf.mxu3 }
 0x6a9   :  { %v5558_v27 = vadd.f32 %v5557_v10, %v5509_v17 }
 0x6ab   :  { %5581 = vst [vmem:[%s11702_s7 + $0x58] sm:$0xff] %v5558_v27 }
 0x6b0   :  { %v5560_v6 = vpop.f32.mrf.mxu3 }
 0x6b1   :  { %v5561_v39 = vadd.f32 %v5560_v6, %v5512_v53 }
 0x6b3   :  { %5582 = vst [vmem:[%s11702_s7 + $0x60] sm:$0xff] %v5561_v39 }
 0x6b8   :  { %v5562_v23 = vpop.f32.mrf.mxu3 }
 0x6b9   :  { %v5563_v49 = vadd.f32 %v5562_v23, %v5514_v41 }
 0x6bb   :  { %5583 = vst [vmem:[%s11702_s7 + $0x68] sm:$0xff] %v5563_v49 }
 0x6c0   :  { %v5565_v19 = vpop.f32.mrf.mxu3 }
 0x6c1   :  { %v5566_v34 = vadd.f32 %v5565_v19, %v5517_v36 }
 0x6c3   :  { %5584 = vst [vmem:[%s11702_s7 + $0x70] sm:$0xff] %v5566_v34 }
 0x6c8   :  { %v5567_v63 = vpop.f32.mrf.mxu3 }
 0x6c9   :  { %v5568_v15 = vadd.f32 %v5567_v63, %v5519_v28 }
 0x6cb   :  { %5585 = vst [vmem:[%s11702_s7 + $0x78] sm:$0xff] %v5568_v15 }

</bundles_post_ra>
